<compile_context>
chip_gen: v6e
topology: v6e:2x2x1
jax: 0.10.0
libtpu: 0.0.40
codegen_flags: <defaults>
</compile_context>

<pallas_src>
import functools

import jax
import jax.numpy as jnp
from jax.experimental import pallas as pl
from jax.experimental.pallas import tpu as pltpu


# ----------------------------------------------------------------------------
# Helpers
# ----------------------------------------------------------------------------

@functools.lru_cache(maxsize=None)
def _vmem_limit_bytes():
    """Scoped-VMEM limit: ~40 MiB on 64-MiB-VMEM parts (v7x), 48 MiB otherwise."""
    try:
        cap = int(pltpu.get_tpu_info().vmem_capacity_bytes)
    except Exception:
        cap = 128 * 1024 * 1024
    return 40 * 1024 * 1024 if cap <= 64 * 1024 * 1024 else 48 * 1024 * 1024


def _pick_tile(n, target, align):
    """Largest divisor of n that is <= target and a multiple of `align`.

    Falls back to the full dimension (always a legal block size) when no
    aligned divisor exists below the target; fine for the shapes used here.
    """
    t = min(n, target)
    if t >= n:
        return n
    start = t - (t % align)
    for cand in range(start, 0, -align):
        if n % cand == 0:
            return cand
    return n


_SQRT_HALF = 0.7071067811865476


def _gelu_exact(x):
    """Exact (erf) GELU; erf via A&S 7.1.26 (|err| < 1.5e-7 -> f32-exact).

    Kept polynomial because lax.erf is not guaranteed to lower in Mosaic.
    Uses only VPU ops + one EUP exp, so it fuses cheaply into matmul epilogues.
    """
    z = x * _SQRT_HALF
    az = jnp.abs(z)
    t = 1.0 / (1.0 + 0.3275911 * az)
    poly = t * (0.254829592 + t * (-0.284496736 + t * (1.421413741
               + t * (-1.453152027 + t * 1.061405429))))
    erf_abs = 1.0 - poly * jnp.exp(-az * az)
    erf = jnp.where(z >= 0.0, erf_abs, -erf_abs)
    return 0.5 * x * (1.0 + erf)


# ----------------------------------------------------------------------------
# Pallas kernels
# ----------------------------------------------------------------------------

def _ln_linear_kernel(x_ref, g_ref, b_ref, w_ref, bias_ref, o_ref, xn_sc,
                      *, eps, act):
    """o = act(LayerNorm(x) @ W + bias) for one (tm, K) x (K, tn) tile.

    LayerNorm is computed once per row tile (j == 0) into a bf16 VMEM scratch
    and reused for every N tile; the matmul runs with bf16 operands on the MXU
    and accumulates in f32.
    """
    j = pl.program_id(1)

    @pl.when(j == 0)
    def _():
        x = x_ref[...].astype(jnp.float32)
        mean = jnp.mean(x, axis=-1, keepdims=True)
        var = jnp.mean(jnp.square(x - mean), axis=-1, keepdims=True)
        xn = (x - mean) * jax.lax.rsqrt(var + eps)
        xn = xn * g_ref[...] + b_ref[...]
        xn_sc[...] = xn.astype(xn_sc.dtype)

    acc = jnp.dot(xn_sc[...], w_ref[...].astype(jnp.bfloat16),
                  preferred_element_type=jnp.float32)
    acc = acc + bias_ref[...]
    if act == "gelu":
        acc = _gelu_exact(acc)
    o_ref[...] = acc.astype(o_ref.dtype)


def _linear_add_kernel(x_ref, w_ref, bias_ref, res_ref, o_ref):
    """o = x @ W + bias + residual (bf16 MXU operands, f32 accumulation)."""
    acc = jnp.dot(x_ref[...].astype(jnp.bfloat16),
                  w_ref[...].astype(jnp.bfloat16),
                  preferred_element_type=jnp.float32)
    o_ref[...] = (acc + bias_ref[...] + res_ref[...].astype(jnp.float32)
                  ).astype(o_ref.dtype)


def _flash_attn_kernel(q_ref, k_ref, v_ref, o_ref, m_sc, l_sc, acc_sc,
                       *, nh, hd):
    """Online-softmax attention for one (tq, D) query tile vs one (tk, D) kv tile.

    q/k/v are lane-dense (rows, D) views of the qkv buffer (scale already
    folded into the q projection weights).  Heads are handled with a static
    loop over hd-wide lane slices; QK / PV matmuls use bf16 operands with f32
    accumulation, all softmax bookkeeping stays in f32, and the output is
    written as a lane-dense (tq, D) tile in (B, S, nh*hd) layout.
    """
    ki = pl.program_id(2)

    @pl.when(ki == 0)
    def _():
        m_sc[...] = jnp.full(m_sc.shape, -jnp.inf, jnp.float32)
        l_sc[...] = jnp.zeros(l_sc.shape, jnp.float32)
        acc_sc[...] = jnp.zeros(acc_sc.shape, jnp.float32)

    for h in range(nh):                       # static unroll over heads
        sl = slice(h * hd, (h + 1) * hd)
        q_h = q_ref[:, sl]                    # (tq, hd) bf16
        k_h = k_ref[:, sl]                    # (tk, hd) bf16
        v_h = v_ref[:, sl]                    # (tk, hd) bf16

        # NT matmul: contract on the head dim of both operands (MXU handles
        # the implicit K transpose; no XLU transpose needed).
        s = jax.lax.dot_general(q_h, k_h, (((1,), (1,)), ((), ())),
                                preferred_element_type=jnp.float32)  # (tq, tk)

        m_prev = m_sc[h]                                       # (tq, 1)
        m_new = jnp.maximum(m_prev, jnp.max(s, axis=-1, keepdims=True))
        alpha = jnp.exp(m_prev - m_new)
        p = jnp.exp(s - m_new)
        l_sc[h] = alpha * l_sc[h] + jnp.sum(p, axis=-1, keepdims=True)
        acc_sc[h] = alpha * acc_sc[h] + jnp.dot(
            p.astype(v_h.dtype), v_h, preferred_element_type=jnp.float32)
        m_sc[h] = m_new

    @pl.when(ki == pl.num_programs(2) - 1)
    def _():
        for h in range(nh):
            sl = slice(h * hd, (h + 1) * hd)
            o_ref[:, sl] = (acc_sc[h] * pl.reciprocal(l_sc[h], approx=True)
                            ).astype(o_ref.dtype)


# ----------------------------------------------------------------------------
# Pallas wrappers
# ----------------------------------------------------------------------------

def fused_ln_linear(x2d, gamma, beta, w, bias, *, eps=1e-5, act=None,
                    out_dtype=jnp.bfloat16, tm_target=1024, tn_target=512):
    """act(LayerNorm(x2d) @ w + bias); x2d f32, w bf16, output `out_dtype`."""
    M, K = x2d.shape
    N = w.shape[1]
    tm = _pick_tile(M, tm_target, 8)
    tn = _pick_tile(N, tn_target, 128)
    kernel = functools.partial(_ln_linear_kernel, eps=eps, act=act)
    return pl.pallas_call(
        kernel,
        out_shape=jax.ShapeDtypeStruct((M, N), out_dtype),
        grid=(M // tm, N // tn),
        in_specs=[
            pl.BlockSpec((tm, K), lambda i, j: (i, 0)),
            pl.BlockSpec((1, K), lambda i, j: (0, 0)),
            pl.BlockSpec((1, K), lambda i, j: (0, 0)),
            pl.BlockSpec((K, tn), lambda i, j: (0, j)),
            pl.BlockSpec((1, tn), lambda i, j: (0, j)),
        ],
        out_specs=pl.BlockSpec((tm, tn), lambda i, j: (i, j)),
        scratch_shapes=[pltpu.VMEM((tm, K), jnp.bfloat16)],   # cached LN(x)
        compiler_params=pltpu.CompilerParams(
            # N axis is "arbitrary": the LN scratch carries state across it.
            dimension_semantics=("parallel", "arbitrary"),
            vmem_limit_bytes=_vmem_limit_bytes()),
    )(x2d, gamma.reshape(1, K).astype(jnp.float32),
      beta.reshape(1, K).astype(jnp.float32), w,
      bias.reshape(1, N).astype(jnp.float32))


def fused_linear_add(x2d, w, bias, res2d, *, tm_target=1024, tn_target=512):
    """x2d @ w + bias + res2d (residual add fused into the matmul epilogue)."""
    M, K = x2d.shape
    N = w.shape[1]
    tm = _pick_tile(M, tm_target, 8)
    tn = _pick_tile(N, tn_target, 128)
    return pl.pallas_call(
        _linear_add_kernel,
        out_shape=jax.ShapeDtypeStruct((M, N), jnp.float32),
        grid=(M // tm, N // tn),
        in_specs=[
            pl.BlockSpec((tm, K), lambda i, j: (i, 0)),
            pl.BlockSpec((K, tn), lambda i, j: (0, j)),
            pl.BlockSpec((1, tn), lambda i, j: (0, j)),
            pl.BlockSpec((tm, tn), lambda i, j: (i, j)),
        ],
        out_specs=pl.BlockSpec((tm, tn), lambda i, j: (i, j)),
        compiler_params=pltpu.CompilerParams(
            dimension_semantics=("parallel", "parallel"),
            vmem_limit_bytes=_vmem_limit_bytes()),
    )(x2d, w, bias.reshape(1, N).astype(jnp.float32), res2d)


def flash_attention(qkv, *, num_heads, tq_target=256, tk_target=512):
    """Global softmax attention reading q/k/v directly from the (B, S, 3D) qkv
    buffer and writing a lane-dense (B, S, D) output (no layout glue in XLA)."""
    B, S, threeD = qkv.shape
    D = threeD // 3
    assert 3 * D == threeD
    assert D % num_heads == 0
    hd = D // num_heads
    # Lane-dense column-block slicing of q/k/v requires D to be 128-aligned.
    assert D % 128 == 0, "flash_attention requires dim % 128 == 0"
    tq = _pick_tile(S, tq_target, 8)
    tk = _pick_tile(S, tk_target, 8)
    kernel = functools.partial(_flash_attn_kernel, nh=num_heads, hd=hd)
    q_spec = pl.BlockSpec((None, tq, D), lambda b, qi, ki: (b, qi, 0))
    k_spec = pl.BlockSpec((None, tk, D), lambda b, qi, ki: (b, ki, 1))
    v_spec = pl.BlockSpec((None, tk, D), lambda b, qi, ki: (b, ki, 2))
    return pl.pallas_call(
        kernel,
        out_shape=jax.ShapeDtypeStruct((B, S, D), qkv.dtype),
        grid=(B, S // tq, S // tk),
        in_specs=[q_spec, k_spec, v_spec],
        out_specs=pl.BlockSpec((None, tq, D), lambda b, qi, ki: (b, qi, 0)),
        scratch_shapes=[
            pltpu.VMEM((num_heads, tq, 1), jnp.float32),   # running max
            pltpu.VMEM((num_heads, tq, 1), jnp.float32),   # running sum
            pltpu.VMEM((num_heads, tq, hd), jnp.float32),  # output accumulator
        ],
        compiler_params=pltpu.CompilerParams(
            dimension_semantics=("parallel", "parallel", "arbitrary"),
            vmem_limit_bytes=_vmem_limit_bytes()),
    )(qkv, qkv, qkv)


# ----------------------------------------------------------------------------
# Parameters (deterministic, synthetic)
# ----------------------------------------------------------------------------

def init_block_params(key, *, dim, mlp_dim):
    ks = jax.random.split(key, 8)

    def w(k, shape):
        return 0.02 * jax.random.normal(k, shape, jnp.float32)

    return dict(
        ln1_g=jnp.ones((dim,), jnp.float32),
        ln1_b=jnp.zeros((dim,), jnp.float32),
        qkv_w=w(ks[0], (dim, 3 * dim)),
        qkv_b=0.01 * jax.random.normal(ks[1], (3 * dim,), jnp.float32),
        proj_w=w(ks[2], (dim, dim)),
        proj_b=0.01 * jax.random.normal(ks[3], (dim,), jnp.float32),
        ln2_g=jnp.ones((dim,), jnp.float32),
        ln2_b=jnp.zeros((dim,), jnp.float32),
        mlp1_w=w(ks[4], (dim, mlp_dim)),
        mlp1_b=0.01 * jax.random.normal(ks[5], (mlp_dim,), jnp.float32),
        mlp2_w=w(ks[6], (mlp_dim, dim)),
        mlp2_b=0.01 * jax.random.normal(ks[7], (dim,), jnp.float32),
    )


# ----------------------------------------------------------------------------
# Block forward (window_size=0 -> global attention, use_rel_pos=False)
# ----------------------------------------------------------------------------

def block_forward(x, params, *, num_heads, window_size=0, eps=1e-5):
    assert window_size == 0  # TODO(synk): window-attention path not implemented
    B, H, W, D = x.shape
    S = H * W
    nh = num_heads
    hd = D // nh
    scale = float(hd) ** (-0.5)

    x2d = x.reshape(B * S, D)                               # residual stream, f32

    # Fold the attention scale into the q-columns of the qkv projection
    # (one-time transform), then cast weights to bf16 for MXU / DMA.
    col_scale = jnp.concatenate([jnp.full((D,), scale, jnp.float32),
                                 jnp.ones((2 * D,), jnp.float32)])
    qkv_w = (params["qkv_w"] * col_scale[None, :]).astype(jnp.bfloat16)
    qkv_b = params["qkv_b"] * col_scale

    # ---- norm1 + qkv projection (fused, bf16 output) -------------------------
    qkv = fused_ln_linear(x2d, params["ln1_g"], params["ln1_b"], qkv_w, qkv_b,
                          eps=eps, out_dtype=jnp.bfloat16)   # (B*S, 3D) bf16
    qkv = qkv.reshape(B, S, 3 * D)                           # free reshape

    # ---- flash-style global attention (reads q/k/v via BlockSpec index maps,
    #      writes lane-dense (B, S, D); no XLA head transposes) ---------------
    attn = flash_attention(qkv, num_heads=nh)                # (B, S, D) bf16
    attn = attn.reshape(B * S, D)                            # free reshape

    # ---- output projection + residual (fused) --------------------------------
    x2 = fused_linear_add(attn, params["proj_w"].astype(jnp.bfloat16),
                          params["proj_b"], x2d)             # (B*S, D) f32

    # ---- norm2 + MLP (GELU fused into mlp1 epilogue) --------------------------
    h = fused_ln_linear(x2, params["ln2_g"], params["ln2_b"],
                        params["mlp1_w"].astype(jnp.bfloat16),
                        params["mlp1_b"], eps=eps, act="gelu",
                        out_dtype=jnp.bfloat16)              # (B*S, mlp) bf16
    out = fused_linear_add(h, params["mlp2_w"].astype(jnp.bfloat16),
                           params["mlp2_b"], x2)             # (B*S, D) f32

    return out.reshape(B, H, W, D)


# ----------------------------------------------------------------------------
# Pure-JAX reference (exact f32 semantics of the PyTorch Block)
# ----------------------------------------------------------------------------

def block_forward_reference(x, params, *, num_heads, eps=1e-5):
    B, H, W, D = x.shape
    S = H * W
    nh = num_heads
    hd = D // nh
    scale = float(hd) ** (-0.5)
    xf = x.reshape(B, S, D)

    def ln(v, g, b):
        mu = jnp.mean(v, -1, keepdims=True)
        var = jnp.mean(jnp.square(v - mu), -1, keepdims=True)
        return (v - mu) * jax.lax.rsqrt(var + eps) * g + b

    h1 = ln(xf, params["ln1_g"], params["ln1_b"])
    qkv = h1 @ params["qkv_w"] + params["qkv_b"]
    qkv = qkv.reshape(B, S, 3, nh, hd).transpose(2, 0, 3, 1, 4)
    q, k, v = qkv[0], qkv[1], qkv[2]
    attn = jax.nn.softmax((q * scale) @ jnp.swapaxes(k, -1, -2), axis=-1)
    o = (attn @ v).transpose(0, 2, 1, 3).reshape(B, S, D)
    o = o @ params["proj_w"] + params["proj_b"]
    x1 = xf + o
    h2 = ln(x1, params["ln2_g"], params["ln2_b"])
    m = jax.nn.gelu(h2 @ params["mlp1_w"] + params["mlp1_b"], approximate=False)
    x2 = x1 + m @ params["mlp2_w"] + params["mlp2_b"]
    return x2.reshape(B, H, W, D)


# ----------------------------------------------------------------------------
# Main
# ----------------------------------------------------------------------------

if __name__ == "__main__":
    # Small but constraint-respecting shapes: D % 128 == 0, S = H*W = 64.
    B, H, W = 2, 8, 8
    DIM, HEADS, MLP_RATIO = 128, 4, 4.0

    key = jax.random.PRNGKey(0)
    kx, kp = jax.random.split(key)
    x = jax.random.normal(kx, (B, H, W, DIM), jnp.float32)
    params = init_block_params(kp, dim=DIM, mlp_dim=int(DIM * MLP_RATIO))

    fwd = jax.jit(functools.partial(block_forward, num_heads=HEADS))
    out = jax.block_until_ready(fwd(x, params))

    assert out.shape == (B, H, W, DIM), out.shape
    assert bool(jnp.all(jnp.isfinite(out)))

    # Validate bf16-operand kernels against the f32 reference.
    ref = block_forward_reference(x, params, num_heads=HEADS)
    max_err = float(jnp.max(jnp.abs(out - ref)))
    assert max_err < 5e-2, f"max abs error vs reference = {max_err}"

    print("KERNEL_OK")
</pallas_src>

<mosaic_0001>
module attributes {stable_mosaic.version = 11 : i64} {
  func.func @_ln_linear_kernel(%arg0: i32, %arg1: i32, %arg2: memref<128x128xf32, #tpu.memory_space<vmem>>, %arg3: memref<1x128xf32, #tpu.memory_space<vmem>>, %arg4: memref<1x128xf32, #tpu.memory_space<vmem>>, %arg5: memref<128x384xbf16, #tpu.memory_space<vmem>>, %arg6: memref<1x384xf32, #tpu.memory_space<vmem>>, %arg7: memref<128x384xbf16, #tpu.memory_space<vmem>>, %arg8: memref<128x128xbf16, #tpu.memory_space<vmem>>) attributes {dimension_semantics = [#tpu.dimension_semantics<parallel>, #tpu.dimension_semantics<arbitrary>], iteration_bounds = array<i64: 1, 1>, scalar_prefetch = 0 : i64, scratch_operands = 1 : i64, tpu.core_type = #tpu.core_type<tc>, window_params = [{transform_indices = @transform_0, window_bounds = array<i64: 128, 128>}, {pipeline_mode = #tpu.pipeline_mode<synchronous>, transform_indices = @transform_1, window_bounds = array<i64: 1, 128>}, {pipeline_mode = #tpu.pipeline_mode<synchronous>, transform_indices = @transform_2, window_bounds = array<i64: 1, 128>}, {transform_indices = @transform_3, window_bounds = array<i64: 128, 384>}, {transform_indices = @transform_4, window_bounds = array<i64: 1, 384>}, {transform_indices = @transform_5, window_bounds = array<i64: 128, 384>}]} {
    %c0_i32 = arith.constant 0 : i32
    %0 = arith.cmpi eq, %arg1, %c0_i32 : i32
    %1 = arith.extui %0 : i1 to i32
    %c0_i32_0 = arith.constant 0 : i32
    %2 = arith.cmpi ne, %1, %c0_i32_0 : i32
    scf.if %2 {
      %c0_8 = arith.constant 0 : index
      %c0_9 = arith.constant 0 : index
      %11 = vector.load %arg2[%c0_8, %c0_9] : memref<128x128xf32, #tpu.memory_space<vmem>>, vector<128x128xf32>
      %cst_10 = arith.constant dense<0.000000e+00> : vector<128xf32>
      %12 = vector.multi_reduction <add>, %11, %cst_10 [1] : vector<128x128xf32> to vector<128xf32>
      %13 = vector.shape_cast %12 : vector<128xf32> to vector<128x1xf32>
      %cst_11 = arith.constant 1.280000e+02 : f32
      %14 = vector.broadcast %cst_11 : f32 to vector<128x1xf32>
      %15 = arith.divf %13, %14 : vector<128x1xf32>
      %16 = vector.broadcast %15 : vector<128x1xf32> to vector<128x128xf32>
      %17 = arith.subf %11, %16 : vector<128x128xf32>
      %18 = arith.mulf %17, %17 : vector<128x128xf32>
      %cst_12 = arith.constant dense<0.000000e+00> : vector<128xf32>
      %19 = vector.multi_reduction <add>, %18, %cst_12 [1] : vector<128x128xf32> to vector<128xf32>
      %20 = vector.shape_cast %19 : vector<128xf32> to vector<128x1xf32>
      %cst_13 = arith.constant 1.280000e+02 : f32
      %21 = vector.broadcast %cst_13 : f32 to vector<128x1xf32>
      %22 = arith.divf %20, %21 : vector<128x1xf32>
      %23 = vector.broadcast %15 : vector<128x1xf32> to vector<128x128xf32>
      %24 = arith.subf %11, %23 : vector<128x128xf32>
      %cst_14 = arith.constant 9.99999974E-6 : f32
      %25 = vector.broadcast %cst_14 : f32 to vector<128x1xf32>
      %26 = arith.addf %22, %25 : vector<128x1xf32>
      %27 = math.rsqrt %26 : vector<128x1xf32>
      %28 = vector.broadcast %27 : vector<128x1xf32> to vector<128x128xf32>
      %29 = arith.mulf %24, %28 : vector<128x128xf32>
      %c0_15 = arith.constant 0 : index
      %c0_16 = arith.constant 0 : index
      %30 = vector.load %arg3[%c0_15, %c0_16] : memref<1x128xf32, #tpu.memory_space<vmem>>, vector<1x128xf32>
      %31 = vector.broadcast %30 : vector<1x128xf32> to vector<128x128xf32>
      %32 = arith.mulf %29, %31 : vector<128x128xf32>
      %c0_17 = arith.constant 0 : index
      %c0_18 = arith.constant 0 : index
      %33 = vector.load %arg4[%c0_17, %c0_18] : memref<1x128xf32, #tpu.memory_space<vmem>>, vector<1x128xf32>
      %34 = vector.broadcast %33 : vector<1x128xf32> to vector<128x128xf32>
      %35 = arith.addf %32, %34 : vector<128x128xf32>
      %36 = arith.truncf %35 : vector<128x128xf32> to vector<128x128xbf16>
      %c0_19 = arith.constant 0 : index
      %c0_20 = arith.constant 0 : index
      %37 = vector.load %arg8[%c0_19, %c0_20] : memref<128x128xbf16, #tpu.memory_space<vmem>>, vector<128x128xbf16>
      tpu.vector_store %arg8[%c0_19, %c0_20], %36 {strides = array<i32>} : memref<128x128xbf16, #tpu.memory_space<vmem>>, vector<128x128xbf16>,
    } else {
    }
    %c0 = arith.constant 0 : index
    %c0_1 = arith.constant 0 : index
    %3 = vector.load %arg8[%c0, %c0_1] : memref<128x128xbf16, #tpu.memory_space<vmem>>, vector<128x128xbf16>
    %c0_2 = arith.constant 0 : index
    %c0_3 = arith.constant 0 : index
    %4 = vector.load %arg5[%c0_2, %c0_3] : memref<128x384xbf16, #tpu.memory_space<vmem>>, vector<128x384xbf16>
    %cst = arith.constant dense<0.000000e+00> : vector<128x384xf32>
    %5 = tpu.matmul %3, %4, %cst {dimension_numbers = #tpu.dot_dimension_numbers<[1], [0], [0], [1], [0, 0, 1, 1], [], []>} : vector<128x128xbf16>, vector<128x384xbf16>, vector<128x384xf32> -> vector<128x384xf32>
    %c0_4 = arith.constant 0 : index
    %c0_5 = arith.constant 0 : index
    %6 = vector.load %arg6[%c0_4, %c0_5] : memref<1x384xf32, #tpu.memory_space<vmem>>, vector<1x384xf32>
    %7 = vector.broadcast %6 : vector<1x384xf32> to vector<128x384xf32>
    %8 = arith.addf %5, %7 : vector<128x384xf32>
    %9 = arith.truncf %8 : vector<128x384xf32> to vector<128x384xbf16>
    %c0_6 = arith.constant 0 : index
    %c0_7 = arith.constant 0 : index
    %10 = vector.load %arg7[%c0_6, %c0_7] : memref<128x384xbf16, #tpu.memory_space<vmem>>, vector<128x384xbf16>
    tpu.vector_store %arg7[%c0_6, %c0_7], %9 {strides = array<i32>} : memref<128x384xbf16, #tpu.memory_space<vmem>>, vector<128x384xbf16>,
    return
  }
  func.func @transform_0(%arg0: i32, %arg1: i32) -> (i32, i32) {
    %c0_i32 = arith.constant 0 : i32
    %c0_i32_0 = arith.constant 0 : i32
    return %arg0, %c0_i32 : i32, i32
  }
  func.func @transform_1(%arg0: i32, %arg1: i32) -> (i32, i32) {
    %c0_i32 = arith.constant 0 : i32
    %c0_i32_0 = arith.constant 0 : i32
    %c0_i32_1 = arith.constant 0 : i32
    return %c0_i32, %c0_i32_0 : i32, i32
  }
  func.func @transform_2(%arg0: i32, %arg1: i32) -> (i32, i32) {
    %c0_i32 = arith.constant 0 : i32
    %c0_i32_0 = arith.constant 0 : i32
    %c0_i32_1 = arith.constant 0 : i32
    return %c0_i32, %c0_i32_0 : i32, i32
  }
  func.func @transform_3(%arg0: i32, %arg1: i32) -> (i32, i32) {
    %c0_i32 = arith.constant 0 : i32
    %c0_i32_0 = arith.constant 0 : i32
    return %c0_i32, %arg1 : i32, i32
  }
  func.func @transform_4(%arg0: i32, %arg1: i32) -> (i32, i32) {
    %c0_i32 = arith.constant 0 : i32
    %c0_i32_0 = arith.constant 0 : i32
    return %c0_i32, %arg1 : i32, i32
  }
  func.func @transform_5(%arg0: i32, %arg1: i32) -> (i32, i32) {
    %c0_i32 = arith.constant 0 : i32
    return %arg0, %arg1 : i32, i32
  }
}

module attributes {stable_mosaic.version = 11 : i64} {
  func.func @_linear_add_kernel(%arg0: i32, %arg1: i32, %arg2: memref<128x128xbf16, #tpu.memory_space<vmem>>, %arg3: memref<128x128xbf16, #tpu.memory_space<vmem>>, %arg4: memref<1x128xf32, #tpu.memory_space<vmem>>, %arg5: memref<128x128xf32, #tpu.memory_space<vmem>>, %arg6: memref<128x128xf32, #tpu.memory_space<vmem>>) attributes {dimension_semantics = [#tpu.dimension_semantics<parallel>, #tpu.dimension_semantics<parallel>], iteration_bounds = array<i64: 1, 1>, scalar_prefetch = 0 : i64, scratch_operands = 0 : i64, tpu.core_type = #tpu.core_type<tc>, window_params = [{transform_indices = @transform_0, window_bounds = array<i64: 128, 128>}, {transform_indices = @transform_1, window_bounds = array<i64: 128, 128>}, {transform_indices = @transform_2, window_bounds = array<i64: 1, 128>}, {transform_indices = @transform_3, window_bounds = array<i64: 128, 128>}, {transform_indices = @transform_4, window_bounds = array<i64: 128, 128>}]} {
    %c0 = arith.constant 0 : index
    %c0_0 = arith.constant 0 : index
    %0 = vector.load %arg2[%c0, %c0_0] : memref<128x128xbf16, #tpu.memory_space<vmem>>, vector<128x128xbf16>
    %c0_1 = arith.constant 0 : index
    %c0_2 = arith.constant 0 : index
    %1 = vector.load %arg3[%c0_1, %c0_2] : memref<128x128xbf16, #tpu.memory_space<vmem>>, vector<128x128xbf16>
    %cst = arith.constant dense<0.000000e+00> : vector<128x128xf32>
    %2 = tpu.matmul %0, %1, %cst {dimension_numbers = #tpu.dot_dimension_numbers<[1], [0], [0], [1], [0, 0, 1, 1], [], []>} : vector<128x128xbf16>, vector<128x128xbf16>, vector<128x128xf32> -> vector<128x128xf32>
    %c0_3 = arith.constant 0 : index
    %c0_4 = arith.constant 0 : index
    %3 = vector.load %arg4[%c0_3, %c0_4] : memref<1x128xf32, #tpu.memory_space<vmem>>, vector<1x128xf32>
    %4 = vector.broadcast %3 : vector<1x128xf32> to vector<128x128xf32>
    %5 = arith.addf %2, %4 : vector<128x128xf32>
    %c0_5 = arith.constant 0 : index
    %c0_6 = arith.constant 0 : index
    %6 = vector.load %arg5[%c0_5, %c0_6] : memref<128x128xf32, #tpu.memory_space<vmem>>, vector<128x128xf32>
    %7 = arith.addf %5, %6 : vector<128x128xf32>
    %c0_7 = arith.constant 0 : index
    %c0_8 = arith.constant 0 : index
    %8 = vector.load %arg6[%c0_7, %c0_8] : memref<128x128xf32, #tpu.memory_space<vmem>>, vector<128x128xf32>
    tpu.vector_store %arg6[%c0_7, %c0_8], %7 {strides = array<i32>} : memref<128x128xf32, #tpu.memory_space<vmem>>, vector<128x128xf32>,
    return
  }
  func.func @transform_0(%arg0: i32, %arg1: i32) -> (i32, i32) {
    %c0_i32 = arith.constant 0 : i32
    %c0_i32_0 = arith.constant 0 : i32
    return %arg0, %c0_i32 : i32, i32
  }
  func.func @transform_1(%arg0: i32, %arg1: i32) -> (i32, i32) {
    %c0_i32 = arith.constant 0 : i32
    %c0_i32_0 = arith.constant 0 : i32
    return %c0_i32, %arg1 : i32, i32
  }
  func.func @transform_2(%arg0: i32, %arg1: i32) -> (i32, i32) {
    %c0_i32 = arith.constant 0 : i32
    %c0_i32_0 = arith.constant 0 : i32
    return %c0_i32, %arg1 : i32, i32
  }
  func.func @transform_3(%arg0: i32, %arg1: i32) -> (i32, i32) {
    %c0_i32 = arith.constant 0 : i32
    return %arg0, %arg1 : i32, i32
  }
  func.func @transform_4(%arg0: i32, %arg1: i32) -> (i32, i32) {
    %c0_i32 = arith.constant 0 : i32
    return %arg0, %arg1 : i32, i32
  }
}

module attributes {stable_mosaic.version = 11 : i64} {
  func.func @_flash_attn_kernel(%arg0: i32, %arg1: i32, %arg2: i32, %arg3: memref<1x64x128xbf16, #tpu.memory_space<vmem>>, %arg4: memref<1x64x128xbf16, #tpu.memory_space<vmem>>, %arg5: memref<1x64x128xbf16, #tpu.memory_space<vmem>>, %arg6: memref<1x64x128xbf16, #tpu.memory_space<vmem>>, %arg7: memref<4x64x1xf32, #tpu.memory_space<vmem>>, %arg8: memref<4x64x1xf32, #tpu.memory_space<vmem>>, %arg9: memref<4x64x32xf32, #tpu.memory_space<vmem>>) attributes {dimension_semantics = [#tpu.dimension_semantics<parallel>, #tpu.dimension_semantics<parallel>, #tpu.dimension_semantics<arbitrary>], iteration_bounds = array<i64: 2, 1, 1>, scalar_prefetch = 0 : i64, scratch_operands = 3 : i64, tpu.core_type = #tpu.core_type<tc>, window_params = [{transform_indices = @transform_0, window_bounds = array<i64: 1, 64, 128>}, {transform_indices = @transform_1, window_bounds = array<i64: 1, 64, 128>}, {transform_indices = @transform_2, window_bounds = array<i64: 1, 64, 128>}, {transform_indices = @transform_3, window_bounds = array<i64: 1, 64, 128>}]} {
    %c0_i32 = arith.constant 0 : i32
    %0 = arith.cmpi eq, %arg2, %c0_i32 : i32
    %1 = arith.extui %0 : i1 to i32
    %c0_i32_0 = arith.constant 0 : i32
    %2 = arith.cmpi ne, %1, %c0_i32_0 : i32
    scf.if %2 {
      %cst_119 = arith.constant 0xFF800000 : f32
      %162 = vector.broadcast %cst_119 : f32 to vector<4x64x1xf32>
      %c0_120 = arith.constant 0 : index
      %c0_121 = arith.constant 0 : index
      %c0_122 = arith.constant 0 : index
      %163 = vector.load %arg7[%c0_120, %c0_121, %c0_122] : memref<4x64x1xf32, #tpu.memory_space<vmem>>, vector<4x64x1xf32>
      tpu.vector_store %arg7[%c0_120, %c0_121, %c0_122], %162 {strides = array<i32>} : memref<4x64x1xf32, #tpu.memory_space<vmem>>, vector<4x64x1xf32>,
      %cst_123 = arith.constant 0.000000e+00 : f32
      %164 = vector.broadcast %cst_123 : f32 to vector<4x64x1xf32>
      %c0_124 = arith.constant 0 : index
      %c0_125 = arith.constant 0 : index
      %c0_126 = arith.constant 0 : index
      %165 = vector.load %arg8[%c0_124, %c0_125, %c0_126] : memref<4x64x1xf32, #tpu.memory_space<vmem>>, vector<4x64x1xf32>
      tpu.vector_store %arg8[%c0_124, %c0_125, %c0_126], %164 {strides = array<i32>} : memref<4x64x1xf32, #tpu.memory_space<vmem>>, vector<4x64x1xf32>,
      %cst_127 = arith.constant 0.000000e+00 : f32
      %166 = vector.broadcast %cst_127 : f32 to vector<4x64x32xf32>
      %c0_128 = arith.constant 0 : index
      %c0_129 = arith.constant 0 : index
      %c0_130 = arith.constant 0 : index
      %167 = vector.load %arg9[%c0_128, %c0_129, %c0_130] : memref<4x64x32xf32, #tpu.memory_space<vmem>>, vector<4x64x32xf32>
      tpu.vector_store %arg9[%c0_128, %c0_129, %c0_130], %166 {strides = array<i32>} : memref<4x64x32xf32, #tpu.memory_space<vmem>>, vector<4x64x32xf32>,
    } else {
    }
    %c0 = arith.constant 0 : index
    %c0_1 = arith.constant 0 : index
    %c0_2 = arith.constant 0 : index
    %3 = vector.load %arg3[%c0, %c0_1, %c0_2] : memref<1x64x128xbf16, #tpu.memory_space<vmem>>, vector<1x64x32xbf16>
    %4 = vector.shape_cast %3 : vector<1x64x32xbf16> to vector<64x32xbf16>
    %c0_3 = arith.constant 0 : index
    %c0_4 = arith.constant 0 : index
    %c0_5 = arith.constant 0 : index
    %5 = vector.load %arg4[%c0_3, %c0_4, %c0_5] : memref<1x64x128xbf16, #tpu.memory_space<vmem>>, vector<1x64x32xbf16>
    %6 = vector.shape_cast %5 : vector<1x64x32xbf16> to vector<64x32xbf16>
    %c0_6 = arith.constant 0 : index
    %c0_7 = arith.constant 0 : index
    %c0_8 = arith.constant 0 : index
    %7 = vector.load %arg5[%c0_6, %c0_7, %c0_8] : memref<1x64x128xbf16, #tpu.memory_space<vmem>>, vector<1x64x32xbf16>
    %8 = vector.shape_cast %7 : vector<1x64x32xbf16> to vector<64x32xbf16>
    %cst = arith.constant dense<0.000000e+00> : vector<64x64xf32>
    %9 = tpu.matmul %4, %6, %cst {dimension_numbers = #tpu.dot_dimension_numbers<[1], [1], [0], [0], [0, 0, 1, 0], [], []>} : vector<64x32xbf16>, vector<64x32xbf16>, vector<64x64xf32> -> vector<64x64xf32>
    %c0_9 = arith.constant 0 : index
    %c0_10 = arith.constant 0 : index
    %c0_11 = arith.constant 0 : index
    %10 = vector.load %arg7[%c0_9, %c0_10, %c0_11] : memref<4x64x1xf32, #tpu.memory_space<vmem>>, vector<1x64x1xf32>
    %11 = vector.shape_cast %10 : vector<1x64x1xf32> to vector<64x1xf32>
    %cst_12 = arith.constant dense<0xFF800000> : vector<64xf32>
    %12 = vector.multi_reduction <maximumf>, %9, %cst_12 [1] : vector<64x64xf32> to vector<64xf32>
    %13 = vector.shape_cast %12 : vector<64xf32> to vector<64x1xf32>
    %14 = arith.maximumf %11, %13 : vector<64x1xf32>
    %15 = arith.subf %11, %14 : vector<64x1xf32>
    %16 = math.exp %15 : vector<64x1xf32>
    %17 = vector.broadcast %14 : vector<64x1xf32> to vector<64x64xf32>
    %18 = arith.subf %9, %17 : vector<64x64xf32>
    %19 = math.exp %18 : vector<64x64xf32>
    %c0_13 = arith.constant 0 : index
    %c0_14 = arith.constant 0 : index
    %c0_15 = arith.constant 0 : index
    %20 = vector.load %arg8[%c0_13, %c0_14, %c0_15] : memref<4x64x1xf32, #tpu.memory_space<vmem>>, vector<1x64x1xf32>
    %21 = vector.shape_cast %20 : vector<1x64x1xf32> to vector<64x1xf32>
    %22 = arith.mulf %16, %21 : vector<64x1xf32>
    %cst_16 = arith.constant dense<0.000000e+00> : vector<64xf32>
    %23 = vector.multi_reduction <add>, %19, %cst_16 [1] : vector<64x64xf32> to vector<64xf32>
    %24 = vector.shape_cast %23 : vector<64xf32> to vector<64x1xf32>
    %25 = arith.addf %22, %24 : vector<64x1xf32>
    %c0_17 = arith.constant 0 : index
    %c0_18 = arith.constant 0 : index
    %c0_19 = arith.constant 0 : index
    %26 = vector.load %arg8[%c0_17, %c0_18, %c0_19] : memref<4x64x1xf32, #tpu.memory_space<vmem>>, vector<1x64x1xf32>
    %27 = vector.shape_cast %26 : vector<1x64x1xf32> to vector<64x1xf32>
    %28 = vector.shape_cast %25 : vector<64x1xf32> to vector<1x64x1xf32>
    tpu.vector_store %arg8[%c0_17, %c0_18, %c0_19], %28 {strides = array<i32>} : memref<4x64x1xf32, #tpu.memory_space<vmem>>, vector<1x64x1xf32>,
    %c0_20 = arith.constant 0 : index
    %c0_21 = arith.constant 0 : index
    %c0_22 = arith.constant 0 : index
    %29 = vector.load %arg9[%c0_20, %c0_21, %c0_22] : memref<4x64x32xf32, #tpu.memory_space<vmem>>, vector<1x64x32xf32>
    %30 = vector.shape_cast %29 : vector<1x64x32xf32> to vector<64x32xf32>
    %31 = vector.broadcast %16 : vector<64x1xf32> to vector<64x32xf32>
    %32 = arith.mulf %31, %30 : vector<64x32xf32>
    %33 = arith.truncf %19 : vector<64x64xf32> to vector<64x64xbf16>
    %cst_23 = arith.constant dense<0.000000e+00> : vector<64x32xf32>
    %34 = tpu.matmul %33, %8, %cst_23 {dimension_numbers = #tpu.dot_dimension_numbers<[1], [0], [0], [1], [0, 0, 1, 1], [], []>} : vector<64x64xbf16>, vector<64x32xbf16>, vector<64x32xf32> -> vector<64x32xf32>
    %35 = arith.addf %32, %34 : vector<64x32xf32>
    %c0_24 = arith.constant 0 : index
    %c0_25 = arith.constant 0 : index
    %c0_26 = arith.constant 0 : index
    %36 = vector.load %arg9[%c0_24, %c0_25, %c0_26] : memref<4x64x32xf32, #tpu.memory_space<vmem>>, vector<1x64x32xf32>
    %37 = vector.shape_cast %36 : vector<1x64x32xf32> to vector<64x32xf32>
    %38 = vector.shape_cast %35 : vector<64x32xf32> to vector<1x64x32xf32>
    tpu.vector_store %arg9[%c0_24, %c0_25, %c0_26], %38 {strides = array<i32>} : memref<4x64x32xf32, #tpu.memory_space<vmem>>, vector<1x64x32xf32>,
    %c0_27 = arith.constant 0 : index
    %c0_28 = arith.constant 0 : index
    %c0_29 = arith.constant 0 : index
    %39 = vector.load %arg7[%c0_27, %c0_28, %c0_29] : memref<4x64x1xf32, #tpu.memory_space<vmem>>, vector<1x64x1xf32>
    %40 = vector.shape_cast %39 : vector<1x64x1xf32> to vector<64x1xf32>
    %41 = vector.shape_cast %14 : vector<64x1xf32> to vector<1x64x1xf32>
    tpu.vector_store %arg7[%c0_27, %c0_28, %c0_29], %41 {strides = array<i32>} : memref<4x64x1xf32, #tpu.memory_space<vmem>>, vector<1x64x1xf32>,
    %c0_30 = arith.constant 0 : index
    %c0_31 = arith.constant 0 : index
    %c32 = arith.constant 32 : index
    %42 = vector.load %arg3[%c0_30, %c0_31, %c32] : memref<1x64x128xbf16, #tpu.memory_space<vmem>>, vector<1x64x32xbf16>
    %43 = vector.shape_cast %42 : vector<1x64x32xbf16> to vector<64x32xbf16>
    %c0_32 = arith.constant 0 : index
    %c0_33 = arith.constant 0 : index
    %c32_34 = arith.constant 32 : index
    %44 = vector.load %arg4[%c0_32, %c0_33, %c32_34] : memref<1x64x128xbf16, #tpu.memory_space<vmem>>, vector<1x64x32xbf16>
    %45 = vector.shape_cast %44 : vector<1x64x32xbf16> to vector<64x32xbf16>
    %c0_35 = arith.constant 0 : index
    %c0_36 = arith.constant 0 : index
    %c32_37 = arith.constant 32 : index
    %46 = vector.load %arg5[%c0_35, %c0_36, %c32_37] : memref<1x64x128xbf16, #tpu.memory_space<vmem>>, vector<1x64x32xbf16>
    %47 = vector.shape_cast %46 : vector<1x64x32xbf16> to vector<64x32xbf16>
    %cst_38 = arith.constant dense<0.000000e+00> : vector<64x64xf32>
    %48 = tpu.matmul %43, %45, %cst_38 {dimension_numbers = #tpu.dot_dimension_numbers<[1], [1], [0], [0], [0, 0, 1, 0], [], []>} : vector<64x32xbf16>, vector<64x32xbf16>, vector<64x64xf32> -> vector<64x64xf32>
    %c1 = arith.constant 1 : index
    %c0_39 = arith.constant 0 : index
    %c0_40 = arith.constant 0 : index
    %49 = vector.load %arg7[%c1, %c0_39, %c0_40] : memref<4x64x1xf32, #tpu.memory_space<vmem>>, vector<1x64x1xf32>
    %50 = vector.shape_cast %49 : vector<1x64x1xf32> to vector<64x1xf32>
    %cst_41 = arith.constant dense<0xFF800000> : vector<64xf32>
    %51 = vector.multi_reduction <maximumf>, %48, %cst_41 [1] : vector<64x64xf32> to vector<64xf32>
    %52 = vector.shape_cast %51 : vector<64xf32> to vector<64x1xf32>
    %53 = arith.maximumf %50, %52 : vector<64x1xf32>
    %54 = arith.subf %50, %53 : vector<64x1xf32>
    %55 = math.exp %54 : vector<64x1xf32>
    %56 = vector.broadcast %53 : vector<64x1xf32> to vector<64x64xf32>
    %57 = arith.subf %48, %56 : vector<64x64xf32>
    %58 = math.exp %57 : vector<64x64xf32>
    %c1_42 = arith.constant 1 : index
    %c0_43 = arith.constant 0 : index
    %c0_44 = arith.constant 0 : index
    %59 = vector.load %arg8[%c1_42, %c0_43, %c0_44] : memref<4x64x1xf32, #tpu.memory_space<vmem>>, vector<1x64x1xf32>
    %60 = vector.shape_cast %59 : vector<1x64x1xf32> to vector<64x1xf32>
    %61 = arith.mulf %55, %60 : vector<64x1xf32>
    %cst_45 = arith.constant dense<0.000000e+00> : vector<64xf32>
    %62 = vector.multi_reduction <add>, %58, %cst_45 [1] : vector<64x64xf32> to vector<64xf32>
    %63 = vector.shape_cast %62 : vector<64xf32> to vector<64x1xf32>
    %64 = arith.addf %61, %63 : vector<64x1xf32>
    %c1_46 = arith.constant 1 : index
    %c0_47 = arith.constant 0 : index
    %c0_48 = arith.constant 0 : index
    %65 = vector.load %arg8[%c1_46, %c0_47, %c0_48] : memref<4x64x1xf32, #tpu.memory_space<vmem>>, vector<1x64x1xf32>
    %66 = vector.shape_cast %65 : vector<1x64x1xf32> to vector<64x1xf32>
    %67 = vector.shape_cast %64 : vector<64x1xf32> to vector<1x64x1xf32>
    tpu.vector_store %arg8[%c1_46, %c0_47, %c0_48], %67 {strides = array<i32>} : memref<4x64x1xf32, #tpu.memory_space<vmem>>, vector<1x64x1xf32>,
    %c1_49 = arith.constant 1 : index
    %c0_50 = arith.constant 0 : index
    %c0_51 = arith.constant 0 : index
    %68 = vector.load %arg9[%c1_49, %c0_50, %c0_51] : memref<4x64x32xf32, #tpu.memory_space<vmem>>, vector<1x64x32xf32>
    %69 = vector.shape_cast %68 : vector<1x64x32xf32> to vector<64x32xf32>
    %70 = vector.broadcast %55 : vector<64x1xf32> to vector<64x32xf32>
    %71 = arith.mulf %70, %69 : vector<64x32xf32>
    %72 = arith.truncf %58 : vector<64x64xf32> to vector<64x64xbf16>
    %cst_52 = arith.constant dense<0.000000e+00> : vector<64x32xf32>
    %73 = tpu.matmul %72, %47, %cst_52 {dimension_numbers = #tpu.dot_dimension_numbers<[1], [0], [0], [1], [0, 0, 1, 1], [], []>} : vector<64x64xbf16>, vector<64x32xbf16>, vector<64x32xf32> -> vector<64x32xf32>
    %74 = arith.addf %71, %73 : vector<64x32xf32>
    %c1_53 = arith.constant 1 : index
    %c0_54 = arith.constant 0 : index
    %c0_55 = arith.constant 0 : index
    %75 = vector.load %arg9[%c1_53, %c0_54, %c0_55] : memref<4x64x32xf32, #tpu.memory_space<vmem>>, vector<1x64x32xf32>
    %76 = vector.shape_cast %75 : vector<1x64x32xf32> to vector<64x32xf32>
    %77 = vector.shape_cast %74 : vector<64x32xf32> to vector<1x64x32xf32>
    tpu.vector_store %arg9[%c1_53, %c0_54, %c0_55], %77 {strides = array<i32>} : memref<4x64x32xf32, #tpu.memory_space<vmem>>, vector<1x64x32xf32>,
    %c1_56 = arith.constant 1 : index
    %c0_57 = arith.constant 0 : index
    %c0_58 = arith.constant 0 : index
    %78 = vector.load %arg7[%c1_56, %c0_57, %c0_58] : memref<4x64x1xf32, #tpu.memory_space<vmem>>, vector<1x64x1xf32>
    %79 = vector.shape_cast %78 : vector<1x64x1xf32> to vector<64x1xf32>
    %80 = vector.shape_cast %53 : vector<64x1xf32> to vector<1x64x1xf32>
    tpu.vector_store %arg7[%c1_56, %c0_57, %c0_58], %80 {strides = array<i32>} : memref<4x64x1xf32, #tpu.memory_space<vmem>>, vector<1x64x1xf32>,
    %c0_59 = arith.constant 0 : index
    %c0_60 = arith.constant 0 : index
    %c64 = arith.constant 64 : index
    %81 = vector.load %arg3[%c0_59, %c0_60, %c64] : memref<1x64x128xbf16, #tpu.memory_space<vmem>>, vector<1x64x32xbf16>
    %82 = vector.shape_cast %81 : vector<1x64x32xbf16> to vector<64x32xbf16>
    %c0_61 = arith.constant 0 : index
    %c0_62 = arith.constant 0 : index
    %c64_63 = arith.constant 64 : index
    %83 = vector.load %arg4[%c0_61, %c0_62, %c64_63] : memref<1x64x128xbf16, #tpu.memory_space<vmem>>, vector<1x64x32xbf16>
    %84 = vector.shape_cast %83 : vector<1x64x32xbf16> to vector<64x32xbf16>
    %c0_64 = arith.constant 0 : index
    %c0_65 = arith.constant 0 : index
    %c64_66 = arith.constant 64 : index
    %85 = vector.load %arg5[%c0_64, %c0_65, %c64_66] : memref<1x64x128xbf16, #tpu.memory_space<vmem>>, vector<1x64x32xbf16>
    %86 = vector.shape_cast %85 : vector<1x64x32xbf16> to vector<64x32xbf16>
    %cst_67 = arith.constant dense<0.000000e+00> : vector<64x64xf32>
    %87 = tpu.matmul %82, %84, %cst_67 {dimension_numbers = #tpu.dot_dimension_numbers<[1], [1], [0], [0], [0, 0, 1, 0], [], []>} : vector<64x32xbf16>, vector<64x32xbf16>, vector<64x64xf32> -> vector<64x64xf32>
    %c2 = arith.constant 2 : index
    %c0_68 = arith.constant 0 : index
    %c0_69 = arith.constant 0 : index
    %88 = vector.load %arg7[%c2, %c0_68, %c0_69] : memref<4x64x1xf32, #tpu.memory_space<vmem>>, vector<1x64x1xf32>
    %89 = vector.shape_cast %88 : vector<1x64x1xf32> to vector<64x1xf32>
    %cst_70 = arith.constant dense<0xFF800000> : vector<64xf32>
    %90 = vector.multi_reduction <maximumf>, %87, %cst_70 [1] : vector<64x64xf32> to vector<64xf32>
    %91 = vector.shape_cast %90 : vector<64xf32> to vector<64x1xf32>
    %92 = arith.maximumf %89, %91 : vector<64x1xf32>
    %93 = arith.subf %89, %92 : vector<64x1xf32>
    %94 = math.exp %93 : vector<64x1xf32>
    %95 = vector.broadcast %92 : vector<64x1xf32> to vector<64x64xf32>
    %96 = arith.subf %87, %95 : vector<64x64xf32>
    %97 = math.exp %96 : vector<64x64xf32>
    %c2_71 = arith.constant 2 : index
    %c0_72 = arith.constant 0 : index
    %c0_73 = arith.constant 0 : index
    %98 = vector.load %arg8[%c2_71, %c0_72, %c0_73] : memref<4x64x1xf32, #tpu.memory_space<vmem>>, vector<1x64x1xf32>
    %99 = vector.shape_cast %98 : vector<1x64x1xf32> to vector<64x1xf32>
    %100 = arith.mulf %94, %99 : vector<64x1xf32>
    %cst_74 = arith.constant dense<0.000000e+00> : vector<64xf32>
    %101 = vector.multi_reduction <add>, %97, %cst_74 [1] : vector<64x64xf32> to vector<64xf32>
    %102 = vector.shape_cast %101 : vector<64xf32> to vector<64x1xf32>
    %103 = arith.addf %100, %102 : vector<64x1xf32>
    %c2_75 = arith.constant 2 : index
    %c0_76 = arith.constant 0 : index
    %c0_77 = arith.constant 0 : index
    %104 = vector.load %arg8[%c2_75, %c0_76, %c0_77] : memref<4x64x1xf32, #tpu.memory_space<vmem>>, vector<1x64x1xf32>
    %105 = vector.shape_cast %104 : vector<1x64x1xf32> to vector<64x1xf32>
    %106 = vector.shape_cast %103 : vector<64x1xf32> to vector<1x64x1xf32>
    tpu.vector_store %arg8[%c2_75, %c0_76, %c0_77], %106 {strides = array<i32>} : memref<4x64x1xf32, #tpu.memory_space<vmem>>, vector<1x64x1xf32>,
    %c2_78 = arith.constant 2 : index
    %c0_79 = arith.constant 0 : index
    %c0_80 = arith.constant 0 : index
    %107 = vector.load %arg9[%c2_78, %c0_79, %c0_80] : memref<4x64x32xf32, #tpu.memory_space<vmem>>, vector<1x64x32xf32>
    %108 = vector.shape_cast %107 : vector<1x64x32xf32> to vector<64x32xf32>
    %109 = vector.broadcast %94 : vector<64x1xf32> to vector<64x32xf32>
    %110 = arith.mulf %109, %108 : vector<64x32xf32>
    %111 = arith.truncf %97 : vector<64x64xf32> to vector<64x64xbf16>
    %cst_81 = arith.constant dense<0.000000e+00> : vector<64x32xf32>
    %112 = tpu.matmul %111, %86, %cst_81 {dimension_numbers = #tpu.dot_dimension_numbers<[1], [0], [0], [1], [0, 0, 1, 1], [], []>} : vector<64x64xbf16>, vector<64x32xbf16>, vector<64x32xf32> -> vector<64x32xf32>
    %113 = arith.addf %110, %112 : vector<64x32xf32>
    %c2_82 = arith.constant 2 : index
    %c0_83 = arith.constant 0 : index
    %c0_84 = arith.constant 0 : index
    %114 = vector.load %arg9[%c2_82, %c0_83, %c0_84] : memref<4x64x32xf32, #tpu.memory_space<vmem>>, vector<1x64x32xf32>
    %115 = vector.shape_cast %114 : vector<1x64x32xf32> to vector<64x32xf32>
    %116 = vector.shape_cast %113 : vector<64x32xf32> to vector<1x64x32xf32>
    tpu.vector_store %arg9[%c2_82, %c0_83, %c0_84], %116 {strides = array<i32>} : memref<4x64x32xf32, #tpu.memory_space<vmem>>, vector<1x64x32xf32>,
    %c2_85 = arith.constant 2 : index
    %c0_86 = arith.constant 0 : index
    %c0_87 = arith.constant 0 : index
    %117 = vector.load %arg7[%c2_85, %c0_86, %c0_87] : memref<4x64x1xf32, #tpu.memory_space<vmem>>, vector<1x64x1xf32>
    %118 = vector.shape_cast %117 : vector<1x64x1xf32> to vector<64x1xf32>
    %119 = vector.shape_cast %92 : vector<64x1xf32> to vector<1x64x1xf32>
    tpu.vector_store %arg7[%c2_85, %c0_86, %c0_87], %119 {strides = array<i32>} : memref<4x64x1xf32, #tpu.memory_space<vmem>>, vector<1x64x1xf32>,
    %c0_88 = arith.constant 0 : index
    %c0_89 = arith.constant 0 : index
    %c96 = arith.constant 96 : index
    %120 = vector.load %arg3[%c0_88, %c0_89, %c96] : memref<1x64x128xbf16, #tpu.memory_space<vmem>>, vector<1x64x32xbf16>
    %121 = vector.shape_cast %120 : vector<1x64x32xbf16> to vector<64x32xbf16>
    %c0_90 = arith.constant 0 : index
    %c0_91 = arith.constant 0 : index
    %c96_92 = arith.constant 96 : index
    %122 = vector.load %arg4[%c0_90, %c0_91, %c96_92] : memref<1x64x128xbf16, #tpu.memory_space<vmem>>, vector<1x64x32xbf16>
    %123 = vector.shape_cast %122 : vector<1x64x32xbf16> to vector<64x32xbf16>
    %c0_93 = arith.constant 0 : index
    %c0_94 = arith.constant 0 : index
    %c96_95 = arith.constant 96 : index
    %124 = vector.load %arg5[%c0_93, %c0_94, %c96_95] : memref<1x64x128xbf16, #tpu.memory_space<vmem>>, vector<1x64x32xbf16>
    %125 = vector.shape_cast %124 : vector<1x64x32xbf16> to vector<64x32xbf16>
    %cst_96 = arith.constant dense<0.000000e+00> : vector<64x64xf32>
    %126 = tpu.matmul %121, %123, %cst_96 {dimension_numbers = #tpu.dot_dimension_numbers<[1], [1], [0], [0], [0, 0, 1, 0], [], []>} : vector<64x32xbf16>, vector<64x32xbf16>, vector<64x64xf32> -> vector<64x64xf32>
    %c3 = arith.constant 3 : index
    %c0_97 = arith.constant 0 : index
    %c0_98 = arith.constant 0 : index
    %127 = vector.load %arg7[%c3, %c0_97, %c0_98] : memref<4x64x1xf32, #tpu.memory_space<vmem>>, vector<1x64x1xf32>
    %128 = vector.shape_cast %127 : vector<1x64x1xf32> to vector<64x1xf32>
    %cst_99 = arith.constant dense<0xFF800000> : vector<64xf32>
    %129 = vector.multi_reduction <maximumf>, %126, %cst_99 [1] : vector<64x64xf32> to vector<64xf32>
    %130 = vector.shape_cast %129 : vector<64xf32> to vector<64x1xf32>
    %131 = arith.maximumf %128, %130 : vector<64x1xf32>
    %132 = arith.subf %128, %131 : vector<64x1xf32>
    %133 = math.exp %132 : vector<64x1xf32>
    %134 = vector.broadcast %131 : vector<64x1xf32> to vector<64x64xf32>
    %135 = arith.subf %126, %134 : vector<64x64xf32>
    %136 = math.exp %135 : vector<64x64xf32>
    %c3_100 = arith.constant 3 : index
    %c0_101 = arith.constant 0 : index
    %c0_102 = arith.constant 0 : index
    %137 = vector.load %arg8[%c3_100, %c0_101, %c0_102] : memref<4x64x1xf32, #tpu.memory_space<vmem>>, vector<1x64x1xf32>
    %138 = vector.shape_cast %137 : vector<1x64x1xf32> to vector<64x1xf32>
    %139 = arith.mulf %133, %138 : vector<64x1xf32>
    %cst_103 = arith.constant dense<0.000000e+00> : vector<64xf32>
    %140 = vector.multi_reduction <add>, %136, %cst_103 [1] : vector<64x64xf32> to vector<64xf32>
    %141 = vector.shape_cast %140 : vector<64xf32> to vector<64x1xf32>
    %142 = arith.addf %139, %141 : vector<64x1xf32>
    %c3_104 = arith.constant 3 : index
    %c0_105 = arith.constant 0 : index
    %c0_106 = arith.constant 0 : index
    %143 = vector.load %arg8[%c3_104, %c0_105, %c0_106] : memref<4x64x1xf32, #tpu.memory_space<vmem>>, vector<1x64x1xf32>
    %144 = vector.shape_cast %143 : vector<1x64x1xf32> to vector<64x1xf32>
    %145 = vector.shape_cast %142 : vector<64x1xf32> to vector<1x64x1xf32>
    tpu.vector_store %arg8[%c3_104, %c0_105, %c0_106], %145 {strides = array<i32>} : memref<4x64x1xf32, #tpu.memory_space<vmem>>, vector<1x64x1xf32>,
    %c3_107 = arith.constant 3 : index
    %c0_108 = arith.constant 0 : index
    %c0_109 = arith.constant 0 : index
    %146 = vector.load %arg9[%c3_107, %c0_108, %c0_109] : memref<4x64x32xf32, #tpu.memory_space<vmem>>, vector<1x64x32xf32>
    %147 = vector.shape_cast %146 : vector<1x64x32xf32> to vector<64x32xf32>
    %148 = vector.broadcast %133 : vector<64x1xf32> to vector<64x32xf32>
    %149 = arith.mulf %148, %147 : vector<64x32xf32>
    %150 = arith.truncf %136 : vector<64x64xf32> to vector<64x64xbf16>
    %cst_110 = arith.constant dense<0.000000e+00> : vector<64x32xf32>
    %151 = tpu.matmul %150, %125, %cst_110 {dimension_numbers = #tpu.dot_dimension_numbers<[1], [0], [0], [1], [0, 0, 1, 1], [], []>} : vector<64x64xbf16>, vector<64x32xbf16>, vector<64x32xf32> -> vector<64x32xf32>
    %152 = arith.addf %149, %151 : vector<64x32xf32>
    %c3_111 = arith.constant 3 : index
    %c0_112 = arith.constant 0 : index
    %c0_113 = arith.constant 0 : index
    %153 = vector.load %arg9[%c3_111, %c0_112, %c0_113] : memref<4x64x32xf32, #tpu.memory_space<vmem>>, vector<1x64x32xf32>
    %154 = vector.shape_cast %153 : vector<1x64x32xf32> to vector<64x32xf32>
    %155 = vector.shape_cast %152 : vector<64x32xf32> to vector<1x64x32xf32>
    tpu.vector_store %arg9[%c3_111, %c0_112, %c0_113], %155 {strides = array<i32>} : memref<4x64x32xf32, #tpu.memory_space<vmem>>, vector<1x64x32xf32>,
    %c3_114 = arith.constant 3 : index
    %c0_115 = arith.constant 0 : index
    %c0_116 = arith.constant 0 : index
    %156 = vector.load %arg7[%c3_114, %c0_115, %c0_116] : memref<4x64x1xf32, #tpu.memory_space<vmem>>, vector<1x64x1xf32>
    %157 = vector.shape_cast %156 : vector<1x64x1xf32> to vector<64x1xf32>
    %158 = vector.shape_cast %131 : vector<64x1xf32> to vector<1x64x1xf32>
    tpu.vector_store %arg7[%c3_114, %c0_115, %c0_116], %158 {strides = array<i32>} : memref<4x64x1xf32, #tpu.memory_space<vmem>>, vector<1x64x1xf32>,
    %c0_i32_117 = arith.constant 0 : i32
    %159 = arith.cmpi eq, %arg2, %c0_i32_117 : i32
    %160 = arith.extui %159 : i1 to i32
    %c0_i32_118 = arith.constant 0 : i32
    %161 = arith.cmpi ne, %160, %c0_i32_118 : i32
    scf.if %161 {
      %c0_119 = arith.constant 0 : index
      %c0_120 = arith.constant 0 : index
      %c0_121 = arith.constant 0 : index
      %162 = vector.load %arg9[%c0_119, %c0_120, %c0_121] : memref<4x64x32xf32, #tpu.memory_space<vmem>>, vector<1x64x32xf32>
      %163 = vector.shape_cast %162 : vector<1x64x32xf32> to vector<64x32xf32>
      %c0_122 = arith.constant 0 : index
      %c0_123 = arith.constant 0 : index
      %c0_124 = arith.constant 0 : index
      %164 = vector.load %arg8[%c0_122, %c0_123, %c0_124] : memref<4x64x1xf32, #tpu.memory_space<vmem>>, vector<1x64x1xf32>
      %165 = vector.shape_cast %164 : vector<1x64x1xf32> to vector<64x1xf32>
      %166 = tpu.reciprocal %165 {approx = true} : vector<64x1xf32> -> vector<64x1xf32>
      %167 = vector.broadcast %166 : vector<64x1xf32> to vector<64x32xf32>
      %168 = arith.mulf %163, %167 : vector<64x32xf32>
      %169 = arith.truncf %168 : vector<64x32xf32> to vector<64x32xbf16>
      %c0_125 = arith.constant 0 : index
      %c0_126 = arith.constant 0 : index
      %c0_127 = arith.constant 0 : index
      %170 = vector.load %arg6[%c0_125, %c0_126, %c0_127] : memref<1x64x128xbf16, #tpu.memory_space<vmem>>, vector<1x64x32xbf16>
      %171 = vector.shape_cast %170 : vector<1x64x32xbf16> to vector<64x32xbf16>
      %172 = vector.shape_cast %169 : vector<64x32xbf16> to vector<1x64x32xbf16>
      tpu.vector_store %arg6[%c0_125, %c0_126, %c0_127], %172 {strides = array<i32>} : memref<1x64x128xbf16, #tpu.memory_space<vmem>>, vector<1x64x32xbf16>,
      %c1_128 = arith.constant 1 : index
      %c0_129 = arith.constant 0 : index
      %c0_130 = arith.constant 0 : index
      %173 = vector.load %arg9[%c1_128, %c0_129, %c0_130] : memref<4x64x32xf32, #tpu.memory_space<vmem>>, vector<1x64x32xf32>
      %174 = vector.shape_cast %173 : vector<1x64x32xf32> to vector<64x32xf32>
      %c1_131 = arith.constant 1 : index
      %c0_132 = arith.constant 0 : index
      %c0_133 = arith.constant 0 : index
      %175 = vector.load %arg8[%c1_131, %c0_132, %c0_133] : memref<4x64x1xf32, #tpu.memory_space<vmem>>, vector<1x64x1xf32>
      %176 = vector.shape_cast %175 : vector<1x64x1xf32> to vector<64x1xf32>
      %177 = tpu.reciprocal %176 {approx = true} : vector<64x1xf32> -> vector<64x1xf32>
      %178 = vector.broadcast %177 : vector<64x1xf32> to vector<64x32xf32>
      %179 = arith.mulf %174, %178 : vector<64x32xf32>
      %180 = arith.truncf %179 : vector<64x32xf32> to vector<64x32xbf16>
      %c0_134 = arith.constant 0 : index
      %c0_135 = arith.constant 0 : index
      %c32_136 = arith.constant 32 : index
      %181 = vector.load %arg6[%c0_134, %c0_135, %c32_136] : memref<1x64x128xbf16, #tpu.memory_space<vmem>>, vector<1x64x32xbf16>
      %182 = vector.shape_cast %181 : vector<1x64x32xbf16> to vector<64x32xbf16>
      %183 = vector.shape_cast %180 : vector<64x32xbf16> to vector<1x64x32xbf16>
      tpu.vector_store %arg6[%c0_134, %c0_135, %c32_136], %183 {strides = array<i32>} : memref<1x64x128xbf16, #tpu.memory_space<vmem>>, vector<1x64x32xbf16>,
      %c2_137 = arith.constant 2 : index
      %c0_138 = arith.constant 0 : index
      %c0_139 = arith.constant 0 : index
      %184 = vector.load %arg9[%c2_137, %c0_138, %c0_139] : memref<4x64x32xf32, #tpu.memory_space<vmem>>, vector<1x64x32xf32>
      %185 = vector.shape_cast %184 : vector<1x64x32xf32> to vector<64x32xf32>
      %c2_140 = arith.constant 2 : index
      %c0_141 = arith.constant 0 : index
      %c0_142 = arith.constant 0 : index
      %186 = vector.load %arg8[%c2_140, %c0_141, %c0_142] : memref<4x64x1xf32, #tpu.memory_space<vmem>>, vector<1x64x1xf32>
      %187 = vector.shape_cast %186 : vector<1x64x1xf32> to vector<64x1xf32>
      %188 = tpu.reciprocal %187 {approx = true} : vector<64x1xf32> -> vector<64x1xf32>
      %189 = vector.broadcast %188 : vector<64x1xf32> to vector<64x32xf32>
      %190 = arith.mulf %185, %189 : vector<64x32xf32>
      %191 = arith.truncf %190 : vector<64x32xf32> to vector<64x32xbf16>
      %c0_143 = arith.constant 0 : index
      %c0_144 = arith.constant 0 : index
      %c64_145 = arith.constant 64 : index
      %192 = vector.load %arg6[%c0_143, %c0_144, %c64_145] : memref<1x64x128xbf16, #tpu.memory_space<vmem>>, vector<1x64x32xbf16>
      %193 = vector.shape_cast %192 : vector<1x64x32xbf16> to vector<64x32xbf16>
      %194 = vector.shape_cast %191 : vector<64x32xbf16> to vector<1x64x32xbf16>
      tpu.vector_store %arg6[%c0_143, %c0_144, %c64_145], %194 {strides = array<i32>} : memref<1x64x128xbf16, #tpu.memory_space<vmem>>, vector<1x64x32xbf16>,
      %c3_146 = arith.constant 3 : index
      %c0_147 = arith.constant 0 : index
      %c0_148 = arith.constant 0 : index
      %195 = vector.load %arg9[%c3_146, %c0_147, %c0_148] : memref<4x64x32xf32, #tpu.memory_space<vmem>>, vector<1x64x32xf32>
      %196 = vector.shape_cast %195 : vector<1x64x32xf32> to vector<64x32xf32>
      %c3_149 = arith.constant 3 : index
      %c0_150 = arith.constant 0 : index
      %c0_151 = arith.constant 0 : index
      %197 = vector.load %arg8[%c3_149, %c0_150, %c0_151] : memref<4x64x1xf32, #tpu.memory_space<vmem>>, vector<1x64x1xf32>
      %198 = vector.shape_cast %197 : vector<1x64x1xf32> to vector<64x1xf32>
      %199 = tpu.reciprocal %198 {approx = true} : vector<64x1xf32> -> vector<64x1xf32>
      %200 = vector.broadcast %199 : vector<64x1xf32> to vector<64x32xf32>
      %201 = arith.mulf %196, %200 : vector<64x32xf32>
      %202 = arith.truncf %201 : vector<64x32xf32> to vector<64x32xbf16>
      %c0_152 = arith.constant 0 : index
      %c0_153 = arith.constant 0 : index
      %c96_154 = arith.constant 96 : index
      %203 = vector.load %arg6[%c0_152, %c0_153, %c96_154] : memref<1x64x128xbf16, #tpu.memory_space<vmem>>, vector<1x64x32xbf16>
      %204 = vector.shape_cast %203 : vector<1x64x32xbf16> to vector<64x32xbf16>
      %205 = vector.shape_cast %202 : vector<64x32xbf16> to vector<1x64x32xbf16>
      tpu.vector_store %arg6[%c0_152, %c0_153, %c96_154], %205 {strides = array<i32>} : memref<1x64x128xbf16, #tpu.memory_space<vmem>>, vector<1x64x32xbf16>,
    } else {
    }
    return
  }
  func.func @transform_0(%arg0: i32, %arg1: i32, %arg2: i32) -> (i32, i32, i32) {
    %c0_i32 = arith.constant 0 : i32
    %c0_i32_0 = arith.constant 0 : i32
    return %arg0, %arg1, %c0_i32 : i32, i32, i32
  }
  func.func @transform_1(%arg0: i32, %arg1: i32, %arg2: i32) -> (i32, i32, i32) {
    %c1_i32 = arith.constant 1 : i32
    %c0_i32 = arith.constant 0 : i32
    return %arg0, %arg2, %c1_i32 : i32, i32, i32
  }
  func.func @transform_2(%arg0: i32, %arg1: i32, %arg2: i32) -> (i32, i32, i32) {
    %c2_i32 = arith.constant 2 : i32
    %c0_i32 = arith.constant 0 : i32
    return %arg0, %arg2, %c2_i32 : i32, i32, i32
  }
  func.func @transform_3(%arg0: i32, %arg1: i32, %arg2: i32) -> (i32, i32, i32) {
    %c0_i32 = arith.constant 0 : i32
    %c0_i32_0 = arith.constant 0 : i32
    return %arg0, %arg1, %c0_i32 : i32, i32, i32
  }
}

module attributes {stable_mosaic.version = 11 : i64} {
  func.func @_ln_linear_kernel(%arg0: i32, %arg1: i32, %arg2: memref<128x128xf32, #tpu.memory_space<vmem>>, %arg3: memref<1x128xf32, #tpu.memory_space<vmem>>, %arg4: memref<1x128xf32, #tpu.memory_space<vmem>>, %arg5: memref<128x512xbf16, #tpu.memory_space<vmem>>, %arg6: memref<1x512xf32, #tpu.memory_space<vmem>>, %arg7: memref<128x512xbf16, #tpu.memory_space<vmem>>, %arg8: memref<128x128xbf16, #tpu.memory_space<vmem>>) attributes {dimension_semantics = [#tpu.dimension_semantics<parallel>, #tpu.dimension_semantics<arbitrary>], iteration_bounds = array<i64: 1, 1>, scalar_prefetch = 0 : i64, scratch_operands = 1 : i64, tpu.core_type = #tpu.core_type<tc>, window_params = [{transform_indices = @transform_0, window_bounds = array<i64: 128, 128>}, {pipeline_mode = #tpu.pipeline_mode<synchronous>, transform_indices = @transform_1, window_bounds = array<i64: 1, 128>}, {pipeline_mode = #tpu.pipeline_mode<synchronous>, transform_indices = @transform_2, window_bounds = array<i64: 1, 128>}, {transform_indices = @transform_3, window_bounds = array<i64: 128, 512>}, {transform_indices = @transform_4, window_bounds = array<i64: 1, 512>}, {transform_indices = @transform_5, window_bounds = array<i64: 128, 512>}]} {
    %c0_i32 = arith.constant 0 : i32
    %0 = arith.cmpi eq, %arg1, %c0_i32 : i32
    %1 = arith.extui %0 : i1 to i32
    %c0_i32_0 = arith.constant 0 : i32
    %2 = arith.cmpi ne, %1, %c0_i32_0 : i32
    scf.if %2 {
      %c0_23 = arith.constant 0 : index
      %c0_24 = arith.constant 0 : index
      %51 = vector.load %arg2[%c0_23, %c0_24] : memref<128x128xf32, #tpu.memory_space<vmem>>, vector<128x128xf32>
      %cst_25 = arith.constant dense<0.000000e+00> : vector<128xf32>
      %52 = vector.multi_reduction <add>, %51, %cst_25 [1] : vector<128x128xf32> to vector<128xf32>
      %53 = vector.shape_cast %52 : vector<128xf32> to vector<128x1xf32>
      %cst_26 = arith.constant 1.280000e+02 : f32
      %54 = vector.broadcast %cst_26 : f32 to vector<128x1xf32>
      %55 = arith.divf %53, %54 : vector<128x1xf32>
      %56 = vector.broadcast %55 : vector<128x1xf32> to vector<128x128xf32>
      %57 = arith.subf %51, %56 : vector<128x128xf32>
      %58 = arith.mulf %57, %57 : vector<128x128xf32>
      %cst_27 = arith.constant dense<0.000000e+00> : vector<128xf32>
      %59 = vector.multi_reduction <add>, %58, %cst_27 [1] : vector<128x128xf32> to vector<128xf32>
      %60 = vector.shape_cast %59 : vector<128xf32> to vector<128x1xf32>
      %cst_28 = arith.constant 1.280000e+02 : f32
      %61 = vector.broadcast %cst_28 : f32 to vector<128x1xf32>
      %62 = arith.divf %60, %61 : vector<128x1xf32>
      %63 = vector.broadcast %55 : vector<128x1xf32> to vector<128x128xf32>
      %64 = arith.subf %51, %63 : vector<128x128xf32>
      %cst_29 = arith.constant 9.99999974E-6 : f32
      %65 = vector.broadcast %cst_29 : f32 to vector<128x1xf32>
      %66 = arith.addf %62, %65 : vector<128x1xf32>
      %67 = math.rsqrt %66 : vector<128x1xf32>
      %68 = vector.broadcast %67 : vector<128x1xf32> to vector<128x128xf32>
      %69 = arith.mulf %64, %68 : vector<128x128xf32>
      %c0_30 = arith.constant 0 : index
      %c0_31 = arith.constant 0 : index
      %70 = vector.load %arg3[%c0_30, %c0_31] : memref<1x128xf32, #tpu.memory_space<vmem>>, vector<1x128xf32>
      %71 = vector.broadcast %70 : vector<1x128xf32> to vector<128x128xf32>
      %72 = arith.mulf %69, %71 : vector<128x128xf32>
      %c0_32 = arith.constant 0 : index
      %c0_33 = arith.constant 0 : index
      %73 = vector.load %arg4[%c0_32, %c0_33] : memref<1x128xf32, #tpu.memory_space<vmem>>, vector<1x128xf32>
      %74 = vector.broadcast %73 : vector<1x128xf32> to vector<128x128xf32>
      %75 = arith.addf %72, %74 : vector<128x128xf32>
      %76 = arith.truncf %75 : vector<128x128xf32> to vector<128x128xbf16>
      %c0_34 = arith.constant 0 : index
      %c0_35 = arith.constant 0 : index
      %77 = vector.load %arg8[%c0_34, %c0_35] : memref<128x128xbf16, #tpu.memory_space<vmem>>, vector<128x128xbf16>
      tpu.vector_store %arg8[%c0_34, %c0_35], %76 {strides = array<i32>} : memref<128x128xbf16, #tpu.memory_space<vmem>>, vector<128x128xbf16>,
    } else {
    }
    %c0 = arith.constant 0 : index
    %c0_1 = arith.constant 0 : index
    %3 = vector.load %arg8[%c0, %c0_1] : memref<128x128xbf16, #tpu.memory_space<vmem>>, vector<128x128xbf16>
    %c0_2 = arith.constant 0 : index
    %c0_3 = arith.constant 0 : index
    %4 = vector.load %arg5[%c0_2, %c0_3] : memref<128x512xbf16, #tpu.memory_space<vmem>>, vector<128x512xbf16>
    %cst = arith.constant dense<0.000000e+00> : vector<128x512xf32>
    %5 = tpu.matmul %3, %4, %cst {dimension_numbers = #tpu.dot_dimension_numbers<[1], [0], [0], [1], [0, 0, 1, 1], [], []>} : vector<128x128xbf16>, vector<128x512xbf16>, vector<128x512xf32> -> vector<128x512xf32>
    %c0_4 = arith.constant 0 : index
    %c0_5 = arith.constant 0 : index
    %6 = vector.load %arg6[%c0_4, %c0_5] : memref<1x512xf32, #tpu.memory_space<vmem>>, vector<1x512xf32>
    %7 = vector.broadcast %6 : vector<1x512xf32> to vector<128x512xf32>
    %8 = arith.addf %5, %7 : vector<128x512xf32>
    %cst_6 = arith.constant 0.707106769 : f32
    %9 = vector.broadcast %cst_6 : f32 to vector<128x512xf32>
    %10 = arith.mulf %8, %9 : vector<128x512xf32>
    %11 = math.absf %10 : vector<128x512xf32>
    %cst_7 = arith.constant 0.327591091 : f32
    %12 = vector.broadcast %cst_7 : f32 to vector<128x512xf32>
    %13 = arith.mulf %12, %11 : vector<128x512xf32>
    %cst_8 = arith.constant 1.000000e+00 : f32
    %14 = vector.broadcast %cst_8 : f32 to vector<128x512xf32>
    %15 = arith.addf %14, %13 : vector<128x512xf32>
    %cst_9 = arith.constant 1.000000e+00 : f32
    %16 = vector.broadcast %cst_9 : f32 to vector<128x512xf32>
    %17 = arith.divf %16, %15 : vector<128x512xf32>
    %cst_10 = arith.constant 1.06140542 : f32
    %18 = vector.broadcast %cst_10 : f32 to vector<128x512xf32>
    %19 = arith.mulf %17, %18 : vector<128x512xf32>
    %cst_11 = arith.constant -1.45315206 : f32
    %20 = vector.broadcast %cst_11 : f32 to vector<128x512xf32>
    %21 = arith.addf %20, %19 : vector<128x512xf32>
    %22 = arith.mulf %17, %21 : vector<128x512xf32>
    %cst_12 = arith.constant 1.42141378 : f32
    %23 = vector.broadcast %cst_12 : f32 to vector<128x512xf32>
    %24 = arith.addf %23, %22 : vector<128x512xf32>
    %25 = arith.mulf %17, %24 : vector<128x512xf32>
    %cst_13 = arith.constant -0.284496725 : f32
    %26 = vector.broadcast %cst_13 : f32 to vector<128x512xf32>
    %27 = arith.addf %26, %25 : vector<128x512xf32>
    %28 = arith.mulf %17, %27 : vector<128x512xf32>
    %cst_14 = arith.constant 0.254829586 : f32
    %29 = vector.broadcast %cst_14 : f32 to vector<128x512xf32>
    %30 = arith.addf %29, %28 : vector<128x512xf32>
    %31 = arith.mulf %17, %30 : vector<128x512xf32>
    %cst_15 = arith.constant 0.000000e+00 : f32
    %32 = vector.broadcast %cst_15 : f32 to vector<128x512xf32>
    %33 = arith.subf %32, %11 : vector<128x512xf32>
    %34 = arith.mulf %33, %11 : vector<128x512xf32>
    %35 = math.exp %34 : vector<128x512xf32>
    %36 = arith.mulf %31, %35 : vector<128x512xf32>
    %cst_16 = arith.constant 1.000000e+00 : f32
    %37 = vector.broadcast %cst_16 : f32 to vector<128x512xf32>
    %38 = arith.subf %37, %36 : vector<128x512xf32>
    %cst_17 = arith.constant 0.000000e+00 : f32
    %39 = vector.broadcast %cst_17 : f32 to vector<128x512xf32>
    %40 = arith.cmpf oge, %10, %39 : vector<128x512xf32>
    %cst_18 = arith.constant 0.000000e+00 : f32
    %41 = vector.broadcast %cst_18 : f32 to vector<128x512xf32>
    %42 = arith.subf %41, %38 : vector<128x512xf32>
    %43 = arith.select %40, %38, %42 : vector<128x512xi1>, vector<128x512xf32>
    %cst_19 = arith.constant 5.000000e-01 : f32
    %44 = vector.broadcast %cst_19 : f32 to vector<128x512xf32>
    %45 = arith.mulf %44, %8 : vector<128x512xf32>
    %cst_20 = arith.constant 1.000000e+00 : f32
    %46 = vector.broadcast %cst_20 : f32 to vector<128x512xf32>
    %47 = arith.addf %46, %43 : vector<128x512xf32>
    %48 = arith.mulf %45, %47 : vector<128x512xf32>
    %49 = arith.truncf %48 : vector<128x512xf32> to vector<128x512xbf16>
    %c0_21 = arith.constant 0 : index
    %c0_22 = arith.constant 0 : index
    %50 = vector.load %arg7[%c0_21, %c0_22] : memref<128x512xbf16, #tpu.memory_space<vmem>>, vector<128x512xbf16>
    tpu.vector_store %arg7[%c0_21, %c0_22], %49 {strides = array<i32>} : memref<128x512xbf16, #tpu.memory_space<vmem>>, vector<128x512xbf16>,
    return
  }
  func.func @transform_0(%arg0: i32, %arg1: i32) -> (i32, i32) {
    %c0_i32 = arith.constant 0 : i32
    %c0_i32_0 = arith.constant 0 : i32
    return %arg0, %c0_i32 : i32, i32
  }
  func.func @transform_1(%arg0: i32, %arg1: i32) -> (i32, i32) {
    %c0_i32 = arith.constant 0 : i32
    %c0_i32_0 = arith.constant 0 : i32
    %c0_i32_1 = arith.constant 0 : i32
    return %c0_i32, %c0_i32_0 : i32, i32
  }
  func.func @transform_2(%arg0: i32, %arg1: i32) -> (i32, i32) {
    %c0_i32 = arith.constant 0 : i32
    %c0_i32_0 = arith.constant 0 : i32
    %c0_i32_1 = arith.constant 0 : i32
    return %c0_i32, %c0_i32_0 : i32, i32
  }
  func.func @transform_3(%arg0: i32, %arg1: i32) -> (i32, i32) {
    %c0_i32 = arith.constant 0 : i32
    %c0_i32_0 = arith.constant 0 : i32
    return %c0_i32, %arg1 : i32, i32
  }
  func.func @transform_4(%arg0: i32, %arg1: i32) -> (i32, i32) {
    %c0_i32 = arith.constant 0 : i32
    %c0_i32_0 = arith.constant 0 : i32
    return %c0_i32, %arg1 : i32, i32
  }
  func.func @transform_5(%arg0: i32, %arg1: i32) -> (i32, i32) {
    %c0_i32 = arith.constant 0 : i32
    return %arg0, %arg1 : i32, i32
  }
}

module attributes {stable_mosaic.version = 11 : i64} {
  func.func @_linear_add_kernel(%arg0: i32, %arg1: i32, %arg2: memref<128x512xbf16, #tpu.memory_space<vmem>>, %arg3: memref<512x128xbf16, #tpu.memory_space<vmem>>, %arg4: memref<1x128xf32, #tpu.memory_space<vmem>>, %arg5: memref<128x128xf32, #tpu.memory_space<vmem>>, %arg6: memref<128x128xf32, #tpu.memory_space<vmem>>) attributes {dimension_semantics = [#tpu.dimension_semantics<parallel>, #tpu.dimension_semantics<parallel>], iteration_bounds = array<i64: 1, 1>, scalar_prefetch = 0 : i64, scratch_operands = 0 : i64, tpu.core_type = #tpu.core_type<tc>, window_params = [{transform_indices = @transform_0, window_bounds = array<i64: 128, 512>}, {transform_indices = @transform_1, window_bounds = array<i64: 512, 128>}, {transform_indices = @transform_2, window_bounds = array<i64: 1, 128>}, {transform_indices = @transform_3, window_bounds = array<i64: 128, 128>}, {transform_indices = @transform_4, window_bounds = array<i64: 128, 128>}]} {
    %c0 = arith.constant 0 : index
    %c0_0 = arith.constant 0 : index
    %0 = vector.load %arg2[%c0, %c0_0] : memref<128x512xbf16, #tpu.memory_space<vmem>>, vector<128x512xbf16>
    %c0_1 = arith.constant 0 : index
    %c0_2 = arith.constant 0 : index
    %1 = vector.load %arg3[%c0_1, %c0_2] : memref<512x128xbf16, #tpu.memory_space<vmem>>, vector<512x128xbf16>
    %cst = arith.constant dense<0.000000e+00> : vector<128x128xf32>
    %2 = tpu.matmul %0, %1, %cst {dimension_numbers = #tpu.dot_dimension_numbers<[1], [0], [0], [1], [0, 0, 1, 1], [], []>} : vector<128x512xbf16>, vector<512x128xbf16>, vector<128x128xf32> -> vector<128x128xf32>
    %c0_3 = arith.constant 0 : index
    %c0_4 = arith.constant 0 : index
    %3 = vector.load %arg4[%c0_3, %c0_4] : memref<1x128xf32, #tpu.memory_space<vmem>>, vector<1x128xf32>
    %4 = vector.broadcast %3 : vector<1x128xf32> to vector<128x128xf32>
    %5 = arith.addf %2, %4 : vector<128x128xf32>
    %c0_5 = arith.constant 0 : index
    %c0_6 = arith.constant 0 : index
    %6 = vector.load %arg5[%c0_5, %c0_6] : memref<128x128xf32, #tpu.memory_space<vmem>>, vector<128x128xf32>
    %7 = arith.addf %5, %6 : vector<128x128xf32>
    %c0_7 = arith.constant 0 : index
    %c0_8 = arith.constant 0 : index
    %8 = vector.load %arg6[%c0_7, %c0_8] : memref<128x128xf32, #tpu.memory_space<vmem>>, vector<128x128xf32>
    tpu.vector_store %arg6[%c0_7, %c0_8], %7 {strides = array<i32>} : memref<128x128xf32, #tpu.memory_space<vmem>>, vector<128x128xf32>,
    return
  }
  func.func @transform_0(%arg0: i32, %arg1: i32) -> (i32, i32) {
    %c0_i32 = arith.constant 0 : i32
    %c0_i32_0 = arith.constant 0 : i32
    return %arg0, %c0_i32 : i32, i32
  }
  func.func @transform_1(%arg0: i32, %arg1: i32) -> (i32, i32) {
    %c0_i32 = arith.constant 0 : i32
    %c0_i32_0 = arith.constant 0 : i32
    return %c0_i32, %arg1 : i32, i32
  }
  func.func @transform_2(%arg0: i32, %arg1: i32) -> (i32, i32) {
    %c0_i32 = arith.constant 0 : i32
    %c0_i32_0 = arith.constant 0 : i32
    return %c0_i32, %arg1 : i32, i32
  }
  func.func @transform_3(%arg0: i32, %arg1: i32) -> (i32, i32) {
    %c0_i32 = arith.constant 0 : i32
    return %arg0, %arg1 : i32, i32
  }
  func.func @transform_4(%arg0: i32, %arg1: i32) -> (i32, i32) {
    %c0_i32 = arith.constant 0 : i32
    return %arg0, %arg1 : i32, i32
  }
}

</mosaic_0001>

<bundles_post_ra>
// kernel: mul.9
= control target key start
LH: loop header
LB: loop body
LE: loop exit
PB: predicated region body
PF: predicated region fallthrough
CT: control target
= control target key end

     0   :  { %s34_s0 = inlined_call_operand.vmem [shape: f32[384], index: 0, kind: input, shape index: {}]   ;;  %s35_s1 = inlined_call_operand.vmem [shape: f32[384], index: 1, kind: input, shape index: {}]   ;;  %s36_s2 = inlined_call_operand.vmem [shape: f32[384], index: 2, kind: output, shape index: {}]  }
   0x1   :  { %v3_v0 = vld [vmem:[%s34_s0] sm:$0x7] }
   0x2   :  { %v4_v1 = vld [vmem:[%s35_s1] sm:$0x7] }
   0x3   :  { %v7_v2 = vmul.f32 %v4_v1, %v3_v0 }
   0x5   :  { %9 = vst [vmem:[%s36_s2] sm:$0xf] %v7_v2 }

// kernel: block_forward.7
= control target key start
LH: loop header
LB: loop body
LE: loop exit
PB: predicated region body
PF: predicated region fallthrough
CT: control target
= control target key end

     0   :  { %s589_s1 = inlined_call_operand.vmem [shape: bf16[128,128], index: 1, kind: input, shape index: {}]   ;;  %s590_s0 = inlined_call_operand.vmem [shape: bf16[128,128], index: 0, kind: input, shape index: {}]   ;;  %s591_s2 = inlined_call_operand.vmem [shape: f32[1,128], index: 2, kind: input, shape index: {}]   ;;  %s592_s3 = inlined_call_operand.vmem [shape: f32[128,128], index: 3, kind: input, shape index: {}]   ;;  %s593_s4 = inlined_call_operand.vmem [shape: f32[128,128], index: 4, kind: output, shape index: {}]  }
   0x1   :  { %v383_v0 = vld [vmem:[%s589_s1 + $0x38] sm:$0xff]   ;;  %v384_v1 = vld [vmem:[%s589_s1 + $0x30] sm:$0xff]   ;;  %v385_v2 = vld [vmem:[%s589_s1 + $0x28] sm:$0xff]  }
   0x2   :  { %335 = vmatprep.subr.bf16.mxu0 %v383_v0  ;;  %367 = vmatprep.subr.bf16.mxu1 %v383_v0  ;;  %v386_v3 = vld [vmem:[%s589_s1 + $0x20] sm:$0xff]   ;;  %v387_v6 = vld [vmem:[%s589_s1 + $0x18] sm:$0xff]   ;;  %v388_v7 = vld [vmem:[%s589_s1 + $0x10] sm:$0xff]  }
   0x3   :  { %336 = vmatpush3.bf16.msra.mxu0 %v383_v0  ;;  %375 = vmatpush3.bf16.msra.mxu1 %v383_v0  ;;  %v391_v4 = vld [vmem:[%s590_s0] sm:$0xff]   ;;  %v389_v8 = vld [vmem:[%s589_s1 + $0x8] sm:$0xff]   ;;  %v395_v12 = vld [vmem:[%s590_s0 + $0x10] sm:$0xff]  }
   0x4   :  { %337 = vmatprep.subr.bf16.mxu0 %v384_v1  ;;  %368 = vmatprep.subr.bf16.mxu1 %v384_v1  ;;  %v392_v5 = vld [vmem:[%s590_s0 + $0x20] sm:$0xff]   ;;  %v393_v10 = vld [vmem:[%s590_s0 + $0x8] sm:$0xff]   ;;  %v396_v13 = vld [vmem:[%s590_s0 + $0x30] sm:$0xff]  }
   0x5   :  { %351 = vmatprep.mubr.bf16.mxu0 %v391_v4  ;;  %359 = vmatprep.mubr.bf16.mxu1 %v392_v5  ;;  %v390_v9 = vld [vmem:[%s589_s1] sm:$0xff]   ;;  %v394_v11 = vld [vmem:[%s590_s0 + $0x28] sm:$0xff]   ;;  %v397_v14 = vld [vmem:[%s590_s0 + $0x18] sm:$0xff]  }
   0x6   :  { %v398_v15 = vld [vmem:[%s590_s0 + $0x38] sm:$0xff]   ;;  %v475_v16 = vld [vmem:[%s591_s2] ss:$0 sm:$0xff]  ;;  %v252_v18 = vld [vmem:[%s592_s3 + $0x10] sm:$0xff] }
   0x7   :  { %338 = vmatpush3.bf16.msra.mxu0 %v384_v1  ;;  %376 = vmatpush3.bf16.msra.mxu1 %v384_v1  ;;  %v260_v20 = vld [vmem:[%s592_s3 + $0x50] sm:$0xff]  ;;  %v250_v24 = vld [vmem:[%s592_s3] sm:$0xff]  ;;  %v253_v32 = vld [vmem:[%s592_s3 + $0x18] sm:$0xff] }
   0x8   :  { %339 = vmatprep.subr.bf16.mxu0 %v385_v2  ;;  %369 = vmatprep.subr.bf16.mxu1 %v385_v2  ;;  %v258_v26 = vld [vmem:[%s592_s3 + $0x40] sm:$0xff]  ;;  %v261_v34 = vld [vmem:[%s592_s3 + $0x58] sm:$0xff]  ;;  %v251_v40 = vld [vmem:[%s592_s3 + $0x8] sm:$0xff] }
   0x9   :  { %v259_v42 = vld [vmem:[%s592_s3 + $0x48] sm:$0xff]  ;;  %v256_v48 = vld [vmem:[%s592_s3 + $0x30] sm:$0xff]  ;;  %v254_v56 = vld [vmem:[%s592_s3 + $0x20] sm:$0xff] }
   0xa   :  { %v264_v50 = vld [vmem:[%s592_s3 + $0x70] sm:$0xff]  ;;  %v262_v58 = vld [vmem:[%s592_s3 + $0x60] sm:$0xff]  ;;  %v257_v0 = vld [vmem:[%s592_s3 + $0x38] sm:$0xff] }
   0xb   :  { %340 = vmatpush3.bf16.msra.mxu0 %v385_v2  ;;  %377 = vmatpush3.bf16.msra.mxu1 %v385_v2  ;;  %v265_v2 = vld [vmem:[%s592_s3 + $0x78] sm:$0xff] }
   0xc   :  { %341 = vmatprep.subr.bf16.mxu0 %v386_v3  ;;  %370 = vmatprep.subr.bf16.mxu1 %v386_v3 }
   0xf   :  { %342 = vmatpush3.bf16.msra.mxu0 %v386_v3  ;;  %378 = vmatpush3.bf16.msra.mxu1 %v386_v3 }
  0x10   :  { %343 = vmatprep.subr.bf16.mxu0 %v387_v6  ;;  %371 = vmatprep.subr.bf16.mxu1 %v387_v6 }
  0x13   :  { %344 = vmatpush3.bf16.msra.mxu0 %v387_v6  ;;  %379 = vmatpush3.bf16.msra.mxu1 %v387_v6 }
  0x14   :  { %345 = vmatprep.subr.bf16.mxu0 %v388_v7  ;;  %372 = vmatprep.subr.bf16.mxu1 %v388_v7 }
  0x17   :  { %346 = vmatpush3.bf16.msra.mxu0 %v388_v7  ;;  %380 = vmatpush3.bf16.msra.mxu1 %v388_v7 }
  0x18   :  { %347 = vmatprep.subr.bf16.mxu0 %v389_v8  ;;  %373 = vmatprep.subr.bf16.mxu1 %v389_v8 }
  0x1b   :  { %348 = vmatpush3.bf16.msra.mxu0 %v389_v8  ;;  %381 = vmatpush3.bf16.msra.mxu1 %v389_v8  ;;  %v255_v8 = vld [vmem:[%s592_s3 + $0x28] sm:$0xff] }
  0x1c   :  { %349 = vmatprep.subr.bf16.mxu0 %v390_v9  ;;  %374 = vmatprep.subr.bf16.mxu1 %v390_v9 }
  0x1f   :  { %350 = vmatpush3.bf16.msra.mxu0 %v390_v9  ;;  %382 = vmatpush3.bf16.msra.mxu1 %v390_v9 }
  0x22   :  { %352 = vmatmul.mubr.bf16.vlgmr.msra.gmra.mxu0 %v393_v10  ;;  %360 = vmatmul.mubr.bf16.vlgmr.msra.gmra.mxu1 %v394_v11  ;;  %v263_v10 = vld [vmem:[%s592_s3 + $0x68] sm:$0xff] }
  0x23   :  { %355 = vmatprep.mubr.bf16.mxu0 %v395_v12  ;;  %363 = vmatprep.mubr.bf16.mxu1 %v396_v13 }
  0x2a   :  { %356 = vmatmul.mubr.bf16.gmra.mxu0 %v397_v14  ;;  %364 = vmatmul.mubr.bf16.gmra.mxu1 %v398_v15 }
  0xe2   :  { %v353_v17 = vpop.f32.mrf.mxu0  ;;  %v361_v19 = vpop.f32.mrf.mxu1 }
  0xe3   :  { %v196_v21 = vadd.f32 %v353_v17, %v475_v16  ;;  %v228_v22 = vadd.f32 %v361_v19, %v475_v16 }
  0xe4   :  { %v187_v23 = vpop.f32.mrf.mxu0  ;;  %v219_v25 = vpop.f32.mrf.mxu1 }
  0xe5   :  { %v268_v27 = vadd.f32 %v252_v18, %v196_v21  ;;  %v276_v28 = vadd.f32 %v260_v20, %v228_v22  ;;  %v188_v29 = vadd.f32 %v475_v16, %v187_v23  ;;  %v220_v30 = vadd.f32 %v475_v16, %v219_v25 }
  0xe6   :  { %v354_v31 = vpop.f32.mrf.mxu0  ;;  %v362_v33 = vpop.f32.mrf.mxu1 }
  0xe7   :  { %284 = vst [vmem:[%s593_s4 + $0x10] sm:$0xff] %v268_v27  ;;  %292 = vst [vmem:[%s593_s4 + $0x50] sm:$0xff] %v276_v28  ;;  %v266_v35 = vadd.f32 %v250_v24, %v188_v29  ;;  %v274_v36 = vadd.f32 %v258_v26, %v220_v30  ;;  %v199_v37 = vadd.f32 %v354_v31, %v475_v16 }
  0xe8   :  { %v231_v38 = vadd.f32 %v362_v33, %v475_v16  ;;  %v190_v39 = vpop.f32.mrf.mxu0  ;;  %v222_v41 = vpop.f32.mrf.mxu1 }
  0xe9   :  { %282 = vst [vmem:[%s593_s4] sm:$0xff] %v266_v35  ;;  %290 = vst [vmem:[%s593_s4 + $0x40] sm:$0xff] %v274_v36  ;;  %v269_v43 = vadd.f32 %v253_v32, %v199_v37  ;;  %v191_v45 = vadd.f32 %v475_v16, %v190_v39  ;;  %v223_v46 = vadd.f32 %v475_v16, %v222_v41 }
  0xea   :  { %v277_v44 = vadd.f32 %v261_v34, %v231_v38  ;;  %v357_v47 = vpop.f32.mrf.mxu0  ;;  %v365_v49 = vpop.f32.mrf.mxu1 }
  0xeb   :  { %285 = vst [vmem:[%s593_s4 + $0x18] sm:$0xff] %v269_v43  ;;  %v267_v51 = vadd.f32 %v251_v40, %v191_v45  ;;  %v275_v52 = vadd.f32 %v259_v42, %v223_v46  ;;  %v212_v53 = vadd.f32 %v357_v47, %v475_v16  ;;  %v244_v54 = vadd.f32 %v365_v49, %v475_v16 }
  0xec   :  { %293 = vst [vmem:[%s593_s4 + $0x58] sm:$0xff] %v277_v44  ;;  %v203_v55 = vpop.f32.mrf.mxu0  ;;  %v235_v57 = vpop.f32.mrf.mxu1 }
  0xed   :  { %283 = vst [vmem:[%s593_s4 + $0x8] sm:$0xff] %v267_v51  ;;  %291 = vst [vmem:[%s593_s4 + $0x48] sm:$0xff] %v275_v52  ;;  %v272_v59 = vadd.f32 %v256_v48, %v212_v53  ;;  %v280_v60 = vadd.f32 %v264_v50, %v244_v54  ;;  %v204_v61 = vadd.f32 %v475_v16, %v203_v55 }
  0xee   :  { %v236_v62 = vadd.f32 %v475_v16, %v235_v57  ;;  %v358_v63 = vpop.f32.mrf.mxu0  ;;  %v366_v1 = vpop.f32.mrf.mxu1 }
  0xef   :  { %288 = vst [vmem:[%s593_s4 + $0x30] sm:$0xff] %v272_v59  ;;  %296 = vst [vmem:[%s593_s4 + $0x70] sm:$0xff] %v280_v60  ;;  %v270_v3 = vadd.f32 %v254_v56, %v204_v61  ;;  %v215_v5 = vadd.f32 %v358_v63, %v475_v16  ;;  %v247_v6 = vadd.f32 %v366_v1, %v475_v16 }
  0xf0   :  { %v278_v4 = vadd.f32 %v262_v58, %v236_v62  ;;  %v206_v7 = vpop.f32.mrf.mxu0  ;;  %v238_v9 = vpop.f32.mrf.mxu1 }
  0xf1   :  { %286 = vst [vmem:[%s593_s4 + $0x20] sm:$0xff] %v270_v3  ;;  %v273_v11 = vadd.f32 %v257_v0, %v215_v5  ;;  %v281_v12 = vadd.f32 %v265_v2, %v247_v6  ;;  %v207_v13 = vadd.f32 %v475_v16, %v206_v7  ;;  %v239_v14 = vadd.f32 %v475_v16, %v238_v9 }
  0xf2   :  { %294 = vst [vmem:[%s593_s4 + $0x60] sm:$0xff] %v278_v4 }
  0xf3   :  { %289 = vst [vmem:[%s593_s4 + $0x38] sm:$0xff] %v273_v11  ;;  %297 = vst [vmem:[%s593_s4 + $0x78] sm:$0xff] %v281_v12  ;;  %v271_v15 = vadd.f32 %v255_v8, %v207_v13  ;;  %v279_v17 = vadd.f32 %v263_v10, %v239_v14 }
  0xf5   :  { %287 = vst [vmem:[%s593_s4 + $0x28] sm:$0xff] %v271_v15  ;;  %295 = vst [vmem:[%s593_s4 + $0x68] sm:$0xff] %v279_v17 }

// kernel: block_forward.5
= control target key start
LH: loop header
LB: loop body
LE: loop exit
PB: predicated region body
PF: predicated region fallthrough
CT: control target
= control target key end

     0   :  { %s1747_s0 = inlined_call_operand.vmem [shape: f32[128,128], index: 0, kind: input, shape index: {}]   ;;  %s1748_s3 = inlined_call_operand.vmem [shape: bf16[128,384], index: 3, kind: input, shape index: {}]   ;;  %s1749_s1 = inlined_call_operand.vmem [shape: f32[1,128], index: 1, kind: input, shape index: {}]   ;;  %s1750_s2 = inlined_call_operand.vmem [shape: f32[1,128], index: 2, kind: input, shape index: {}]   ;;  %s1751_s4 = inlined_call_operand.vmem [shape: f32[1,384], index: 4, kind: input, shape index: {}]   ;;  %s1752_s5 = inlined_call_operand.vmem [shape: bf16[128,384], index: 5, kind: output, shape index: {}]  }
   0x1   :  { %v25_v0 = vld [vmem:[%s1747_s0] sm:$0xff]  ;;  %v27_v1 = vld [vmem:[%s1747_s0 + $0x10] sm:$0xff]  ;;  %v26_v2 = vld [vmem:[%s1747_s0 + $0x8] sm:$0xff] }
   0x2   :  { %41 = vadd.xlane.f32.xlu0 %v25_v0  ;;  %45 = vadd.xlane.f32.xlu1 %v27_v1  ;;  %v28_v3 = vld [vmem:[%s1747_s0 + $0x18] sm:$0xff]  ;;  %v29_v4 = vld [vmem:[%s1747_s0 + $0x20] sm:$0xff]  ;;  %v30_v5 = vld [vmem:[%s1747_s0 + $0x28] sm:$0xff] }
   0x3   :  { %v31_v6 = vld [vmem:[%s1747_s0 + $0x30] sm:$0xff]  ;;  %v32_v7 = vld [vmem:[%s1747_s0 + $0x38] sm:$0xff]  ;;  %v33_v8 = vld [vmem:[%s1747_s0 + $0x40] sm:$0xff] }
   0x4   :  { %v34_v9 = vld [vmem:[%s1747_s0 + $0x48] sm:$0xff]  ;;  %v1353_v10 = vld [vmem:[%s1747_s0 + $0x50] sm:$0xff]  ;;  %v1358_v11 = vld [vmem:[%s1747_s0 + $0x58] sm:$0xff] }
   0x5   :  { %v1365_v12 = vld [vmem:[%s1747_s0 + $0x60] sm:$0xff]  ;;  %v1370_v13 = vld [vmem:[%s1747_s0 + $0x68] sm:$0xff]  ;;  %v1377_v14 = vld [vmem:[%s1747_s0 + $0x70] sm:$0xff] }
   0x6   :  { %43 = vadd.xlane.f32.xlu0 %v26_v2  ;;  %47 = vadd.xlane.f32.xlu1 %v28_v3  ;;  %v1382_v15 = vld [vmem:[%s1747_s0 + $0x78] sm:$0xff] }
   0x7   :  { %v1217_v62 = vld [vmem:[%s1748_s3 + $0xac] ss:$12 sps:$4 sm:$0xff]  }
   0x8   :  { %585 = vmatprep.subr.bf16.mxu0 %v1217_v62 }
   0xa   :  { %49 = vadd.xlane.f32.xlu0 %v29_v4  ;;  %51 = vadd.xlane.f32.xlu1 %v30_v5 }
   0xe   :  { %53 = vadd.xlane.f32.xlu0 %v31_v6  ;;  %55 = vadd.xlane.f32.xlu1 %v32_v7 }
  0x12   :  { %57 = vadd.xlane.f32.xlu0 %v33_v8  ;;  %59 = vadd.xlane.f32.xlu1 %v34_v9 }
  0x16   :  { %61 = vadd.xlane.f32.xlu0 %v1353_v10  ;;  %63 = vadd.xlane.f32.xlu1 %v1358_v11 }
  0x1a   :  { %65 = vadd.xlane.f32.xlu0 %v1365_v12  ;;  %67 = vadd.xlane.f32.xlu1 %v1370_v13 }
  0x1e   :  { %69 = vadd.xlane.f32.xlu0 %v1377_v14  ;;  %71 = vadd.xlane.f32.xlu1 %v1382_v15 }
  0x8b   :  { %v42_v16 = vpop.xlane.xlu0 %41  ;;  %v46_v17 = vpop.xlane.xlu1 %45 }
  0x8c   :  { %v74_v18 = vmul.f32 0.0078125, %v42_v16  ;;  %v76_v19 = vmul.f32 0.0078125, %v46_v17 }
  0x8e   :  { %v1386_v20 = vsub.f32 %v25_v0, %v74_v18  ;;  %v1388_v21 = vsub.f32 %v27_v1, %v76_v19  ;;  %v1219_v1 = vld [vmem:[%s1748_s3 + $0xa8] ss:$12 sps:$4 sm:$0xff]  }
  0x8f   :  { %v44_v22 = vpop.xlane.xlu0 %43  ;;  %v48_v23 = vpop.xlane.xlu1 %47  ;;  %586 = vmatpush1.bf16.msra.mxu0 %v1219_v1 }
  0x90   :  { %v75_v24 = vmul.f32 0.0078125, %v44_v22  ;;  %v106_v25 = vmul.f32 %v1386_v20, %v1386_v20  ;;  %v77_v26 = vmul.f32 0.0078125, %v48_v23  ;;  %v108_v29 = vmul.f32 %v1388_v21, %v1388_v21  ;;  %v1224_v23 = vld [vmem:[%s1748_s3 + $0x7c] ss:$12 sps:$4 sm:$0xff]  }
  0x92   :  { %v1392_v27 = vsub.f32 %v26_v2, %v75_v24  ;;  %122 = vadd.xlane.f32.xlu0 %v106_v25  ;;  %v1394_v28 = vsub.f32 %v28_v3, %v77_v26  ;;  %v1226_v24 = vld [vmem:[%s1748_s3 + $0x98] ss:$12 sps:$4 sm:$0xff]  }
  0x93   :  { %v50_v30 = vpop.xlane.xlu0 %49  ;;  %v52_v31 = vpop.xlane.xlu1 %51  ;;  %v1228_v26 = vld [vmem:[%s1748_s3 + $0x64] ss:$12 sps:$4 sm:$0xff]  }
  0x94   :  { %v78_v32 = vmul.f32 0.0078125, %v50_v30  ;;  %v107_v33 = vmul.f32 %v1392_v27, %v1392_v27  ;;  %v79_v34 = vmul.f32 0.0078125, %v52_v31  ;;  %v109_v37 = vmul.f32 %v1394_v28, %v1394_v28  ;;  %v1231_v30 = vld [vmem:[%s1748_s3 + $0x60] ss:$12 sps:$4 sm:$0xff]  }
  0x95   :  { %v1232_v31 = vld [vmem:[%s1748_s3 + $0x4c] ss:$12 sps:$4 sm:$0xff]  }
  0x96   :  { %v1400_v35 = vsub.f32 %v29_v4, %v78_v32  ;;  %126 = vadd.xlane.f32.xlu0 %v108_v29  ;;  %124 = vadd.xlane.f32.xlu1 %v107_v33  ;;  %v1402_v36 = vsub.f32 %v30_v5, %v79_v34  ;;  %v1230_v29 = vld [vmem:[%s1748_s3 + $0x80] ss:$12 sps:$4 sm:$0xff]   ;;  %v1234_v32 = vld [vmem:[%s1748_s3 + $0x68] ss:$12 sps:$4 sm:$0xff]  }
  0x97   :  { %v54_v38 = vpop.xlane.xlu0 %53  ;;  %v56_v39 = vpop.xlane.xlu1 %55  ;;  %v1235_v33 = vld [vmem:[%s1748_s3 + $0x48] ss:$12 sps:$4 sm:$0xff]  }
  0x98   :  { %v80_v40 = vmul.f32 0.0078125, %v54_v38  ;;  %v110_v41 = vmul.f32 %v1400_v35, %v1400_v35  ;;  %v81_v42 = vmul.f32 0.0078125, %v56_v39  ;;  %v111_v45 = vmul.f32 %v1402_v36, %v1402_v36  ;;  %v1236_v34 = vld [vmem:[%s1748_s3 + $0x34] ss:$12 sps:$4 sm:$0xff]   ;;  %v1239_v38 = vld [vmem:[%s1748_s3 + $0x30] ss:$12 sps:$4 sm:$0xff]  }
  0x99   :  { %v1240_v39 = vld [vmem:[%s1748_s3 + $0x1c] ss:$12 sps:$4 sm:$0xff]  }
  0x9a   :  { %v1408_v43 = vsub.f32 %v31_v6, %v80_v40  ;;  %128 = vadd.xlane.f32.xlu1 %v109_v37  ;;  %130 = vadd.xlane.f32.xlu0 %v110_v41  ;;  %v1410_v44 = vsub.f32 %v32_v7, %v81_v42  ;;  %v1238_v37 = vld [vmem:[%s1748_s3 + $0x50] ss:$12 sps:$4 sm:$0xff]   ;;  %v1242_v40 = vld [vmem:[%s1748_s3 + $0x38] ss:$12 sps:$4 sm:$0xff]  }
  0x9b   :  { %v58_v46 = vpop.xlane.xlu0 %57  ;;  %v60_v47 = vpop.xlane.xlu1 %59  ;;  %v1243_v41 = vld [vmem:[%s1748_s3 + $0x18] ss:$12 sps:$4 sm:$0xff]  }
  0x9c   :  { %v82_v48 = vmul.f32 0.0078125, %v58_v46  ;;  %v112_v49 = vmul.f32 %v1408_v43, %v1408_v43  ;;  %v83_v50 = vmul.f32 0.0078125, %v60_v47  ;;  %v113_v53 = vmul.f32 %v1410_v44, %v1410_v44  ;;  %v1244_v42 = vld [vmem:[%s1748_s3 + $0x4] ss:$12 sps:$4 sm:$0xff]   ;;  %v1247_v46 = vld [vmem:[%s1748_s3] ss:$12 sps:$4 sm:$0xff]  }
  0x9d   :  { %v1249_v47 = vld [vmem:[%s1748_s3 + $0x8] ss:$12 sps:$4 sm:$0xff]  }
  0x9e   :  { %v1416_v51 = vsub.f32 %v33_v8, %v82_v48  ;;  %132 = vadd.xlane.f32.xlu1 %v111_v45  ;;  %134 = vadd.xlane.f32.xlu0 %v112_v49  ;;  %v1418_v52 = vsub.f32 %v34_v9, %v83_v50  ;;  %v1220_v8 = vld [vmem:[%s1748_s3 + $0x94] ss:$12 sps:$4 sm:$0xff]   ;;  %v1222_v9 = vld [vmem:[%s1748_s3 + $0xb0] ss:$12 sps:$4 sm:$0xff]   ;;  %v1289_v48 = vmov 0  }
  0x9f   :  { %v62_v54 = vpop.xlane.xlu0 %61  ;;  %v64_v55 = vpop.xlane.xlu1 %63  ;;  %587 = vmatprep.subr.bf16.mxu0 %v1220_v8  ;;  %1184 = vmatprep.subr.bf16.mxu1 %v1222_v9  ;;  %v1246_v45 = vld [vmem:[%s1748_s3 + $0x20] ss:$12 sps:$4 sm:$0xff]  }
  0xa0   :  { %v84_v56 = vmul.f32 0.0078125, %v62_v54  ;;  %v114_v57 = vmul.f32 %v1416_v51, %v1416_v51  ;;  %v85_v58 = vmul.f32 0.0078125, %v64_v55  ;;  %v115_v61 = vmul.f32 %v1418_v52, %v1418_v52  ;;  %1185 = vmatpush3.bf16.msra.mxu1 %v1222_v9  ;;  %617 = vmatprep.mubr.bf16.mxu0 %v1289_v48 }
  0xa1   :  { %1186 = vmatprep.subr.bf16.mxu1 %v1226_v24 }
  0xa2   :  { %v1425_v59 = vsub.f32 %v1353_v10, %v84_v56  ;;  %136 = vadd.xlane.f32.xlu1 %v113_v53  ;;  %138 = vadd.xlane.f32.xlu0 %v114_v57  ;;  %v1428_v60 = vsub.f32 %v1358_v11, %v85_v58 }
  0xa3   :  { %v66_v63 = vpop.xlane.xlu0 %65  ;;  %v68_v0 = vpop.xlane.xlu1 %67 }
  0xa4   :  { %v86_v2 = vmul.f32 0.0078125, %v66_v63  ;;  %v116_v3 = vmul.f32 %v1425_v59, %v1425_v59  ;;  %v87_v4 = vmul.f32 0.0078125, %v68_v0  ;;  %v117_v7 = vmul.f32 %v1428_v60, %v1428_v60  ;;  %1187 = vmatpush3.bf16.msra.mxu1 %v1226_v24 }
  0xa5   :  { %1188 = vmatprep.subr.bf16.mxu1 %v1230_v29 }
  0xa6   :  { %v1441_v5 = vsub.f32 %v1365_v12, %v86_v2  ;;  %140 = vadd.xlane.f32.xlu1 %v115_v61  ;;  %142 = vadd.xlane.f32.xlu0 %v116_v3  ;;  %v1444_v6 = vsub.f32 %v1370_v13, %v87_v4  ;;  %v1223_v12 = vld [vmem:[%s1748_s3 + $0x90] ss:$12 sps:$4 sm:$0xff]  }
  0xa7   :  { %v70_v10 = vpop.xlane.xlu0 %69  ;;  %v72_v11 = vpop.xlane.xlu1 %71  ;;  %588 = vmatpush1.bf16.msra.mxu0 %v1223_v12 }
  0xa8   :  { %v88_v16 = vmul.f32 0.0078125, %v70_v10  ;;  %v118_v13 = vmul.f32 %v1441_v5, %v1441_v5  ;;  %v89_v17 = vmul.f32 0.0078125, %v72_v11  ;;  %v119_v22 = vmul.f32 %v1444_v6, %v1444_v6  ;;  %589 = vmatprep.subr.bf16.mxu0 %v1224_v23  ;;  %1189 = vmatpush3.bf16.msra.mxu1 %v1230_v29  ;;  %v1532_v23 = vld [vmem:[%s1749_s1] ss:$0 sm:$0xff] }
  0xa9   :  { %1190 = vmatprep.subr.bf16.mxu1 %v1234_v32 }
  0xaa   :  { %v1460_v18 = vsub.f32 %v1377_v14, %v88_v16  ;;  %144 = vadd.xlane.f32.xlu1 %v117_v7  ;;  %146 = vadd.xlane.f32.xlu0 %v118_v13  ;;  %v1463_v19 = vsub.f32 %v1382_v15, %v89_v17  ;;  %v1227_v14 = vld [vmem:[%s1748_s3 + $0x78] ss:$12 sps:$4 sm:$0xff]  }
  0xab   :  { %590 = vmatpush1.bf16.msra.mxu0 %v1227_v14 }
  0xac   :  { %v120_v25 = vmul.f32 %v1460_v18, %v1460_v18  ;;  %v121_v15 = vmul.f32 %v1463_v19, %v1463_v19  ;;  %591 = vmatprep.subr.bf16.mxu0 %v1228_v26  ;;  %1191 = vmatpush3.bf16.msra.mxu1 %v1234_v32 }
  0xad   :  { %1192 = vmatprep.subr.bf16.mxu1 %v1238_v37 }
  0xae   :  { %148 = vadd.xlane.f32.xlu1 %v119_v22  ;;  %150 = vadd.xlane.f32.xlu0 %v120_v25 }
  0xaf   :  { %592 = vmatpush1.bf16.msra.mxu0 %v1231_v30 }
  0xb0   :  { %593 = vmatprep.subr.bf16.mxu0 %v1232_v31  ;;  %1193 = vmatpush3.bf16.msra.mxu1 %v1238_v37 }
  0xb1   :  { %1194 = vmatprep.subr.bf16.mxu1 %v1242_v40 }
  0xb2   :  { %152 = vadd.xlane.f32.xlu1 %v121_v15 }
  0xb3   :  { %594 = vmatpush1.bf16.msra.mxu0 %v1235_v33 }
  0xb4   :  { %595 = vmatprep.subr.bf16.mxu0 %v1236_v34  ;;  %1195 = vmatpush3.bf16.msra.mxu1 %v1242_v40  ;;  %v1539_v34 = vld [vmem:[%s1750_s2] ss:$0 sm:$0xff] }
  0xb5   :  { %1196 = vmatprep.subr.bf16.mxu1 %v1246_v45 }
  0xb7   :  { %596 = vmatpush1.bf16.msra.mxu0 %v1239_v38 }
  0xb8   :  { %597 = vmatprep.subr.bf16.mxu0 %v1240_v39  ;;  %1197 = vmatpush3.bf16.msra.mxu1 %v1246_v45 }
  0xb9   :  { %1198 = vmatprep.subr.bf16.mxu1 %v1249_v47 }
  0xbb   :  { %598 = vmatpush1.bf16.msra.mxu0 %v1243_v41 }
  0xbc   :  { %599 = vmatprep.subr.bf16.mxu0 %v1244_v42  ;;  %1199 = vmatpush3.bf16.msra.mxu1 %v1249_v47 }
  0xbf   :  { %600 = vmatpush1.bf16.msra.mxu0 %v1247_v46 }
 0x11b   :  { %v123_v49 = vpop.xlane.xlu0 %122 }
 0x11c   :  { %v154_v50 = vmul.f32 0.0078125, %v123_v49 }
 0x11e   :  { %v170_v53 = vadd.f32 1e-05, %v154_v50 }
 0x11f   :  { %v125_v54 = vpop.xlane.xlu1 %124  ;;  %v127_v55 = vpop.xlane.xlu0 %126 }
 0x120   :  { %1257 = vrsqrt.f32 %v170_v53  ;;  %v155_v56 = vmul.f32 0.0078125, %v125_v54  ;;  %v156_v57 = vmul.f32 0.0078125, %v127_v55 }
 0x122   :  { %v171_v58 = vadd.f32 1e-05, %v155_v56  ;;  %v172_v61 = vadd.f32 1e-05, %v156_v57 }
 0x123   :  { %v129_v62 = vpop.xlane.xlu1 %128  ;;  %v131_v63 = vpop.xlane.xlu0 %130 }
 0x124   :  { %1259 = vrsqrt.f32 %v171_v58  ;;  %v157_v0 = vmul.f32 0.0078125, %v129_v62  ;;  %v158_v1 = vmul.f32 0.0078125, %v131_v63 }
 0x125   :  { %1261 = vrsqrt.f32 %v172_v61 }
 0x126   :  { %v173_v2 = vadd.f32 1e-05, %v157_v0  ;;  %v174_v3 = vadd.f32 1e-05, %v158_v1 }
 0x127   :  { %v133_v4 = vpop.xlane.xlu1 %132  ;;  %v135_v7 = vpop.xlane.xlu0 %134 }
 0x128   :  { %1263 = vrsqrt.f32 %v173_v2  ;;  %v159_v8 = vmul.f32 0.0078125, %v133_v4  ;;  %v160_v9 = vmul.f32 0.0078125, %v135_v7 }
 0x129   :  { %1265 = vrsqrt.f32 %v174_v3 }
 0x12a   :  { %v175_v10 = vadd.f32 1e-05, %v159_v8  ;;  %v176_v11 = vadd.f32 1e-05, %v160_v9 }
 0x12b   :  { %v137_v12 = vpop.xlane.xlu1 %136  ;;  %v139_v16 = vpop.xlane.xlu0 %138 }
 0x12c   :  { %1267 = vrsqrt.f32 %v175_v10  ;;  %v161_v13 = vmul.f32 0.0078125, %v137_v12  ;;  %v162_v17 = vmul.f32 0.0078125, %v139_v16 }
 0x12d   :  { %v1258_v22 = vpop.eup %1257  ;;  %1269 = vrsqrt.f32 %v176_v11 }
 0x12e   :  { %v202_v24 = vmul.f32 %v1258_v22, %v1386_v20  ;;  %v177_v14 = vadd.f32 1e-05, %v161_v13  ;;  %v178_v25 = vadd.f32 1e-05, %v162_v17 }
 0x12f   :  { %v141_v15 = vpop.xlane.xlu1 %140  ;;  %v143_v26 = vpop.xlane.xlu0 %142 }
 0x130   :  { %1271 = vrsqrt.f32 %v177_v14  ;;  %v163_v29 = vmul.f32 0.0078125, %v141_v15  ;;  %v164_v30 = vmul.f32 0.0078125, %v143_v26  ;;  %v225_v32 = vmul.f32 %v1532_v23, %v202_v24 }
 0x131   :  { %v1260_v31 = vpop.eup %1259  ;;  %1273 = vrsqrt.f32 %v178_v25 }
 0x132   :  { %v1262_v33 = vpop.eup %1261  ;;  %v203_v37 = vmul.f32 %v1260_v31, %v1392_v27  ;;  %v179_v20 = vadd.f32 1e-05, %v163_v29  ;;  %v180_v38 = vadd.f32 1e-05, %v164_v30  ;;  %v248_v49 = vadd.f32 %v1539_v34, %v225_v32 }
 0x133   :  { %v204_v39 = vmul.f32 %v1262_v33, %v1388_v21  ;;  %v145_v40 = vpop.xlane.xlu1 %144  ;;  %v147_v41 = vpop.xlane.xlu0 %146 }
 0x134   :  { %v226_v42 = vmul.f32 %v1532_v23, %v203_v37  ;;  %1275 = vrsqrt.f32 %v179_v20  ;;  %v165_v45 = vmul.f32 0.0078125, %v145_v40  ;;  %v166_v46 = vmul.f32 0.0078125, %v147_v41 }
 0x135   :  { %v1264_v47 = vpop.eup %1263  ;;  %v227_v50 = vmul.f32 %v1532_v23, %v204_v39  ;;  %1277 = vrsqrt.f32 %v180_v38 }
 0x136   :  { %v1266_v53 = vpop.eup %1265  ;;  %v249_v27 = vadd.f32 %v1539_v34, %v226_v42  ;;  %v205_v54 = vmul.f32 %v1264_v47, %v1394_v28  ;;  %v181_v55 = vadd.f32 1e-05, %v165_v45  ;;  %v182_v21 = vadd.f32 1e-05, %v166_v46 }
 0x137   :  { %v206_v56 = vmul.f32 %v1266_v53, %v1400_v35  ;;  %v149_v57 = vpop.xlane.xlu1 %148  ;;  %v151_v58 = vpop.xlane.xlu0 %150  ;;  %v250_v28 = vadd.f32 %v1539_v34, %v227_v50 }
 0x138   :  { %v1124_v61 = vpack.c.bf16 %v249_v27, %v248_v49  ;;  %v228_v62 = vmul.f32 %v1532_v23, %v205_v54  ;;  %1279 = vrsqrt.f32 %v181_v55  ;;  %v167_v63 = vmul.f32 0.0078125, %v149_v57 }
 0x139   :  { %v1268_v0 = vpop.eup %1267  ;;  %v229_v1 = vmul.f32 %v1532_v23, %v206_v56  ;;  %1281 = vrsqrt.f32 %v182_v21  ;;  %v168_v2 = vmul.f32 0.0078125, %v151_v58 }
 0x13a   :  { %v1270_v3 = vpop.eup %1269  ;;  %1125 = vst [vmem:[#allocation2] sm:$0xff] %v1124_v61   ;;  %v251_v4 = vadd.f32 %v1539_v34, %v228_v62  ;;  %v207_v35 = vmul.f32 %v1268_v0, %v1402_v36  ;;  %v183_v7 = vadd.f32 1e-05, %v167_v63 }
 0x13b   :  { %v208_v8 = vmul.f32 %v1270_v3, %v1408_v43  ;;  %v184_v9 = vadd.f32 1e-05, %v168_v2  ;;  %v153_v10 = vpop.xlane.xlu1 %152  ;;  %v252_v17 = vadd.f32 %v1539_v34, %v229_v1 }
 0x13c   :  { %v1129_v11 = vpack.c.bf16 %v251_v4, %v250_v28  ;;  %v230_v12 = vmul.f32 %v1532_v23, %v207_v35  ;;  %1283 = vrsqrt.f32 %v183_v7  ;;  %v169_v16 = vmul.f32 0.0078125, %v153_v10  ;;  %v392_v10 = vld [vmem:[%s1751_s4] sm:$0x7] }
 0x13d   :  { %v1272_v13 = vpop.eup %1271  ;;  %1285 = vrsqrt.f32 %v184_v9  ;;  %v231_v36 = vmul.f32 %v1532_v23, %v208_v8 }
 0x13e   :  { %v1274_v22 = vpop.eup %1273  ;;  %1161 = vst [vmem:[#allocation2 + $0x8] sm:$0xff] %v1129_v11   ;;  %v253_v24 = vadd.f32 %v1539_v34, %v230_v12  ;;  %v209_v14 = vmul.f32 %v1272_v13, %v1410_v44  ;;  %v185_v43 = vadd.f32 1e-05, %v169_v16 }
 0x13f   :  { %v210_v25 = vmul.f32 %v1274_v22, %v1416_v51  ;;  %v254_v32 = vadd.f32 %v1539_v34, %v231_v36 }
 0x140   :  { %v1134_v15 = vpack.c.bf16 %v253_v24, %v252_v17  ;;  %v232_v26 = vmul.f32 %v1532_v23, %v209_v14  ;;  %1287 = vrsqrt.f32 %v185_v43 }
 0x141   :  { %v1276_v29 = vpop.eup %1275  ;;  %v1248_v30 = vld [vmem:[#allocation2] sm:$0xff]   ;;  %v233_v37 = vmul.f32 %v1532_v23, %v210_v25 }
 0x142   :  { %v1278_v31 = vpop.eup %1277  ;;  %1162 = vst [vmem:[#allocation2 + $0x10] sm:$0xff] %v1134_v15   ;;  %v255_v33 = vadd.f32 %v1539_v34, %v232_v26  ;;  %v211_v20 = vmul.f32 %v1276_v29, %v1418_v52  ;;  %618 = vmatmul.mubr.bf16.vlgmr.msra.gmra.mxu0 %v1248_v30  ;;  %1200 = vmatprep.mubr.bf16.mxu1 %v1248_v30 }
 0x143   :  { %v212_v44 = vmul.f32 %v1278_v31, %v1425_v59  ;;  %627 = vmatprep.mubr.bf16.mxu0 %v1289_v48  ;;  %v256_v42 = vadd.f32 %v1539_v34, %v233_v37 }
 0x144   :  { %v1139_v51 = vpack.c.bf16 %v255_v33, %v254_v32  ;;  %v234_v38 = vmul.f32 %v1532_v23, %v211_v20 }
 0x145   :  { %v1280_v39 = vpop.eup %1279  ;;  %v1250_v40 = vld [vmem:[#allocation2 + $0x8] sm:$0xff]   ;;  %v235_v46 = vmul.f32 %v1532_v23, %v212_v44 }
 0x146   :  { %v1282_v41 = vpop.eup %1281  ;;  %1163 = vst [vmem:[#allocation2 + $0x18] sm:$0xff] %v1139_v51   ;;  %v257_v45 = vadd.f32 %v1539_v34, %v234_v38  ;;  %v213_v52 = vmul.f32 %v1280_v39, %v1428_v60  ;;  %1201 = vmatmul.mubr.bf16.vlgmr.msra.gmra.mxu1 %v1250_v40 }
 0x147   :  { %v214_v59 = vmul.f32 %v1282_v41, %v1441_v5  ;;  %v258_v54 = vadd.f32 %v1539_v34, %v235_v46 }
 0x148   :  { %v1144_v47 = vpack.c.bf16 %v257_v45, %v256_v42  ;;  %v236_v49 = vmul.f32 %v1532_v23, %v213_v52 }
 0x149   :  { %v1284_v50 = vpop.eup %1283  ;;  %v1251_v53 = vld [vmem:[#allocation2 + $0x10] sm:$0xff]   ;;  %v237_v21 = vmul.f32 %v1532_v23, %v214_v59 }
 0x14a   :  { %v1286_v27 = vpop.eup %1285  ;;  %1164 = vst [vmem:[#allocation2 + $0x20] sm:$0xff] %v1144_v47   ;;  %v259_v55 = vadd.f32 %v1539_v34, %v236_v49  ;;  %v215_v56 = vmul.f32 %v1284_v50, %v1444_v6  ;;  %628 = vmatmul.mubr.bf16.gmra.mxu0 %v1250_v40  ;;  %1204 = vmatprep.mubr.bf16.mxu1 %v1251_v53 }
 0x14b   :  { %v216_v60 = vmul.f32 %v1286_v27, %v1460_v18  ;;  %637 = vmatprep.mubr.bf16.mxu0 %v1289_v48  ;;  %v260_v62 = vadd.f32 %v1539_v34, %v237_v21 }
 0x14c   :  { %v1149_v5 = vpack.c.bf16 %v259_v55, %v258_v54  ;;  %v238_v57 = vmul.f32 %v1532_v23, %v215_v56 }
 0x14d   :  { %v1288_v58 = vpop.eup %1287  ;;  %v1252_v61 = vld [vmem:[#allocation2 + $0x18] sm:$0xff]   ;;  %v239_v0 = vmul.f32 %v1532_v23, %v216_v60 }
 0x14e   :  { %1165 = vst [vmem:[#allocation2 + $0x28] sm:$0xff] %v1149_v5   ;;  %v261_v63 = vadd.f32 %v1539_v34, %v238_v57  ;;  %v217_v6 = vmul.f32 %v1288_v58, %v1463_v19  ;;  %1205 = vmatmul.mubr.bf16.gmra.mxu1 %v1252_v61 }
 0x14f   :  { %v262_v3 = vadd.f32 %v1539_v34, %v239_v0 }
 0x150   :  { %v1154_v18 = vpack.c.bf16 %v261_v63, %v260_v62  ;;  %v240_v1 = vmul.f32 %v1532_v23, %v217_v6  ;;  %v394_v23 = vlaneseq }
 0x151   :  { %v1253_v2 = vld [vmem:[#allocation2 + $0x20] sm:$0xff]  }
 0x152   :  { %1166 = vst [vmem:[#allocation2 + $0x30] sm:$0xff] %v1154_v18   ;;  %v263_v28 = vadd.f32 %v1539_v34, %v240_v1  ;;  %638 = vmatmul.mubr.bf16.gmra.mxu0 %v1251_v53  ;;  %1208 = vmatprep.mubr.bf16.mxu1 %v1253_v2  ;;  %v395_v34 = vshrl.u32 %v394_v23, 7 }
 0x153   :  { %647 = vmatprep.mubr.bf16.mxu0 %v1289_v48 }
 0x154   :  { %v1159_v4 = vpack.c.bf16 %v263_v28, %v262_v3  ;;  %v396_v8 = vsub.s32 0, %v395_v34  ;;  %v400_v9 = vsub.s32 1, %v395_v34  ;;  %v404_v11 = vsub.s32 2, %v395_v34 }
 0x155   :  { %v1254_v35 = vld [vmem:[#allocation2 + $0x28] sm:$0xff]  }
 0x156   :  { %1167 = vst [vmem:[#allocation2 + $0x38] sm:$0xff] %v1159_v4   ;;  %1209 = vmatmul.mubr.bf16.gmra.mxu1 %v1254_v35  ;;  %v1597_v12 = vrot.slane %v392_v10, %v396_v8  ;;  %v1599_v16 = vrot.slane %v392_v10, %v400_v9  ;;  %v1601_v17 = vrot.slane %v392_v10, %v404_v11 }
 0x159   :  { %v1255_v7 = vld [vmem:[#allocation2 + $0x30] sm:$0xff]  }
 0x15a   :  { %648 = vmatmul.mubr.bf16.gmra.mxu0 %v1252_v61  ;;  %1212 = vmatprep.mubr.bf16.mxu1 %v1255_v7 }
 0x15b   :  { %657 = vmatprep.mubr.bf16.mxu0 %v1289_v48 }
 0x15d   :  { %v1256_v19 = vld [vmem:[#allocation2 + $0x38] sm:$0xff]  }
 0x15e   :  { %1213 = vmatmul.mubr.bf16.gmra.mxu1 %v1256_v19 }
 0x162   :  { %658 = vmatmul.mubr.bf16.gmra.mxu0 %v1253_v2 }
 0x163   :  { %667 = vmatprep.mubr.bf16.mxu0 %v1289_v48 }
 0x16a   :  { %668 = vmatmul.mubr.bf16.gmra.mxu0 %v1254_v35 }
 0x16b   :  { %677 = vmatprep.mubr.bf16.mxu0 %v1289_v48 }
 0x172   :  { %678 = vmatmul.mubr.bf16.gmra.mxu0 %v1255_v7 }
 0x173   :  { %687 = vmatprep.mubr.bf16.mxu0 %v1289_v48 }
 0x17a   :  { %688 = vmatmul.mubr.bf16.gmra.mxu0 %v1256_v19 }
 0x202   :  { %v619_v13 = vpop.f32.mrf.mxu0 }
 0x203   :  { %v620_v48 = vadd.f32 %v619_v13, %v1597_v12 }
 0x204   :  { %v621_v22 = vpop.f32.mrf.mxu0 }
 0x205   :  { %v622_v24 = vadd.f32 %v621_v22, %v1599_v16 }
 0x206   :  { %v623_v36 = vpop.f32.mrf.mxu0  ;;  %v1202_v14 = vpop.f32.mrf.mxu1 }
 0x207   :  { %v1089_v43 = vpack.c.bf16 %v622_v24, %v620_v48  ;;  %v741_v25 = vadd.f32 %v1202_v14, %v1601_v17  ;;  %v624_v29 = vadd.f32 %v623_v36, %v1597_v12 }
 0x208   :  { %v625_v15 = vpop.f32.mrf.mxu0  ;;  %v732_v26 = vpop.f32.mrf.mxu1 }
 0x209   :  { %955 = vst [vmem:[%s1752_s5] sm:$0xff] %v1089_v43  ;;  %v1094_v30 = vpack.c.bf16 %v741_v25, %v741_v25  ;;  %v626_v31 = vadd.f32 %v625_v15, %v1599_v16  ;;  %v733_v32 = vadd.f32 %v732_v26, %v1601_v17 }
 0x20a   :  { %v629_v33 = vpop.f32.mrf.mxu0  ;;  %v1203_v37 = vpop.f32.mrf.mxu1 }
 0x20b   :  { %960 = vst [vmem:[%s1752_s5 + $0x20] sm:$0xf] %v1094_v30  ;;  %v1091_v20 = vpack.c.bf16 %v626_v31, %v624_v29  ;;  %v1090_v44 = vpack.c.bf16 %v733_v32, %v733_v32  ;;  %v744_v51 = vadd.f32 %v1203_v37, %v1601_v17  ;;  %v630_v40 = vadd.f32 %v629_v33, %v1597_v12 }
 0x20c   :  { %v631_v38 = vpop.f32.mrf.mxu0  ;;  %v735_v39 = vpop.f32.mrf.mxu1 }
 0x20d   :  { %957 = vst [vmem:[%s1752_s5 + $0xc] sm:$0xff] %v1091_v20  ;;  %956 = vst [vmem:[%s1752_s5 + $0x8] sm:$0xf] %v1090_v44  ;;  %v1096_v41 = vpack.c.bf16 %v744_v51, %v744_v51  ;;  %v632_v42 = vadd.f32 %v631_v38, %v1599_v16  ;;  %v736_v45 = vadd.f32 %v735_v39, %v1601_v17 }
 0x20e   :  { %v633_v46 = vpop.f32.mrf.mxu0  ;;  %v1206_v52 = vpop.f32.mrf.mxu1 }
 0x20f   :  { %962 = vst [vmem:[%s1752_s5 + $0x2c] sm:$0xf] %v1096_v41  ;;  %v1093_v59 = vpack.c.bf16 %v632_v42, %v630_v40  ;;  %v1092_v47 = vpack.c.bf16 %v736_v45, %v736_v45  ;;  %v757_v49 = vadd.f32 %v1206_v52, %v1601_v17  ;;  %v634_v27 = vadd.f32 %v633_v46, %v1597_v12 }
 0x210   :  { %v635_v50 = vpop.f32.mrf.mxu0  ;;  %v748_v53 = vpop.f32.mrf.mxu1 }
 0x211   :  { %959 = vst [vmem:[%s1752_s5 + $0x18] sm:$0xff] %v1093_v59  ;;  %958 = vst [vmem:[%s1752_s5 + $0x14] sm:$0xf] %v1092_v47  ;;  %v1102_v54 = vpack.c.bf16 %v757_v49, %v757_v49  ;;  %v636_v55 = vadd.f32 %v635_v50, %v1599_v16  ;;  %v749_v21 = vadd.f32 %v748_v53, %v1601_v17 }
 0x212   :  { %v639_v56 = vpop.f32.mrf.mxu0  ;;  %v1207_v60 = vpop.f32.mrf.mxu1 }
 0x213   :  { %968 = vst [vmem:[%s1752_s5 + $0x50] sm:$0xf] %v1102_v54  ;;  %v1095_v5 = vpack.c.bf16 %v636_v55, %v634_v27  ;;  %v1098_v57 = vpack.c.bf16 %v749_v21, %v749_v21  ;;  %v760_v58 = vadd.f32 %v1207_v60, %v1601_v17  ;;  %v640_v63 = vadd.f32 %v639_v56, %v1597_v12 }
 0x214   :  { %v641_v61 = vpop.f32.mrf.mxu0  ;;  %v751_v62 = vpop.f32.mrf.mxu1 }
 0x215   :  { %961 = vst [vmem:[%s1752_s5 + $0x24] sm:$0xff] %v1095_v5  ;;  %964 = vst [vmem:[%s1752_s5 + $0x38] sm:$0xf] %v1098_v57  ;;  %v1104_v0 = vpack.c.bf16 %v760_v58, %v760_v58  ;;  %v642_v6 = vadd.f32 %v641_v61, %v1599_v16  ;;  %v752_v18 = vadd.f32 %v751_v62, %v1601_v17 }
 0x216   :  { %v643_v1 = vpop.f32.mrf.mxu0  ;;  %v1210_v2 = vpop.f32.mrf.mxu1 }
 0x217   :  { %970 = vst [vmem:[%s1752_s5 + $0x5c] sm:$0xf] %v1104_v0  ;;  %v1097_v3 = vpack.c.bf16 %v642_v6, %v640_v63  ;;  %v1100_v28 = vpack.c.bf16 %v752_v18, %v752_v18  ;;  %v773_v4 = vadd.f32 %v1210_v2, %v1601_v17  ;;  %v644_v19 = vadd.f32 %v643_v1, %v1597_v12 }
 0x218   :  { %v645_v35 = vpop.f32.mrf.mxu0  ;;  %v764_v7 = vpop.f32.mrf.mxu1 }
 0x219   :  { %963 = vst [vmem:[%s1752_s5 + $0x30] sm:$0xff] %v1097_v3  ;;  %966 = vst [vmem:[%s1752_s5 + $0x44] sm:$0xf] %v1100_v28  ;;  %v1110_v23 = vpack.c.bf16 %v773_v4, %v773_v4  ;;  %v646_v34 = vadd.f32 %v645_v35, %v1599_v16  ;;  %v765_v8 = vadd.f32 %v764_v7, %v1601_v17 }
 0x21a   :  { %v649_v9 = vpop.f32.mrf.mxu0  ;;  %v1211_v10 = vpop.f32.mrf.mxu1 }
 0x21b   :  { %976 = vst [vmem:[%s1752_s5 + $0x80] sm:$0xf] %v1110_v23  ;;  %v1099_v11 = vpack.c.bf16 %v646_v34, %v644_v19  ;;  %v1106_v13 = vpack.c.bf16 %v765_v8, %v765_v8  ;;  %v776_v22 = vadd.f32 %v1211_v10, %v1601_v17  ;;  %v650_v36 = vadd.f32 %v649_v9, %v1597_v12 }
 0x21c   :  { %v651_v48 = vpop.f32.mrf.mxu0  ;;  %v767_v24 = vpop.f32.mrf.mxu1 }
 0x21d   :  { %965 = vst [vmem:[%s1752_s5 + $0x3c] sm:$0xff] %v1099_v11  ;;  %972 = vst [vmem:[%s1752_s5 + $0x68] sm:$0xf] %v1106_v13  ;;  %v1112_v14 = vpack.c.bf16 %v776_v22, %v776_v22  ;;  %v652_v43 = vadd.f32 %v651_v48, %v1599_v16  ;;  %v768_v25 = vadd.f32 %v767_v24, %v1601_v17 }
 0x21e   :  { %v653_v15 = vpop.f32.mrf.mxu0  ;;  %v1214_v26 = vpop.f32.mrf.mxu1 }
 0x21f   :  { %978 = vst [vmem:[%s1752_s5 + $0x8c] sm:$0xf] %v1112_v14  ;;  %v1101_v29 = vpack.c.bf16 %v652_v43, %v650_v36  ;;  %v1108_v30 = vpack.c.bf16 %v768_v25, %v768_v25  ;;  %v789_v31 = vadd.f32 %v1214_v26, %v1601_v17  ;;  %v654_v37 = vadd.f32 %v653_v15, %v1597_v12 }
 0x220   :  { %v655_v32 = vpop.f32.mrf.mxu0  ;;  %v780_v33 = vpop.f32.mrf.mxu1 }
 0x221   :  { %967 = vst [vmem:[%s1752_s5 + $0x48] sm:$0xff] %v1101_v29  ;;  %974 = vst [vmem:[%s1752_s5 + $0x74] sm:$0xf] %v1108_v30  ;;  %v1118_v20 = vpack.c.bf16 %v789_v31, %v789_v31  ;;  %v656_v44 = vadd.f32 %v655_v32, %v1599_v16  ;;  %v781_v51 = vadd.f32 %v780_v33, %v1601_v17 }
 0x222   :  { %v659_v38 = vpop.f32.mrf.mxu0  ;;  %v1215_v39 = vpop.f32.mrf.mxu1 }
 0x223   :  { %984 = vst [vmem:[%s1752_s5 + $0xb0] sm:$0xf] %v1118_v20  ;;  %v1103_v40 = vpack.c.bf16 %v656_v44, %v654_v37  ;;  %v1114_v41 = vpack.c.bf16 %v781_v51, %v781_v51  ;;  %v792_v42 = vadd.f32 %v1215_v39, %v1601_v17  ;;  %v660_v52 = vadd.f32 %v659_v38, %v1597_v12 }
 0x224   :  { %v661_v45 = vpop.f32.mrf.mxu0  ;;  %v783_v46 = vpop.f32.mrf.mxu1 }
 0x225   :  { %969 = vst [vmem:[%s1752_s5 + $0x54] sm:$0xff] %v1103_v40  ;;  %980 = vst [vmem:[%s1752_s5 + $0x98] sm:$0xf] %v1114_v41  ;;  %v1120_v59 = vpack.c.bf16 %v792_v42, %v792_v42  ;;  %v662_v47 = vadd.f32 %v661_v45, %v1599_v16  ;;  %v784_v49 = vadd.f32 %v783_v46, %v1601_v17 }
 0x226   :  { %v663_v50 = vpop.f32.mrf.mxu0 }
 0x227   :  { %986 = vst [vmem:[%s1752_s5 + $0xbc] sm:$0xf] %v1120_v59  ;;  %v1105_v53 = vpack.c.bf16 %v662_v47, %v660_v52  ;;  %v1116_v27 = vpack.c.bf16 %v784_v49, %v784_v49  ;;  %v664_v55 = vadd.f32 %v663_v50, %v1597_v12 }
 0x228   :  { %v665_v54 = vpop.f32.mrf.mxu0 }
 0x229   :  { %971 = vst [vmem:[%s1752_s5 + $0x60] sm:$0xff] %v1105_v53  ;;  %982 = vst [vmem:[%s1752_s5 + $0xa4] sm:$0xf] %v1116_v27  ;;  %v666_v17 = vadd.f32 %v665_v54, %v1599_v16 }
 0x22a   :  { %v669_v21 = vpop.f32.mrf.mxu0 }
 0x22b   :  { %v1107_v56 = vpack.c.bf16 %v666_v17, %v664_v55  ;;  %v670_v5 = vadd.f32 %v669_v21, %v1597_v12 }
 0x22c   :  { %v671_v60 = vpop.f32.mrf.mxu0 }
 0x22d   :  { %973 = vst [vmem:[%s1752_s5 + $0x6c] sm:$0xff] %v1107_v56  ;;  %v672_v57 = vadd.f32 %v671_v60, %v1599_v16 }
 0x22e   :  { %v673_v58 = vpop.f32.mrf.mxu0 }
 0x22f   :  { %v1109_v61 = vpack.c.bf16 %v672_v57, %v670_v5  ;;  %v674_v63 = vadd.f32 %v673_v58, %v1597_v12 }
 0x230   :  { %v675_v62 = vpop.f32.mrf.mxu0 }
 0x231   :  { %975 = vst [vmem:[%s1752_s5 + $0x78] sm:$0xff] %v1109_v61  ;;  %v676_v0 = vadd.f32 %v675_v62, %v1599_v16 }
 0x232   :  { %v679_v6 = vpop.f32.mrf.mxu0 }
 0x233   :  { %v1111_v18 = vpack.c.bf16 %v676_v0, %v674_v63  ;;  %v680_v2 = vadd.f32 %v679_v6, %v1597_v12 }
 0x234   :  { %v681_v1 = vpop.f32.mrf.mxu0 }
 0x235   :  { %977 = vst [vmem:[%s1752_s5 + $0x84] sm:$0xff] %v1111_v18  ;;  %v682_v3 = vadd.f32 %v681_v1, %v1599_v16 }
 0x236   :  { %v683_v28 = vpop.f32.mrf.mxu0 }
 0x237   :  { %v1113_v4 = vpack.c.bf16 %v682_v3, %v680_v2  ;;  %v684_v7 = vadd.f32 %v683_v28, %v1597_v12 }
 0x238   :  { %v685_v35 = vpop.f32.mrf.mxu0 }
 0x239   :  { %979 = vst [vmem:[%s1752_s5 + $0x90] sm:$0xff] %v1113_v4  ;;  %v686_v19 = vadd.f32 %v685_v35, %v1599_v16 }
 0x23a   :  { %v689_v23 = vpop.f32.mrf.mxu0 }
 0x23b   :  { %v1115_v34 = vpack.c.bf16 %v686_v19, %v684_v7  ;;  %v690_v9 = vadd.f32 %v689_v23, %v1597_v12 }
 0x23c   :  { %v691_v8 = vpop.f32.mrf.mxu0 }
 0x23d   :  { %981 = vst [vmem:[%s1752_s5 + $0x9c] sm:$0xff] %v1115_v34  ;;  %v692_v10 = vadd.f32 %v691_v8, %v1599_v16 }
 0x23e   :  { %v693_v11 = vpop.f32.mrf.mxu0 }
 0x23f   :  { %v1117_v13 = vpack.c.bf16 %v692_v10, %v690_v9  ;;  %v694_v48 = vadd.f32 %v693_v11, %v1597_v12 }
 0x240   :  { %v695_v22 = vpop.f32.mrf.mxu0 }
 0x241   :  { %983 = vst [vmem:[%s1752_s5 + $0xa8] sm:$0xff] %v1117_v13  ;;  %v696_v24 = vadd.f32 %v695_v22, %v1599_v16 }
 0x243   :  { %v1119_v36 = vpack.c.bf16 %v696_v24, %v694_v48 }
 0x245   :  { %985 = vst [vmem:[%s1752_s5 + $0xb4] sm:$0xff] %v1119_v36 }

// kernel: block_forward.9
= control target key start
LH: loop header
LB: loop body
LE: loop exit
PB: predicated region body
PF: predicated region fallthrough
CT: control target
= control target key end

     0   :  { %s1322_s0 = inlined_call_operand.vmem [shape: bf16[128,512], index: 0, kind: input, shape index: {}]   ;;  %s1323_s1 = inlined_call_operand.vmem [shape: bf16[512,128], index: 1, kind: input, shape index: {}]   ;;  %s1324_s2 = inlined_call_operand.vmem [shape: f32[1,128], index: 2, kind: input, shape index: {}]   ;;  %s1325_s3 = inlined_call_operand.vmem [shape: f32[128,128], index: 3, kind: input, shape index: {}]   ;;  %s1326_s4 = inlined_call_operand.hbm [shape: f32[128,128], index: 4, kind: output, shape index: {}]  }
   0x1   :  { %v928_v0 = vld [vmem:[%s1323_s1 + $0x78] sm:$0xff]   ;;  %v932_v4 = vld [vmem:[%s1323_s1 + $0x70] sm:$0xff]   ;;  %v936_v8 = vld [vmem:[%s1323_s1 + $0x68] sm:$0xff]  }
   0x2   :  { %v929_v1 = vld [vmem:[%s1323_s1 + $0xf8] sm:$0xff]   ;;  %797 = vmatprep.subr.bf16.mxu0 %v928_v0  ;;  %v933_v5 = vld [vmem:[%s1323_s1 + $0xf0] sm:$0xff]   ;;  %v937_v9 = vld [vmem:[%s1323_s1 + $0xe8] sm:$0xff]  }
   0x3   :  { %v930_v2 = vld [vmem:[%s1323_s1 + $0x38] sm:$0xff]   ;;  %861 = vmatprep.subr.bf16.mxu1 %v929_v1  ;;  %v934_v6 = vld [vmem:[%s1323_s1 + $0x30] sm:$0xff]   ;;  %v938_v10 = vld [vmem:[%s1323_s1 + $0x28] sm:$0xff]  }
   0x4   :  { %v931_v3 = vld [vmem:[%s1323_s1 + $0xb8] sm:$0xff]   ;;  %798 = vmatpush3.bf16.msra.mxu0 %v930_v2  ;;  %v935_v7 = vld [vmem:[%s1323_s1 + $0xb0] sm:$0xff]   ;;  %v939_v11 = vld [vmem:[%s1323_s1 + $0xa8] sm:$0xff]  }
   0x5   :  { %862 = vmatpush3.bf16.msra.mxu1 %v931_v3  ;;  %799 = vmatprep.subr.bf16.mxu0 %v932_v4  ;;  %v940_v12 = vld [vmem:[%s1323_s1 + $0x60] sm:$0xff]   ;;  %v944_v16 = vld [vmem:[%s1323_s1 + $0x58] sm:$0xff]   ;;  %v948_v20 = vld [vmem:[%s1323_s1 + $0x50] sm:$0xff]  }
   0x6   :  { %863 = vmatprep.subr.bf16.mxu1 %v933_v5  ;;  %v941_v13 = vld [vmem:[%s1323_s1 + $0xe0] sm:$0xff]   ;;  %v945_v17 = vld [vmem:[%s1323_s1 + $0xd8] sm:$0xff]   ;;  %v949_v21 = vld [vmem:[%s1323_s1 + $0xd0] sm:$0xff]  }
   0x7   :  { %v942_v14 = vld [vmem:[%s1323_s1 + $0x20] sm:$0xff]   ;;  %v946_v18 = vld [vmem:[%s1323_s1 + $0x18] sm:$0xff]   ;;  %v950_v22 = vld [vmem:[%s1323_s1 + $0x10] sm:$0xff]  }
   0x8   :  { %800 = vmatpush3.bf16.msra.mxu0 %v934_v6  ;;  %v943_v15 = vld [vmem:[%s1323_s1 + $0xa0] sm:$0xff]   ;;  %v947_v19 = vld [vmem:[%s1323_s1 + $0x98] sm:$0xff]   ;;  %v951_v23 = vld [vmem:[%s1323_s1 + $0x90] sm:$0xff]  }
   0x9   :  { %864 = vmatpush3.bf16.msra.mxu1 %v935_v7  ;;  %801 = vmatprep.subr.bf16.mxu0 %v936_v8  ;;  %v952_v24 = vld [vmem:[%s1323_s1 + $0x48] sm:$0xff]   ;;  %v956_v28 = vld [vmem:[%s1323_s1 + $0x40] sm:$0xff]  }
   0xa   :  { %865 = vmatprep.subr.bf16.mxu1 %v937_v9  ;;  %v953_v25 = vld [vmem:[%s1323_s1 + $0xc8] sm:$0xff]   ;;  %v957_v29 = vld [vmem:[%s1323_s1 + $0xc0] sm:$0xff]  }
   0xb   :  { %v954_v26 = vld [vmem:[%s1323_s1 + $0x8] sm:$0xff]   ;;  %v958_v30 = vld [vmem:[%s1323_s1] sm:$0xff]  }
   0xc   :  { %802 = vmatpush3.bf16.msra.mxu0 %v938_v10  ;;  %v955_v27 = vld [vmem:[%s1323_s1 + $0x88] sm:$0xff]   ;;  %v959_v31 = vld [vmem:[%s1323_s1 + $0x80] sm:$0xff]  }
   0xd   :  { %866 = vmatpush3.bf16.msra.mxu1 %v939_v11  ;;  %803 = vmatprep.subr.bf16.mxu0 %v940_v12  ;;  %v960_v32 = vld [vmem:[%s1322_s0] ss:$16 sps:$4 sm:$0xff]   ;;  %v962_v33 = vld [vmem:[%s1322_s0 + $0x4] ss:$16 sps:$4 sm:$0xff]   ;;  %v963_v34 = vld [vmem:[%s1322_s0 + $0x8] ss:$16 sps:$4 sm:$0xff]  }
   0xe   :  { %867 = vmatprep.subr.bf16.mxu1 %v941_v13  ;;  %v965_v35 = vld [vmem:[%s1322_s0 + $0xc] ss:$16 sps:$4 sm:$0xff]   ;;  %506 = vmatprep.mubr.bf16.mxu0 %v962_v33  ;;  %v966_v36 = vld [vmem:[%s1322_s0 + $0x24] ss:$16 sps:$4 sm:$0xff]   ;;  %v970_v38 = vld [vmem:[%s1322_s0 + $0x20] ss:$16 sps:$4 sm:$0xff]  }
   0xf   :  { %603 = vmatprep.mubr.bf16.mxu1 %v965_v35  ;;  %v968_v37 = vld [vmem:[%s1322_s0 + $0x2c] ss:$16 sps:$4 sm:$0xff]   ;;  %v971_v39 = vld [vmem:[%s1322_s0 + $0x28] ss:$16 sps:$4 sm:$0xff]   ;;  %v972_v40 = vld [vmem:[%s1322_s0 + $0x44] ss:$16 sps:$4 sm:$0xff]  }
  0x10   :  { %804 = vmatpush3.bf16.msra.mxu0 %v942_v14  ;;  %v974_v41 = vld [vmem:[%s1322_s0 + $0x4c] ss:$16 sps:$4 sm:$0xff]   ;;  %v976_v42 = vld [vmem:[%s1322_s0 + $0x40] ss:$16 sps:$4 sm:$0xff]   ;;  %v977_v43 = vld [vmem:[%s1322_s0 + $0x48] ss:$16 sps:$4 sm:$0xff]  }
  0x11   :  { %868 = vmatpush3.bf16.msra.mxu1 %v943_v15  ;;  %805 = vmatprep.subr.bf16.mxu0 %v944_v16  ;;  %v978_v44 = vld [vmem:[%s1322_s0 + $0x64] ss:$16 sps:$4 sm:$0xff]   ;;  %v980_v45 = vld [vmem:[%s1322_s0 + $0x6c] ss:$16 sps:$4 sm:$0xff]  }
  0x12   :  { %869 = vmatprep.subr.bf16.mxu1 %v945_v17 }
  0x14   :  { %806 = vmatpush3.bf16.msra.mxu0 %v946_v18 }
  0x15   :  { %870 = vmatpush3.bf16.msra.mxu1 %v947_v19  ;;  %807 = vmatprep.subr.bf16.mxu0 %v948_v20 }
  0x16   :  { %871 = vmatprep.subr.bf16.mxu1 %v949_v21 }
  0x18   :  { %808 = vmatpush3.bf16.msra.mxu0 %v950_v22 }
  0x19   :  { %872 = vmatpush3.bf16.msra.mxu1 %v951_v23  ;;  %809 = vmatprep.subr.bf16.mxu0 %v952_v24 }
  0x1a   :  { %873 = vmatprep.subr.bf16.mxu1 %v953_v25 }
  0x1c   :  { %810 = vmatpush3.bf16.msra.mxu0 %v954_v26 }
  0x1d   :  { %874 = vmatpush3.bf16.msra.mxu1 %v955_v27  ;;  %811 = vmatprep.subr.bf16.mxu0 %v956_v28 }
  0x1e   :  { %875 = vmatprep.subr.bf16.mxu1 %v957_v29 }
  0x20   :  { %812 = vmatpush3.bf16.msra.mxu0 %v958_v30 }
  0x21   :  { %876 = vmatpush3.bf16.msra.mxu1 %v959_v31 }
  0x23   :  { %507 = vmatmul.mubr.bf16.vlgmr.msra.gmra.mxu0 %v960_v32 }
  0x24   :  { %604 = vmatmul.mubr.bf16.vlgmr.msra.gmra.mxu1 %v963_v34  ;;  %514 = vmatprep.mubr.bf16.mxu0 %v966_v36 }
  0x25   :  { %611 = vmatprep.mubr.bf16.mxu1 %v968_v37 }
  0x2b   :  { %515 = vmatmul.mubr.bf16.gmra.mxu0 %v970_v38 }
  0x2c   :  { %612 = vmatmul.mubr.bf16.gmra.mxu1 %v971_v39  ;;  %522 = vmatprep.mubr.bf16.mxu0 %v972_v40 }
  0x2d   :  { %619 = vmatprep.mubr.bf16.mxu1 %v974_v41 }
  0x33   :  { %523 = vmatmul.mubr.bf16.gmra.mxu0 %v976_v42 }
  0x34   :  { %620 = vmatmul.mubr.bf16.gmra.mxu1 %v977_v43  ;;  %530 = vmatprep.mubr.bf16.mxu0 %v978_v44 }
  0x35   :  { %9 = vsyncpa [#allocation3], 0  ;;  %627 = vmatprep.mubr.bf16.mxu1 %v980_v45  ;;  %v982_v46 = vld [vmem:[%s1322_s0 + $0x60] ss:$16 sps:$4 sm:$0xff]   ;;  %v983_v47 = vld [vmem:[%s1322_s0 + $0x68] ss:$16 sps:$4 sm:$0xff]  }
  0x36   :  { %v984_v48 = vld [vmem:[%s1322_s0 + $0x84] ss:$16 sps:$4 sm:$0xff]   ;;  %v986_v49 = vld [vmem:[%s1322_s0 + $0x8c] ss:$16 sps:$4 sm:$0xff]   ;;  %v988_v50 = vld [vmem:[%s1322_s0 + $0x80] ss:$16 sps:$4 sm:$0xff]  }
  0x37   :  { %v989_v51 = vld [vmem:[%s1322_s0 + $0x88] ss:$16 sps:$4 sm:$0xff]   ;;  %v990_v52 = vld [vmem:[%s1322_s0 + $0xa4] ss:$16 sps:$4 sm:$0xff]   ;;  %v992_v53 = vld [vmem:[%s1322_s0 + $0xac] ss:$16 sps:$4 sm:$0xff]  }
  0x38   :  { %v994_v54 = vld [vmem:[%s1322_s0 + $0xa0] ss:$16 sps:$4 sm:$0xff]   ;;  %v995_v55 = vld [vmem:[%s1322_s0 + $0xa8] ss:$16 sps:$4 sm:$0xff]   ;;  %v996_v56 = vld [vmem:[%s1322_s0 + $0xc4] ss:$16 sps:$4 sm:$0xff]  }
  0x39   :  { %v998_v57 = vld [vmem:[%s1322_s0 + $0xcc] ss:$16 sps:$4 sm:$0xff]   ;;  %v1000_v58 = vld [vmem:[%s1322_s0 + $0xc0] ss:$16 sps:$4 sm:$0xff]   ;;  %v1001_v59 = vld [vmem:[%s1322_s0 + $0xc8] ss:$16 sps:$4 sm:$0xff]  }
  0x3a   :  { %v1002_v60 = vld [vmem:[%s1322_s0 + $0xe4] ss:$16 sps:$4 sm:$0xff]   ;;  %v1004_v61 = vld [vmem:[%s1322_s0 + $0xec] ss:$16 sps:$4 sm:$0xff]   ;;  %v1006_v62 = vld [vmem:[%s1322_s0 + $0xe0] ss:$16 sps:$4 sm:$0xff]  }
  0x3b   :  { %531 = vmatmul.mubr.bf16.gmra.mxu0 %v982_v46  ;;  %v1007_v63 = vld [vmem:[%s1322_s0 + $0xe8] ss:$16 sps:$4 sm:$0xff]   ;;  %v1253_v2 = vld [vmem:[%s1324_s2] ss:$0 sm:$0xff]  ;;  %v670_v30 = vld [vmem:[%s1325_s3 + $0x10] sm:$0xff]  ;;  %s1030_s2 = smov [#allocation2]  }
  0x3c   :  { %628 = vmatmul.mubr.bf16.gmra.mxu1 %v983_v47  ;;  %538 = vmatprep.mubr.bf16.mxu0 %v984_v48  ;;  %v668_v10 = vld [vmem:[%s1325_s3] sm:$0xff]  ;;  %v669_v20 = vld [vmem:[%s1325_s3 + $0x8] sm:$0xff]  ;;  %v671_v40 = vld [vmem:[%s1325_s3 + $0x18] sm:$0xff]  ;;  %s721_s14 = sshll.u32 %s1030_s2, 4  ;;  %s722_s14 = int_to_ptr.vmem [resolvable:$true] %s721_s14 }
  0x3d   :  { %635 = vmatprep.mubr.bf16.mxu1 %v986_v49  ;;  %s1008_s15 = scalar_lea.vmem %s722_s14, 2048  ;;  %p1013_p1 = scmp.lt.s32.totalorder %s722_s14, %s722_s14 }
  0x3e   :  { %p1009_p0 = scmp.ne.s32.totalorder %s722_s14, %s1008_s15  ;;  %p1014_p2 = scmp.lt.s32.totalorder %s1008_s15, %s1008_s15 }
  0x40   :  { %p1015_p3 = por %p1014_p2, %p1013_p1 }
  0x42   :  { %p1016_p4 = pnand %p1015_p3, %p1009_p0 }
  0x43   :  { %539 = vmatmul.mubr.bf16.gmra.mxu0 %v988_v50  ;;  %v672_v50 = vld [vmem:[%s1325_s3 + $0x20] sm:$0xff] }
  0x44   :  { %636 = vmatmul.mubr.bf16.gmra.mxu1 %v989_v51  ;;  %546 = vmatprep.mubr.bf16.mxu0 %v990_v52 }
  0x45   :  { %643 = vmatprep.mubr.bf16.mxu1 %v992_v53 }
  0x4b   :  { %547 = vmatmul.mubr.bf16.gmra.mxu0 %v994_v54 }
  0x4c   :  { %644 = vmatmul.mubr.bf16.gmra.mxu1 %v995_v55  ;;  %554 = vmatprep.mubr.bf16.mxu0 %v996_v56 }
  0x4d   :  { %651 = vmatprep.mubr.bf16.mxu1 %v998_v57 }
  0x53   :  { %555 = vmatmul.mubr.bf16.gmra.mxu0 %v1000_v58 }
  0x54   :  { %652 = vmatmul.mubr.bf16.gmra.mxu1 %v1001_v59  ;;  %562 = vmatprep.mubr.bf16.mxu0 %v1002_v60  ;;  %v673_v60 = vld [vmem:[%s1325_s3 + $0x28] sm:$0xff] }
  0x55   :  { %659 = vmatprep.mubr.bf16.mxu1 %v1004_v61 }
  0x5b   :  { %563 = vmatmul.mubr.bf16.gmra.mxu0 %v1006_v62 }
  0x5c   :  { %660 = vmatmul.mubr.bf16.gmra.mxu1 %v1007_v63 }
  0xe3   :  { %v813_v0 = vpop.f32.mrf.mxu0 }
  0xe4   :  { %v877_v1 = vpop.f32.mrf.mxu1 }
  0xe5   :  { %v814_v3 = vpop.f32.mrf.mxu0 }
  0xe6   :  { %v815_v4 = vadd.f32 %v814_v3, %v813_v0  ;;  %v878_v5 = vpop.f32.mrf.mxu1 }
  0xe7   :  { %v816_v6 = vpop.f32.mrf.mxu0  ;;  %v879_v8 = vadd.f32 %v878_v5, %v877_v1 }
  0xe8   :  { %v509_v7 = vadd.f32 %v815_v4, %v1253_v2  ;;  %v880_v9 = vpop.f32.mrf.mxu1 }
  0xe9   :  { %v817_v11 = vpop.f32.mrf.mxu0 }
  0xea   :  { %v606_v12 = vadd.f32 %v879_v8, %v509_v7  ;;  %v818_v13 = vadd.f32 %v817_v11, %v816_v6  ;;  %v881_v14 = vpop.f32.mrf.mxu1  ;;  %v674_v7 = vld [vmem:[%s1325_s3 + $0x30] sm:$0xff] }
  0xeb   :  { %v819_v15 = vpop.f32.mrf.mxu0  ;;  %v882_v18 = vadd.f32 %v881_v14, %v880_v9 }
  0xec   :  { %v684_v16 = vadd.f32 %v668_v10, %v606_v12  ;;  %v512_v17 = vadd.f32 %v818_v13, %v1253_v2  ;;  %v883_v19 = vpop.f32.mrf.mxu1 }
  0xed   :  { %v820_v21 = vpop.f32.mrf.mxu0 }
  0xee   :  { %700 = vst [vmem:[#allocation2] sm:$0xff] %v684_v16  ;;  %v609_v22 = vadd.f32 %v882_v18, %v512_v17  ;;  %v821_v23 = vadd.f32 %v820_v21, %v819_v15  ;;  %v884_v24 = vpop.f32.mrf.mxu1  ;;  %v675_v17 = vld [vmem:[%s1325_s3 + $0x38] sm:$0xff] }
  0xef   :  { %v822_v25 = vpop.f32.mrf.mxu0  ;;  %v885_v28 = vadd.f32 %v884_v24, %v883_v19 }
  0xf0   :  { %v685_v26 = vadd.f32 %v669_v20, %v609_v22  ;;  %v517_v27 = vadd.f32 %v821_v23, %v1253_v2  ;;  %v886_v29 = vpop.f32.mrf.mxu1 }
  0xf1   :  { %v823_v31 = vpop.f32.mrf.mxu0 }
  0xf2   :  { %701 = vst [vmem:[#allocation2 + $0x8] sm:$0xff] %v685_v26  ;;  %v614_v32 = vadd.f32 %v885_v28, %v517_v27  ;;  %v824_v33 = vadd.f32 %v823_v31, %v822_v25  ;;  %v887_v34 = vpop.f32.mrf.mxu1  ;;  %v676_v27 = vld [vmem:[%s1325_s3 + $0x40] sm:$0xff] }
  0xf3   :  { %v825_v35 = vpop.f32.mrf.mxu0  ;;  %v888_v38 = vadd.f32 %v887_v34, %v886_v29 }
  0xf4   :  { %v686_v36 = vadd.f32 %v670_v30, %v614_v32  ;;  %v520_v37 = vadd.f32 %v824_v33, %v1253_v2  ;;  %v889_v39 = vpop.f32.mrf.mxu1 }
  0xf5   :  { %v826_v41 = vpop.f32.mrf.mxu0 }
  0xf6   :  { %702 = vst [vmem:[#allocation2 + $0x10] sm:$0xff] %v686_v36  ;;  %v617_v42 = vadd.f32 %v888_v38, %v520_v37  ;;  %v827_v43 = vadd.f32 %v826_v41, %v825_v35  ;;  %v890_v44 = vpop.f32.mrf.mxu1  ;;  %v677_v37 = vld [vmem:[%s1325_s3 + $0x48] sm:$0xff] }
  0xf7   :  { %v828_v45 = vpop.f32.mrf.mxu0  ;;  %v891_v48 = vadd.f32 %v890_v44, %v889_v39 }
  0xf8   :  { %v687_v46 = vadd.f32 %v671_v40, %v617_v42  ;;  %v525_v47 = vadd.f32 %v827_v43, %v1253_v2  ;;  %v892_v49 = vpop.f32.mrf.mxu1 }
  0xf9   :  { %v829_v51 = vpop.f32.mrf.mxu0 }
  0xfa   :  { %703 = vst [vmem:[#allocation2 + $0x18] sm:$0xff] %v687_v46  ;;  %v622_v52 = vadd.f32 %v891_v48, %v525_v47  ;;  %v830_v53 = vadd.f32 %v829_v51, %v828_v45  ;;  %v893_v54 = vpop.f32.mrf.mxu1  ;;  %v678_v47 = vld [vmem:[%s1325_s3 + $0x50] sm:$0xff] }
  0xfb   :  { %v831_v55 = vpop.f32.mrf.mxu0  ;;  %v894_v58 = vadd.f32 %v893_v54, %v892_v49 }
  0xfc   :  { %v688_v56 = vadd.f32 %v672_v50, %v622_v52  ;;  %v528_v57 = vadd.f32 %v830_v53, %v1253_v2  ;;  %v895_v59 = vpop.f32.mrf.mxu1 }
  0xfd   :  { %v832_v61 = vpop.f32.mrf.mxu0 }
  0xfe   :  { %704 = vst [vmem:[#allocation2 + $0x20] sm:$0xff] %v688_v56  ;;  %v625_v62 = vadd.f32 %v894_v58, %v528_v57  ;;  %v833_v63 = vadd.f32 %v832_v61, %v831_v55  ;;  %v896_v0 = vpop.f32.mrf.mxu1  ;;  %v679_v57 = vld [vmem:[%s1325_s3 + $0x58] sm:$0xff] }
  0xff   :  { %v834_v1 = vpop.f32.mrf.mxu0  ;;  %v897_v5 = vadd.f32 %v896_v0, %v895_v59 }
 0x100   :  { %v689_v3 = vadd.f32 %v673_v60, %v625_v62  ;;  %v533_v4 = vadd.f32 %v833_v63, %v1253_v2  ;;  %v898_v6 = vpop.f32.mrf.mxu1 }
 0x101   :  { %v835_v8 = vpop.f32.mrf.mxu0 }
 0x102   :  { %705 = vst [vmem:[#allocation2 + $0x28] sm:$0xff] %v689_v3  ;;  %v630_v9 = vadd.f32 %v897_v5, %v533_v4  ;;  %v836_v10 = vadd.f32 %v835_v8, %v834_v1  ;;  %v899_v11 = vpop.f32.mrf.mxu1  ;;  %v680_v4 = vld [vmem:[%s1325_s3 + $0x60] sm:$0xff] }
 0x103   :  { %v837_v12 = vpop.f32.mrf.mxu0  ;;  %v900_v15 = vadd.f32 %v899_v11, %v898_v6 }
 0x104   :  { %v690_v13 = vadd.f32 %v674_v7, %v630_v9  ;;  %v536_v14 = vadd.f32 %v836_v10, %v1253_v2  ;;  %v901_v16 = vpop.f32.mrf.mxu1 }
 0x105   :  { %v838_v18 = vpop.f32.mrf.mxu0 }
 0x106   :  { %706 = vst [vmem:[#allocation2 + $0x30] sm:$0xff] %v690_v13  ;;  %v633_v19 = vadd.f32 %v900_v15, %v536_v14  ;;  %v839_v20 = vadd.f32 %v838_v18, %v837_v12  ;;  %v902_v21 = vpop.f32.mrf.mxu1  ;;  %v681_v14 = vld [vmem:[%s1325_s3 + $0x68] sm:$0xff] }
 0x107   :  { %v840_v22 = vpop.f32.mrf.mxu0  ;;  %v903_v25 = vadd.f32 %v902_v21, %v901_v16 }
 0x108   :  { %v691_v23 = vadd.f32 %v675_v17, %v633_v19  ;;  %v541_v24 = vadd.f32 %v839_v20, %v1253_v2  ;;  %v904_v26 = vpop.f32.mrf.mxu1 }
 0x109   :  { %v841_v28 = vpop.f32.mrf.mxu0 }
 0x10a   :  { %707 = vst [vmem:[#allocation2 + $0x38] sm:$0xff] %v691_v23  ;;  %v638_v29 = vadd.f32 %v903_v25, %v541_v24  ;;  %v842_v30 = vadd.f32 %v841_v28, %v840_v22  ;;  %v905_v31 = vpop.f32.mrf.mxu1  ;;  %v682_v24 = vld [vmem:[%s1325_s3 + $0x70] sm:$0xff] }
 0x10b   :  { %v843_v32 = vpop.f32.mrf.mxu0  ;;  %v906_v35 = vadd.f32 %v905_v31, %v904_v26 }
 0x10c   :  { %v692_v33 = vadd.f32 %v676_v27, %v638_v29  ;;  %v544_v34 = vadd.f32 %v842_v30, %v1253_v2  ;;  %v907_v36 = vpop.f32.mrf.mxu1 }
 0x10d   :  { %v844_v38 = vpop.f32.mrf.mxu0 }
 0x10e   :  { %708 = vst [vmem:[#allocation2 + $0x40] sm:$0xff] %v692_v33  ;;  %v641_v39 = vadd.f32 %v906_v35, %v544_v34  ;;  %v845_v40 = vadd.f32 %v844_v38, %v843_v32  ;;  %v908_v41 = vpop.f32.mrf.mxu1  ;;  %v683_v32 = vld [vmem:[%s1325_s3 + $0x78] sm:$0xff] }
 0x10f   :  { %v846_v42 = vpop.f32.mrf.mxu0  ;;  %v909_v45 = vadd.f32 %v908_v41, %v907_v36 }
 0x110   :  { %v693_v43 = vadd.f32 %v677_v37, %v641_v39  ;;  %v549_v44 = vadd.f32 %v845_v40, %v1253_v2  ;;  %v910_v46 = vpop.f32.mrf.mxu1 }
 0x111   :  { %v847_v48 = vpop.f32.mrf.mxu0 }
 0x112   :  { %709 = vst [vmem:[#allocation2 + $0x48] sm:$0xff] %v693_v43  ;;  %v646_v49 = vadd.f32 %v909_v45, %v549_v44  ;;  %v848_v50 = vadd.f32 %v847_v48, %v846_v42  ;;  %v911_v51 = vpop.f32.mrf.mxu1 }
 0x113   :  { %v849_v52 = vpop.f32.mrf.mxu0  ;;  %v912_v55 = vadd.f32 %v911_v51, %v910_v46 }
 0x114   :  { %v694_v53 = vadd.f32 %v678_v47, %v646_v49  ;;  %v552_v54 = vadd.f32 %v848_v50, %v1253_v2  ;;  %v913_v56 = vpop.f32.mrf.mxu1 }
 0x115   :  { %v850_v58 = vpop.f32.mrf.mxu0 }
 0x116   :  { %710 = vst [vmem:[#allocation2 + $0x50] sm:$0xff] %v694_v53  ;;  %v649_v59 = vadd.f32 %v912_v55, %v552_v54  ;;  %v851_v60 = vadd.f32 %v850_v58, %v849_v52  ;;  %v914_v61 = vpop.f32.mrf.mxu1 }
 0x117   :  { %v852_v62 = vpop.f32.mrf.mxu0  ;;  %v915_v1 = vadd.f32 %v914_v61, %v913_v56 }
 0x118   :  { %v695_v63 = vadd.f32 %v679_v57, %v649_v59  ;;  %v557_v0 = vadd.f32 %v851_v60, %v1253_v2  ;;  %v916_v3 = vpop.f32.mrf.mxu1 }
 0x119   :  { %v853_v5 = vpop.f32.mrf.mxu0 }
 0x11a   :  { %711 = vst [vmem:[#allocation2 + $0x58] sm:$0xff] %v695_v63  ;;  %v654_v6 = vadd.f32 %v915_v1, %v557_v0  ;;  %v854_v7 = vadd.f32 %v853_v5, %v852_v62  ;;  %v917_v8 = vpop.f32.mrf.mxu1 }
 0x11b   :  { %v855_v9 = vpop.f32.mrf.mxu0  ;;  %v918_v12 = vadd.f32 %v917_v8, %v916_v3 }
 0x11c   :  { %v696_v10 = vadd.f32 %v680_v4, %v654_v6  ;;  %v560_v11 = vadd.f32 %v854_v7, %v1253_v2  ;;  %v919_v13 = vpop.f32.mrf.mxu1 }
 0x11d   :  { %v856_v15 = vpop.f32.mrf.mxu0 }
 0x11e   :  { %712 = vst [vmem:[#allocation2 + $0x60] sm:$0xff] %v696_v10  ;;  %v657_v16 = vadd.f32 %v918_v12, %v560_v11  ;;  %v857_v17 = vadd.f32 %v856_v15, %v855_v9  ;;  %v920_v18 = vpop.f32.mrf.mxu1 }
 0x11f   :  { %v858_v19 = vpop.f32.mrf.mxu0  ;;  %v921_v22 = vadd.f32 %v920_v18, %v919_v13 }
 0x120   :  { %v697_v20 = vadd.f32 %v681_v14, %v657_v16  ;;  %v565_v21 = vadd.f32 %v857_v17, %v1253_v2  ;;  %v922_v23 = vpop.f32.mrf.mxu1 }
 0x121   :  { %v859_v25 = vpop.f32.mrf.mxu0 }
 0x122   :  { %713 = vst [vmem:[#allocation2 + $0x68] sm:$0xff] %v697_v20  ;;  %v662_v26 = vadd.f32 %v921_v22, %v565_v21  ;;  %v860_v27 = vadd.f32 %v859_v25, %v858_v19  ;;  %v923_v28 = vpop.f32.mrf.mxu1 }
 0x123   :  { %v924_v31 = vadd.f32 %v923_v28, %v922_v23 }
 0x124   :  { %v698_v29 = vadd.f32 %v682_v24, %v662_v26  ;;  %v568_v30 = vadd.f32 %v860_v27, %v1253_v2 }
 0x126   :  { %714 = vst [vmem:[#allocation2 + $0x70] sm:$0xff] %v698_v29  ;;  %v665_v33 = vadd.f32 %v924_v31, %v568_v30 }
 0x128   :  { %v699_v34 = vadd.f32 %v683_v32, %v665_v33 }
 0x12a   :  { %715 = vst [vmem:[#allocation2 + $0x78] sm:$0xff] %v699_v34 }
 0x12b   :  { %1019 = shalt.err (!%p1016_p4)
}
 0x12c   :  { %s1031_s16 = smov 128   ;;  %s1032_s17 = smov 8  }
 0x12d   :  { %727 = dma.vmem_to_hbm [thread:$0]  %s722_s14, 2048, %s1326_s4, [#allocation3], %s1031_s16, %s1031_s16, %s1032_s17  }
 0x12e   :  { %1028 = dma.done.wait [#allocation3], 2048  }
 0x12f   :  { %1029 = vsyncadd [#allocation3], 4294965248 }
 0x130   :  { %731 = vsyncpa [#allocation3], 1 }

// kernel: block_forward.6
= control target key start
LH: loop header
LB: loop body
LE: loop exit
PB: predicated region body
PF: predicated region fallthrough
CT: control target
= control target key end

     0   :  { %s4134_s12 = smov 0   ;;  %s4136_s13 = smov 0   ;;  %s5589_s0 = inlined_call_operand.vmem [shape: bf16[2,64,384], index: 0, kind: input, shape index: {}, may-alias: {0,1,2}]   ;;  %s5590_s1 = inlined_call_operand.vmem [shape: bf16[2,64,384], index: 1, kind: input, shape index: {}, may-alias: {0,1,2}]   ;;  %s5591_s2 = inlined_call_operand.vmem [shape: bf16[2,64,384], index: 2, kind: input, shape index: {}, may-alias: {0,1,2}]   ;;  %s5592_s3 = inlined_call_operand.vmem [shape: bf16[2,64,128], index: 3, kind: output, shape index: {}]  }
   0x1   :  { %s4138_s14 = smov 0   ;;  %s4140_s15 = smov 0  }
   0x2   :  { %s4142_s16 = smov 0  }
   0x3 LB: > { %s32_s17 = sadd.s32 1, %s4102_s15  ;;  %p48_p1 = scmp.ne.s32.totalorder %s4094_s13, %s4090_s12  ;;  %s4106_s16 = sphi %s4142_s16, %s13_s16   ;;  %s4102_s15 = sphi %s4140_s15, %s5701_s15   ;;  %s4098_s14 = sphi %s4138_s14, %s5700_s14   ;;  %s4094_s13 = sphi %s4136_s13, %s5699_s13   ;;  %s4090_s12 = sphi %s4134_s12, %s5698_s12  }
   0x4   : > { %p34_p0 = scmp.ge.s32.totalorder %s32_s17, 2  ;;  %p49_p2 = scmp.eq.s32.totalorder %s4106_s16, 0 }
   0x5   : > { %s41_s20 = sadd.s32 1, %s4094_s13  ;;  %p3395_p5 = scmp.ge.s32.totalorder %s4106_s16, 2 }
   0x6   : > { %s5703_s17 = smov (%p34_p0, %s32_s17), 0  ;;  %p4165_p3 = por %p49_p2, %p48_p1 }
   0x7   : > { %s36_s19 = ssub.s32 %s4102_s15, %s5703_s17  ;;  %158 = sbr.rel (%p3395_p5) target bundleno = 42 (0x2a), region = 16 }
   0x8   : > { %p39_p4 = scmp.eq.s32.totalorder %s36_s19, 0 }
   0xa   : > { %s4173_s21 = scalar_select %p39_p4, %s4094_s13, %s41_s20  }
   0xc   : > { %161 = sbr.rel (!%p4165_p3) target bundleno = 22 (0x16), region = 20  ;;  %s163_s22 = sand.u32 (%p4165_p3), 1, %s4094_s13  }
   0xd   : > { %s3779_s23 = smul.u32 (%p4165_p3), 96, %s4102_s15  ;;  %s3396_s24 = sshll.u32 (%p4165_p3), %s163_s22, 5 }
   0xe   : > { %s165_s28 = scalar_lea.vmem (%p4165_p3), [#allocation5], %s3396_s24 }
   0xf   : > { %s171_s27 = scalar_lea.vmem (%p4165_p3), %s5589_s0, %s3779_s23 }
  0x10   : > { %v188_v0 = vld [vmem:[%s171_s27] sm:$0xf] (%p4165_p3)  ;;  %v190_v1 = vld [vmem:[%s171_s27 + $0xc] sm:$0xf] (%p4165_p3)  ;;  %v192_v2 = vld [vmem:[%s171_s27 + $0x18] sm:$0xf] (%p4165_p3) }
  0x11   : > { %189 = vst [vmem:[%s165_s28] sm:$0xf] %v188_v0  ;;  %191 = vst [vmem:[%s165_s28 + $0x4] sm:$0xf] %v190_v1  ;;  %v194_v3 = vld [vmem:[%s171_s27 + $0x24] sm:$0xf] }
  0x12   : > { %193 = vst [vmem:[%s165_s28 + $0x8] sm:$0xf] %v192_v2  ;;  %v196_v4 = vld [vmem:[%s171_s27 + $0x30] sm:$0xf]  ;;  %v198_v5 = vld [vmem:[%s171_s27 + $0x3c] sm:$0xf] }
  0x13   : > { %195 = vst [vmem:[%s165_s28 + $0xc] sm:$0xf] %v194_v3  ;;  %197 = vst [vmem:[%s165_s28 + $0x10] sm:$0xf] %v196_v4  ;;  %v200_v6 = vld [vmem:[%s171_s27 + $0x48] sm:$0xf] }
  0x14   : > { %199 = vst [vmem:[%s165_s28 + $0x14] sm:$0xf] %v198_v5  ;;  %v202_v7 = vld [vmem:[%s171_s27 + $0x54] sm:$0xf]  ;;  %201 = vst [vmem:[%s165_s28 + $0x18] sm:$0xf] %v200_v6 }
  0x15   : > { %203 = vst [vmem:[%s165_s28 + $0x1c] sm:$0xf] %v202_v7 }
  0x16 PF: > { %243 = sbr.rel (!%p4165_p3) target bundleno = 32 (0x20), region = 61  ;;  %s245_s29 = sand.u32 (%p4165_p3), 1, %s4094_s13  }
  0x17   : > { %s3399_s30 = smul.u32 (%p4165_p3), 96, %s4102_s15  ;;  %s3398_s4 = sshll.u32 (%p4165_p3), %s245_s29, 5 }
  0x18   : > { %s247_s8 = scalar_lea.vmem (%p4165_p3), [#allocation6], %s3398_s4 }
  0x19   : > { %s3298_s7 = scalar_lea.vmem (%p4165_p3), %s5590_s1, %s3399_s30 }
  0x1a   : > { %v3400_v8 = vld [vmem:[%s3298_s7 + $0x4] sm:$0xf] (%p4165_p3)  ;;  %v3401_v9 = vld [vmem:[%s3298_s7 + $0x10] sm:$0xf] (%p4165_p3)  ;;  %v3402_v10 = vld [vmem:[%s3298_s7 + $0x1c] sm:$0xf] (%p4165_p3) }
  0x1b   : > { %272 = vst [vmem:[%s247_s8] sm:$0xf] %v3400_v8  ;;  %274 = vst [vmem:[%s247_s8 + $0x4] sm:$0xf] %v3401_v9  ;;  %v3403_v11 = vld [vmem:[%s3298_s7 + $0x28] sm:$0xf] }
  0x1c   : > { %276 = vst [vmem:[%s247_s8 + $0x8] sm:$0xf] %v3402_v10  ;;  %v3404_v12 = vld [vmem:[%s3298_s7 + $0x34] sm:$0xf]  ;;  %v3405_v13 = vld [vmem:[%s3298_s7 + $0x40] sm:$0xf] }
  0x1d   : > { %278 = vst [vmem:[%s247_s8 + $0xc] sm:$0xf] %v3403_v11  ;;  %280 = vst [vmem:[%s247_s8 + $0x10] sm:$0xf] %v3404_v12  ;;  %v3406_v14 = vld [vmem:[%s3298_s7 + $0x4c] sm:$0xf] }
  0x1e   : > { %282 = vst [vmem:[%s247_s8 + $0x14] sm:$0xf] %v3405_v13  ;;  %v3407_v15 = vld [vmem:[%s3298_s7 + $0x58] sm:$0xf]  ;;  %284 = vst [vmem:[%s247_s8 + $0x18] sm:$0xf] %v3406_v14 }
  0x1f   : > { %286 = vst [vmem:[%s247_s8 + $0x1c] sm:$0xf] %v3407_v15 }
  0x20 PF: > { %326 = sbr.rel (!%p4165_p3) target bundleno = 42 (0x2a), region = 102  ;;  %s328_s9 = sand.u32 (%p4165_p3), 1, %s4094_s13  }
  0x21   : > { %s3409_s10 = smul.u32 (%p4165_p3), 96, %s4102_s15  ;;  %s3408_s11 = sshll.u32 (%p4165_p3), %s328_s9, 5 }
  0x22   : > { %s330_s23 = scalar_lea.vmem (%p4165_p3), [#allocation7], %s3408_s11 }
  0x23   : > { %s3306_s22 = scalar_lea.vmem (%p4165_p3), %s5591_s2, %s3409_s10 }
  0x24   : > { %v3410_v16 = vld [vmem:[%s3306_s22 + $0x8] sm:$0xf] (%p4165_p3)  ;;  %v3411_v17 = vld [vmem:[%s3306_s22 + $0x14] sm:$0xf] (%p4165_p3)  ;;  %v3412_v18 = vld [vmem:[%s3306_s22 + $0x20] sm:$0xf] (%p4165_p3) }
  0x25   : > { %355 = vst [vmem:[%s330_s23] sm:$0xf] %v3410_v16  ;;  %357 = vst [vmem:[%s330_s23 + $0x4] sm:$0xf] %v3411_v17  ;;  %v3413_v19 = vld [vmem:[%s3306_s22 + $0x2c] sm:$0xf] }
  0x26   : > { %359 = vst [vmem:[%s330_s23 + $0x8] sm:$0xf] %v3412_v18  ;;  %v3414_v20 = vld [vmem:[%s3306_s22 + $0x38] sm:$0xf]  ;;  %v3415_v21 = vld [vmem:[%s3306_s22 + $0x44] sm:$0xf] }
  0x27   : > { %361 = vst [vmem:[%s330_s23 + $0xc] sm:$0xf] %v3413_v19  ;;  %363 = vst [vmem:[%s330_s23 + $0x10] sm:$0xf] %v3414_v20  ;;  %v3416_v22 = vld [vmem:[%s3306_s22 + $0x50] sm:$0xf] }
  0x28   : > { %365 = vst [vmem:[%s330_s23 + $0x14] sm:$0xf] %v3415_v21  ;;  %v3417_v23 = vld [vmem:[%s3306_s22 + $0x5c] sm:$0xf]  ;;  %367 = vst [vmem:[%s330_s23 + $0x18] sm:$0xf] %v3416_v22 }
  0x29   : > { %369 = vst [vmem:[%s330_s23 + $0x1c] sm:$0xf] %v3417_v23 }
  0x2a PF: > { %p3418_p6 = scmp.ge.s32.totalorder %s4106_s16, 1  ;;  %p408_p7 = scmp.lt.s32.totalorder %s4106_s16, 3 }
  0x2c   : > { %p409_p8 = pnand %p3418_p6, %p408_p7 }
  0x2e   : > { %412 = sbr.rel (%p409_p8) target bundleno = 2565 (0xa05), region = 143 }
  0x33   : > { %s415_s18 = sand.u32 1, %s4090_s12   ;;  %vm547_vm0 = vcmask 261120   ;;  %vm482_vm1 = vcmask 7168   ;;  %v4108_v36 = vmov -inf   ;;  %vm742_vm2 = vcmask 523264   ;;  %s4111_s26 = smov 96  }
  0x34   : > { %s4200_s24 = sshll.u32 %s415_s18, 5  ;;  %485 = vst.msk [vmem:[#allocation2 + $0x10] sm:$0xff] %vm482_vm1, %v4108_v36  ;;  %483 = vst.msk [vmem:[#allocation2] sm:$0xff] %vm482_vm1, %v4108_v36  ;;  %v4109_v49 = vmov 0   ;;  %v4110_v54 = vmov 0.0   ;;  %s4112_s28 = smov 64  }
  0x35   : > { %s4203_s25 = scalar_lea.vmem [#allocation6], %s4200_s24  ;;  %s4212_s12 = scalar_lea.vmem [#allocation5], %s4200_s24  ;;  %484 = vst.msk [vmem:[#allocation2 + $0x8] sm:$0xff] %vm482_vm1, %v4108_v36  ;;  %486 = vst.msk [vmem:[#allocation2 + $0x18] sm:$0xff] %vm482_vm1, %v4108_v36  ;;  %3827 = vset.pattern.permute.xlu1 %v4109_v49  ;;  %3826 = vset.pattern.permute.xlu0 %v4109_v49  ;;  %vm2859_vm3 = vcmask 257024   ;;  %vm2988_vm4 = vcmask 519424  }
  0x36   : > { %v3828_v24 = vld [vmem:[%s4203_s25 + $0x18] sm:$0xff]   ;;  %v3829_v25 = vld [vmem:[%s4203_s25 + $0x10] sm:$0xff]   ;;  %v3830_v27 = vld [vmem:[%s4203_s25 + $0x8] sm:$0xff]   ;;  %487 = vst.msk [vmem:[#allocation2 + $0x20] sm:$0xff] %vm482_vm1, %v4108_v36  ;;  %s4473_s27 = scalar_lea.vmem [#allocation7], %s4200_s24  ;;  %s4113_s29 = smov 32  }
  0x37   : > { %3763 = vmatprep.subr.msk.bf16.mxu0 %vm547_vm0, %v3828_v24  ;;  %v667_v26 = vsel %vm547_vm0, %v3828_v24, 0  ;;  %v3832_v28 = vld [vmem:[%s4212_s12] sm:$0xff]   ;;  %v664_v29 = vsel %vm547_vm0, %v3829_v25, 0  ;;  %v661_v30 = vsel %vm547_vm0, %v3830_v27, 0  ;;  %v3833_v33 = vld [vmem:[%s4212_s12 + $0x8] sm:$0xff]   ;;  %v3834_v34 = vld [vmem:[%s4212_s12 + $0x10] sm:$0xff]  }
  0x38   : > { %3636 = vmatpush3.bf16.xpose.msra.mxu0 %v667_v26  ;;  %3643 = vmatprep.mubr.msk.bf16.mxu0 %vm547_vm0, %v3832_v28  ;;  %v3831_v31 = vld [vmem:[%s4203_s25] sm:$0xff]   ;;  %v3835_v35 = vld [vmem:[%s4212_s12 + $0x18] sm:$0xff]   ;;  %488 = vst.msk [vmem:[#allocation2 + $0x28] sm:$0xff] %vm482_vm1, %v4108_v36  ;;  %489 = vst.msk [vmem:[#allocation2 + $0x30] sm:$0xff] %vm482_vm1, %v4108_v36  ;;  %p468_p9 = scmp.lt.s32.totalorder %s4098_s14, 1  ;;  %vm3117_vm5 = vcmask 781824  }
  0x39   : > { %3764 = vmatprep.subr.msk.bf16.mxu0 %vm547_vm0, %v3829_v25  ;;  %v658_v32 = vsel %vm547_vm0, %v3831_v31, 0  ;;  %490 = vst.msk [vmem:[#allocation2 + $0x38] sm:$0xff] %vm482_vm1, %v4108_v36  ;;  %491 = vst.msk [vmem:[#allocation2 + $0x40] sm:$0xff] %vm482_vm1, %v4108_v36  ;;  %v3837_v3 = vld [vmem:[%s4203_s25 + $0x10] sm:$0xff]   ;;  %v3839_v9 = vld [vmem:[%s4203_s25] sm:$0xff]   ;;  %vm3246_vm6 = vcmask 1044224  }
  0x3a   : > { %492 = vst.msk [vmem:[#allocation2 + $0x48] sm:$0xff] %vm482_vm1, %v4108_v36  ;;  %493 = vst.msk [vmem:[#allocation2 + $0x50] sm:$0xff] %vm482_vm1, %v4108_v36  ;;  %v3841_v14 = vld [vmem:[%s4212_s12 + $0x8] sm:$0xff]   ;;  %v3844_v15 = vld [vmem:[%s4473_s27 + $0x18] sm:$0xff]   ;;  %s5705_s14 = smov (!%p468_p9, %s4098_s14), 1 }
  0x3b   : > { %494 = vst.msk [vmem:[#allocation2 + $0x58] sm:$0xff] %vm482_vm1, %v4108_v36  ;;  %495 = vst.msk [vmem:[#allocation2 + $0x60] sm:$0xff] %vm482_vm1, %v4108_v36  ;;  %v4420_v55 = vld [vmem:[#allocation2 + $0x10] sm:$0xff]  ;;  %v4422_v57 = vld [vmem:[#allocation2] sm:$0xff]  ;;  %3651 = vmatprep.subr.bf16.mxu1 %v3844_v15  ;;  %s3538_s30 = sshll.u32 %s5705_s14, 5 }
  0x3c   : > { %496 = vst.msk [vmem:[#allocation2 + $0x68] sm:$0xff] %vm482_vm1, %v4108_v36  ;;  %497 = vst.msk [vmem:[#allocation2 + $0x70] sm:$0xff] %vm482_vm1, %v4108_v36  ;;  %v4427_v60 = vld [vmem:[#allocation2 + $0x18] sm:$0xff]  ;;  %v4437_v0 = vld [vmem:[#allocation2 + $0x8] sm:$0xff]  ;;  %3652 = vmatpush3.bf16.msra.mxu1 %v3844_v15  ;;  %s5464_s6 = scalar_lea.vmem %s5592_s3, %s3538_s30 }
  0x3d   : > { %498 = vst.msk [vmem:[#allocation2 + $0x78] sm:$0xff] %vm482_vm1, %v4108_v36  ;;  %499 = vst.msk [vmem:[#allocation2 + $0x80] sm:$0xff] %vm482_vm1, %v4108_v36  ;;  %v4455_v7 = vld [vmem:[#allocation2 + $0x20] sm:$0xff]  ;;  %v3843_v22 = vld [vmem:[%s4212_s12 + $0x18] sm:$0xff]  }
  0x3e   : > { %500 = vst.msk [vmem:[#allocation2 + $0x88] sm:$0xff] %vm482_vm1, %v4108_v36  ;;  %501 = vst.msk [vmem:[#allocation2 + $0x90] sm:$0xff] %vm482_vm1, %v4108_v36  ;;  %v3845_v23 = vld [vmem:[%s4473_s27 + $0x10] sm:$0xff]   ;;  %v3846_v28 = vld [vmem:[%s4473_s27 + $0x8] sm:$0xff]  }
  0x3f   : > { %502 = vst.msk [vmem:[#allocation2 + $0x98] sm:$0xff] %vm482_vm1, %v4108_v36  ;;  %503 = vst.msk [vmem:[#allocation2 + $0xa0] sm:$0xff] %vm482_vm1, %v4108_v36  ;;  %v4467_v12 = vld [vmem:[#allocation2 + $0x30] sm:$0xff]  ;;  %v4469_v13 = vld [vmem:[#allocation2 + $0x28] sm:$0xff]  ;;  %3653 = vmatprep.subr.bf16.mxu1 %v3845_v23 }
  0x40   : > { %3638 = vmatpush3.bf16.xpose.msra.mxu0 %v664_v29  ;;  %504 = vst.msk [vmem:[#allocation2 + $0xa8] sm:$0xff] %vm482_vm1, %v4108_v36  ;;  %505 = vst.msk [vmem:[#allocation2 + $0xb0] sm:$0xff] %vm482_vm1, %v4108_v36  ;;  %v4482_v19 = vld [vmem:[#allocation2 + $0x38] sm:$0xff]  ;;  %3654 = vmatpush3.bf16.msra.mxu1 %v3845_v23  ;;  %v3858_v1 = vld [vmem:[%s4212_s12 + $0x10] sm:$0xff]  }
  0x41   : > { %3765 = vmatprep.subr.msk.bf16.mxu0 %vm547_vm0, %v3830_v27  ;;  %506 = vst.msk [vmem:[#allocation2 + $0xb8] sm:$0xff] %vm482_vm1, %v4108_v36  ;;  %507 = vst.msk [vmem:[#allocation2 + $0xc0] sm:$0xff] %vm482_vm1, %v4108_v36  ;;  %3655 = vmatprep.subr.bf16.mxu1 %v3846_v28  ;;  %v3859_v5 = vld [vmem:[%s4212_s12 + $0x18] sm:$0xff]  }
  0x42   : > { %508 = vst.msk [vmem:[#allocation2 + $0xc8] sm:$0xff] %vm482_vm1, %v4108_v36  ;;  %509 = vst.msk [vmem:[#allocation2 + $0xd0] sm:$0xff] %vm482_vm1, %v4108_v36 }
  0x43   : > { %510 = vst.msk [vmem:[#allocation2 + $0xd8] sm:$0xff] %vm482_vm1, %v4108_v36  ;;  %511 = vst.msk [vmem:[#allocation2 + $0xe0] sm:$0xff] %vm482_vm1, %v4108_v36  ;;  %v4673_v8 = vld [vmem:[#allocation2 + $0x70] sm:$0xff] }
  0x44   : > { %512 = vst.msk [vmem:[#allocation2 + $0xe8] sm:$0xff] %vm482_vm1, %v4108_v36  ;;  %513 = vst.msk [vmem:[#allocation2 + $0xf0] sm:$0xff] %vm482_vm1, %v4108_v36  ;;  %3656 = vmatpush3.bf16.msra.mxu1 %v3846_v28 }
  0x45   : > { %514 = vst.msk [vmem:[#allocation2 + $0xf8] sm:$0xff] %vm482_vm1, %v4108_v36  ;;  %516 = vst.msk [vmem:[#allocation3 + $0x8] sm:$0xff] %vm482_vm1, %v4110_v54 }
  0x46   : > { %515 = vst.msk [vmem:[#allocation3] sm:$0xff] %vm482_vm1, %v4110_v54  ;;  %517 = vst.msk [vmem:[#allocation3 + $0x10] sm:$0xff] %vm482_vm1, %v4110_v54 }
  0x47   : > { %518 = vst.msk [vmem:[#allocation3 + $0x18] sm:$0xff] %vm482_vm1, %v4110_v54  ;;  %519 = vst.msk [vmem:[#allocation3 + $0x20] sm:$0xff] %vm482_vm1, %v4110_v54 }
  0x48   : > { %3640 = vmatpush3.bf16.xpose.msra.mxu0 %v661_v30  ;;  %520 = vst.msk [vmem:[#allocation3 + $0x28] sm:$0xff] %vm482_vm1, %v4110_v54  ;;  %521 = vst.msk [vmem:[#allocation3 + $0x30] sm:$0xff] %vm482_vm1, %v4110_v54  ;;  %v3847_v30 = vld [vmem:[%s4473_s27] sm:$0xff]  }
  0x49   : > { %3766 = vmatprep.subr.msk.bf16.mxu0 %vm547_vm0, %v3831_v31  ;;  %522 = vst.msk [vmem:[#allocation3 + $0x38] sm:$0xff] %vm482_vm1, %v4110_v54  ;;  %523 = vst.msk [vmem:[#allocation3 + $0x40] sm:$0xff] %vm482_vm1, %v4110_v54  ;;  %3657 = vmatprep.subr.bf16.mxu1 %v3847_v30  ;;  %v3836_v31 = vld [vmem:[%s4203_s25 + $0x18] sm:$0xff]  }
  0x4a   : > { %524 = vst.msk [vmem:[#allocation3 + $0x48] sm:$0xff] %vm482_vm1, %v4110_v54  ;;  %525 = vst.msk [vmem:[#allocation3 + $0x50] sm:$0xff] %vm482_vm1, %v4110_v54  ;;  %3658 = vmatpush3.bf16.msra.mxu1 %v3847_v30 }
  0x4b   : > { %526 = vst.msk [vmem:[#allocation3 + $0x58] sm:$0xff] %vm482_vm1, %v4110_v54  ;;  %527 = vst.msk [vmem:[#allocation3 + $0x60] sm:$0xff] %vm482_vm1, %v4110_v54 }
  0x4c   : > { %528 = vst.msk [vmem:[#allocation3 + $0x68] sm:$0xff] %vm482_vm1, %v4110_v54  ;;  %529 = vst.msk [vmem:[#allocation3 + $0x70] sm:$0xff] %vm482_vm1, %v4110_v54 }
  0x4d   : > { %530 = vst.msk [vmem:[#allocation3 + $0x78] sm:$0xff] %vm482_vm1, %v4110_v54  ;;  %531 = vst.msk [vmem:[#allocation3 + $0x80] sm:$0xff] %vm482_vm1, %v4110_v54 }
  0x4e   : > { %532 = vst.msk [vmem:[#allocation3 + $0x88] sm:$0xff] %vm482_vm1, %v4110_v54  ;;  %533 = vst.msk [vmem:[#allocation3 + $0x90] sm:$0xff] %vm482_vm1, %v4110_v54 }
  0x4f   : > { %534 = vst.msk [vmem:[#allocation3 + $0x98] sm:$0xff] %vm482_vm1, %v4110_v54  ;;  %535 = vst.msk [vmem:[#allocation3 + $0xa0] sm:$0xff] %vm482_vm1, %v4110_v54 }
  0x50   : > { %3642 = vmatpush3.bf16.xpose.msra.mxu0 %v658_v32  ;;  %536 = vst.msk [vmem:[#allocation3 + $0xa8] sm:$0xff] %vm482_vm1, %v4110_v54  ;;  %537 = vst.msk [vmem:[#allocation3 + $0xb0] sm:$0xff] %vm482_vm1, %v4110_v54  ;;  %v3838_v32 = vld [vmem:[%s4203_s25 + $0x8] sm:$0xff]  }
  0x51   : > { %538 = vst.msk [vmem:[#allocation3 + $0xb8] sm:$0xff] %vm482_vm1, %v4110_v54  ;;  %539 = vst.msk [vmem:[#allocation3 + $0xc0] sm:$0xff] %vm482_vm1, %v4110_v54 }
  0x52   : > { %540 = vst.msk [vmem:[#allocation3 + $0xc8] sm:$0xff] %vm482_vm1, %v4110_v54  ;;  %541 = vst.msk [vmem:[#allocation3 + $0xd0] sm:$0xff] %vm482_vm1, %v4110_v54 }
  0x53   : > { %542 = vst.msk [vmem:[#allocation3 + $0xd8] sm:$0xff] %vm482_vm1, %v4110_v54  ;;  %543 = vst.msk [vmem:[#allocation3 + $0xe0] sm:$0xff] %vm482_vm1, %v4110_v54 }
  0x54   : > { %544 = vst.msk [vmem:[#allocation3 + $0xe8] sm:$0xff] %vm482_vm1, %v4110_v54  ;;  %545 = vst.msk [vmem:[#allocation3 + $0xf0] sm:$0xff] %vm482_vm1, %v4110_v54 }
  0x55   : > { %546 = vst.msk [vmem:[#allocation3 + $0xf8] sm:$0xff] %vm482_vm1, %v4110_v54 }
  0x56   : > { %548 = vst.msk [vmem:[#allocation4] sm:$0xff] %vm547_vm0, %v4110_v54  ;;  %549 = vst.msk [vmem:[#allocation4 + $0x8] sm:$0xff] %vm547_vm0, %v4110_v54 }
  0x57   : > { %3644 = vmatmul.mubr.msk.bf16.vlgmr.msra.gmra.mxu0 %vm547_vm0, %v3833_v33  ;;  %550 = vst.msk [vmem:[#allocation4 + $0x10] sm:$0xff] %vm547_vm0, %v4110_v54  ;;  %551 = vst.msk [vmem:[#allocation4 + $0x18] sm:$0xff] %vm547_vm0, %v4110_v54  ;;  %v3840_v33 = vld [vmem:[%s4212_s12] sm:$0xff]  }
  0x58   : > { %3647 = vmatprep.mubr.msk.bf16.mxu0 %vm547_vm0, %v3834_v34  ;;  %552 = vst.msk [vmem:[#allocation4 + $0x20] sm:$0xff] %vm547_vm0, %v4110_v54  ;;  %553 = vst.msk [vmem:[#allocation4 + $0x28] sm:$0xff] %vm547_vm0, %v4110_v54  ;;  %v3842_v34 = vld [vmem:[%s4212_s12 + $0x10] sm:$0xff]  }
  0x59   : > { %554 = vst.msk [vmem:[#allocation4 + $0x30] sm:$0xff] %vm547_vm0, %v4110_v54  ;;  %555 = vst.msk [vmem:[#allocation4 + $0x38] sm:$0xff] %vm547_vm0, %v4110_v54 }
  0x5a   : > { %556 = vst.msk [vmem:[#allocation4 + $0x40] sm:$0xff] %vm547_vm0, %v4110_v54  ;;  %557 = vst.msk [vmem:[#allocation4 + $0x48] sm:$0xff] %vm547_vm0, %v4110_v54 }
  0x5b   : > { %558 = vst.msk [vmem:[#allocation4 + $0x50] sm:$0xff] %vm547_vm0, %v4110_v54  ;;  %559 = vst.msk [vmem:[#allocation4 + $0x58] sm:$0xff] %vm547_vm0, %v4110_v54 }
  0x5c   : > { %560 = vst.msk [vmem:[#allocation4 + $0x60] sm:$0xff] %vm547_vm0, %v4110_v54  ;;  %561 = vst.msk [vmem:[#allocation4 + $0x68] sm:$0xff] %vm547_vm0, %v4110_v54 }
  0x5d   : > { %562 = vst.msk [vmem:[#allocation4 + $0x70] sm:$0xff] %vm547_vm0, %v4110_v54  ;;  %563 = vst.msk [vmem:[#allocation4 + $0x78] sm:$0xff] %vm547_vm0, %v4110_v54 }
  0x5e   : > { %564 = vst.msk [vmem:[#allocation4 + $0x80] sm:$0xff] %vm547_vm0, %v4110_v54  ;;  %565 = vst.msk [vmem:[#allocation4 + $0x88] sm:$0xff] %vm547_vm0, %v4110_v54 }
  0x5f   : > { %3648 = vmatmul.mubr.msk.bf16.gmra.mxu0 %vm547_vm0, %v3835_v35  ;;  %566 = vst.msk [vmem:[#allocation4 + $0x90] sm:$0xff] %vm547_vm0, %v4110_v54  ;;  %567 = vst.msk [vmem:[#allocation4 + $0x98] sm:$0xff] %vm547_vm0, %v4110_v54 }
  0x60   : > { %568 = vst.msk [vmem:[#allocation4 + $0xa0] sm:$0xff] %vm547_vm0, %v4110_v54  ;;  %569 = vst.msk [vmem:[#allocation4 + $0xa8] sm:$0xff] %vm547_vm0, %v4110_v54 }
  0x61   : > { %570 = vst.msk [vmem:[#allocation4 + $0xb0] sm:$0xff] %vm547_vm0, %v4110_v54  ;;  %571 = vst.msk [vmem:[#allocation4 + $0xb8] sm:$0xff] %vm547_vm0, %v4110_v54 }
  0x62   : > { %572 = vst.msk [vmem:[#allocation4 + $0xc0] sm:$0xff] %vm547_vm0, %v4110_v54  ;;  %573 = vst.msk [vmem:[#allocation4 + $0xc8] sm:$0xff] %vm547_vm0, %v4110_v54 }
  0x63   : > { %574 = vst.msk [vmem:[#allocation4 + $0xd0] sm:$0xff] %vm547_vm0, %v4110_v54  ;;  %575 = vst.msk [vmem:[#allocation4 + $0xd8] sm:$0xff] %vm547_vm0, %v4110_v54 }
  0x64   : > { %576 = vst.msk [vmem:[#allocation4 + $0xe0] sm:$0xff] %vm547_vm0, %v4110_v54  ;;  %577 = vst.msk [vmem:[#allocation4 + $0xe8] sm:$0xff] %vm547_vm0, %v4110_v54 }
  0x65   : > { %578 = vst.msk [vmem:[#allocation4 + $0xf0] sm:$0xff] %vm547_vm0, %v4110_v54  ;;  %579 = vst.msk [vmem:[#allocation4 + $0xf8] sm:$0xff] %vm547_vm0, %v4110_v54 }
 0x117   : > { %v4260_v37 = vpop.f32.mrf.mxu0 }
 0x118   : > { %v749_v38 = vsel %vm742_vm2, %v4260_v37, -inf }
 0x119   : > { %750 = vmax.xlane.f32.xlu1 %v749_v38  ;;  %v4264_v39 = vpop.f32.mrf.mxu0 }
 0x11a   : > { %v743_v40 = vsel %vm742_vm2, %v4264_v39, -inf }
 0x11b   : > { %744 = vmax.xlane.f32.xlu0 %v743_v40  ;;  %v4268_v41 = vpop.f32.mrf.mxu0 }
 0x11c   : > { %v752_v42 = vsel %vm742_vm2, %v4268_v41, -inf }
 0x11d   : > { %753 = vmax.xlane.f32.xlu1 %v752_v42  ;;  %v4272_v43 = vpop.f32.mrf.mxu0 }
 0x11e   : > { %v746_v44 = vsel %vm742_vm2, %v4272_v43, -inf }
 0x11f   : > { %747 = vmax.xlane.f32.xlu0 %v746_v44  ;;  %v4276_v45 = vpop.f32.mrf.mxu0 }
 0x120   : > { %v761_v51 = vsel %vm742_vm2, %v4276_v45, -inf }
 0x121   : > { %v4278_v46 = vpop.f32.mrf.mxu0 }
 0x122   : > { %v755_v47 = vsel %vm742_vm2, %v4278_v46, -inf }
 0x123   : > { %756 = vmax.xlane.f32.xlu0 %v755_v47  ;;  %v4282_v48 = vpop.f32.mrf.mxu0 }
 0x124   : > { %v764_v53 = vsel %vm742_vm2, %v4282_v48, -inf }
 0x125   : > { %v4284_v50 = vpop.f32.mrf.mxu0 }
 0x126   : > { %v758_v52 = vsel %vm742_vm2, %v4284_v50, -inf }
 0x127   : > { %762 = vmax.xlane.f32.xlu0 %v761_v51  ;;  %759 = vmax.xlane.f32.xlu1 %v758_v52 }
 0x12b   : > { %765 = vmax.xlane.f32.xlu1 %v764_v53 }
 0x1a2   : > { %v751_v56 = vpop.xlane.xlu1 %750 }
 0x1a3   : > { %v4425_v58 = vmax.f32 %v4420_v55, %v751_v56 }
 0x1a4   : > { %v745_v59 = vpop.xlane.xlu0 %744 }
 0x1a5   : > { %1099 = vst.msk [vmem:[#allocation2 + $0x10] sm:$0xff] %vm482_vm1, %v4425_v58  ;;  %v4434_v62 = vmax.f32 %v4422_v57, %v745_v59  ;;  %811 = vperm.xlu1 %3827, %v4425_v58  }
 0x1a6   : > { %v754_v63 = vpop.xlane.xlu1 %753 }
 0x1a7   : > { %1097 = vst.msk [vmem:[#allocation2] sm:$0xff] %vm482_vm1, %v4434_v62  ;;  %v4444_v2 = vmax.f32 %v4427_v60, %v754_v63  ;;  %801 = vperm.xlu0 %3826, %v4434_v62  }
 0x1a8   : > { %v748_v4 = vpop.xlane.xlu0 %747 }
 0x1a9   : > { %1100 = vst.msk [vmem:[#allocation2 + $0x18] sm:$0xff] %vm482_vm1, %v4444_v2  ;;  %v4453_v6 = vmax.f32 %v4437_v0, %v748_v4 }
 0x1ab   : > { %1098 = vst.msk [vmem:[#allocation2 + $0x8] sm:$0xff] %vm482_vm1, %v4453_v6  ;;  %806 = vperm.xlu1 %3827, %v4453_v6   ;;  %1181 = vrot.lane.b32.xlu0 %v3837_v3, %s4111_s26 }
 0x1ac   : > { %v757_v10 = vpop.xlane.xlu0 %756 }
 0x1ad   : > { %v4465_v11 = vmax.f32 %v4455_v7, %v757_v10 }
 0x1af   : > { %1101 = vst.msk [vmem:[#allocation2 + $0x20] sm:$0xff] %vm482_vm1, %v4465_v11  ;;  %816 = vperm.xlu1 %3827, %v4444_v2   ;;  %1177 = vrot.lane.b32.xlu0 %v3839_v9, %s4111_s26 }
 0x1b0   : > { %v763_v17 = vpop.xlane.xlu0 %762  ;;  %v760_v18 = vpop.xlane.xlu1 %759 }
 0x1b1   : > { %v4485_v20 = vmax.f32 %v4467_v12, %v763_v17  ;;  %v4488_v21 = vmax.f32 %v4469_v13, %v760_v18 }
 0x1b3   : > { %1103 = vst.msk [vmem:[#allocation2 + $0x30] sm:$0xff] %vm482_vm1, %v4485_v20  ;;  %1102 = vst.msk [vmem:[#allocation2 + $0x28] sm:$0xff] %vm482_vm1, %v4488_v21  ;;  %831 = vperm.xlu1 %3827, %v4485_v20   ;;  %1151 = vrot.lane.b32.xlu0 %v3841_v14, %s4111_s26 }
 0x1b4   : > { %v766_v26 = vpop.xlane.xlu1 %765 }
 0x1b5   : > { %v4503_v27 = vmax.f32 %v4482_v19, %v766_v26 }
 0x1b7   : > { %1104 = vst.msk [vmem:[#allocation2 + $0x38] sm:$0xff] %vm482_vm1, %v4503_v27  ;;  %821 = vperm.xlu1 %3827, %v4465_v11   ;;  %1155 = vrot.lane.b32.xlu0 %v3843_v22, %s4111_s26 }
 0x1bb   : > { %836 = vperm.xlu1 %3827, %v4503_v27  }
 0x1bf   : > { %826 = vperm.xlu1 %3827, %v4488_v21  }
 0x1c3   : > { %1183 = vrot.lane.b32.xlu1 %v3836_v31, %s4111_s26 }
 0x1c7   : > { %1179 = vrot.lane.b32.xlu1 %v3838_v32, %s4111_s26 }
 0x1cb   : > { %1149 = vrot.lane.b32.xlu1 %v3840_v33, %s4111_s26 }
 0x1cf   : > { %1153 = vrot.lane.b32.xlu1 %v3842_v34, %s4111_s26 }
 0x220   : > { %v812_v35 = vpop.permute.xlu1 %811 }
 0x221   : > { %v841_v40 = vsub.f32 %v4260_v37, %v812_v35 }
 0x222   : > { %v802_v36 = vpop.permute.xlu0 %801 }
 0x223   : > { %v839_v38 = vsub.f32 %v4264_v39, %v802_v36  ;;  %v851_v51 = vmul.f32 1.442695, %v841_v40 }
 0x225   : > { %v847_v42 = vmul.f32 1.442695, %v839_v38 }
 0x226   : > { %v807_v44 = vpop.permute.xlu1 %806  ;;  %v1182_v23 = vpop.permute.xlu0 %1181 }
 0x227   : > { %v840_v47 = vsub.f32 %v4272_v43, %v807_v44  ;;  %3876 = vpow2.f32 %v847_v42  ;;  %v1204_v26 = vsel %vm547_vm0, %v1182_v23, 0 }
 0x229   : > { %v849_v49 = vmul.f32 1.442695, %v840_v47 }
 0x22a   : > { %v817_v52 = vpop.permute.xlu1 %816  ;;  %v1178_v40 = vpop.permute.xlu0 %1177 }
 0x22b   : > { %3878 = vpow2.f32 %v849_v49  ;;  %v842_v53 = vsub.f32 %v4268_v41, %v817_v52  ;;  %v1198_v42 = vsel %vm547_vm0, %v1178_v40, 0 }
 0x22c   : > { %3880 = vpow2.f32 %v851_v51 }
 0x22d   : > { %v853_v54 = vmul.f32 1.442695, %v842_v53 }
 0x22e   : > { %v832_v56 = vpop.permute.xlu1 %831  ;;  %v1152_v44 = vpop.permute.xlu0 %1151 }
 0x22f   : > { %3882 = vpow2.f32 %v853_v54  ;;  %v845_v4 = vsub.f32 %v4276_v45, %v832_v56 }
 0x231   : > { %v859_v18 = vmul.f32 1.442695, %v845_v4 }
 0x232   : > { %v822_v59 = vpop.permute.xlu1 %821  ;;  %v1156_v49 = vpop.permute.xlu0 %1155 }
 0x233   : > { %v843_v39 = vsub.f32 %v4278_v46, %v822_v59 }
 0x234   : > { %v4528_v37 = vpop.eup %3876 }
 0x235   : > { %v855_v9 = vmul.f32 1.442695, %v843_v39 }
 0x236   : > { %v837_v63 = vpop.permute.xlu1 %836 }
 0x237   : > { %v846_v3 = vsub.f32 %v4282_v48, %v837_v63  ;;  %3884 = vpow2.f32 %v855_v9 }
 0x238   : > { %v4531_v43 = vpop.eup %3878 }
 0x239   : > { %v976_v41 = vpack.c.bf16 %v4531_v43, %v4528_v37  ;;  %v861_v10 = vmul.f32 1.442695, %v846_v3  ;;  %v4536_v15 = vpop.eup %3880 }
 0x23a   : > { %v827_v14 = vpop.permute.xlu1 %826 }
 0x23b   : > { %v844_v17 = vsub.f32 %v4284_v50, %v827_v14  ;;  %3659 = vmatprep.mubr.msk.bf16.mxu1 %vm742_vm2, %v976_v41  ;;  %3886 = vpow2.f32 %v861_v10 }
 0x23c   : > { %v4540_v46 = vpop.eup %3882 }
 0x23d   : > { %v857_v48 = vmul.f32 1.442695, %v844_v17  ;;  %v977_v45 = vpack.c.bf16 %v4540_v46, %v4536_v15 }
 0x23e   : > { %v1184_v22 = vpop.permute.xlu1 %1183 }
 0x23f   : > { %3888 = vpow2.f32 %v857_v48  ;;  %3660 = vmatmul.mubr.msk.bf16.vlgmr.msra.gmra.mxu1 %vm742_vm2, %v977_v45  ;;  %3767 = vmatprep.subr.msk.bf16.mxu1 %vm547_vm0, %v1184_v22  ;;  %v1207_v50 = vsel %vm547_vm0, %v1184_v22, 0 }
 0x240   : > { %3890 = vpow2.f32 %v859_v18  ;;  %3668 = vmatpush3.bf16.xpose.msra.mxu1 %v1207_v50 }
 0x241   : > { %3768 = vmatprep.subr.msk.bf16.mxu1 %vm547_vm0, %v1182_v23 }
 0x242   : > { %v1180_v28 = vpop.permute.xlu1 %1179 }
 0x243   : > { %v1201_v36 = vsel %vm547_vm0, %v1180_v28, 0 }
 0x244   : > { %v4550_v30 = vpop.eup %3884 }
 0x246   : > { %v1150_v38 = vpop.permute.xlu1 %1149 }
 0x248   : > { %3670 = vmatpush3.bf16.xpose.msra.mxu1 %v1204_v26  ;;  %v4552_v31 = vpop.eup %3886 }
 0x249   : > { %3769 = vmatprep.subr.msk.bf16.mxu1 %vm547_vm0, %v1180_v28 }
 0x24a   : > { %v1154_v47 = vpop.permute.xlu1 %1153 }
 0x24c   : > { %v4554_v32 = vpop.eup %3888 }
 0x24d   : > { %v4556_v33 = vpop.eup %3890  ;;  %v978_v34 = vpack.c.bf16 %v4554_v32, %v4550_v30 }
 0x24e   : > { %v979_v35 = vpack.c.bf16 %v4552_v31, %v4556_v33 }
 0x24f   : > { %3663 = vmatprep.mubr.msk.bf16.mxu1 %vm742_vm2, %v978_v34 }
 0x250   : > { %3664 = vmatmul.mubr.msk.bf16.gmra.mxu1 %vm742_vm2, %v979_v35  ;;  %v4619_v35 = vld [vmem:[#allocation2 + $0x40] sm:$0xff] }
 0x251   : > { %3672 = vmatpush3.bf16.xpose.msra.mxu1 %v1201_v36  ;;  %3675 = vmatprep.mubr.msk.bf16.mxu1 %vm547_vm0, %v1150_v38 }
 0x252   : > { %3770 = vmatprep.subr.msk.bf16.mxu1 %vm547_vm0, %v1178_v40  ;;  %v4624_v40 = vld [vmem:[#allocation2 + $0x48] sm:$0xff] }
 0x259   : > { %3674 = vmatpush3.bf16.xpose.msra.mxu1 %v1198_v42  ;;  %v4626_v42 = vld [vmem:[#allocation2 + $0x58] sm:$0xff] }
 0x260   : > { %3676 = vmatmul.mubr.msk.bf16.vlgmr.msra.gmra.mxu1 %vm547_vm0, %v1152_v44 }
 0x261   : > { %3679 = vmatprep.mubr.msk.bf16.mxu1 %vm547_vm0, %v1154_v47 }
 0x268   : > { %3680 = vmatmul.mubr.msk.bf16.gmra.mxu1 %vm547_vm0, %v1156_v49 }
 0x2ff   : > { %v4571_v51 = vpop.f32.mrf.mxu1 }
 0x300   : > { %5610 = vst [vmem:[#allocation8_spill] sm:$0xff] %v4571_v51 }
 0x301   : > { %v4573_v52 = vpop.f32.mrf.mxu1 }
 0x302   : > { %5611 = vst [vmem:[#allocation9_spill] sm:$0xff] %v4573_v52  ;;  %v4824_v52 = vld [vmem:[#allocation2 + $0x88] sm:$0xff] }
 0x303   : > { %v4575_v53 = vpop.f32.mrf.mxu1  ;;  %5633 = vst [vmem:[#allocation31_spill] sm:$0xff] %v4824_v52 }
 0x304   : > { %5612 = vst [vmem:[#allocation10_spill] sm:$0xff] %v4575_v53 }
 0x305   : > { %v4577_v54 = vpop.f32.mrf.mxu1 }
 0x306   : > { %5613 = vst [vmem:[#allocation11_spill] sm:$0xff] %v4577_v54 }
 0x310   : > { %v4579_v56 = vpop.f32.mrf.mxu1 }
 0x311   : > { %5614 = vst [vmem:[#allocation12_spill] sm:$0xff] %v4579_v56 }
 0x312   : > { %v4581_v59 = vpop.f32.mrf.mxu1 }
 0x313   : > { %5615 = vst [vmem:[#allocation13_spill] sm:$0xff] %v4581_v59 }
 0x314   : > { %v4583_v39 = vpop.f32.mrf.mxu1 }
 0x315   : > { %5616 = vst [vmem:[#allocation14_spill] sm:$0xff] %v4583_v39 }
 0x316   : > { %v4585_v63 = vpop.f32.mrf.mxu1 }
 0x317   : > { %5617 = vst [vmem:[#allocation15_spill] sm:$0xff] %v4585_v63 }
 0x320   : > { %v4587_v3 = vpop.f32.mrf.mxu1 }
 0x321   : > { %v1289_v45 = vsel %vm742_vm2, %v4587_v3, -inf }
 0x322   : > { %v4589_v4 = vpop.f32.mrf.mxu1 }
 0x323   : > { %v1283_v9 = vsel %vm742_vm2, %v4589_v4, -inf }
 0x324   : > { %1284 = vmax.xlane.f32.xlu1 %v1283_v9  ;;  %v4593_v41 = vpop.f32.mrf.mxu1 }
 0x325   : > { %v1292_v14 = vsel %vm742_vm2, %v4593_v41, -inf }
 0x326   : > { %v4595_v10 = vpop.f32.mrf.mxu1 }
 0x327   : > { %v1286_v17 = vsel %vm742_vm2, %v4595_v10, -inf }
 0x328   : > { %1293 = vmax.xlane.f32.xlu1 %v1292_v14  ;;  %1287 = vmax.xlane.f32.xlu0 %v1286_v17  ;;  %v4601_v18 = vpop.f32.mrf.mxu1  ;;  %v4639_v17 = vld [vmem:[#allocation2 + $0x50] sm:$0xff] }
 0x329   : > { %v1301_v28 = vsel %vm742_vm2, %v4601_v18, -inf }
 0x32a   : > { %v4603_v48 = vpop.f32.mrf.mxu1 }
 0x32b   : > { %v1295_v23 = vsel %vm742_vm2, %v4603_v48, -inf }
 0x32c   : > { %1290 = vmax.xlane.f32.xlu0 %v1289_v45  ;;  %v4607_v22 = vpop.f32.mrf.mxu1  ;;  %v3850_v45 = vld [vmem:[%s4473_s27] sm:$0xff]  }
 0x32d   : > { %v1304_v34 = vsel %vm742_vm2, %v4607_v22, -inf }
 0x32e   : > { %v4611_v50 = vpop.f32.mrf.mxu1 }
 0x32f   : > { %v1298_v26 = vsel %vm742_vm2, %v4611_v50, -inf }
 0x330   : > { %1296 = vmax.xlane.f32.xlu0 %v1295_v23  ;;  %1299 = vmax.xlane.f32.xlu1 %v1298_v26  ;;  %v3848_v26 = vld [vmem:[%s4473_s27 + $0x10] sm:$0xff]   ;;  %v3849_v23 = vld [vmem:[%s4473_s27 + $0x18] sm:$0xff]  }
 0x334   : > { %1302 = vmax.xlane.f32.xlu0 %v1301_v28  ;;  %1305 = vmax.xlane.f32.xlu1 %v1304_v34 }
 0x3ad   : > { %v1285_v36 = vpop.xlane.xlu1 %1284 }
 0x3ae   : > { %v4622_v38 = vmax.f32 %v4619_v35, %v1285_v36  ;;  %v4655_v36 = vld [vmem:[#allocation2 + $0x60] sm:$0xff] }
 0x3b0   : > { %1646 = vst.msk [vmem:[#allocation2 + $0x40] sm:$0xff] %vm482_vm1, %v4622_v38  ;;  %1341 = vperm.xlu0 %3826, %v4622_v38  }
 0x3b1   : > { %v1288_v47 = vpop.xlane.xlu0 %1287  ;;  %v1294_v49 = vpop.xlane.xlu1 %1293 }
 0x3b2   : > { %v4634_v9 = vmax.f32 %v4624_v40, %v1288_v47  ;;  %v4637_v14 = vmax.f32 %v4626_v42, %v1294_v49  ;;  %v4657_v47 = vld [vmem:[#allocation2 + $0x68] sm:$0xff]  ;;  %v4675_v49 = vld [vmem:[#allocation2 + $0x78] sm:$0xff] }
 0x3b3   : > { %5619 = vst [vmem:[#allocation17_spill] sm:$0xff] %v4657_v47  ;;  %5621 = vst [vmem:[#allocation19_spill] sm:$0xff] %v4675_v49 }
 0x3b4   : > { %5618 = vst [vmem:[#allocation16_spill] sm:$0xff] %v4637_v14  ;;  %1647 = vst.msk [vmem:[#allocation2 + $0x48] sm:$0xff] %vm482_vm1, %v4634_v9  ;;  %1346 = vperm.xlu1 %3827, %v4634_v9   ;;  %1356 = vperm.xlu0 %3826, %v4637_v14  }
 0x3b5   : > { %1649 = vst.msk [vmem:[#allocation2 + $0x58] sm:$0xff] %vm482_vm1, %v4637_v14  ;;  %v1291_v28 = vpop.xlane.xlu0 %1290  ;;  %v4873_v14 = vld [vmem:[#allocation2 + $0xb0] sm:$0xff] }
 0x3b6   : > { %v4653_v34 = vmax.f32 %v4639_v17, %v1291_v28 }
 0x3b8   : > { %1648 = vst.msk [vmem:[#allocation2 + $0x50] sm:$0xff] %vm482_vm1, %v4653_v34  ;;  %1351 = vperm.xlu1 %3827, %v4653_v34   ;;  %1545 = vrot.lane.b32.xlu0 %v3848_v26, %s4111_s26  ;;  %v3856_v26 = vld [vmem:[%s4212_s12] sm:$0xff]  }
 0x3b9   : > { %v1297_v24 = vpop.xlane.xlu0 %1296  ;;  %v1300_v28 = vpop.xlane.xlu1 %1299 }
 0x3ba   : > { %v4668_v16 = vmax.f32 %v4655_v36, %v1297_v24  ;;  %v4671_v61 = vmax.f32 %v4657_v47, %v1300_v28  ;;  %v3851_v24 = vld [vmem:[%s4473_s27 + $0x8] sm:$0xff]  }
 0x3bc   : > { %5620 = vst [vmem:[#allocation18_spill] sm:$0xff] %v4671_v61  ;;  %1650 = vst.msk [vmem:[#allocation2 + $0x60] sm:$0xff] %vm482_vm1, %v4668_v16  ;;  %1547 = vrot.lane.b32.xlu1 %v3849_v23, %s4111_s26  ;;  %1541 = vrot.lane.b32.xlu0 %v3850_v45, %s4111_s26  ;;  %v3852_v23 = vld [vmem:[%s4203_s25 + $0x18] sm:$0xff]   ;;  %v3854_v45 = vld [vmem:[%s4203_s25 + $0x8] sm:$0xff]  }
 0x3bd   : > { %1651 = vst.msk [vmem:[#allocation2 + $0x68] sm:$0xff] %vm482_vm1, %v4671_v61  ;;  %v1303_v28 = vpop.xlane.xlu0 %1302  ;;  %v1306_v29 = vpop.xlane.xlu1 %1305 }
 0x3be   : > { %v4689_v44 = vmax.f32 %v4673_v8, %v1303_v28  ;;  %v4692_v25 = vmax.f32 %v4675_v49, %v1306_v29  ;;  %v3853_v29 = vld [vmem:[%s4203_s25 + $0x10] sm:$0xff]   ;;  %v3855_v28 = vld [vmem:[%s4203_s25] sm:$0xff]  }
 0x3bf   : > { %v4839_v49 = vld [vmem:[#allocation2 + $0x90] sm:$0xff] }
 0x3c0   : > { %5622 = vst [vmem:[#allocation20_spill] sm:$0xff] %v4692_v25  ;;  %1652 = vst.msk [vmem:[#allocation2 + $0x70] sm:$0xff] %vm482_vm1, %v4689_v44  ;;  %1543 = vrot.lane.b32.xlu1 %v3851_v24, %s4111_s26  ;;  %1366 = vperm.xlu0 %3826, %v4671_v61   ;;  %v3857_v24 = vld [vmem:[%s4212_s12 + $0x8] sm:$0xff]   ;;  %v4855_v61 = vld [vmem:[#allocation2 + $0xa0] sm:$0xff] }
 0x3c1   : > { %1653 = vst.msk [vmem:[#allocation2 + $0x78] sm:$0xff] %vm482_vm1, %v4692_v25  ;;  %5637 = vst [vmem:[#allocation35_spill] sm:$0xff] %v4839_v49 }
 0x3c2   : > { %5639 = vst [vmem:[#allocation37_spill] sm:$0xff] %v4855_v61 }
 0x3c4   : > { %1371 = vperm.xlu1 %3827, %v4689_v44   ;;  %1376 = vperm.xlu0 %3826, %v4692_v25   ;;  %v4826_v25 = vld [vmem:[#allocation2 + $0x98] sm:$0xff] }
 0x3c5   : > { %5634 = vst [vmem:[#allocation32_spill] sm:$0xff] %v4826_v25 }
 0x3c8   : > { %1361 = vperm.xlu1 %3827, %v4668_v16   ;;  %1730 = vrot.lane.b32.xlu0 %v3853_v29, %s4112_s28 }
 0x3cc   : > { %1732 = vrot.lane.b32.xlu1 %v3852_v23, %s4112_s28  ;;  %1726 = vrot.lane.b32.xlu0 %v3855_v28, %s4112_s28 }
 0x3d0   : > { %1728 = vrot.lane.b32.xlu1 %v3854_v45, %s4112_s28  ;;  %1700 = vrot.lane.b32.xlu0 %v3857_v24, %s4112_s28 }
 0x3d4   : > { %1698 = vrot.lane.b32.xlu1 %v3856_v26, %s4112_s28  ;;  %1704 = vrot.lane.b32.xlu0 %v3859_v5, %s4112_s28 }
 0x3d8   : > { %1702 = vrot.lane.b32.xlu1 %v3858_v1, %s4112_s28 }
 0x42b   : > { %v1342_v29 = vpop.permute.xlu0 %1341 }
 0x42c   : > { %v1379_v23 = vsub.f32 %v4589_v4, %v1342_v29 }
 0x42e   : > { %v1387_v28 = vmul.f32 1.442695, %v1379_v23 }
 0x42f   : > { %v1357_v56 = vpop.permute.xlu0 %1356  ;;  %v1347_v59 = vpop.permute.xlu1 %1346 }
 0x430   : > { %v1382_v51 = vsub.f32 %v4593_v41, %v1357_v56  ;;  %v1380_v45 = vsub.f32 %v4595_v10, %v1347_v59  ;;  %3892 = vpow2.f32 %v1387_v28 }
 0x432   : > { %v1389_v54 = vmul.f32 1.442695, %v1380_v45  ;;  %v1393_v24 = vmul.f32 1.442695, %v1382_v51 }
 0x433   : > { %v1546_v39 = vpop.permute.xlu0 %1545  ;;  %v1352_v63 = vpop.permute.xlu1 %1351 }
 0x434   : > { %v1381_v26 = vsub.f32 %v4587_v3, %v1352_v63  ;;  %3894 = vpow2.f32 %v1389_v54 }
 0x435   : > { %3896 = vpow2.f32 %v1393_v24 }
 0x436   : > { %v1391_v5 = vmul.f32 1.442695, %v1381_v26 }
 0x437   : > { %v1542_v1 = vpop.permute.xlu0 %1541  ;;  %v1548_v53 = vpop.permute.xlu1 %1547 }
 0x438   : > { %3898 = vpow2.f32 %v1391_v5  ;;  %3683 = vmatprep.subr.bf16.mxu0 %v1548_v53 }
 0x439   : > { %3684 = vmatpush3.bf16.msra.mxu0 %v1548_v53 }
 0x43a   : > { %3685 = vmatprep.subr.bf16.mxu0 %v1546_v39 }
 0x43b   : > { %v1367_v4 = vpop.permute.xlu0 %1366  ;;  %v1544_v56 = vpop.permute.xlu1 %1543 }
 0x43c   : > { %v1384_v59 = vsub.f32 %v4611_v50, %v1367_v4 }
 0x43d   : > { %3686 = vmatpush3.bf16.msra.mxu0 %v1546_v39  ;;  %v4730_v63 = vpop.eup %3892 }
 0x43e   : > { %3687 = vmatprep.subr.bf16.mxu0 %v1544_v56  ;;  %v1397_v3 = vmul.f32 1.442695, %v1384_v59 }
 0x43f   : > { %v1377_v51 = vpop.permute.xlu0 %1376  ;;  %v1372_v41 = vpop.permute.xlu1 %1371 }
 0x440   : > { %v1386_v10 = vsub.f32 %v4607_v22, %v1377_v51  ;;  %v1385_v54 = vsub.f32 %v4601_v18, %v1372_v41  ;;  %3900 = vpow2.f32 %v1397_v3 }
 0x441   : > { %3688 = vmatpush3.bf16.msra.mxu0 %v1544_v56  ;;  %v4732_v29 = vpop.eup %3894 }
 0x442   : > { %v1401_v53 = vmul.f32 1.442695, %v1386_v10  ;;  %3689 = vmatprep.subr.bf16.mxu0 %v1542_v1  ;;  %v1399_v23 = vmul.f32 1.442695, %v1385_v54  ;;  %v1517_v39 = vpack.c.bf16 %v4732_v29, %v4730_v63  ;;  %v4736_v50 = vpop.eup %3896 }
 0x443   : > { %v1362_v28 = vpop.permute.xlu1 %1361  ;;  %v1731_v5 = vpop.permute.xlu0 %1730 }
 0x444   : > { %v1383_v45 = vsub.f32 %v4603_v48, %v1362_v28  ;;  %3691 = vmatprep.mubr.msk.bf16.mxu0 %vm742_vm2, %v1517_v39  ;;  %3902 = vpow2.f32 %v1401_v53 }
 0x445   : > { %v4739_v22 = vpop.eup %3898  ;;  %3690 = vmatpush3.bf16.msra.mxu0 %v1542_v1  ;;  %3904 = vpow2.f32 %v1399_v23  ;;  %v1753_v1 = vsel %vm547_vm0, %v1731_v5, 0 }
 0x446   : > { %v1518_v18 = vpack.c.bf16 %v4736_v50, %v4739_v22  ;;  %v1395_v24 = vmul.f32 1.442695, %v1383_v45 }
 0x447   : > { %v1733_v26 = vpop.permute.xlu1 %1732  ;;  %v1727_v23 = vpop.permute.xlu0 %1726 }
 0x448   : > { %3906 = vpow2.f32 %v1395_v24  ;;  %3692 = vmatmul.mubr.msk.bf16.vlgmr.msra.gmra.mxu0 %vm742_vm2, %v1518_v18  ;;  %3771 = vmatprep.subr.msk.bf16.mxu0 %vm547_vm0, %v1733_v26  ;;  %v1756_v48 = vsel %vm547_vm0, %v1733_v26, 0  ;;  %v1747_v28 = vsel %vm547_vm0, %v1727_v23, 0 }
 0x449   : > { %3700 = vmatpush3.bf16.xpose.msra.mxu0 %v1756_v48 }
 0x44a   : > { %3772 = vmatprep.subr.msk.bf16.mxu0 %vm547_vm0, %v1731_v5 }
 0x44b   : > { %v1729_v4 = vpop.permute.xlu1 %1728  ;;  %v1701_v39 = vpop.permute.xlu0 %1700 }
 0x44c   : > { %v1750_v3 = vsel %vm547_vm0, %v1729_v4, 0 }
 0x44d   : > { %v4749_v56 = vpop.eup %3900 }
 0x44f   : > { %v1699_v53 = vpop.permute.xlu1 %1698  ;;  %v1705_v18 = vpop.permute.xlu0 %1704 }
 0x451   : > { %3702 = vmatpush3.bf16.xpose.msra.mxu0 %v1753_v1  ;;  %v4752_v59 = vpop.eup %3902 }
 0x452   : > { %3773 = vmatprep.subr.msk.bf16.mxu0 %vm547_vm0, %v1729_v4  ;;  %v4754_v51 = vpop.eup %3904 }
 0x453   : > { %v1520_v54 = vpack.c.bf16 %v4752_v59, %v4754_v51  ;;  %v1703_v45 = vpop.permute.xlu1 %1702 }
 0x455   : > { %v4756_v41 = vpop.eup %3906 }
 0x456   : > { %v1519_v10 = vpack.c.bf16 %v4749_v56, %v4756_v41 }
 0x458   : > { %3695 = vmatprep.mubr.msk.bf16.mxu0 %vm742_vm2, %v1519_v10 }
 0x459   : > { %3696 = vmatmul.mubr.msk.bf16.gmra.mxu0 %vm742_vm2, %v1520_v54 }
 0x45a   : > { %3704 = vmatpush3.bf16.xpose.msra.mxu0 %v1750_v3  ;;  %3707 = vmatprep.mubr.msk.bf16.mxu0 %vm547_vm0, %v1699_v53 }
 0x45b   : > { %3774 = vmatprep.subr.msk.bf16.mxu0 %vm547_vm0, %v1727_v23 }
 0x462   : > { %3706 = vmatpush3.bf16.xpose.msra.mxu0 %v1747_v28 }
 0x469   : > { %3708 = vmatmul.mubr.msk.bf16.vlgmr.msra.gmra.mxu0 %vm547_vm0, %v1701_v39 }
 0x46a   : > { %3711 = vmatprep.mubr.msk.bf16.mxu0 %vm547_vm0, %v1703_v45 }
 0x471   : > { %3712 = vmatmul.mubr.msk.bf16.gmra.mxu0 %vm547_vm0, %v1705_v18 }
 0x508   : > { %v4771_v24 = vpop.f32.mrf.mxu0 }
 0x509   : > { %5623 = vst [vmem:[#allocation21_spill] sm:$0xff] %v4771_v24 }
 0x50a   : > { %v4773_v26 = vpop.f32.mrf.mxu0 }
 0x50b   : > { %5624 = vst [vmem:[#allocation22_spill] sm:$0xff] %v4773_v26 }
 0x50c   : > { %v4775_v5 = vpop.f32.mrf.mxu0 }
 0x50d   : > { %5625 = vst [vmem:[#allocation23_spill] sm:$0xff] %v4775_v5 }
 0x50e   : > { %v4777_v48 = vpop.f32.mrf.mxu0 }
 0x50f   : > { %5626 = vst [vmem:[#allocation24_spill] sm:$0xff] %v4777_v48 }
 0x519   : > { %v4779_v1 = vpop.f32.mrf.mxu0 }
 0x51a   : > { %5627 = vst [vmem:[#allocation25_spill] sm:$0xff] %v4779_v1 }
 0x51b   : > { %v4781_v4 = vpop.f32.mrf.mxu0 }
 0x51c   : > { %5628 = vst [vmem:[#allocation26_spill] sm:$0xff] %v4781_v4 }
 0x51d   : > { %v4783_v10 = vpop.f32.mrf.mxu0 }
 0x51e   : > { %5629 = vst [vmem:[#allocation27_spill] sm:$0xff] %v4783_v10 }
 0x51f   : > { %v4785_v54 = vpop.f32.mrf.mxu0 }
 0x520   : > { %5630 = vst [vmem:[#allocation28_spill] sm:$0xff] %v4785_v54 }
 0x529   : > { %v4787_v3 = vpop.f32.mrf.mxu0 }
 0x52a   : > { %v1838_v24 = vsel %vm742_vm2, %v4787_v3, -inf }
 0x52b   : > { %v4789_v53 = vpop.f32.mrf.mxu0 }
 0x52c   : > { %v1832_v23 = vsel %vm742_vm2, %v4789_v53, -inf }
 0x52d   : > { %1833 = vmax.xlane.f32.xlu1 %v1832_v23  ;;  %v4793_v28 = vpop.f32.mrf.mxu0 }
 0x52e   : > { %v1841_v45 = vsel %vm742_vm2, %v4793_v28, -inf }
 0x52f   : > { %v4795_v39 = vpop.f32.mrf.mxu0 }
 0x530   : > { %v1835_v18 = vsel %vm742_vm2, %v4795_v39, -inf }
 0x531   : > { %1842 = vmax.xlane.f32.xlu1 %v1841_v45  ;;  %1836 = vmax.xlane.f32.xlu0 %v1835_v18  ;;  %v4801_v10 = vpop.f32.mrf.mxu0 }
 0x532   : > { %v1850_v45 = vsel %vm742_vm2, %v4801_v10, -inf }
 0x533   : > { %v4803_v4 = vpop.f32.mrf.mxu0 }
 0x534   : > { %v1844_v48 = vsel %vm742_vm2, %v4803_v4, -inf }
 0x535   : > { %1839 = vmax.xlane.f32.xlu0 %v1838_v24  ;;  %v4807_v23 = vpop.f32.mrf.mxu0  ;;  %v4819_v24 = vld [vmem:[#allocation2 + $0x80] sm:$0xff] }
 0x536   : > { %v1853_v18 = vsel %vm742_vm2, %v4807_v23, -inf  ;;  %5631 = vst [vmem:[#allocation29_spill] sm:$0xff] %v4819_v24 }
 0x537   : > { %v4811_v1 = vpop.f32.mrf.mxu0 }
 0x538   : > { %v1847_v54 = vsel %vm742_vm2, %v4811_v1, -inf }
 0x539   : > { %1845 = vmax.xlane.f32.xlu0 %v1844_v48  ;;  %1848 = vmax.xlane.f32.xlu1 %v1847_v54  ;;  %v3861_v48 = vld [vmem:[%s4473_s27 + $0x18] sm:$0xff]  }
 0x53d   : > { %1851 = vmax.xlane.f32.xlu0 %v1850_v45  ;;  %1854 = vmax.xlane.f32.xlu1 %v1853_v18 }
 0x5b6   : > { %v1834_v5 = vpop.xlane.xlu1 %1833 }
 0x5b7   : > { %v4822_v26 = vmax.f32 %v4819_v24, %v1834_v5  ;;  %v4875_v24 = vld [vmem:[#allocation2 + $0xb8] sm:$0xff] }
 0x5b9   : > { %5632 = vst [vmem:[#allocation30_spill] sm:$0xff] %v4822_v26  ;;  %2195 = vst.msk [vmem:[#allocation2 + $0x80] sm:$0xff] %vm482_vm1, %v4822_v26  ;;  %1890 = vperm.xlu0 %3826, %v4822_v26  }
 0x5ba   : > { %v1837_v54 = vpop.xlane.xlu0 %1836  ;;  %v1843_v45 = vpop.xlane.xlu1 %1842 }
 0x5bb   : > { %v4834_v18 = vmax.f32 %v4824_v52, %v1837_v54  ;;  %v4837_v5 = vmax.f32 %v4826_v25, %v1843_v45  ;;  %v3860_v54 = vld [vmem:[%s4473_s27 + $0x10] sm:$0xff]   ;;  %v4857_v52 = vld [vmem:[#allocation2 + $0xa8] sm:$0xff] }
 0x5bd   : > { %5635 = vst [vmem:[#allocation33_spill] sm:$0xff] %v4834_v18  ;;  %5636 = vst [vmem:[#allocation34_spill] sm:$0xff] %v4837_v5  ;;  %1895 = vperm.xlu1 %3827, %v4834_v18   ;;  %1905 = vperm.xlu0 %3826, %v4837_v5  }
 0x5be   : > { %2196 = vst.msk [vmem:[#allocation2 + $0x88] sm:$0xff] %vm482_vm1, %v4834_v18  ;;  %2198 = vst.msk [vmem:[#allocation2 + $0x98] sm:$0xff] %vm482_vm1, %v4837_v5  ;;  %v1840_v45 = vpop.xlane.xlu0 %1839  ;;  %v3862_v18 = vld [vmem:[%s4473_s27] sm:$0xff]  }
 0x5bf   : > { %v4853_v26 = vmax.f32 %v4839_v49, %v1840_v45 }
 0x5c1   : > { %5638 = vst [vmem:[#allocation36_spill] sm:$0xff] %v4853_v26  ;;  %2197 = vst.msk [vmem:[#allocation2 + $0x90] sm:$0xff] %vm482_vm1, %v4853_v26  ;;  %1900 = vperm.xlu1 %3827, %v4853_v26   ;;  %2094 = vrot.lane.b32.xlu0 %v3860_v54, %s4112_s28  ;;  %v3868_v54 = vld [vmem:[%s4212_s12 + $0x8] sm:$0xff]  }
 0x5c2   : > { %v1846_v5 = vpop.xlane.xlu0 %1845  ;;  %v1849_v45 = vpop.xlane.xlu1 %1848 }
 0x5c3   : > { %v4868_v25 = vmax.f32 %v4855_v61, %v1846_v5  ;;  %v4871_v47 = vmax.f32 %v4857_v52, %v1849_v45  ;;  %v3863_v5 = vld [vmem:[%s4473_s27 + $0x8] sm:$0xff]  }
 0x5c5   : > { %5640 = vst [vmem:[#allocation38_spill] sm:$0xff] %v4868_v25  ;;  %2199 = vst.msk [vmem:[#allocation2 + $0xa0] sm:$0xff] %vm482_vm1, %v4868_v25  ;;  %2096 = vrot.lane.b32.xlu1 %v3861_v48, %s4112_s28  ;;  %2090 = vrot.lane.b32.xlu0 %v3862_v18, %s4112_s28  ;;  %v3865_v18 = vld [vmem:[%s4203_s25 + $0x18] sm:$0xff]   ;;  %v3869_v48 = vld [vmem:[%s4212_s12] sm:$0xff]  }
 0x5c6   : > { %2200 = vst.msk [vmem:[#allocation2 + $0xa8] sm:$0xff] %vm482_vm1, %v4871_v47  ;;  %v1852_v45 = vpop.xlane.xlu0 %1851  ;;  %v1855_v49 = vpop.xlane.xlu1 %1854 }
 0x5c7   : > { %v4889_v26 = vmax.f32 %v4873_v14, %v1852_v45  ;;  %v4892_v61 = vmax.f32 %v4875_v24, %v1855_v49  ;;  %v3864_v49 = vld [vmem:[%s4203_s25 + $0x10] sm:$0xff]   ;;  %v3866_v45 = vld [vmem:[%s4203_s25] sm:$0xff]  }
 0x5c9   : > { %5641 = vst [vmem:[#allocation39_spill] sm:$0xff] %v4889_v26  ;;  %2201 = vst.msk [vmem:[#allocation2 + $0xb0] sm:$0xff] %vm482_vm1, %v4889_v26  ;;  %2092 = vrot.lane.b32.xlu1 %v3863_v5, %s4112_s28  ;;  %1915 = vperm.xlu0 %3826, %v4871_v47   ;;  %v3867_v5 = vld [vmem:[%s4203_s25 + $0x8] sm:$0xff]  }
 0x5ca   : > { %2202 = vst.msk [vmem:[#allocation2 + $0xb8] sm:$0xff] %vm482_vm1, %v4892_v61 }
 0x5cd   : > { %1920 = vperm.xlu1 %3827, %v4889_v26   ;;  %1925 = vperm.xlu0 %3826, %v4892_v61   ;;  %v3870_v26 = vld [vmem:[%s4212_s12 + $0x18] sm:$0xff]  }
 0x5d1   : > { %1910 = vperm.xlu1 %3827, %v4868_v25   ;;  %2279 = vrot.lane.b32.xlu0 %v3864_v49, %s4113_s29  ;;  %v3871_v25 = vld [vmem:[%s4212_s12 + $0x10] sm:$0xff]   ;;  %v882_v49 = vsel %vm742_vm2, %v4531_v43, 0.0  ;;  %v1423_v43 = vsel %vm742_vm2, %v4732_v29, 0.0  ;;  %v1429_v29 = vsel %vm742_vm2, %v4736_v50, 0.0  ;;  %v5644_v50 = vsub.f32 %v4469_v13, %v4488_v21 }
 0x5d5   : > { %2281 = vrot.lane.b32.xlu1 %v3865_v18, %s4113_s29  ;;  %2275 = vrot.lane.b32.xlu0 %v3866_v45, %s4113_s29  ;;  %v885_v18 = vsel %vm742_vm2, %v4536_v15, 0.0  ;;  %v894_v15 = vsel %vm742_vm2, %v4554_v32, 0.0  ;;  %v1438_v32 = vsel %vm742_vm2, %v4754_v51, 0.0  ;;  %v1441_v51 = vsel %vm742_vm2, %v4752_v59, 0.0 }
 0x5d9   : > { %2277 = vrot.lane.b32.xlu1 %v3867_v5, %s4113_s29  ;;  %2249 = vrot.lane.b32.xlu0 %v3868_v54, %s4113_s29  ;;  %v891_v54 = vsel %vm742_vm2, %v4550_v30, 0.0  ;;  %v900_v30 = vsel %vm742_vm2, %v4552_v31, 0.0  ;;  %v5642_v31 = vsub.f32 %v4422_v57, %v4434_v62  ;;  %v793_v5 = vmul.f32 1.442695, %v5644_v50 }
 0x5da   : > { %v5645_v57 = vsub.f32 %v4482_v19, %v4503_v27 }
 0x5dc   : > { %v797_v62 = vmul.f32 1.442695, %v5645_v57 }
 0x5dd   : > { %2247 = vrot.lane.b32.xlu1 %v3869_v48, %s4113_s29  ;;  %2253 = vrot.lane.b32.xlu0 %v3870_v26, %s4113_s29  ;;  %v879_v48 = vsel %vm742_vm2, %v4528_v37, 0.0  ;;  %v897_v26 = vsel %vm742_vm2, %v4556_v33, 0.0  ;;  %v1426_v37 = vsel %vm742_vm2, %v4739_v22, 0.0  ;;  %v1420_v33 = vsel %vm742_vm2, %v4730_v63, 0.0 }
 0x5de   : > { %v783_v22 = vmul.f32 1.442695, %v5642_v31  ;;  %v5643_v63 = vsub.f32 %v4427_v60, %v4444_v2 }
 0x5e0   : > { %3908 = vpow2.f32 %v783_v22  ;;  %v789_v45 = vmul.f32 1.442695, %v5643_v63 }
 0x5e1   : > { %2251 = vrot.lane.b32.xlu1 %v3871_v25, %s4113_s29  ;;  %v888_v25 = vsel %vm742_vm2, %v4540_v46, 0.0  ;;  %v1432_v46 = vsel %vm742_vm2, %v4756_v41, 0.0  ;;  %v1435_v41 = vsel %vm742_vm2, %v4749_v56, 0.0  ;;  %v5646_v56 = vsub.f32 %v4619_v35, %v4622_v38 }
 0x5e2   : > { %3910 = vpow2.f32 %v789_v45 }
 0x5e3   : > { %3912 = vpow2.f32 %v793_v5  ;;  %v1323_v60 = vmul.f32 1.442695, %v5646_v56 }
 0x5e4   : > { %3914 = vpow2.f32 %v797_v62 }
 0x5e5   : > { %3916 = vpow2.f32 %v1323_v60 }
 0x5ed   : > { %v4970_v2 = vpop.eup %3908 }
 0x5ef   : > { %v4973_v59 = vpop.eup %3910 }
 0x5f0   : > { %v4976_v21 = vpop.eup %3912 }
 0x5f1   : > { %v4980_v35 = vpop.eup %3914 }
 0x5fc   : > { %883 = vadd.xlane.f32.xlu0 %v882_v49 }
 0x600   : > { %886 = vadd.xlane.f32.xlu0 %v885_v18 }
 0x604   : > { %892 = vadd.xlane.f32.xlu0 %v891_v54 }
 0x605   : > { %880 = vadd.xlane.f32.xlu1 %v879_v48 }
 0x608   : > { %898 = vadd.xlane.f32.xlu0 %v897_v26 }
 0x609   : > { %889 = vadd.xlane.f32.xlu1 %v888_v25 }
 0x60c   : > { %1424 = vadd.xlane.f32.xlu0 %v1423_v43 }
 0x60d   : > { %895 = vadd.xlane.f32.xlu1 %v894_v15  ;;  %v4985_v15 = vpop.eup %3916 }
 0x610   : > { %1427 = vadd.xlane.f32.xlu0 %v1426_v37 }
 0x611   : > { %901 = vadd.xlane.f32.xlu1 %v900_v30 }
 0x614   : > { %1433 = vadd.xlane.f32.xlu0 %v1432_v46 }
 0x615   : > { %1421 = vadd.xlane.f32.xlu1 %v1420_v33 }
 0x618   : > { %1439 = vadd.xlane.f32.xlu0 %v1438_v32 }
 0x619   : > { %1430 = vadd.xlane.f32.xlu1 %v1429_v29 }
 0x61d   : > { %1436 = vadd.xlane.f32.xlu1 %v1435_v41 }
 0x621   : > { %1442 = vadd.xlane.f32.xlu1 %v1441_v51 }
 0x62e   : > { %930 = vperm.xlu0 %3826, %v4970_v2  }
 0x632   : > { %945 = vperm.xlu0 %3826, %v4973_v59  }
 0x634   : > { %v1891_v13 = vpop.permute.xlu0 %1890 }
 0x635   : > { %v1928_v19 = vsub.f32 %v4789_v53, %v1891_v13 }
 0x636   : > { %955 = vperm.xlu0 %3826, %v4976_v21  }
 0x637   : > { %v1936_v38 = vmul.f32 1.442695, %v1928_v19 }
 0x638   : > { %v1906_v27 = vpop.permute.xlu0 %1905  ;;  %v1896_v49 = vpop.permute.xlu1 %1895 }
 0x639   : > { %v1931_v18 = vsub.f32 %v4793_v28, %v1906_v27  ;;  %v1929_v54 = vsub.f32 %v4795_v39, %v1896_v49  ;;  %3918 = vpow2.f32 %v1936_v38 }
 0x63a   : > { %965 = vperm.xlu0 %3826, %v4980_v35  }
 0x63b   : > { %v1938_v48 = vmul.f32 1.442695, %v1929_v54  ;;  %v1942_v26 = vmul.f32 1.442695, %v1931_v18 }
 0x63c   : > { %v2095_v25 = vpop.permute.xlu0 %2094  ;;  %v1901_v43 = vpop.permute.xlu1 %1900 }
 0x63d   : > { %v1930_v53 = vsub.f32 %v4787_v3, %v1901_v43  ;;  %3920 = vpow2.f32 %v1938_v48 }
 0x63e   : > { %1471 = vperm.xlu0 %3826, %v4985_v15   ;;  %3922 = vpow2.f32 %v1942_v26 }
 0x63f   : > { %v1940_v37 = vmul.f32 1.442695, %v1930_v53 }
 0x640   : > { %v2091_v30 = vpop.permute.xlu0 %2090  ;;  %v2097_v28 = vpop.permute.xlu1 %2096 }
 0x641   : > { %3924 = vpow2.f32 %v1940_v37  ;;  %3715 = vmatprep.subr.bf16.mxu1 %v2097_v28 }
 0x642   : > { %3716 = vmatpush3.bf16.msra.mxu1 %v2097_v28 }
 0x643   : > { %3717 = vmatprep.subr.bf16.mxu1 %v2095_v25 }
 0x644   : > { %v1916_v39 = vpop.permute.xlu0 %1915  ;;  %v2093_v46 = vpop.permute.xlu1 %2092 }
 0x645   : > { %v1933_v33 = vsub.f32 %v4811_v1, %v1916_v39 }
 0x646   : > { %3718 = vmatpush3.bf16.msra.mxu1 %v2095_v25  ;;  %v4992_v22 = vpop.eup %3918 }
 0x647   : > { %3719 = vmatprep.subr.bf16.mxu1 %v2093_v46  ;;  %v1946_v41 = vmul.f32 1.442695, %v1933_v33 }
 0x648   : > { %v1926_v32 = vpop.permute.xlu0 %1925  ;;  %v1921_v29 = vpop.permute.xlu1 %1920 }
 0x649   : > { %v1935_v3 = vsub.f32 %v4807_v23, %v1926_v32  ;;  %v1934_v31 = vsub.f32 %v4801_v10, %v1921_v29  ;;  %3926 = vpow2.f32 %v1946_v41  ;;  %v5649_v29 = vsub.f32 %v4455_v7, %v4465_v11  ;;  %v864_v41 = vld [vmem:[#allocation3 + $0x8] sm:$0xff] }
 0x64a   : > { %3720 = vmatpush3.bf16.msra.mxu1 %v2093_v46  ;;  %v4994_v63 = vpop.eup %3920  ;;  %v5648_v46 = vsub.f32 %v4420_v55, %v4425_v58  ;;  %v5652_v7 = vsub.f32 %v4639_v17, %v4653_v34  ;;  %v867_v34 = vld [vmem:[#allocation3 + $0x20] sm:$0xff] }
 0x64b   : > { %v1950_v45 = vmul.f32 1.442695, %v1935_v3  ;;  %3721 = vmatprep.subr.bf16.mxu1 %v2091_v30  ;;  %v1948_v51 = vmul.f32 1.442695, %v1934_v31  ;;  %v2066_v1 = vpack.c.bf16 %v4994_v63, %v4992_v22  ;;  %v4998_v5 = vpop.eup %3922  ;;  %v791_v3 = vmul.f32 1.442695, %v5649_v29 }
 0x64c   : > { %v1911_v50 = vpop.permute.xlu1 %1910  ;;  %v2280_v60 = vpop.permute.xlu0 %2279  ;;  %v787_v33 = vmul.f32 1.442695, %v5648_v46  ;;  %v5651_v31 = vsub.f32 %v4624_v40, %v4634_v9  ;;  %v1327_v11 = vmul.f32 1.442695, %v5652_v7  ;;  %v5653_v40 = vsub.f32 %v4655_v36, %v4668_v16 }
 0x64d   : > { %v1932_v57 = vsub.f32 %v4803_v4, %v1911_v50  ;;  %3723 = vmatprep.mubr.msk.bf16.mxu1 %vm742_vm2, %v2066_v1  ;;  %3928 = vpow2.f32 %v1950_v45  ;;  %v2302_v13 = vsel %vm547_vm0, %v2280_v60, 0 }
 0x64e   : > { %v5001_v23 = vpop.eup %3924  ;;  %3722 = vmatpush3.bf16.msra.mxu1 %v2091_v30  ;;  %3930 = vpow2.f32 %v1948_v51  ;;  %v5647_v30 = vsub.f32 %v4437_v0, %v4453_v6  ;;  %v5650_v0 = vsub.f32 %v4467_v12, %v4485_v20  ;;  %v1325_v55 = vmul.f32 1.442695, %v5651_v31  ;;  %v865_v12 = vld [vmem:[#allocation3 + $0x10] sm:$0xff] }
 0x64f   : > { %v2067_v10 = vpack.c.bf16 %v4998_v5, %v5001_v23  ;;  %v1944_v62 = vmul.f32 1.442695, %v1932_v57  ;;  %v1331_v9 = vmul.f32 1.442695, %v5653_v40  ;;  %v870_v40 = vld [vmem:[#allocation3 + $0x38] sm:$0xff] }
 0x650   : > { %v2282_v56 = vpop.permute.xlu1 %2281  ;;  %v2276_v43 = vpop.permute.xlu0 %2275  ;;  %v785_v28 = vmul.f32 1.442695, %v5647_v30  ;;  %v795_v6 = vmul.f32 1.442695, %v5650_v0  ;;  %v5657_v30 = vld [vmem:[#allocation17_spill] sm:$0xff] }
 0x651   : > { %3932 = vpow2.f32 %v1944_v62  ;;  %3724 = vmatmul.mubr.msk.bf16.vlgmr.msra.gmra.mxu1 %vm742_vm2, %v2067_v10  ;;  %3775 = vmatprep.subr.msk.bf16.mxu1 %vm547_vm0, %v2282_v56  ;;  %v2305_v4 = vsel %vm547_vm0, %v2282_v56, 0  ;;  %v2296_v53 = vsel %vm547_vm0, %v2276_v43, 0  ;;  %v863_v62 = vld [vmem:[#allocation3] sm:$0xff]  ;;  %v5654_v56 = vsub.f32 %v4673_v8, %v4689_v44 }
 0x652   : > { %3732 = vmatpush3.bf16.xpose.msra.mxu1 %v2305_v4  ;;  %3934 = vpow2.f32 %v785_v28  ;;  %v5655_v4 = vld [vmem:[#allocation16_spill] sm:$0xff]  ;;  %v5658_v28 = vld [vmem:[#allocation18_spill] sm:$0xff] }
 0x653   : > { %3776 = vmatprep.subr.msk.bf16.mxu1 %vm547_vm0, %v2280_v60  ;;  %3936 = vpow2.f32 %v787_v33  ;;  %v1335_v60 = vmul.f32 1.442695, %v5654_v56  ;;  %v1405_v33 = vld [vmem:[#allocation3 + $0x48] sm:$0xff] }
 0x654   : > { %v2278_v19 = vpop.permute.xlu1 %2277  ;;  %v2250_v37 = vpop.permute.xlu0 %2249  ;;  %3938 = vpow2.f32 %v791_v3  ;;  %v868_v3 = vld [vmem:[#allocation3 + $0x28] sm:$0xff] }
 0x655   : > { %v2299_v26 = vsel %vm547_vm0, %v2278_v19, 0  ;;  %3940 = vpow2.f32 %v795_v6 }
 0x656   : > { %v5011_v27 = vpop.eup %3926  ;;  %3942 = vpow2.f32 %v1325_v55  ;;  %v5660_v55 = vld [vmem:[#allocation19_spill] sm:$0xff] }
 0x657   : > { %3944 = vpow2.f32 %v1327_v11 }
 0x658   : > { %v2248_v25 = vpop.permute.xlu1 %2247  ;;  %v2254_v32 = vpop.permute.xlu0 %2253  ;;  %3946 = vpow2.f32 %v1331_v9 }
 0x659   : > { %3948 = vpow2.f32 %v1335_v60  ;;  %v1404_v60 = vld [vmem:[#allocation3 + $0x40] sm:$0xff] }
 0x65a   : > { %3734 = vmatpush3.bf16.xpose.msra.mxu1 %v2302_v13  ;;  %v5014_v49 = vpop.eup %3928  ;;  %v5656_v13 = vsub.f32 %v4626_v42, %v5655_v4  ;;  %v5659_v42 = vsub.f32 %v5657_v30, %v5658_v28 }
 0x65b   : > { %3777 = vmatprep.subr.msk.bf16.mxu1 %vm547_vm0, %v2278_v19  ;;  %v5016_v38 = vpop.eup %3930 }
 0x65c   : > { %v2069_v48 = vpack.c.bf16 %v5014_v49, %v5016_v38  ;;  %v2252_v39 = vpop.permute.xlu1 %2251  ;;  %v1329_v19 = vmul.f32 1.442695, %v5656_v13 }
 0x65e   : > { %v5018_v18 = vpop.eup %3932  ;;  %3950 = vpow2.f32 %v1329_v19 }
 0x65f   : > { %v2068_v54 = vpack.c.bf16 %v5011_v27, %v5018_v18  ;;  %v5048_v58 = vpop.eup %3934 }
 0x660   : > { %v872_v45 = vmul.f32 %v5048_v58, %v864_v41  ;;  %v5054_v51 = vpop.eup %3936  ;;  %v5661_v41 = vld [vmem:[#allocation20_spill] sm:$0xff] }
 0x661   : > { %3727 = vmatprep.mubr.msk.bf16.mxu1 %vm742_vm2, %v2068_v54  ;;  %v873_v1 = vmul.f32 %v5054_v51, %v865_v12  ;;  %v5061_v57 = vpop.eup %3938  ;;  %v5662_v7 = vsub.f32 %v5660_v55, %v5661_v41 }
 0x662   : > { %3728 = vmatmul.mubr.msk.bf16.gmra.mxu1 %vm742_vm2, %v2069_v48  ;;  %v875_v16 = vmul.f32 %v5061_v57, %v867_v34  ;;  %v5068_v36 = vpop.eup %3940  ;;  %v871_v48 = vmul.f32 %v4970_v2, %v863_v62  ;;  %v1408_v62 = vld [vmem:[#allocation3 + $0x60] sm:$0xff] }
 0x663   : > { %3736 = vmatpush3.bf16.xpose.msra.mxu1 %v2299_v26  ;;  %3739 = vmatprep.mubr.msk.bf16.mxu1 %vm547_vm0, %v2248_v25  ;;  %v869_v26 = vld [vmem:[#allocation3 + $0x30] sm:$0xff]  ;;  %v5076_v44 = vpop.eup %3942  ;;  %v1337_v11 = vmul.f32 1.442695, %v5662_v7 }
 0x664   : > { %3778 = vmatprep.subr.msk.bf16.mxu1 %vm547_vm0, %v2276_v43  ;;  %v877_v8 = vmul.f32 %v5068_v36, %v869_v26  ;;  %v1413_v6 = vmul.f32 %v5076_v44, %v1405_v33  ;;  %v5085_v31 = vpop.eup %3944 }
 0x66b   : > { %3738 = vmatpush3.bf16.xpose.msra.mxu1 %v2296_v53  ;;  %v866_v53 = vld [vmem:[#allocation3 + $0x18] sm:$0xff] }
 0x66c   : > { %v874_v46 = vmul.f32 %v4973_v59, %v866_v53  ;;  %v876_v59 = vmul.f32 %v4976_v21, %v868_v3 }
 0x672   : > { %3740 = vmatmul.mubr.msk.bf16.vlgmr.msra.gmra.mxu1 %vm547_vm0, %v2250_v37 }
 0x673   : > { %3743 = vmatprep.mubr.msk.bf16.mxu1 %vm547_vm0, %v2252_v39  ;;  %v1333_v39 = vmul.f32 1.442695, %v5659_v42 }
 0x675   : > { %3952 = vpow2.f32 %v1333_v39  ;;  %v1409_v39 = vld [vmem:[#allocation3 + $0x68] sm:$0xff] }
 0x676   : > { %3954 = vpow2.f32 %v1337_v11 }
 0x67a   : > { %3744 = vmatmul.mubr.msk.bf16.gmra.mxu1 %vm547_vm0, %v2254_v32 }
 0x685   : > { %v884_v50 = vpop.xlane.xlu0 %883 }
 0x686   : > { %v904_v20 = vadd.f32 %v884_v50, %v872_v45  ;;  %v1406_v50 = vld [vmem:[#allocation3 + $0x50] sm:$0xff] }
 0x688   : > { %913 = vst.msk [vmem:[#allocation3 + $0x8] sm:$0xff] %vm482_vm1, %v904_v20 }
 0x689   : > { %v887_v17 = vpop.xlane.xlu0 %886 }
 0x68a   : > { %v905_v10 = vadd.f32 %v887_v17, %v873_v1  ;;  %v1414_v1 = vmul.f32 %v5085_v31, %v1406_v50  ;;  %v5094_v17 = vpop.eup %3946 }
 0x68b   : > { %v1416_v4 = vmul.f32 %v5094_v17, %v1408_v62  ;;  %v5100_v13 = vpop.eup %3948  ;;  %v927_v62 = vld [vmem:[#allocation4 + $0x38] sm:$0xff] }
 0x68c   : > { %914 = vst.msk [vmem:[#allocation3 + $0x10] sm:$0xff] %vm482_vm1, %v905_v10  ;;  %v878_v10 = vmul.f32 %v4980_v35, %v870_v40  ;;  %v5104_v26 = vpop.eup %3950  ;;  %v925_v40 = vld [vmem:[#allocation4 + $0x28] sm:$0xff] }
 0x68d   : > { %v893_v54 = vpop.xlane.xlu0 %892  ;;  %v5110_v28 = vpop.eup %3952 }
 0x68e   : > { %v907_v25 = vadd.f32 %v893_v54, %v875_v16  ;;  %v881_v43 = vpop.xlane.xlu1 %880  ;;  %v1412_v54 = vmul.f32 %v4985_v15, %v1404_v60  ;;  %v5115_v33 = vpop.eup %3954 }
 0x68f   : > { %v903_v37 = vadd.f32 %v881_v43, %v871_v48  ;;  %v1410_v48 = vld [vmem:[#allocation3 + $0x70] sm:$0xff]  ;;  %v1407_v43 = vld [vmem:[#allocation3 + $0x58] sm:$0xff] }
 0x690   : > { %916 = vst.msk [vmem:[#allocation3 + $0x20] sm:$0xff] %vm482_vm1, %v907_v25  ;;  %v1415_v30 = vmul.f32 %v5104_v26, %v1407_v43 }
 0x691   : > { %912 = vst.msk [vmem:[#allocation3] sm:$0xff] %vm482_vm1, %v903_v37  ;;  %v899_v2 = vpop.xlane.xlu0 %898  ;;  %v1418_v37 = vmul.f32 %v5100_v13, %v1410_v48 }
 0x692   : > { %v909_v32 = vadd.f32 %v899_v2, %v877_v8  ;;  %v890_v29 = vpop.xlane.xlu1 %889 }
 0x693   : > { %v906_v0 = vadd.f32 %v890_v29, %v874_v46  ;;  %v1417_v46 = vmul.f32 %v5110_v28, %v1409_v39  ;;  %v1411_v29 = vld [vmem:[#allocation3 + $0x78] sm:$0xff] }
 0x694   : > { %918 = vst.msk [vmem:[#allocation3 + $0x30] sm:$0xff] %vm482_vm1, %v909_v32  ;;  %v1419_v55 = vmul.f32 %v5115_v33, %v1411_v29 }
 0x695   : > { %915 = vst.msk [vmem:[#allocation3 + $0x18] sm:$0xff] %vm482_vm1, %v906_v0  ;;  %v1425_v45 = vpop.xlane.xlu0 %1424  ;;  %v920_v0 = vld [vmem:[#allocation4] sm:$0xff] }
 0x696   : > { %v1445_v12 = vadd.f32 %v1425_v45, %v1413_v6  ;;  %v896_v20 = vpop.xlane.xlu1 %895  ;;  %v923_v45 = vld [vmem:[#allocation4 + $0x18] sm:$0xff] }
 0x697   : > { %v908_v9 = vadd.f32 %v896_v20, %v876_v59  ;;  %v5663_v59 = vld [vmem:[#allocation9_spill] sm:$0xff] }
 0x698   : > { %1453 = vst.msk [vmem:[#allocation3 + $0x48] sm:$0xff] %vm482_vm1, %v1445_v12 }
 0x699   : > { %917 = vst.msk [vmem:[#allocation3 + $0x28] sm:$0xff] %vm482_vm1, %v908_v9  ;;  %v1428_v34 = vpop.xlane.xlu0 %1427  ;;  %v5664_v9 = vld [vmem:[#allocation10_spill] sm:$0xff] }
 0x69a   : > { %v1446_v56 = vadd.f32 %v1428_v34, %v1414_v1  ;;  %v902_v21 = vpop.xlane.xlu1 %901 }
 0x69b   : > { %v910_v16 = vadd.f32 %v902_v21, %v878_v10 }
 0x69c   : > { %1454 = vst.msk [vmem:[#allocation3 + $0x50] sm:$0xff] %vm482_vm1, %v1446_v56  ;;  %v5665_v56 = vld [vmem:[#allocation15_spill] sm:$0xff] }
 0x69d   : > { %919 = vst.msk [vmem:[#allocation3 + $0x38] sm:$0xff] %vm482_vm1, %v910_v16  ;;  %v1434_v19 = vpop.xlane.xlu0 %1433 }
 0x69e   : > { %v1448_v35 = vadd.f32 %v1434_v19, %v1416_v4  ;;  %v1422_v25 = vpop.xlane.xlu1 %1421  ;;  %v1461_v4 = vld [vmem:[#allocation4 + $0x40] sm:$0xff]  ;;  %v5666_v19 = vld [vmem:[#allocation14_spill] sm:$0xff] }
 0x69f   : > { %v1444_v53 = vadd.f32 %v1422_v25, %v1412_v54  ;;  %v5667_v25 = vld [vmem:[#allocation22_spill] sm:$0xff] }
 0x6a0   : > { %1456 = vst.msk [vmem:[#allocation3 + $0x60] sm:$0xff] %vm482_vm1, %v1448_v35 }
 0x6a1   : > { %1452 = vst.msk [vmem:[#allocation3 + $0x40] sm:$0xff] %vm482_vm1, %v1444_v53  ;;  %v1440_v8 = vpop.xlane.xlu0 %1439 }
 0x6a2   : > { %v1450_v42 = vadd.f32 %v1440_v8, %v1418_v37  ;;  %v1431_v15 = vpop.xlane.xlu1 %1430 }
 0x6a3   : > { %v1447_v2 = vadd.f32 %v1431_v15, %v1415_v30 }
 0x6a4   : > { %1458 = vst.msk [vmem:[#allocation3 + $0x70] sm:$0xff] %vm482_vm1, %v1450_v42 }
 0x6a5   : > { %1455 = vst.msk [vmem:[#allocation3 + $0x58] sm:$0xff] %vm482_vm1, %v1447_v2 }
 0x6a6   : > { %v1437_v32 = vpop.xlane.xlu1 %1436 }
 0x6a7   : > { %v1449_v3 = vadd.f32 %v1437_v32, %v1417_v46 }
 0x6a9   : > { %1457 = vst.msk [vmem:[#allocation3 + $0x68] sm:$0xff] %vm482_vm1, %v1449_v3  ;;  %v931_v6 = vpop.permute.xlu0 %930 }
 0x6aa   : > { %v968_v41 = vmul.f32 %v931_v6, %v920_v0  ;;  %v1443_v7 = vpop.xlane.xlu1 %1442 }
 0x6ab   : > { %v1451_v11 = vadd.f32 %v1443_v7, %v1419_v55 }
 0x6ac   : > { %v1081_v50 = vadd.f32 %v5663_v59, %v968_v41 }
 0x6ad   : > { %1459 = vst.msk [vmem:[#allocation3 + $0x78] sm:$0xff] %vm482_vm1, %v1451_v11  ;;  %v946_v12 = vpop.permute.xlu0 %945 }
 0x6ae   : > { %1089 = vst.msk [vmem:[#allocation4] sm:$0xff] %vm547_vm0, %v1081_v50  ;;  %v971_v20 = vmul.f32 %v946_v12, %v923_v45 }
 0x6b0   : > { %v1084_v1 = vadd.f32 %v5664_v9, %v971_v20  ;;  %v1969_v9 = vsel %vm742_vm2, %v4992_v22, 0.0  ;;  %v5668_v22 = vld [vmem:[#allocation29_spill] sm:$0xff] }
 0x6b1   : > { %v956_v34 = vpop.permute.xlu0 %955 }
 0x6b2   : > { %1092 = vst.msk [vmem:[#allocation4 + $0x18] sm:$0xff] %vm547_vm0, %v1084_v1  ;;  %v973_v10 = vmul.f32 %v956_v34, %v925_v40  ;;  %v3872_v1 = vld [vmem:[%s4473_s27 + $0x10] sm:$0xff]   ;;  %v1975_v34 = vsel %vm742_vm2, %v5001_v23, 0.0  ;;  %v5671_v23 = vld [vmem:[#allocation35_spill] sm:$0xff] }
 0x6b4   : > { %v1086_v21 = vadd.f32 %v5665_v56, %v973_v10  ;;  %v1987_v10 = vsel %vm742_vm2, %v5016_v38, 0.0 }
 0x6b5   : > { %v966_v60 = vpop.permute.xlu0 %965 }
 0x6b6   : > { %1094 = vst.msk [vmem:[#allocation4 + $0x28] sm:$0xff] %vm547_vm0, %v1086_v21  ;;  %v975_v16 = vmul.f32 %v966_v60, %v927_v62  ;;  %v5672_v62 = vld [vmem:[#allocation36_spill] sm:$0xff]  ;;  %v5675_v21 = vld [vmem:[#allocation34_spill] sm:$0xff] }
 0x6b7   : > { %v5673_v56 = vsub.f32 %v5671_v23, %v5672_v62 }
 0x6b8   : > { %v1088_v54 = vadd.f32 %v5666_v19, %v975_v16 }
 0x6b9   : > { %v1472_v48 = vpop.permute.xlu0 %1471  ;;  %v1876_v38 = vmul.f32 1.442695, %v5673_v56 }
 0x6ba   : > { %1096 = vst.msk [vmem:[#allocation4 + $0x38] sm:$0xff] %vm547_vm0, %v1088_v54  ;;  %v1509_v35 = vmul.f32 %v1472_v48, %v1461_v4 }
 0x6bc   : > { %v1630_v43 = vadd.f32 %v5667_v25, %v1509_v35  ;;  %v5225_v35 = vld [vmem:[#allocation2 + $0xc8] sm:$0xff]  ;;  %v2376_v25 = vld [vmem:[#allocation2 + $0xd8] sm:$0xff] }
 0x6be   : > { %1638 = vst.msk [vmem:[#allocation4 + $0x40] sm:$0xff] %vm547_vm0, %v1630_v43 }
 0x711   : > { %v5130_v53 = vpop.f32.mrf.mxu1 }
 0x713   : > { %v5132_v37 = vpop.f32.mrf.mxu1 }
 0x715   : > { %v5134_v8 = vpop.f32.mrf.mxu1 }
 0x717   : > { %v5136_v30 = vpop.f32.mrf.mxu1 }
 0x722   : > { %v5138_v42 = vpop.f32.mrf.mxu1 }
 0x724   : > { %v5140_v15 = vpop.f32.mrf.mxu1 }
 0x726   : > { %v5142_v39 = vpop.f32.mrf.mxu1 }
 0x728   : > { %v5144_v2 = vpop.f32.mrf.mxu1 }
 0x732   : > { %v5146_v46 = vpop.f32.mrf.mxu1 }
 0x733   : > { %v2387_v32 = vsel %vm742_vm2, %v5146_v46, -inf }
 0x734   : > { %2388 = vmax.xlane.f32.xlu0 %v2387_v32  ;;  %v5150_v29 = vpop.f32.mrf.mxu1 }
 0x735   : > { %v2381_v3 = vsel %vm742_vm2, %v5150_v29, -inf }
 0x736   : > { %2382 = vmax.xlane.f32.xlu1 %v2381_v3  ;;  %v5154_v0 = vpop.f32.mrf.mxu1 }
 0x737   : > { %v2390_v55 = vsel %vm742_vm2, %v5154_v0, -inf }
 0x738   : > { %v5156_v6 = vpop.f32.mrf.mxu1 }
 0x739   : > { %v2384_v41 = vsel %vm742_vm2, %v5156_v6, -inf }
 0x73a   : > { %2391 = vmax.xlane.f32.xlu1 %v2390_v55  ;;  %2385 = vmax.xlane.f32.xlu0 %v2384_v41  ;;  %v5162_v7 = vpop.f32.mrf.mxu1 }
 0x73b   : > { %v2399_v11 = vsel %vm742_vm2, %v5162_v7, -inf }
 0x73c   : > { %v5166_v45 = vpop.f32.mrf.mxu1 }
 0x73d   : > { %v2393_v50 = vsel %vm742_vm2, %v5166_v45, -inf }
 0x73e   : > { %2400 = vmax.xlane.f32.xlu0 %v2399_v11  ;;  %v5168_v59 = vpop.f32.mrf.mxu1 }
 0x73f   : > { %v2402_v40 = vsel %vm742_vm2, %v5168_v59, -inf }
 0x740   : > { %v5172_v12 = vpop.f32.mrf.mxu1 }
 0x741   : > { %v2396_v20 = vsel %vm742_vm2, %v5172_v12, -inf }
 0x742   : > { %2394 = vmax.xlane.f32.xlu0 %v2393_v50  ;;  %2397 = vmax.xlane.f32.xlu1 %v2396_v20 }
 0x746   : > { %2403 = vmax.xlane.f32.xlu1 %v2402_v40  ;;  %v5234_v40 = vld [vmem:[#allocation2 + $0xf0] sm:$0xff] }
 0x74a   : > { %1970 = vadd.xlane.f32.xlu1 %v1969_v9 }
 0x758   : > { %1486 = vperm.xlu0 %3826, %v5104_v26   ;;  %v5669_v26 = vld [vmem:[#allocation30_spill] sm:$0xff] }
 0x75b   : > { %2643 = vrot.lane.b32.xlu1 %v3872_v1, %s4113_s29 }
 0x75c   : > { %1496 = vperm.xlu0 %3826, %v5110_v28   ;;  %v5670_v28 = vsub.f32 %v5668_v22, %v5669_v26  ;;  %v5244_v26 = vld [vmem:[#allocation2 + $0xe0] sm:$0xff] }
 0x760   : > { %1501 = vperm.xlu0 %3826, %v5100_v13   ;;  %v1872_v13 = vmul.f32 1.442695, %v5670_v28  ;;  %v5246_v28 = vld [vmem:[#allocation2 + $0xe8] sm:$0xff] }
 0x762   : > { %3956 = vpow2.f32 %v1872_v13 }
 0x763   : > { %3958 = vpow2.f32 %v1876_v38 }
 0x77f   : > { %1976 = vadd.xlane.f32.xlu1 %v1975_v34 }
 0x783   : > { %1988 = vadd.xlane.f32.xlu1 %v1987_v10 }
 0x794   : > { %935 = vperm.xlu1 %3827, %v5048_v58   ;;  %v5674_v58 = vld [vmem:[#allocation32_spill] sm:$0xff] }
 0x798   : > { %940 = vperm.xlu1 %3827, %v5054_v51   ;;  %v5676_v51 = vsub.f32 %v5674_v58, %v5675_v21  ;;  %v5259_v58 = vld [vmem:[#allocation2 + $0xf8] sm:$0xff] }
 0x79a   : > { %v1878_v60 = vmul.f32 1.442695, %v5676_v51 }
 0x79c   : > { %950 = vperm.xlu1 %3827, %v5061_v57   ;;  %3960 = vpow2.f32 %v1878_v60  ;;  %v5677_v57 = vsub.f32 %v4857_v52, %v4871_v47  ;;  %v2375_v52 = vld [vmem:[#allocation2 + $0xd0] sm:$0xff] }
 0x7a0   : > { %960 = vperm.xlu1 %3827, %v5068_v36   ;;  %v1882_v36 = vmul.f32 1.442695, %v5677_v57  ;;  %v1953_v57 = vld [vmem:[#allocation3 + $0x80] sm:$0xff] }
 0x7a2   : > { %3962 = vpow2.f32 %v1882_v36 }
 0x7a4   : > { %1476 = vperm.xlu1 %3827, %v5076_v44   ;;  %v5678_v44 = vsub.f32 %v4875_v24, %v4892_v61 }
 0x7a6   : > { %v1886_v16 = vmul.f32 1.442695, %v5678_v44 }
 0x7a8   : > { %1481 = vperm.xlu1 %3827, %v5085_v31   ;;  %v5212_v31 = vpop.eup %3956  ;;  %3964 = vpow2.f32 %v1886_v16  ;;  %v1464_v16 = vld [vmem:[#allocation4 + $0x58] sm:$0xff] }
 0x7a9   : > { %v5215_v4 = vpop.eup %3958 }
 0x7ac   : > { %1491 = vperm.xlu1 %3827, %v5094_v17   ;;  %v5218_v17 = vpop.eup %3960 }
 0x7af   : > { %v5221_v54 = vpop.eup %3962 }
 0x7b0   : > { %1506 = vperm.xlu1 %3827, %v5115_v33   ;;  %v2373_v33 = vld [vmem:[#allocation2 + $0xc0] sm:$0xff] }
 0x7b4   : > { %2020 = vperm.xlu1 %3827, %v5212_v31  }
 0x7b5   : > { %v5228_v3 = vpop.eup %3964 }
 0x7b8   : > { %2030 = vperm.xlu1 %3827, %v5215_v4  }
 0x7bc   : > { %2035 = vperm.xlu1 %3827, %v5218_v17  }
 0x7bd   : > { %v2389_v47 = vpop.xlane.xlu0 %2388 }
 0x7be   : > { %v2407_v19 = vmax.f32 %v2375_v52, %v2389_v47  ;;  %v1961_v47 = vmul.f32 %v5212_v31, %v1953_v57  ;;  %v3874_v57 = vld [vmem:[%s4473_s27 + $0x8] sm:$0xff]  }
 0x7bf   : > { %v2383_v61 = vpop.xlane.xlu1 %2382 }
 0x7c0   : > { %v2415_v24 = vsub.f32 %v2375_v52, %v2407_v19  ;;  %2746 = vst.msk [vmem:[#allocation2 + $0xd0] sm:$0xff] %vm482_vm1, %v2407_v19  ;;  %v2405_v48 = vmax.f32 %v2373_v33, %v2383_v61  ;;  %2449 = vperm.xlu0 %3826, %v2407_v19   ;;  %2045 = vperm.xlu1 %3827, %v5221_v54  }
 0x7c2   : > { %v2425_v43 = vmul.f32 1.442695, %v2415_v24  ;;  %v2413_v32 = vsub.f32 %v2373_v33, %v2405_v48  ;;  %2744 = vst.msk [vmem:[#allocation2 + $0xc0] sm:$0xff] %vm482_vm1, %v2405_v48 }
 0x7c3   : > { %v2386_v55 = vpop.xlane.xlu0 %2385  ;;  %v2392_v41 = vpop.xlane.xlu1 %2391 }
 0x7c4   : > { %3966 = vpow2.f32 %v2425_v43  ;;  %v2421_v11 = vmul.f32 1.442695, %v2413_v32  ;;  %v5231_v50 = vmax.f32 %v5225_v35, %v2386_v55  ;;  %v2408_v20 = vmax.f32 %v2376_v25, %v2392_v41  ;;  %2055 = vperm.xlu1 %3827, %v5228_v3   ;;  %2439 = vperm.xlu0 %3826, %v2405_v48   ;;  %v5679_v43 = vld [vmem:[#allocation23_spill] sm:$0xff] }
 0x7c6   : > { %v2414_v9 = vsub.f32 %v5225_v35, %v5231_v50  ;;  %2745 = vst.msk [vmem:[#allocation2 + $0xc8] sm:$0xff] %vm482_vm1, %v5231_v50  ;;  %v2416_v1 = vsub.f32 %v2376_v25, %v2408_v20  ;;  %2747 = vst.msk [vmem:[#allocation2 + $0xd8] sm:$0xff] %vm482_vm1, %v2408_v20  ;;  %3968 = vpow2.f32 %v2421_v11  ;;  %v1466_v25 = vld [vmem:[#allocation4 + $0x68] sm:$0xff]  ;;  %v1467_v11 = vld [vmem:[#allocation4 + $0x70] sm:$0xff] }
 0x7c7   : > { %v2401_v34 = vpop.xlane.xlu0 %2400  ;;  %v2010_v35 = vld [vmem:[#allocation4 + $0x80] sm:$0xff] }
 0x7c8   : > { %v2427_v10 = vmul.f32 1.442695, %v2416_v1  ;;  %v5242_v22 = vmax.f32 %v5234_v40, %v2401_v34  ;;  %2454 = vperm.xlu0 %3826, %v2408_v20   ;;  %v5680_v20 = vld [vmem:[#allocation28_spill] sm:$0xff] }
 0x7ca   : > { %v2419_v13 = vsub.f32 %v5234_v40, %v5242_v22  ;;  %2750 = vst.msk [vmem:[#allocation2 + $0xf0] sm:$0xff] %vm482_vm1, %v5242_v22  ;;  %3970 = vpow2.f32 %v2427_v10  ;;  %v2765_v40 = vld [vmem:[#allocation3 + $0x10] sm:$0xff] }
 0x7cb   : > { %v2395_v23 = vpop.xlane.xlu0 %2394  ;;  %v2398_v62 = vpop.xlane.xlu1 %2397 }
 0x7cc   : > { %v5253_v56 = vmax.f32 %v5244_v26, %v2395_v23  ;;  %v5256_v38 = vmax.f32 %v5246_v28, %v2398_v62  ;;  %2444 = vperm.xlu0 %3826, %v5231_v50   ;;  %v3873_v23 = vld [vmem:[%s4473_s27 + $0x18] sm:$0xff]   ;;  %v5681_v62 = vld [vmem:[#allocation25_spill] sm:$0xff] }
 0x7cd   : > { %v5697_v50 = vld [vmem:[#allocation27_spill] sm:$0xff] }
 0x7ce   : > { %v2417_v21 = vsub.f32 %v5244_v26, %v5253_v56  ;;  %2748 = vst.msk [vmem:[#allocation2 + $0xe0] sm:$0xff] %vm482_vm1, %v5253_v56  ;;  %v2418_v51 = vsub.f32 %v5246_v28, %v5256_v38  ;;  %2749 = vst.msk [vmem:[#allocation2 + $0xe8] sm:$0xff] %vm482_vm1, %v5256_v38  ;;  %v2763_v26 = vld [vmem:[#allocation3] sm:$0xff] }
 0x7cf   : > { %v2404_v60 = vpop.xlane.xlu1 %2403 }
 0x7d0   : > { %v5270_v36 = vmax.f32 %v5259_v58, %v2404_v60  ;;  %2469 = vperm.xlu0 %3826, %v5242_v22  }
 0x7d1   : > { %v5273_v44 = vpop.eup %3966 }
 0x7d2   : > { %v2420_v52 = vsub.f32 %v5259_v58, %v5270_v36  ;;  %2751 = vst.msk [vmem:[#allocation2 + $0xf8] sm:$0xff] %vm482_vm1, %v5270_v36  ;;  %2579 = vperm.xlu1 %3827, %v5273_v44   ;;  %v2766_v58 = vld [vmem:[#allocation3 + $0x18] sm:$0xff] }
 0x7d3   : > { %v1487_v33 = vpop.permute.xlu0 %1486  ;;  %v1971_v19 = vpop.xlane.xlu1 %1970 }
 0x7d4   : > { %v1512_v61 = vmul.f32 %v1487_v33, %v1464_v16  ;;  %v1993_v24 = vadd.f32 %v1971_v19, %v1961_v47  ;;  %2459 = vperm.xlu0 %3826, %v5253_v56   ;;  %v5282_v48 = vpop.eup %3968  ;;  %v3875_v16 = vld [vmem:[%s4473_s27] sm:$0xff]   ;;  %v5682_v47 = vld [vmem:[#allocation39_spill] sm:$0xff] }
 0x7d5   : > { %v5683_v33 = vsub.f32 %v4873_v14, %v5682_v47 }
 0x7d6   : > { %v1633_v32 = vadd.f32 %v5679_v43, %v1512_v61  ;;  %2001 = vst.msk [vmem:[#allocation3 + $0x80] sm:$0xff] %vm482_vm1, %v1993_v24  ;;  %2569 = vperm.xlu1 %3827, %v5282_v48   ;;  %v1955_v24 = vld [vmem:[#allocation3 + $0x90] sm:$0xff] }
 0x7d7   : > { %v1497_v55 = vpop.permute.xlu0 %1496  ;;  %v5289_v41 = vpop.eup %3970  ;;  %v1884_v19 = vmul.f32 1.442695, %v5683_v33  ;;  %v1963_v43 = vmul.f32 %v5215_v4, %v1955_v24  ;;  %v924_v33 = vld [vmem:[#allocation4 + $0x20] sm:$0xff] }
 0x7d8   : > { %1641 = vst.msk [vmem:[#allocation4 + $0x58] sm:$0xff] %vm547_vm0, %v1633_v32  ;;  %v1514_v31 = vmul.f32 %v1497_v55, %v1466_v25  ;;  %2474 = vperm.xlu0 %3826, %v5270_v36   ;;  %v5306_v61 = vpop.permute.xlu1 %2643  ;;  %v1972_v25 = vsel %vm742_vm2, %v4994_v63, 0.0  ;;  %v1981_v63 = vsel %vm742_vm2, %v5018_v18, 0.0  ;;  %v1990_v18 = vsel %vm742_vm2, %v5014_v49, 0.0  ;;  %v1462_v49 = vld [vmem:[#allocation4 + $0x48] sm:$0xff] }
 0x7d9   : > { %3972 = vpow2.f32 %v1884_v19  ;;  %v5685_v19 = vld [vmem:[#allocation8_spill] sm:$0xff]  ;;  %v2429_v36 = vmul.f32 1.442695, %v2417_v21 }
 0x7da   : > { %v1635_v1 = vadd.f32 %v5680_v20, %v1514_v31  ;;  %2584 = vperm.xlu1 %3827, %v5289_v41   ;;  %v1959_v31 = vld [vmem:[#allocation3 + $0xb0] sm:$0xff]  ;;  %v1978_v20 = vsel %vm742_vm2, %v4998_v5, 0.0  ;;  %v2880_v21 = vld [vmem:[#allocation3 + $0x60] sm:$0xff] }
 0x7db   : > { %v1502_v34 = vpop.permute.xlu0 %1501  ;;  %v922_v5 = vld [vmem:[#allocation4 + $0x10] sm:$0xff] }
 0x7dc   : > { %1643 = vst.msk [vmem:[#allocation4 + $0x68] sm:$0xff] %vm547_vm0, %v1635_v1  ;;  %v1515_v10 = vmul.f32 %v1502_v34, %v1467_v11  ;;  %2464 = vperm.xlu0 %3826, %v5256_v38  }
 0x7de   : > { %v1636_v60 = vadd.f32 %v5681_v62, %v1515_v10  ;;  %v921_v10 = vld [vmem:[#allocation4 + $0x8] sm:$0xff]  ;;  %v1984_v62 = vsel %vm742_vm2, %v5011_v27, 0.0  ;;  %v926_v27 = vld [vmem:[#allocation4 + $0x30] sm:$0xff] }
 0x7e0   : > { %1644 = vst.msk [vmem:[#allocation4 + $0x70] sm:$0xff] %vm547_vm0, %v1636_v60  ;;  %2645 = vrot.lane.b32.xlu0 %v3873_v23, %s4113_s29  ;;  %v5684_v60 = vld [vmem:[#allocation11_spill] sm:$0xff] }
 0x7e4   : > { %2641 = vrot.lane.b32.xlu0 %v3874_v57, %s4113_s29 }
 0x7e6   : > { %v5311_v32 = vpop.eup %3972 }
 0x7e7   : > { %v1967_v14 = vmul.f32 %v5311_v32, %v1959_v31  ;;  %v5687_v31 = vld [vmem:[#allocation33_spill] sm:$0xff] }
 0x7e8   : > { %2639 = vrot.lane.b32.xlu0 %v3875_v16, %s4113_s29 }
 0x807   : > { %1973 = vadd.xlane.f32.xlu0 %v1972_v25 }
 0x808   : > { %v1977_v55 = vpop.xlane.xlu1 %1976 }
 0x809   : > { %v1995_v11 = vadd.f32 %v1977_v55, %v1963_v43  ;;  %v5686_v55 = vld [vmem:[#allocation31_spill] sm:$0xff] }
 0x80b   : > { %2003 = vst.msk [vmem:[#allocation3 + $0x90] sm:$0xff] %vm482_vm1, %v1995_v11  ;;  %1979 = vadd.xlane.f32.xlu0 %v1978_v20  ;;  %v5688_v11 = vsub.f32 %v5686_v55, %v5687_v31 }
 0x80c   : > { %v1989_v1 = vpop.xlane.xlu1 %1988 }
 0x80d   : > { %v1999_v34 = vadd.f32 %v1989_v1, %v1967_v14  ;;  %v1874_v20 = vmul.f32 1.442695, %v5688_v11  ;;  %v5689_v14 = vld [vmem:[#allocation13_spill] sm:$0xff] }
 0x80f   : > { %2007 = vst.msk [vmem:[#allocation3 + $0xb0] sm:$0xff] %vm482_vm1, %v1999_v34  ;;  %1982 = vadd.xlane.f32.xlu0 %v1981_v63  ;;  %3974 = vpow2.f32 %v1874_v20  ;;  %v1468_v20 = vld [vmem:[#allocation4 + $0x78] sm:$0xff] }
 0x810   : > { %v936_v4 = vpop.permute.xlu1 %935 }
 0x811   : > { %v969_v23 = vmul.f32 %v936_v4, %v921_v10  ;;  %v5690_v10 = vld [vmem:[#allocation37_spill] sm:$0xff]  ;;  %v5691_v4 = vld [vmem:[#allocation38_spill] sm:$0xff] }
 0x813   : > { %v1082_v57 = vadd.f32 %v5684_v60, %v969_v23  ;;  %1985 = vadd.xlane.f32.xlu0 %v1984_v62  ;;  %v5692_v23 = vsub.f32 %v5690_v10, %v5691_v4 }
 0x814   : > { %v941_v16 = vpop.permute.xlu1 %940 }
 0x815   : > { %1090 = vst.msk [vmem:[#allocation4 + $0x8] sm:$0xff] %vm547_vm0, %v1082_v57  ;;  %v970_v47 = vmul.f32 %v941_v16, %v922_v5  ;;  %v1880_v62 = vmul.f32 1.442695, %v5692_v23  ;;  %v5693_v5 = vld [vmem:[#allocation12_spill] sm:$0xff] }
 0x817   : > { %v1083_v24 = vadd.f32 %v5685_v19, %v970_v47  ;;  %1991 = vadd.xlane.f32.xlu0 %v1990_v18  ;;  %v1463_v47 = vld [vmem:[#allocation4 + $0x50] sm:$0xff]  ;;  %3976 = vpow2.f32 %v1880_v62  ;;  %v5694_v18 = vld [vmem:[#allocation24_spill] sm:$0xff] }
 0x818   : > { %v951_v25 = vpop.permute.xlu1 %950  ;;  %v2012_v62 = vld [vmem:[#allocation4 + $0x90] sm:$0xff] }
 0x819   : > { %1091 = vst.msk [vmem:[#allocation4 + $0x10] sm:$0xff] %vm547_vm0, %v1083_v24  ;;  %v972_v43 = vmul.f32 %v951_v25, %v924_v33  ;;  %v1465_v25 = vld [vmem:[#allocation4 + $0x60] sm:$0xff] }
 0x81b   : > { %v1085_v1 = vadd.f32 %v5689_v14, %v972_v43  ;;  %v2423_v43 = vmul.f32 1.442695, %v2414_v9  ;;  %v5696_v14 = vld [vmem:[#allocation26_spill] sm:$0xff] }
 0x81c   : > { %v961_v34 = vpop.permute.xlu1 %960 }
 0x81d   : > { %1093 = vst.msk [vmem:[#allocation4 + $0x20] sm:$0xff] %vm547_vm0, %v1085_v1  ;;  %v974_v63 = vmul.f32 %v961_v34, %v926_v27  ;;  %v5695_v27 = vld [vmem:[#allocation21_spill] sm:$0xff]  ;;  %3978 = vpow2.f32 %v2423_v43  ;;  %v5346_v34 = vpop.eup %3974 }
 0x81f   : > { %v1087_v60 = vadd.f32 %v5693_v5, %v974_v63 }
 0x820   : > { %v1477_v57 = vpop.permute.xlu1 %1476 }
 0x821   : > { %1095 = vst.msk [vmem:[#allocation4 + $0x30] sm:$0xff] %vm547_vm0, %v1087_v60  ;;  %v1510_v16 = vmul.f32 %v1477_v57, %v1462_v49 }
 0x823   : > { %v1631_v33 = vadd.f32 %v5694_v18, %v1510_v16  ;;  %v2013_v16 = vld [vmem:[#allocation4 + $0x98] sm:$0xff] }
 0x824   : > { %v1482_v19 = vpop.permute.xlu1 %1481  ;;  %v5351_v10 = vpop.eup %3976 }
 0x825   : > { %1639 = vst.msk [vmem:[#allocation4 + $0x48] sm:$0xff] %vm547_vm0, %v1631_v33  ;;  %v1511_v24 = vmul.f32 %v1482_v19, %v1463_v47 }
 0x827   : > { %v1632_v55 = vadd.f32 %v5695_v27, %v1511_v24  ;;  %v2015_v24 = vld [vmem:[#allocation4 + $0xa8] sm:$0xff] }
 0x828   : > { %v1492_v31 = vpop.permute.xlu1 %1491 }
 0x829   : > { %1640 = vst.msk [vmem:[#allocation4 + $0x50] sm:$0xff] %vm547_vm0, %v1632_v55  ;;  %v1513_v11 = vmul.f32 %v1492_v31, %v1465_v25 }
 0x82a   : > { %v5359_v18 = vpop.eup %3978 }
 0x82b   : > { %v1634_v1 = vadd.f32 %v5696_v14, %v1513_v11 }
 0x82c   : > { %v1507_v63 = vpop.permute.xlu1 %1506 }
 0x82d   : > { %1642 = vst.msk [vmem:[#allocation4 + $0x60] sm:$0xff] %vm547_vm0, %v1634_v1  ;;  %v1516_v49 = vmul.f32 %v1507_v63, %v1468_v20  ;;  %2025 = vperm.xlu0 %3826, %v5346_v34  }
 0x82f   : > { %v1637_v9 = vadd.f32 %v5697_v50, %v1516_v49 }
 0x830   : > { %v2021_v4 = vpop.permute.xlu1 %2020 }
 0x831   : > { %1645 = vst.msk [vmem:[#allocation4 + $0x78] sm:$0xff] %vm547_vm0, %v1637_v9  ;;  %v2058_v23 = vmul.f32 %v2021_v4, %v2010_v35  ;;  %2040 = vperm.xlu0 %3826, %v5351_v10  }
 0x833   : > { %v2179_v5 = vadd.f32 %v5132_v37, %v2058_v23 }
 0x834   : > { %v2031_v60 = vpop.permute.xlu1 %2030 }
 0x835   : > { %2187 = vst.msk [vmem:[#allocation4 + $0x80] sm:$0xff] %vm547_vm0, %v2179_v5  ;;  %v2060_v57 = vmul.f32 %v2031_v60, %v2012_v62  ;;  %2050 = vperm.xlu0 %3826, %v5311_v32   ;;  %v2017_v32 = vld [vmem:[#allocation4 + $0xb8] sm:$0xff] }
 0x837   : > { %v2181_v47 = vadd.f32 %v5130_v53, %v2060_v57 }
 0x838   : > { %v2036_v33 = vpop.permute.xlu1 %2035 }
 0x839   : > { %2189 = vst.msk [vmem:[#allocation4 + $0x90] sm:$0xff] %vm547_vm0, %v2181_v47  ;;  %v2061_v19 = vmul.f32 %v2036_v33, %v2013_v16  ;;  %2574 = vperm.xlu0 %3826, %v5359_v18  }
 0x83b   : > { %v2182_v37 = vadd.f32 %v5134_v8, %v2061_v19  ;;  %v2450_v25 = vpop.permute.xlu0 %2449 }
 0x83c   : > { %v2046_v43 = vpop.permute.xlu1 %2045  ;;  %v2479_v55 = vsub.f32 %v5146_v46, %v2450_v25 }
 0x83d   : > { %2190 = vst.msk [vmem:[#allocation4 + $0x98] sm:$0xff] %vm547_vm0, %v2182_v37  ;;  %v2063_v27 = vmul.f32 %v2046_v43, %v2015_v24 }
 0x83e   : > { %v2489_v14 = vmul.f32 1.442695, %v2479_v55 }
 0x83f   : > { %v2184_v53 = vadd.f32 %v5144_v2, %v2063_v27  ;;  %v2440_v31 = vpop.permute.xlu0 %2439 }
 0x840   : > { %v2056_v11 = vpop.permute.xlu1 %2055  ;;  %v2477_v1 = vsub.f32 %v5150_v29, %v2440_v31  ;;  %3980 = vpow2.f32 %v2489_v14  ;;  %v2431_v31 = vmul.f32 1.442695, %v2418_v51  ;;  %v2435_v14 = vmul.f32 1.442695, %v2420_v52 }
 0x841   : > { %2192 = vst.msk [vmem:[#allocation4 + $0xa8] sm:$0xff] %vm547_vm0, %v2184_v53  ;;  %v2065_v20 = vmul.f32 %v2056_v11, %v2017_v32 }
 0x842   : > { %v2485_v49 = vmul.f32 1.442695, %v2477_v1 }
 0x843   : > { %v2186_v8 = vadd.f32 %v5142_v39, %v2065_v20  ;;  %v2455_v63 = vpop.permute.xlu0 %2454 }
 0x844   : > { %v2480_v35 = vsub.f32 %v5154_v0, %v2455_v63  ;;  %3982 = vpow2.f32 %v2485_v49  ;;  %v2876_v49 = vld [vmem:[#allocation3 + $0x40] sm:$0xff] }
 0x845   : > { %2194 = vst.msk [vmem:[#allocation4 + $0xb8] sm:$0xff] %vm547_vm0, %v2186_v8 }
 0x846   : > { %v2491_v9 = vmul.f32 1.442695, %v2480_v35  ;;  %v2433_v35 = vmul.f32 1.442695, %v2419_v13  ;;  %v2882_v13 = vld [vmem:[#allocation3 + $0x70] sm:$0xff] }
 0x847   : > { %v2445_v46 = vpop.permute.xlu0 %2444 }
 0x848   : > { %v2478_v2 = vsub.f32 %v5156_v6, %v2445_v46 }
 0x84a   : > { %v2487_v50 = vmul.f32 1.442695, %v2478_v2 }
 0x84b   : > { %v2470_v4 = vpop.permute.xlu0 %2469 }
 0x84c   : > { %3984 = vpow2.f32 %v2487_v50  ;;  %v2483_v23 = vsub.f32 %v5162_v7, %v2470_v4  ;;  %v2878_v50 = vld [vmem:[#allocation3 + $0x50] sm:$0xff]  ;;  %v2767_v4 = vld [vmem:[#allocation3 + $0x20] sm:$0xff] }
 0x84d   : > { %3986 = vpow2.f32 %v2491_v9  ;;  %v3981_v57 = vpop.eup %3980 }
 0x84e   : > { %v2497_v29 = vmul.f32 1.442695, %v2483_v23  ;;  %v2524_v47 = vsel %vm742_vm2, %v3981_v57, 0.0 }
 0x84f   : > { %v2460_v39 = vpop.permute.xlu0 %2459 }
 0x850   : > { %3988 = vpow2.f32 %v2497_v29  ;;  %v2481_v62 = vsub.f32 %v5166_v45, %v2460_v39  ;;  %v3005_v29 = vld [vmem:[#allocation3 + $0x80] sm:$0xff] }
 0x851   : > { %v3983_v33 = vpop.eup %3982 }
 0x852   : > { %v2493_v5 = vmul.f32 1.442695, %v2481_v62  ;;  %v2518_v43 = vsel %vm742_vm2, %v3983_v33, 0.0  ;;  %v2877_v62 = vld [vmem:[#allocation3 + $0x48] sm:$0xff] }
 0x853   : > { %v2475_v60 = vpop.permute.xlu0 %2474 }
 0x854   : > { %3990 = vpow2.f32 %v2493_v5  ;;  %v2484_v0 = vsub.f32 %v5168_v59, %v2475_v60  ;;  %v3007_v60 = vld [vmem:[#allocation3 + $0x90] sm:$0xff] }
 0x856   : > { %v2499_v6 = vmul.f32 1.442695, %v2484_v0  ;;  %v2879_v0 = vld [vmem:[#allocation3 + $0x58] sm:$0xff] }
 0x857   : > { %v2465_v16 = vpop.permute.xlu0 %2464 }
 0x858   : > { %3992 = vpow2.f32 %v2499_v6  ;;  %v2482_v7 = vsub.f32 %v5172_v12, %v2465_v16  ;;  %2525 = vadd.xlane.f32.xlu0 %v2524_v47  ;;  %v2881_v47 = vld [vmem:[#allocation3 + $0x68] sm:$0xff] }
 0x859   : > { %v3985_v19 = vpop.eup %3984 }
 0x85a   : > { %v2495_v24 = vmul.f32 1.442695, %v2482_v7  ;;  %v2521_v37 = vsel %vm742_vm2, %v3985_v19, 0.0  ;;  %v2615_v45 = vpack.c.bf16 %v3985_v19, %v3983_v33  ;;  %v3987_v27 = vpop.eup %3986  ;;  %v1954_v33 = vld [vmem:[#allocation3 + $0x88] sm:$0xff] }
 0x85b   : > { %2522 = vadd.xlane.f32.xlu1 %v2521_v37  ;;  %v2646_v25 = vpop.permute.xlu0 %2645  ;;  %v2527_v32 = vsel %vm742_vm2, %v3987_v27, 0.0  ;;  %v2616_v63 = vpack.c.bf16 %v3987_v27, %v3981_v57  ;;  %v1962_v19 = vmul.f32 %v5346_v34, %v1954_v33  ;;  %v2883_v37 = vld [vmem:[#allocation3 + $0x78] sm:$0xff] }
 0x85c   : > { %3994 = vpow2.f32 %v2495_v24  ;;  %3755 = vmatprep.mubr.msk.bf16.mxu0 %vm742_vm2, %v2615_v45  ;;  %2519 = vadd.xlane.f32.xlu0 %v2518_v43 }
 0x85d   : > { %v3989_v59 = vpop.eup %3988  ;;  %3747 = vmatprep.subr.bf16.mxu0 %v2646_v25  ;;  %3996 = vpow2.f32 %v2431_v31 }
 0x85e   : > { %3748 = vmatpush3.bf16.msra.mxu0 %v2646_v25  ;;  %v2536_v12 = vsel %vm742_vm2, %v3989_v59, 0.0  ;;  %3998 = vpow2.f32 %v2435_v14  ;;  %v1956_v25 = vld [vmem:[#allocation3 + $0x98] sm:$0xff]  ;;  %v1958_v14 = vld [vmem:[#allocation3 + $0xa8] sm:$0xff] }
 0x85f   : > { %3749 = vmatprep.subr.bf16.mxu0 %v5306_v61  ;;  %2537 = vadd.xlane.f32.xlu1 %v2536_v12  ;;  %v2642_v55 = vpop.permute.xlu0 %2641 }
 0x860   : > { %2528 = vadd.xlane.f32.xlu0 %v2527_v32 }
 0x861   : > { %v3991_v53 = vpop.eup %3990 }
 0x862   : > { %3750 = vmatpush3.bf16.msra.mxu0 %v5306_v61  ;;  %v2530_v11 = vsel %vm742_vm2, %v3991_v53, 0.0  ;;  %v2764_v61 = vld [vmem:[#allocation3 + $0x8] sm:$0xff] }
 0x863   : > { %3751 = vmatprep.subr.bf16.mxu0 %v2642_v55  ;;  %2531 = vadd.xlane.f32.xlu1 %v2530_v11  ;;  %v2640_v1 = vpop.permute.xlu0 %2639  ;;  %4000 = vrcp.f32 %v2764_v61 }
 0x864   : > { %4002 = vrcp.f32 %v2766_v58 }
 0x865   : > { %v3993_v20 = vpop.eup %3992  ;;  %4004 = vpow2.f32 %v2429_v36 }
 0x866   : > { %3752 = vmatpush3.bf16.msra.mxu0 %v2642_v55  ;;  %v2539_v8 = vsel %vm742_vm2, %v3993_v20, 0.0  ;;  %v2618_v46 = vpack.c.bf16 %v3993_v20, %v3989_v59  ;;  %4006 = vrcp.f32 %v2876_v49  ;;  %v1964_v59 = vmul.f32 %v5218_v17, %v1956_v25  ;;  %v1957_v55 = vld [vmem:[#allocation3 + $0xa0] sm:$0xff] }
 0x867   : > { %3753 = vmatprep.subr.bf16.mxu0 %v2640_v1  ;;  %2540 = vadd.xlane.f32.xlu0 %v2539_v8  ;;  %4008 = vpow2.f32 %v2433_v35  ;;  %v1965_v31 = vmul.f32 %v5351_v10, %v1957_v55  ;;  %v1966_v17 = vmul.f32 %v5221_v54, %v1958_v14 }
 0x868   : > { %4010 = vrcp.f32 %v2878_v50  ;;  %v2011_v50 = vld [vmem:[#allocation4 + $0x88] sm:$0xff] }
 0x869   : > { %v3995_v28 = vpop.eup %3994  ;;  %4012 = vrcp.f32 %v2763_v26 }
 0x86a   : > { %3754 = vmatpush3.bf16.msra.mxu0 %v2640_v1  ;;  %v2533_v38 = vsel %vm742_vm2, %v3995_v28, 0.0  ;;  %v2617_v51 = vpack.c.bf16 %v3995_v28, %v3991_v53  ;;  %v5399_v52 = vpop.eup %3996  ;;  %4014 = vrcp.f32 %v2880_v21 }
 0x86b   : > { %2534 = vadd.xlane.f32.xlu0 %v2533_v38  ;;  %v5406_v2 = vpop.eup %3998  ;;  %4016 = vrcp.f32 %v2765_v40 }
 0x86c   : > { %4018 = vrcp.f32 %v2882_v13 }
 0x86d   : > { %3756 = vmatmul.mubr.msk.bf16.vlgmr.msra.gmra.mxu0 %vm742_vm2, %v2616_v63  ;;  %4020 = vrcp.f32 %v2767_v4 }
 0x86e   : > { %3759 = vmatprep.mubr.msk.bf16.mxu0 %vm742_vm2, %v2617_v51  ;;  %4022 = vrcp.f32 %v3005_v29  ;;  %v1960_v51 = vld [vmem:[#allocation3 + $0xb8] sm:$0xff]  ;;  %v2016_v29 = vld [vmem:[#allocation4 + $0xb0] sm:$0xff] }
 0x86f   : > { %4024 = vrcp.f32 %v2877_v62  ;;  %v1968_v10 = vmul.f32 %v5228_v3, %v1960_v51 }
 0x870   : > { %v4001_v56 = vpop.eup %4000  ;;  %4026 = vrcp.f32 %v3007_v60 }
 0x871   : > { %v4003_v22 = vpop.eup %4002  ;;  %4028 = vrcp.f32 %v2879_v0 }
 0x872   : > { %v5409_v9 = vpop.eup %4004  ;;  %4030 = vrcp.f32 %v2881_v47  ;;  %v5431_v47 = vpop.permute.xlu1 %2579 }
 0x873   : > { %v4007_v23 = vpop.eup %4006  ;;  %4032 = vrcp.f32 %v2883_v37  ;;  %v2503_v37 = vld [vmem:[#allocation3 + $0xc8] sm:$0xff] }
 0x874   : > { %2594 = vperm.xlu1 %3827, %v5399_v52   ;;  %v5412_v39 = vpop.eup %4008 }
 0x875   : > { %3760 = vmatmul.mubr.msk.bf16.gmra.mxu0 %vm742_vm2, %v2618_v46  ;;  %v4011_v5 = vpop.eup %4010  ;;  %v3011_v46 = vld [vmem:[#allocation3 + $0xb0] sm:$0xff] }
 0x876   : > { %v4013_v57 = vpop.eup %4012  ;;  %v5433_v33 = vpop.permute.xlu1 %2569 }
 0x877   : > { %v4015_v6 = vpop.eup %4014 }
 0x878   : > { %2604 = vperm.xlu1 %3827, %v5406_v2   ;;  %v4017_v16 = vpop.eup %4016 }
 0x879   : > { %v4019_v7 = vpop.eup %4018 }
 0x87a   : > { %v4021_v24 = vpop.eup %4020 }
 0x87b   : > { %v4023_v27 = vpop.eup %4022 }
 0x87c   : > { %2786 = vperm.xlu1 %3827, %v4001_v56   ;;  %v4025_v12 = vpop.eup %4024 }
 0x87d   : > { %v4027_v34 = vpop.eup %4026 }
 0x87e   : > { %v4029_v11 = vpop.eup %4028 }
 0x87f   : > { %v4031_v28 = vpop.eup %4030 }
 0x880   : > { %2796 = vperm.xlu1 %3827, %v4003_v22   ;;  %v4033_v58 = vpop.eup %4032  ;;  %v2014_v22 = vld [vmem:[#allocation4 + $0xa0] sm:$0xff] }
 0x881   : > { %2589 = vperm.xlu0 %3826, %v5409_v9  }
 0x884   : > { %2894 = vperm.xlu1 %3827, %v4007_v23  }
 0x885   : > { %2599 = vperm.xlu0 %3826, %v5412_v39  }
 0x888   : > { %2904 = vperm.xlu1 %3827, %v4011_v5  }
 0x889   : > { %2781 = vperm.xlu0 %3826, %v4013_v57  }
 0x88c   : > { %2914 = vperm.xlu1 %3827, %v4015_v6  }
 0x88d   : > { %2791 = vperm.xlu0 %3826, %v4017_v16  }
 0x890   : > { %v1974_v45 = vpop.xlane.xlu0 %1973  ;;  %2924 = vperm.xlu1 %3827, %v4019_v7   ;;  %v2504_v7 = vld [vmem:[#allocation3 + $0xd0] sm:$0xff] }
 0x891   : > { %v1994_v43 = vadd.f32 %v1974_v45, %v1962_v19  ;;  %2801 = vperm.xlu0 %3826, %v4021_v24   ;;  %v5437_v19 = vpop.permute.xlu1 %2584  ;;  %v2512_v24 = vmul.f32 %v5273_v44, %v2504_v7  ;;  %v2502_v45 = vld [vmem:[#allocation3 + $0xc0] sm:$0xff] }
 0x893   : > { %2002 = vst.msk [vmem:[#allocation3 + $0x88] sm:$0xff] %vm482_vm1, %v1994_v43  ;;  %v2511_v43 = vmul.f32 %v5359_v18, %v2503_v37  ;;  %v2506_v18 = vld [vmem:[#allocation3 + $0xe0] sm:$0xff] }
 0x894   : > { %v1980_v32 = vpop.xlane.xlu0 %1979  ;;  %3023 = vperm.xlu1 %3827, %v4023_v27  }
 0x895   : > { %v1996_v53 = vadd.f32 %v1980_v32, %v1964_v59  ;;  %2899 = vperm.xlu0 %3826, %v4025_v12   ;;  %v2510_v59 = vmul.f32 %v5282_v48, %v2502_v45  ;;  %v2508_v12 = vld [vmem:[#allocation3 + $0xf0] sm:$0xff] }
 0x896   : > { %v2516_v44 = vmul.f32 %v5412_v39, %v2508_v12 }
 0x897   : > { %2004 = vst.msk [vmem:[#allocation3 + $0x98] sm:$0xff] %vm482_vm1, %v1996_v53  ;;  %v2505_v53 = vld [vmem:[#allocation3 + $0xd8] sm:$0xff] }
 0x898   : > { %v1983_v20 = vpop.xlane.xlu0 %1982  ;;  %3033 = vperm.xlu1 %3827, %v4027_v34  }
 0x899   : > { %v1997_v1 = vadd.f32 %v1983_v20, %v1965_v31  ;;  %2909 = vperm.xlu0 %3826, %v4029_v11   ;;  %v2513_v11 = vmul.f32 %v5289_v41, %v2505_v53 }
 0x89a   : > { %v3006_v8 = vld [vmem:[#allocation3 + $0x88] sm:$0xff] }
 0x89b   : > { %4034 = vrcp.f32 %v3006_v8  ;;  %2005 = vst.msk [vmem:[#allocation3 + $0xa0] sm:$0xff] %vm482_vm1, %v1997_v1  ;;  %v2514_v8 = vmul.f32 %v5409_v9, %v2506_v18 }
 0x89c   : > { %v1986_v38 = vpop.xlane.xlu0 %1985 }
 0x89d   : > { %v1998_v61 = vadd.f32 %v1986_v38, %v1966_v17  ;;  %2919 = vperm.xlu0 %3826, %v4031_v28   ;;  %v2509_v17 = vld [vmem:[#allocation3 + $0xf8] sm:$0xff] }
 0x89e   : > { %v3008_v63 = vld [vmem:[#allocation3 + $0x98] sm:$0xff]  ;;  %v2517_v41 = vmul.f32 %v5406_v2, %v2509_v17 }
 0x89f   : > { %4036 = vrcp.f32 %v3008_v63  ;;  %2006 = vst.msk [vmem:[#allocation3 + $0xa8] sm:$0xff] %vm482_vm1, %v1998_v61  ;;  %v2507_v63 = vld [vmem:[#allocation3 + $0xe8] sm:$0xff] }
 0x8a0   : > { %v1992_v36 = vpop.xlane.xlu0 %1991 }
 0x8a1   : > { %v2000_v49 = vadd.f32 %v1992_v36, %v1968_v10  ;;  %2929 = vperm.xlu0 %3826, %v4033_v58   ;;  %v2515_v58 = vmul.f32 %v5399_v52, %v2507_v63  ;;  %v2768_v52 = vld [vmem:[#allocation3 + $0x28] sm:$0xff] }
 0x8a2   : > { %v3009_v35 = vld [vmem:[#allocation3 + $0xa0] sm:$0xff] }
 0x8a3   : > { %4038 = vrcp.f32 %v3009_v35  ;;  %2008 = vst.msk [vmem:[#allocation3 + $0xb8] sm:$0xff] %vm482_vm1, %v2000_v49 }
 0x8a4   : > { %4040 = vrcp.f32 %v3011_v46 }
 0x8a6   : > { %v3010_v54 = vld [vmem:[#allocation3 + $0xa8] sm:$0xff] }
 0x8a7   : > { %4042 = vrcp.f32 %v3010_v54 }
 0x8a8   : > { %v4035_v26 = vpop.eup %4034  ;;  %v2026_v56 = vpop.permute.xlu0 %2025 }
 0x8a9   : > { %v2059_v21 = vmul.f32 %v2026_v56, %v2011_v50  ;;  %3028 = vperm.xlu0 %3826, %v4035_v26   ;;  %v2756_v50 = vld [vmem:[#allocation4 + $0x8] sm:$0xff] }
 0x8aa   : > { %v3012_v40 = vld [vmem:[#allocation3 + $0xb8] sm:$0xff] }
 0x8ab   : > { %4044 = vrcp.f32 %v3012_v40  ;;  %v2180_v3 = vadd.f32 %v5136_v30, %v2059_v21 }
 0x8ac   : > { %v4037_v13 = vpop.eup %4036  ;;  %v2041_v4 = vpop.permute.xlu0 %2040 }
 0x8ad   : > { %2188 = vst.msk [vmem:[#allocation4 + $0x88] sm:$0xff] %vm547_vm0, %v2180_v3  ;;  %v2062_v23 = vmul.f32 %v2041_v4, %v2014_v22  ;;  %3038 = vperm.xlu0 %3826, %v4037_v13   ;;  %v2758_v3 = vld [vmem:[#allocation4 + $0x18] sm:$0xff] }
 0x8af   : > { %v2183_v62 = vadd.f32 %v5140_v15, %v2062_v23 }
 0x8b0   : > { %v4039_v5 = vpop.eup %4038  ;;  %v2051_v60 = vpop.permute.xlu0 %2050 }
 0x8b1   : > { %2191 = vst.msk [vmem:[#allocation4 + $0xa0] sm:$0xff] %vm547_vm0, %v2183_v62  ;;  %v2064_v57 = vmul.f32 %v2051_v60, %v2016_v29  ;;  %3043 = vperm.xlu1 %3827, %v4039_v5   ;;  %v4041_v0 = vpop.eup %4040  ;;  %v2770_v62 = vld [vmem:[#allocation3 + $0x38] sm:$0xff] }
 0x8b3   : > { %v2185_v6 = vadd.f32 %v5138_v42, %v2064_v57 }
 0x8b4   : > { %v4043_v16 = vpop.eup %4042  ;;  %v5435_v15 = vpop.permute.xlu0 %2574 }
 0x8b5   : > { %2193 = vst.msk [vmem:[#allocation4 + $0xb0] sm:$0xff] %vm547_vm0, %v2185_v6  ;;  %3048 = vperm.xlu0 %3826, %v4043_v16   ;;  %3053 = vperm.xlu1 %3827, %v4041_v0   ;;  %v2769_v16 = vld [vmem:[#allocation3 + $0x30] sm:$0xff] }
 0x8b8   : > { %v4045_v30 = vpop.eup %4044 }
 0x8b9   : > { %3058 = vperm.xlu0 %3826, %v4045_v30   ;;  %v2755_v30 = vld [vmem:[#allocation4] sm:$0xff] }
 0x8e1   : > { %v2526_v42 = vpop.xlane.xlu0 %2525 }
 0x8e2   : > { %v2544_v25 = vadd.f32 %v2526_v42, %v2512_v24 }
 0x8e4   : > { %2552 = vst.msk [vmem:[#allocation3 + $0xd0] sm:$0xff] %vm482_vm1, %v2544_v25  ;;  %v2523_v27 = vpop.xlane.xlu1 %2522 }
 0x8e5   : > { %v2543_v32 = vadd.f32 %v2523_v27, %v2511_v43  ;;  %v2520_v55 = vpop.xlane.xlu0 %2519  ;;  %v2757_v27 = vld [vmem:[#allocation4 + $0x10] sm:$0xff] }
 0x8e6   : > { %v2542_v34 = vadd.f32 %v2520_v55, %v2510_v59 }
 0x8e7   : > { %2551 = vst.msk [vmem:[#allocation3 + $0xc8] sm:$0xff] %vm482_vm1, %v2543_v32 }
 0x8e8   : > { %2550 = vst.msk [vmem:[#allocation3 + $0xc0] sm:$0xff] %vm482_vm1, %v2542_v34  ;;  %v2538_v31 = vpop.xlane.xlu1 %2537 }
 0x8e9   : > { %v2548_v20 = vadd.f32 %v2538_v31, %v2516_v44  ;;  %v2529_v14 = vpop.xlane.xlu0 %2528  ;;  %v2759_v44 = vld [vmem:[#allocation4 + $0x20] sm:$0xff] }
 0x8ea   : > { %v2545_v1 = vadd.f32 %v2529_v14, %v2513_v11 }
 0x8eb   : > { %v3136_v48 = vld [vmem:[#allocation3 + $0xd0] sm:$0xff]  ;;  %2556 = vst.msk [vmem:[#allocation3 + $0xf0] sm:$0xff] %vm482_vm1, %v2548_v20 }
 0x8ec   : > { %4046 = vrcp.f32 %v3136_v48  ;;  %2553 = vst.msk [vmem:[#allocation3 + $0xd8] sm:$0xff] %vm482_vm1, %v2545_v1  ;;  %v2532_v39 = vpop.xlane.xlu1 %2531  ;;  %v2869_v1 = vld [vmem:[#allocation4 + $0x48] sm:$0xff] }
 0x8ed   : > { %v2546_v28 = vadd.f32 %v2532_v39, %v2514_v8  ;;  %v2868_v8 = vld [vmem:[#allocation4 + $0x40] sm:$0xff] }
 0x8ee   : > { %v3135_v35 = vld [vmem:[#allocation3 + $0xc8] sm:$0xff] }
 0x8ef   : > { %v3134_v38 = vld [vmem:[#allocation3 + $0xc0] sm:$0xff]  ;;  %2554 = vst.msk [vmem:[#allocation3 + $0xe0] sm:$0xff] %vm482_vm1, %v2546_v28 }
 0x8f0   : > { %4048 = vrcp.f32 %v3134_v38  ;;  %v2541_v51 = vpop.xlane.xlu0 %2540  ;;  %v5453_v61 = vpop.permute.xlu1 %2594 }
 0x8f1   : > { %v2549_v10 = vadd.f32 %v2541_v51, %v2517_v41  ;;  %v2871_v41 = vld [vmem:[#allocation4 + $0x58] sm:$0xff] }
 0x8f2   : > { %v3140_v54 = vld [vmem:[#allocation3 + $0xf0] sm:$0xff] }
 0x8f3   : > { %v3137_v9 = vld [vmem:[#allocation3 + $0xd8] sm:$0xff]  ;;  %2557 = vst.msk [vmem:[#allocation3 + $0xf8] sm:$0xff] %vm482_vm1, %v2549_v10  ;;  %v2870_v10 = vld [vmem:[#allocation4 + $0x50] sm:$0xff] }
 0x8f4   : > { %4050 = vrcp.f32 %v3137_v9  ;;  %v2535_v36 = vpop.xlane.xlu0 %2534  ;;  %v5458_v49 = vpop.permute.xlu1 %2604 }
 0x8f5   : > { %v2547_v46 = vadd.f32 %v2535_v36, %v2515_v58 }
 0x8f6   : > { %v3138_v2 = vld [vmem:[#allocation3 + $0xe0] sm:$0xff] }
 0x8f7   : > { %4052 = vrcp.f32 %v3138_v2  ;;  %2555 = vst.msk [vmem:[#allocation3 + $0xe8] sm:$0xff] %vm482_vm1, %v2547_v46  ;;  %v2873_v46 = vld [vmem:[#allocation4 + $0x68] sm:$0xff] }
 0x8f8   : > { %4054 = vrcp.f32 %v3135_v35  ;;  %v2787_v26 = vpop.permute.xlu1 %2786 }
 0x8f9   : > { %v4047_v56 = vpop.eup %4046  ;;  %v2820_v21 = vmul.f32 %v2787_v26, %v2756_v50  ;;  %4056 = vrcp.f32 %v3140_v54  ;;  %v2872_v50 = vld [vmem:[#allocation4 + $0x60] sm:$0xff] }
 0x8fa   : > { %3162 = vperm.xlu1 %3827, %v4047_v56   ;;  %4058 = vrcp.f32 %v2768_v52  ;;  %v3141_v60 = vld [vmem:[#allocation3 + $0xf8] sm:$0xff] }
 0x8fb   : > { %v3540_v40 = vpack.c.bf16 %v2820_v21, %v2820_v21 }
 0x8fc   : > { %v5466_v22 = vpop.permute.xlu0 %2589  ;;  %v2797_v13 = vpop.permute.xlu1 %2796 }
 0x8fd   : > { %v4049_v4 = vpop.eup %4048  ;;  %2861 = vst.msk [vmem:[%s5464_s6 + $0x4] sm:$0xf] %vm2859_vm3, %v3540_v40  ;;  %v2822_v23 = vmul.f32 %v2797_v13, %v2758_v3  ;;  %v2875_v40 = vld [vmem:[#allocation4 + $0x78] sm:$0xff]  ;;  %v2874_v13 = vld [vmem:[#allocation4 + $0x70] sm:$0xff] }
 0x8fe   : > { %v3139_v29 = vld [vmem:[#allocation3 + $0xe8] sm:$0xff]  ;;  %3152 = vperm.xlu1 %3827, %v4049_v4  }
 0x8ff   : > { %4060 = vrcp.f32 %v3139_v29  ;;  %v3542_v5 = vpack.c.bf16 %v2822_v23, %v2822_v23 }
 0x900   : > { %v5470_v57 = vpop.permute.xlu0 %2599  ;;  %4062 = vrcp.f32 %v2770_v62  ;;  %v2895_v42 = vpop.permute.xlu1 %2894 }
 0x901   : > { %v4051_v0 = vpop.eup %4050  ;;  %2863 = vst.msk [vmem:[%s5464_s6 + $0xc] sm:$0xf] %vm2859_vm3, %v3542_v5  ;;  %4064 = vrcp.f32 %v3141_v60  ;;  %v2932_v17 = vmul.f32 %v2895_v42, %v2868_v8  ;;  %v2997_v5 = vld [vmem:[#allocation4 + $0x80] sm:$0xff] }
 0x902   : > { %3167 = vperm.xlu0 %3826, %v4051_v0   ;;  %4066 = vrcp.f32 %v2769_v16  ;;  %v2998_v16 = vld [vmem:[#allocation4 + $0x88] sm:$0xff] }
 0x903   : > { %v3547_v9 = vpack.c.bf16 %v2932_v17, %v2932_v17 }
 0x904   : > { %v4053_v6 = vpop.eup %4052  ;;  %v2782_v7 = vpop.permute.xlu0 %2781 }
 0x905   : > { %v4055_v24 = vpop.eup %4054  ;;  %v2819_v37 = vmul.f32 %v2782_v7, %v2755_v30  ;;  %3172 = vperm.xlu1 %3827, %v4053_v6   ;;  %v2905_v53 = vpop.permute.xlu1 %2904 }
 0x906   : > { %3157 = vperm.xlu0 %3826, %v4055_v24   ;;  %v4057_v25 = vpop.eup %4056  ;;  %v2934_v58 = vmul.f32 %v2905_v53, %v2870_v10  ;;  %v2999_v24 = vld [vmem:[#allocation4 + $0x90] sm:$0xff] }
 0x907   : > { %v3539_v45 = vpack.c.bf16 %v2819_v37, %v2819_v37  ;;  %v4059_v12 = vpop.eup %4058 }
 0x908   : > { %v2792_v43 = vpop.permute.xlu0 %2791  ;;  %v3549_v26 = vpack.c.bf16 %v2934_v58, %v2934_v58 }
 0x909   : > { %2860 = vst.msk [vmem:[%s5464_s6] sm:$0xf] %vm2859_vm3, %v3539_v45  ;;  %v2821_v59 = vmul.f32 %v2792_v43, %v2757_v27  ;;  %3182 = vperm.xlu1 %3827, %v4057_v25   ;;  %v2915_v39 = vpop.permute.xlu1 %2914  ;;  %v3000_v43 = vld [vmem:[#allocation4 + $0x98] sm:$0xff]  ;;  %v2561_v27 = vld [vmem:[#allocation4 + $0xd0] sm:$0xff] }
 0x90a   : > { %v2936_v56 = vmul.f32 %v2915_v39, %v2872_v50  ;;  %v2609_v53 = vmul.f32 %v5431_v47, %v2561_v27 }
 0x90b   : > { %v3541_v32 = vpack.c.bf16 %v2821_v59, %v2821_v59 }
 0x90c   : > { %v4061_v55 = vpop.eup %4060  ;;  %v2802_v34 = vpop.permute.xlu0 %2801  ;;  %v3551_v23 = vpack.c.bf16 %v2936_v56, %v2936_v56  ;;  %v2566_v56 = vld [vmem:[#allocation4 + $0xf8] sm:$0xff] }
 0x90d   : > { %2862 = vst.msk [vmem:[%s5464_s6 + $0x8] sm:$0xf] %vm2859_vm3, %v3541_v32  ;;  %v2823_v31 = vmul.f32 %v2802_v34, %v2759_v44  ;;  %3177 = vperm.xlu0 %3826, %v4061_v55   ;;  %2806 = vperm.xlu1 %3827, %v4059_v12   ;;  %v4063_v11 = vpop.eup %4062  ;;  %v2925_v35 = vpop.permute.xlu1 %2924  ;;  %v2559_v12 = vld [vmem:[#allocation4 + $0xc0] sm:$0xff] }
 0x90e   : > { %v4065_v20 = vpop.eup %4064  ;;  %v2938_v29 = vmul.f32 %v2925_v35, %v2874_v13  ;;  %v3001_v34 = vld [vmem:[#allocation4 + $0xa0] sm:$0xff] }
 0x90f   : > { %v3543_v18 = vpack.c.bf16 %v2823_v31, %v2823_v31  ;;  %v4067_v38 = vpop.eup %4066  ;;  %v2562_v31 = vld [vmem:[#allocation4 + $0xd8] sm:$0xff] }
 0x910   : > { %v2900_v14 = vpop.permute.xlu0 %2899  ;;  %v3553_v60 = vpack.c.bf16 %v2938_v29, %v2938_v29  ;;  %v2610_v39 = vmul.f32 %v5437_v19, %v2562_v31 }
 0x911   : > { %2864 = vst.msk [vmem:[%s5464_s6 + $0x10] sm:$0xf] %vm2859_vm3, %v3543_v18  ;;  %v2933_v48 = vmul.f32 %v2900_v14, %v2869_v1  ;;  %3187 = vperm.xlu0 %3826, %v4065_v20   ;;  %2816 = vperm.xlu1 %3827, %v4063_v11   ;;  %v3024_v4 = vpop.permute.xlu1 %3023  ;;  %v2607_v20 = vmul.f32 %v5433_v33, %v2559_v12  ;;  %v2560_v1 = vld [vmem:[#allocation4 + $0xc8] sm:$0xff] }
 0x912   : > { %v3061_v0 = vmul.f32 %v3024_v4, %v2997_v5  ;;  %v2608_v33 = vmul.f32 %v5435_v15, %v2560_v1  ;;  %v2614_v4 = vmul.f32 %v5458_v49, %v2566_v56  ;;  %v2760_v1 = vld [vmem:[#allocation4 + $0x28] sm:$0xff] }
 0x913   : > { %v3548_v28 = vpack.c.bf16 %v2933_v48, %v2933_v48 }
 0x914   : > { %v2910_v51 = vpop.permute.xlu0 %2909  ;;  %v3555_v37 = vpack.c.bf16 %v3061_v0, %v3061_v0 }
 0x915   : > { %v2935_v63 = vmul.f32 %v2910_v51, %v2871_v41  ;;  %2811 = vperm.xlu0 %3826, %v4067_v38   ;;  %2966 = vrot.lane.b32.xlu1 %v3548_v28, %s4113_s29  ;;  %v3034_v6 = vpop.permute.xlu1 %3033  ;;  %v3002_v28 = vld [vmem:[#allocation4 + $0xa8] sm:$0xff]  ;;  %v3003_v38 = vld [vmem:[#allocation4 + $0xb0] sm:$0xff] }
 0x916   : > { %v3063_v42 = vmul.f32 %v3034_v6, %v2999_v24  ;;  %v2565_v51 = vld [vmem:[#allocation4 + $0xf0] sm:$0xff] }
 0x917   : > { %v3550_v36 = vpack.c.bf16 %v2935_v63, %v2935_v63 }
 0x918   : > { %v2920_v2 = vpop.permute.xlu0 %2919  ;;  %v3557_v32 = vpack.c.bf16 %v3063_v42, %v3063_v42 }
 0x919   : > { %v2937_v54 = vmul.f32 %v2920_v2, %v2873_v46  ;;  %2970 = vrot.lane.b32.xlu1 %v3550_v36, %s4113_s29  ;;  %2964 = vrot.lane.b32.xlu0 %v3547_v9, %s4113_s29  ;;  %v2563_v36 = vld [vmem:[#allocation4 + $0xe0] sm:$0xff]  ;;  %v2613_v2 = vmul.f32 %v5470_v57, %v2565_v51 }
 0x91a   : > { %v2611_v15 = vmul.f32 %v5466_v22, %v2563_v36 }
 0x91b   : > { %v3552_v21 = vpack.c.bf16 %v2937_v54, %v2937_v54 }
 0x91c   : > { %v2930_v52 = vpop.permute.xlu0 %2929 }
 0x91d   : > { %v2939_v3 = vmul.f32 %v2930_v52, %v2875_v40  ;;  %2974 = vrot.lane.b32.xlu1 %v3552_v21, %s4113_s29  ;;  %2968 = vrot.lane.b32.xlu0 %v3549_v26, %s4113_s29  ;;  %v3004_v26 = vld [vmem:[#allocation4 + $0xb8] sm:$0xff] }
 0x91f   : > { %v3554_v62 = vpack.c.bf16 %v2939_v3, %v2939_v3  ;;  %v2564_v3 = vld [vmem:[#allocation4 + $0xe8] sm:$0xff] }
 0x921   : > { %2978 = vrot.lane.b32.xlu1 %v3554_v62, %s4113_s29  ;;  %2972 = vrot.lane.b32.xlu0 %v3551_v23, %s4113_s29  ;;  %v2612_v62 = vmul.f32 %v5453_v61, %v2564_v3 }
 0x924   : > { %v3029_v30 = vpop.permute.xlu0 %3028 }
 0x925   : > { %v3062_v7 = vmul.f32 %v3029_v30, %v2998_v16  ;;  %2976 = vrot.lane.b32.xlu0 %v3553_v60, %s4113_s29 }
 0x927   : > { %v3556_v45 = vpack.c.bf16 %v3062_v7, %v3062_v7 }
 0x928   : > { %v3039_v25 = vpop.permute.xlu0 %3038 }
 0x929   : > { %v3064_v59 = vmul.f32 %v3039_v25, %v3000_v43  ;;  %3095 = vrot.lane.b32.xlu1 %v3556_v45, %s4112_s28  ;;  %3093 = vrot.lane.b32.xlu0 %v3555_v37, %s4112_s28 }
 0x92b   : > { %v3558_v55 = vpack.c.bf16 %v3064_v59, %v3064_v59 }
 0x92c   : > { %v3044_v44 = vpop.permute.xlu1 %3043 }
 0x92d   : > { %v3757_v11 = vpop.f32.mrf.mxu0  ;;  %v3065_v18 = vmul.f32 %v3044_v44, %v3001_v34  ;;  %3099 = vrot.lane.b32.xlu1 %v3558_v55, %s4112_s28  ;;  %3097 = vrot.lane.b32.xlu0 %v3557_v32, %s4112_s28 }
 0x92e   : > { %v2730_v14 = vadd.f32 %v3757_v11, %v2609_v53 }
 0x92f   : > { %v3559_v48 = vpack.c.bf16 %v3065_v18, %v3065_v18  ;;  %v2697_v8 = vpop.f32.mrf.mxu0 }
 0x930   : > { %2738 = vst.msk [vmem:[#allocation4 + $0xd0] sm:$0xff] %vm547_vm0, %v2730_v14  ;;  %v2728_v47 = vadd.f32 %v2697_v8, %v2607_v20  ;;  %v3049_v17 = vpop.permute.xlu0 %3048  ;;  %v3054_v41 = vpop.permute.xlu1 %3053 }
 0x931   : > { %v3066_v63 = vmul.f32 %v3049_v17, %v3002_v28  ;;  %v3758_v10 = vpop.f32.mrf.mxu0  ;;  %v3067_v9 = vmul.f32 %v3054_v41, %v3003_v38  ;;  %3101 = vrot.lane.b32.xlu0 %v3559_v48, %s4112_s28  ;;  %v2762_v41 = vld [vmem:[#allocation4 + $0x38] sm:$0xff] }
 0x932   : > { %2736 = vst.msk [vmem:[#allocation4 + $0xc0] sm:$0xff] %vm547_vm0, %v2728_v47  ;;  %v2731_v58 = vadd.f32 %v3758_v10, %v2610_v39 }
 0x933   : > { %v3560_v19 = vpack.c.bf16 %v3066_v63, %v3066_v63  ;;  %v3561_v35 = vpack.c.bf16 %v3067_v9, %v3067_v9  ;;  %v2700_v46 = vpop.f32.mrf.mxu0 }
 0x934   : > { %2739 = vst.msk [vmem:[#allocation4 + $0xd8] sm:$0xff] %vm547_vm0, %v2731_v58  ;;  %v2729_v54 = vadd.f32 %v2700_v46, %v2608_v33  ;;  %v3059_v50 = vpop.permute.xlu0 %3058  ;;  %v2761_v58 = vld [vmem:[#allocation4 + $0x30] sm:$0xff] }
 0x935   : > { %v3068_v21 = vmul.f32 %v3059_v50, %v3004_v26  ;;  %v3761_v52 = vpop.f32.mrf.mxu0  ;;  %3103 = vrot.lane.b32.xlu1 %v3560_v19, %s4112_s28  ;;  %3105 = vrot.lane.b32.xlu0 %v3561_v35, %s4112_s28 }
 0x936   : > { %2737 = vst.msk [vmem:[#allocation4 + $0xc8] sm:$0xff] %vm547_vm0, %v2729_v54  ;;  %v2734_v40 = vadd.f32 %v3761_v52, %v2613_v2 }
 0x937   : > { %v3562_v13 = vpack.c.bf16 %v3068_v21, %v3068_v21  ;;  %v2713_v57 = vpop.f32.mrf.mxu0  ;;  %v3128_v0 = vld [vmem:[#allocation4 + $0xd0] sm:$0xff] }
 0x938   : > { %2742 = vst.msk [vmem:[#allocation4 + $0xf0] sm:$0xff] %vm547_vm0, %v2734_v40  ;;  %v2732_v23 = vadd.f32 %v2713_v57, %v2611_v15 }
 0x939   : > { %v3762_v29 = vpop.f32.mrf.mxu0  ;;  %3107 = vrot.lane.b32.xlu1 %v3562_v13, %s4112_s28  ;;  %v3126_v30 = vld [vmem:[#allocation4 + $0xc0] sm:$0xff] }
 0x93a   : > { %2740 = vst.msk [vmem:[#allocation4 + $0xe0] sm:$0xff] %vm547_vm0, %v2732_v23  ;;  %v2735_v5 = vadd.f32 %v3762_v29, %v2614_v4 }
 0x93b   : > { %v2716_v22 = vpop.f32.mrf.mxu0  ;;  %v3129_v42 = vld [vmem:[#allocation4 + $0xd8] sm:$0xff] }
 0x93c   : > { %2743 = vst.msk [vmem:[#allocation4 + $0xf8] sm:$0xff] %vm547_vm0, %v2735_v5  ;;  %v2733_v60 = vadd.f32 %v2716_v22, %v2612_v62 }
 0x93d   : > { %v3127_v12 = vld [vmem:[#allocation4 + $0xc8] sm:$0xff] }
 0x93e   : > { %2741 = vst.msk [vmem:[#allocation4 + $0xe8] sm:$0xff] %vm547_vm0, %v2733_v60 }
 0x93f   : > { %v3132_v44 = vld [vmem:[#allocation4 + $0xf0] sm:$0xff] }
 0x941   : > { %v3130_v43 = vld [vmem:[#allocation4 + $0xe0] sm:$0xff] }
 0x943   : > { %v3133_v38 = vld [vmem:[#allocation4 + $0xf8] sm:$0xff] }
 0x945   : > { %v3131_v14 = vld [vmem:[#allocation4 + $0xe8] sm:$0xff] }
 0x975   : > { %v3163_v6 = vpop.permute.xlu1 %3162 }
 0x976   : > { %v3192_v49 = vmul.f32 %v3163_v6, %v3128_v0 }
 0x978   : > { %v3565_v16 = vpack.c.bf16 %v3192_v49, %v3192_v49 }
 0x979   : > { %v3153_v7 = vpop.permute.xlu1 %3152 }
 0x97a   : > { %v3190_v24 = vmul.f32 %v3153_v7, %v3126_v30  ;;  %3226 = vrot.lane.b32.xlu0 %v3565_v16, %s4111_s26 }
 0x97c   : > { %v3563_v37 = vpack.c.bf16 %v3190_v24, %v3190_v24 }
 0x97d   : > { %v3168_v61 = vpop.permute.xlu0 %3167 }
 0x97e   : > { %v3193_v45 = vmul.f32 %v3168_v61, %v3129_v42  ;;  %3222 = vrot.lane.b32.xlu0 %v3563_v37, %s4111_s26 }
 0x980   : > { %v3566_v25 = vpack.c.bf16 %v3193_v45, %v3193_v45  ;;  %v3173_v27 = vpop.permute.xlu1 %3172 }
 0x981   : > { %v3194_v59 = vmul.f32 %v3173_v27, %v3130_v43  ;;  %v3158_v32 = vpop.permute.xlu0 %3157 }
 0x982   : > { %v3191_v55 = vmul.f32 %v3158_v32, %v3127_v12  ;;  %3228 = vrot.lane.b32.xlu1 %v3566_v25, %s4111_s26 }
 0x983   : > { %v3567_v53 = vpack.c.bf16 %v3194_v59, %v3194_v59 }
 0x984   : > { %v3564_v34 = vpack.c.bf16 %v3191_v55, %v3191_v55  ;;  %v3183_v31 = vpop.permute.xlu1 %3182 }
 0x985   : > { %v3196_v11 = vmul.f32 %v3183_v31, %v3132_v44  ;;  %3230 = vrot.lane.b32.xlu0 %v3567_v53, %s4111_s26 }
 0x986   : > { %3224 = vrot.lane.b32.xlu1 %v3564_v34, %s4111_s26 }
 0x987   : > { %v3569_v18 = vpack.c.bf16 %v3196_v11, %v3196_v11 }
 0x988   : > { %v3178_v20 = vpop.permute.xlu0 %3177  ;;  %v2807_v48 = vpop.permute.xlu1 %2806 }
 0x989   : > { %v3195_v8 = vmul.f32 %v3178_v20, %v3131_v14  ;;  %v2824_v39 = vmul.f32 %v2807_v48, %v2760_v1  ;;  %3234 = vrot.lane.b32.xlu0 %v3569_v18, %s4111_s26 }
 0x98b   : > { %v3568_v47 = vpack.c.bf16 %v3195_v8, %v3195_v8  ;;  %v3544_v17 = vpack.c.bf16 %v2824_v39, %v2824_v39 }
 0x98c   : > { %v3188_v28 = vpop.permute.xlu0 %3187  ;;  %v2817_v51 = vpop.permute.xlu1 %2816 }
 0x98d   : > { %2865 = vst.msk [vmem:[%s5464_s6 + $0x14] sm:$0xf] %vm2859_vm3, %v3544_v17  ;;  %v3197_v63 = vmul.f32 %v3188_v28, %v3133_v38  ;;  %v2826_v10 = vmul.f32 %v2817_v51, %v2762_v41  ;;  %3232 = vrot.lane.b32.xlu1 %v3568_v47, %s4111_s26 }
 0x98f   : > { %v3570_v9 = vpack.c.bf16 %v3197_v63, %v3197_v63  ;;  %v3546_v33 = vpack.c.bf16 %v2826_v10, %v2826_v10 }
 0x990   : > { %v2812_v36 = vpop.permute.xlu0 %2811  ;;  %v2967_v19 = vpop.permute.xlu1 %2966 }
 0x991   : > { %2867 = vst.msk [vmem:[%s5464_s6 + $0x1c] sm:$0xf] %vm2859_vm3, %v3546_v33  ;;  %v2825_v35 = vmul.f32 %v2812_v36, %v2761_v58  ;;  %3236 = vrot.lane.b32.xlu1 %v3570_v9, %s4111_s26 }
 0x992   : > { %2990 = vst.msk [vmem:[%s5464_s6 + $0x4] sm:$0xf] %vm2988_vm4, %v2967_v19 }
 0x993   : > { %v3545_v46 = vpack.c.bf16 %v2825_v35, %v2825_v35 }
 0x994   : > { %v2965_v2 = vpop.permute.xlu0 %2964  ;;  %v2971_v54 = vpop.permute.xlu1 %2970 }
 0x995   : > { %2866 = vst.msk [vmem:[%s5464_s6 + $0x18] sm:$0xf] %vm2859_vm3, %v3545_v46 }
 0x996   : > { %2989 = vst.msk [vmem:[%s5464_s6] sm:$0xf] %vm2988_vm4, %v2965_v2  ;;  %2992 = vst.msk [vmem:[%s5464_s6 + $0xc] sm:$0xf] %vm2988_vm4, %v2971_v54 }
 0x998   : > { %v2969_v50 = vpop.permute.xlu0 %2968  ;;  %v2975_v26 = vpop.permute.xlu1 %2974 }
 0x999   : > { %2991 = vst.msk [vmem:[%s5464_s6 + $0x8] sm:$0xf] %vm2988_vm4, %v2969_v50  ;;  %2994 = vst.msk [vmem:[%s5464_s6 + $0x14] sm:$0xf] %vm2988_vm4, %v2975_v26 }
 0x99c   : > { %v2973_v56 = vpop.permute.xlu0 %2972  ;;  %v2979_v21 = vpop.permute.xlu1 %2978 }
 0x99d   : > { %2993 = vst.msk [vmem:[%s5464_s6 + $0x10] sm:$0xf] %vm2988_vm4, %v2973_v56  ;;  %2996 = vst.msk [vmem:[%s5464_s6 + $0x1c] sm:$0xf] %vm2988_vm4, %v2979_v21 }
 0x9a0   : > { %v2977_v52 = vpop.permute.xlu0 %2976  ;;  %v3096_v15 = vpop.permute.xlu1 %3095 }
 0x9a1   : > { %2995 = vst.msk [vmem:[%s5464_s6 + $0x18] sm:$0xf] %vm2988_vm4, %v2977_v52 }
 0x9a2   : > { %3119 = vst.msk [vmem:[%s5464_s6 + $0x4] sm:$0xf] %vm3117_vm5, %v3096_v15 }
 0x9a4   : > { %v3094_v40 = vpop.permute.xlu0 %3093  ;;  %v3100_v3 = vpop.permute.xlu1 %3099 }
 0x9a5   : > { %3118 = vst.msk [vmem:[%s5464_s6] sm:$0xf] %vm3117_vm5, %v3094_v40  ;;  %3121 = vst.msk [vmem:[%s5464_s6 + $0xc] sm:$0xf] %vm3117_vm5, %v3100_v3 }
 0x9a8   : > { %v3098_v13 = vpop.permute.xlu0 %3097  ;;  %v3104_v57 = vpop.permute.xlu1 %3103 }
 0x9a9   : > { %3120 = vst.msk [vmem:[%s5464_s6 + $0x8] sm:$0xf] %vm3117_vm5, %v3098_v13  ;;  %3123 = vst.msk [vmem:[%s5464_s6 + $0x14] sm:$0xf] %vm3117_vm5, %v3104_v57 }
 0x9ac   : > { %v3102_v4 = vpop.permute.xlu0 %3101  ;;  %v3108_v23 = vpop.permute.xlu1 %3107 }
 0x9ad   : > { %3122 = vst.msk [vmem:[%s5464_s6 + $0x10] sm:$0xf] %vm3117_vm5, %v3102_v4  ;;  %3125 = vst.msk [vmem:[%s5464_s6 + $0x1c] sm:$0xf] %vm3117_vm5, %v3108_v23 }
 0x9b0   : > { %v3106_v29 = vpop.permute.xlu0 %3105 }
 0x9b1   : > { %3124 = vst.msk [vmem:[%s5464_s6 + $0x18] sm:$0xf] %vm3117_vm5, %v3106_v29 }
 0x9ec   : > { %v3227_v62 = vpop.permute.xlu0 %3226 }
 0x9ed   : > { %3249 = vst.msk [vmem:[%s5464_s6 + $0x8] sm:$0xf] %vm3246_vm6, %v3227_v62 }
 0x9f0   : > { %v3223_v5 = vpop.permute.xlu0 %3222 }
 0x9f1   : > { %3247 = vst.msk [vmem:[%s5464_s6] sm:$0xf] %vm3246_vm6, %v3223_v5 }
 0x9f4   : > { %v3229_v22 = vpop.permute.xlu1 %3228 }
 0x9f5   : > { %3250 = vst.msk [vmem:[%s5464_s6 + $0xc] sm:$0xf] %vm3246_vm6, %v3229_v22 }
 0x9f7   : > { %v3231_v60 = vpop.permute.xlu0 %3230 }
 0x9f8   : > { %3251 = vst.msk [vmem:[%s5464_s6 + $0x10] sm:$0xf] %vm3246_vm6, %v3231_v60  ;;  %v3225_v0 = vpop.permute.xlu1 %3224 }
 0x9f9   : > { %3248 = vst.msk [vmem:[%s5464_s6 + $0x4] sm:$0xf] %vm3246_vm6, %v3225_v0 }
 0x9fb   : > { %v3235_v6 = vpop.permute.xlu0 %3234 }
 0x9fc   : > { %3253 = vst.msk [vmem:[%s5464_s6 + $0x18] sm:$0xf] %vm3246_vm6, %v3235_v6 }
 0x9ff   : > { %v3233_v49 = vpop.permute.xlu1 %3232 }
 0xa00   : > { %3252 = vst.msk [vmem:[%s5464_s6 + $0x14] sm:$0xf] %vm3246_vm6, %v3233_v49 }
 0xa03   : > { %v3237_v16 = vpop.permute.xlu1 %3236 }
 0xa04   : > { %3254 = vst.msk [vmem:[%s5464_s6 + $0x1c] sm:$0xf] %vm3246_vm6, %v3237_v16 }
 0xa05 PF: > { %s13_s16 = sadd.s32 1, %s4106_s16   ;;  %s5698_s12 = smov %s4094_s13 }
 0xa06   : > { %p10_p10 = scmp.ge.s32.totalorder %s13_s16, 4   ;;  %s5699_s13 = smov %s4173_s21 }
 0xa07   : > { %s5700_s14 = smov %s4102_s15  ;;  %s5701_s15 = smov %s5703_s17 }
 0xa08   :  { %12 = sbr.rel (!%p10_p10) target bundleno = 3 (0x3), region = 223 }

// kernel: block_forward.8
= control target key start
LH: loop header
LB: loop body
LE: loop exit
PB: predicated region body
PF: predicated region fallthrough
CT: control target
= control target key end

     0   :  { %s5035_s0 = inlined_call_operand.vmem [shape: f32[128,128], index: 0, kind: input, shape index: {}]   ;;  %s5036_s3 = inlined_call_operand.vmem [shape: bf16[128,512], index: 3, kind: input, shape index: {}]   ;;  %s5037_s1 = inlined_call_operand.vmem [shape: f32[1,128], index: 1, kind: input, shape index: {}]   ;;  %s5038_s2 = inlined_call_operand.vmem [shape: f32[1,128], index: 2, kind: input, shape index: {}]   ;;  %s5039_s4 = inlined_call_operand.vmem [shape: f32[1,512], index: 4, kind: input, shape index: {}]   ;;  %s5040_s5 = inlined_call_operand.vmem [shape: bf16[128,512], index: 5, kind: output, shape index: {}]  }
   0x1   :  { %v25_v0 = vld [vmem:[%s5035_s0] sm:$0xff]  ;;  %v27_v1 = vld [vmem:[%s5035_s0 + $0x10] sm:$0xff]  ;;  %v26_v2 = vld [vmem:[%s5035_s0 + $0x8] sm:$0xff] }
   0x2   :  { %41 = vadd.xlane.f32.xlu0 %v25_v0  ;;  %45 = vadd.xlane.f32.xlu1 %v27_v1  ;;  %v28_v3 = vld [vmem:[%s5035_s0 + $0x18] sm:$0xff]  ;;  %v29_v4 = vld [vmem:[%s5035_s0 + $0x20] sm:$0xff]  ;;  %v30_v5 = vld [vmem:[%s5035_s0 + $0x28] sm:$0xff] }
   0x3   :  { %v31_v6 = vld [vmem:[%s5035_s0 + $0x30] sm:$0xff]  ;;  %v32_v7 = vld [vmem:[%s5035_s0 + $0x38] sm:$0xff]  ;;  %v33_v8 = vld [vmem:[%s5035_s0 + $0x40] sm:$0xff] }
   0x4   :  { %v34_v9 = vld [vmem:[%s5035_s0 + $0x48] sm:$0xff]  ;;  %v3398_v10 = vld [vmem:[%s5035_s0 + $0x50] sm:$0xff]  ;;  %v3403_v11 = vld [vmem:[%s5035_s0 + $0x58] sm:$0xff] }
   0x5   :  { %v3410_v12 = vld [vmem:[%s5035_s0 + $0x60] sm:$0xff]  ;;  %v3415_v13 = vld [vmem:[%s5035_s0 + $0x68] sm:$0xff]  ;;  %v3422_v14 = vld [vmem:[%s5035_s0 + $0x70] sm:$0xff] }
   0x6   :  { %43 = vadd.xlane.f32.xlu0 %v26_v2  ;;  %47 = vadd.xlane.f32.xlu1 %v28_v3  ;;  %v3427_v15 = vld [vmem:[%s5035_s0 + $0x78] sm:$0xff]  ;;  %v2990_v62 = vld [vmem:[%s5036_s3 + $0xe4] ss:$16 sps:$4 sm:$0xff]  }
   0x7   :  { %622 = vmatprep.subr.bf16.mxu0 %v2990_v62 }
   0xa   :  { %49 = vadd.xlane.f32.xlu0 %v29_v4  ;;  %51 = vadd.xlane.f32.xlu1 %v30_v5 }
   0xe   :  { %53 = vadd.xlane.f32.xlu0 %v31_v6  ;;  %55 = vadd.xlane.f32.xlu1 %v32_v7 }
  0x12   :  { %57 = vadd.xlane.f32.xlu0 %v33_v8  ;;  %59 = vadd.xlane.f32.xlu1 %v34_v9 }
  0x16   :  { %61 = vadd.xlane.f32.xlu0 %v3398_v10  ;;  %63 = vadd.xlane.f32.xlu1 %v3403_v11 }
  0x1a   :  { %65 = vadd.xlane.f32.xlu0 %v3410_v12  ;;  %67 = vadd.xlane.f32.xlu1 %v3415_v13 }
  0x1e   :  { %69 = vadd.xlane.f32.xlu0 %v3422_v14  ;;  %71 = vadd.xlane.f32.xlu1 %v3427_v15 }
  0x8b   :  { %v42_v16 = vpop.xlane.xlu0 %41  ;;  %v46_v17 = vpop.xlane.xlu1 %45 }
  0x8c   :  { %v74_v18 = vmul.f32 0.0078125, %v42_v16  ;;  %v76_v19 = vmul.f32 0.0078125, %v46_v17 }
  0x8e   :  { %v3431_v20 = vsub.f32 %v25_v0, %v74_v18  ;;  %v3433_v21 = vsub.f32 %v27_v1, %v76_v19  ;;  %v2992_v1 = vld [vmem:[%s5036_s3 + $0xec] ss:$16 sps:$4 sm:$0xff]  }
  0x8f   :  { %v44_v22 = vpop.xlane.xlu0 %43  ;;  %v48_v23 = vpop.xlane.xlu1 %47  ;;  %735 = vmatprep.subr.bf16.mxu1 %v2992_v1 }
  0x90   :  { %v75_v24 = vmul.f32 0.0078125, %v44_v22  ;;  %v106_v25 = vmul.f32 %v3431_v20, %v3431_v20  ;;  %v77_v26 = vmul.f32 0.0078125, %v48_v23  ;;  %v108_v29 = vmul.f32 %v3433_v21, %v3433_v21 }
  0x92   :  { %v3437_v27 = vsub.f32 %v26_v2, %v75_v24  ;;  %122 = vadd.xlane.f32.xlu0 %v106_v25  ;;  %v3439_v28 = vsub.f32 %v28_v3, %v77_v26  ;;  %v3002_v26 = vld [vmem:[%s5036_s3 + $0xa4] ss:$16 sps:$4 sm:$0xff]  }
  0x93   :  { %v50_v30 = vpop.xlane.xlu0 %49  ;;  %v52_v31 = vpop.xlane.xlu1 %51 }
  0x94   :  { %v78_v32 = vmul.f32 0.0078125, %v50_v30  ;;  %v107_v33 = vmul.f32 %v3437_v27, %v3437_v27  ;;  %v79_v34 = vmul.f32 0.0078125, %v52_v31  ;;  %v109_v37 = vmul.f32 %v3439_v28, %v3439_v28 }
  0x96   :  { %v3445_v35 = vsub.f32 %v29_v4, %v78_v32  ;;  %126 = vadd.xlane.f32.xlu0 %v108_v29  ;;  %124 = vadd.xlane.f32.xlu1 %v107_v33  ;;  %v3447_v36 = vsub.f32 %v30_v5, %v79_v34  ;;  %v2994_v5 = vld [vmem:[%s5036_s3 + $0xe0] ss:$16 sps:$4 sm:$0xff]   ;;  %v3004_v29 = vld [vmem:[%s5036_s3 + $0xac] ss:$16 sps:$4 sm:$0xff]   ;;  %v3008_v32 = vld [vmem:[%s5036_s3 + $0x84] ss:$16 sps:$4 sm:$0xff]  }
  0x97   :  { %v54_v38 = vpop.xlane.xlu0 %53  ;;  %v56_v39 = vpop.xlane.xlu1 %55  ;;  %623 = vmatpush1.bf16.msra.mxu0 %v2994_v5  ;;  %v3010_v33 = vld [vmem:[%s5036_s3 + $0x8c] ss:$16 sps:$4 sm:$0xff]   ;;  %v3012_v34 = vld [vmem:[%s5036_s3 + $0x80] ss:$16 sps:$4 sm:$0xff]  }
  0x98   :  { %v80_v40 = vmul.f32 0.0078125, %v54_v38  ;;  %v110_v41 = vmul.f32 %v3445_v35, %v3445_v35  ;;  %v81_v42 = vmul.f32 0.0078125, %v56_v39  ;;  %v111_v45 = vmul.f32 %v3447_v36, %v3447_v36  ;;  %v3014_v38 = vld [vmem:[%s5036_s3 + $0x64] ss:$16 sps:$4 sm:$0xff]   ;;  %v3016_v39 = vld [vmem:[%s5036_s3 + $0x6c] ss:$16 sps:$4 sm:$0xff]  }
  0x9a   :  { %v3453_v43 = vsub.f32 %v31_v6, %v80_v40  ;;  %128 = vadd.xlane.f32.xlu1 %v109_v37  ;;  %130 = vadd.xlane.f32.xlu0 %v110_v41  ;;  %v3455_v44 = vsub.f32 %v32_v7, %v81_v42  ;;  %v2995_v6 = vld [vmem:[%s5036_s3 + $0xe8] ss:$16 sps:$4 sm:$0xff]   ;;  %v3018_v40 = vld [vmem:[%s5036_s3 + $0x60] ss:$16 sps:$4 sm:$0xff]   ;;  %v3020_v42 = vld [vmem:[%s5036_s3 + $0x44] ss:$16 sps:$4 sm:$0xff]  }
  0x9b   :  { %v58_v46 = vpop.xlane.xlu0 %57  ;;  %v60_v47 = vpop.xlane.xlu1 %59  ;;  %736 = vmatpush1.bf16.msra.mxu1 %v2995_v6  ;;  %v3013_v37 = vld [vmem:[%s5036_s3 + $0x88] ss:$16 sps:$4 sm:$0xff]  }
  0x9c   :  { %v82_v48 = vmul.f32 0.0078125, %v58_v46  ;;  %v112_v49 = vmul.f32 %v3453_v43, %v3453_v43  ;;  %v83_v50 = vmul.f32 0.0078125, %v60_v47  ;;  %v113_v53 = vmul.f32 %v3455_v44, %v3455_v44  ;;  %v3019_v41 = vld [vmem:[%s5036_s3 + $0x68] ss:$16 sps:$4 sm:$0xff]   ;;  %v3024_v46 = vld [vmem:[%s5036_s3 + $0x40] ss:$16 sps:$4 sm:$0xff]  }
  0x9d   :  { %v3025_v47 = vld [vmem:[%s5036_s3 + $0x48] ss:$16 sps:$4 sm:$0xff]  }
  0x9e   :  { %v3461_v51 = vsub.f32 %v33_v8, %v82_v48  ;;  %132 = vadd.xlane.f32.xlu1 %v111_v45  ;;  %134 = vadd.xlane.f32.xlu0 %v112_v49  ;;  %v3463_v52 = vsub.f32 %v34_v9, %v83_v50  ;;  %v3022_v45 = vld [vmem:[%s5036_s3 + $0x4c] ss:$16 sps:$4 sm:$0xff]   ;;  %v3026_v48 = vld [vmem:[%s5036_s3 + $0x24] ss:$16 sps:$4 sm:$0xff]   ;;  %v3030_v50 = vld [vmem:[%s5036_s3 + $0x20] ss:$16 sps:$4 sm:$0xff]  }
  0x9f   :  { %v62_v54 = vpop.xlane.xlu0 %61  ;;  %v64_v55 = vpop.xlane.xlu1 %63  ;;  %v3028_v49 = vld [vmem:[%s5036_s3 + $0x2c] ss:$16 sps:$4 sm:$0xff]  }
  0xa0   :  { %v84_v56 = vmul.f32 0.0078125, %v62_v54  ;;  %v114_v57 = vmul.f32 %v3461_v51, %v3461_v51  ;;  %v85_v58 = vmul.f32 0.0078125, %v64_v55  ;;  %v115_v61 = vmul.f32 %v3463_v52, %v3463_v52  ;;  %v3032_v54 = vld [vmem:[%s5036_s3 + $0x4] ss:$16 sps:$4 sm:$0xff]   ;;  %v3034_v55 = vld [vmem:[%s5036_s3 + $0xc] ss:$16 sps:$4 sm:$0xff]  }
  0xa2   :  { %v3470_v59 = vsub.f32 %v3398_v10, %v84_v56  ;;  %136 = vadd.xlane.f32.xlu1 %v113_v53  ;;  %138 = vadd.xlane.f32.xlu0 %v114_v57  ;;  %v3473_v60 = vsub.f32 %v3403_v11, %v85_v58  ;;  %v2996_v10 = vld [vmem:[%s5036_s3 + $0xc4] ss:$16 sps:$4 sm:$0xff]   ;;  %v2998_v11 = vld [vmem:[%s5036_s3 + $0xcc] ss:$16 sps:$4 sm:$0xff]   ;;  %v3031_v53 = vld [vmem:[%s5036_s3 + $0x28] ss:$16 sps:$4 sm:$0xff]  }
  0xa3   :  { %v66_v63 = vpop.xlane.xlu0 %65  ;;  %v68_v0 = vpop.xlane.xlu1 %67  ;;  %624 = vmatprep.subr.bf16.mxu0 %v2996_v10  ;;  %737 = vmatprep.subr.bf16.mxu1 %v2998_v11  ;;  %v3036_v56 = vld [vmem:[%s5036_s3] ss:$16 sps:$4 sm:$0xff]   ;;  %v3037_v57 = vld [vmem:[%s5036_s3 + $0x8] ss:$16 sps:$4 sm:$0xff]   ;;  %v3334_v58 = vmov 0  }
  0xa4   :  { %v86_v2 = vmul.f32 0.0078125, %v66_v63  ;;  %v116_v3 = vmul.f32 %v3470_v59, %v3470_v59  ;;  %v87_v4 = vmul.f32 0.0078125, %v68_v0  ;;  %v117_v9 = vmul.f32 %v3473_v60, %v3473_v60  ;;  %654 = vmatprep.mubr.bf16.mxu0 %v3334_v58  ;;  %767 = vmatprep.mubr.bf16.mxu1 %v3334_v58 }
  0xa6   :  { %v3492_v7 = vsub.f32 %v3410_v12, %v86_v2  ;;  %140 = vadd.xlane.f32.xlu1 %v115_v61  ;;  %142 = vadd.xlane.f32.xlu0 %v116_v3  ;;  %v3495_v8 = vsub.f32 %v3415_v13, %v87_v4  ;;  %v3000_v12 = vld [vmem:[%s5036_s3 + $0xc0] ss:$16 sps:$4 sm:$0xff]   ;;  %v3001_v13 = vld [vmem:[%s5036_s3 + $0xc8] ss:$16 sps:$4 sm:$0xff]  }
  0xa7   :  { %v70_v16 = vpop.xlane.xlu0 %69  ;;  %v72_v17 = vpop.xlane.xlu1 %71  ;;  %625 = vmatpush1.bf16.msra.mxu0 %v3000_v12  ;;  %738 = vmatpush1.bf16.msra.mxu1 %v3001_v13 }
  0xa8   :  { %v88_v18 = vmul.f32 0.0078125, %v70_v16  ;;  %v118_v19 = vmul.f32 %v3492_v7, %v3492_v7  ;;  %v89_v22 = vmul.f32 0.0078125, %v72_v17  ;;  %v119_v25 = vmul.f32 %v3495_v8, %v3495_v8  ;;  %626 = vmatprep.subr.bf16.mxu0 %v3002_v26  ;;  %739 = vmatprep.subr.bf16.mxu1 %v3004_v29 }
  0xaa   :  { %v3514_v23 = vsub.f32 %v3422_v14, %v88_v18  ;;  %144 = vadd.xlane.f32.xlu1 %v117_v9  ;;  %146 = vadd.xlane.f32.xlu0 %v118_v19  ;;  %v3517_v24 = vsub.f32 %v3427_v15, %v89_v22  ;;  %v3006_v14 = vld [vmem:[%s5036_s3 + $0xa0] ss:$16 sps:$4 sm:$0xff]   ;;  %v3007_v15 = vld [vmem:[%s5036_s3 + $0xa8] ss:$16 sps:$4 sm:$0xff]  }
  0xab   :  { %627 = vmatpush1.bf16.msra.mxu0 %v3006_v14  ;;  %740 = vmatpush1.bf16.msra.mxu1 %v3007_v15 }
  0xac   :  { %v120_v30 = vmul.f32 %v3514_v23, %v3514_v23  ;;  %v121_v31 = vmul.f32 %v3517_v24, %v3517_v24  ;;  %628 = vmatprep.subr.bf16.mxu0 %v3008_v32  ;;  %741 = vmatprep.subr.bf16.mxu1 %v3010_v33 }
  0xae   :  { %148 = vadd.xlane.f32.xlu1 %v119_v25  ;;  %150 = vadd.xlane.f32.xlu0 %v120_v30 }
  0xaf   :  { %629 = vmatpush1.bf16.msra.mxu0 %v3012_v34  ;;  %742 = vmatpush1.bf16.msra.mxu1 %v3013_v37 }
  0xb0   :  { %630 = vmatprep.subr.bf16.mxu0 %v3014_v38  ;;  %743 = vmatprep.subr.bf16.mxu1 %v3016_v39 }
  0xb2   :  { %152 = vadd.xlane.f32.xlu1 %v121_v31  ;;  %v3602_v31 = vld [vmem:[%s5037_s1] ss:$0 sm:$0xff] }
  0xb3   :  { %631 = vmatpush1.bf16.msra.mxu0 %v3018_v40  ;;  %744 = vmatpush1.bf16.msra.mxu1 %v3019_v41 }
  0xb4   :  { %632 = vmatprep.subr.bf16.mxu0 %v3020_v42  ;;  %745 = vmatprep.subr.bf16.mxu1 %v3022_v45 }
  0xb7   :  { %633 = vmatpush1.bf16.msra.mxu0 %v3024_v46  ;;  %746 = vmatpush1.bf16.msra.mxu1 %v3025_v47  ;;  %v3609_v46 = vld [vmem:[%s5038_s2] ss:$0 sm:$0xff] }
  0xb8   :  { %634 = vmatprep.subr.bf16.mxu0 %v3026_v48  ;;  %747 = vmatprep.subr.bf16.mxu1 %v3028_v49 }
  0xbb   :  { %635 = vmatpush1.bf16.msra.mxu0 %v3030_v50  ;;  %748 = vmatpush1.bf16.msra.mxu1 %v3031_v53 }
  0xbc   :  { %636 = vmatprep.subr.bf16.mxu0 %v3032_v54  ;;  %749 = vmatprep.subr.bf16.mxu1 %v3034_v55 }
  0xbf   :  { %637 = vmatpush1.bf16.msra.mxu0 %v3036_v56  ;;  %750 = vmatpush1.bf16.msra.mxu1 %v3037_v57 }
 0x11b   :  { %v123_v61 = vpop.xlane.xlu0 %122 }
 0x11c   :  { %v154_v62 = vmul.f32 0.0078125, %v123_v61 }
 0x11e   :  { %v170_v63 = vadd.f32 1e-05, %v154_v62 }
 0x11f   :  { %v125_v0 = vpop.xlane.xlu1 %124  ;;  %v127_v1 = vpop.xlane.xlu0 %126 }
 0x120   :  { %3046 = vrsqrt.f32 %v170_v63  ;;  %v155_v2 = vmul.f32 0.0078125, %v125_v0  ;;  %v156_v3 = vmul.f32 0.0078125, %v127_v1 }
 0x122   :  { %v171_v4 = vadd.f32 1e-05, %v155_v2  ;;  %v172_v5 = vadd.f32 1e-05, %v156_v3 }
 0x123   :  { %v129_v6 = vpop.xlane.xlu1 %128  ;;  %v131_v9 = vpop.xlane.xlu0 %130 }
 0x124   :  { %3048 = vrsqrt.f32 %v171_v4  ;;  %v157_v10 = vmul.f32 0.0078125, %v129_v6  ;;  %v158_v11 = vmul.f32 0.0078125, %v131_v9 }
 0x125   :  { %3050 = vrsqrt.f32 %v172_v5 }
 0x126   :  { %v173_v16 = vadd.f32 1e-05, %v157_v10  ;;  %v174_v17 = vadd.f32 1e-05, %v158_v11 }
 0x127   :  { %v133_v12 = vpop.xlane.xlu1 %132  ;;  %v135_v13 = vpop.xlane.xlu0 %134 }
 0x128   :  { %3052 = vrsqrt.f32 %v173_v16  ;;  %v159_v18 = vmul.f32 0.0078125, %v133_v12  ;;  %v160_v19 = vmul.f32 0.0078125, %v135_v13 }
 0x129   :  { %3054 = vrsqrt.f32 %v174_v17 }
 0x12a   :  { %v175_v22 = vadd.f32 1e-05, %v159_v18  ;;  %v176_v25 = vadd.f32 1e-05, %v160_v19 }
 0x12b   :  { %v137_v26 = vpop.xlane.xlu1 %136  ;;  %v139_v29 = vpop.xlane.xlu0 %138 }
 0x12c   :  { %3056 = vrsqrt.f32 %v175_v22  ;;  %v161_v14 = vmul.f32 0.0078125, %v137_v26  ;;  %v162_v15 = vmul.f32 0.0078125, %v139_v29 }
 0x12d   :  { %v3047_v30 = vpop.eup %3046  ;;  %3058 = vrsqrt.f32 %v176_v25 }
 0x12e   :  { %v202_v32 = vmul.f32 %v3047_v30, %v3431_v20  ;;  %v177_v33 = vadd.f32 1e-05, %v161_v14  ;;  %v178_v34 = vadd.f32 1e-05, %v162_v15 }
 0x12f   :  { %v141_v37 = vpop.xlane.xlu1 %140  ;;  %v143_v38 = vpop.xlane.xlu0 %142 }
 0x130   :  { %3060 = vrsqrt.f32 %v177_v33  ;;  %v163_v39 = vmul.f32 0.0078125, %v141_v37  ;;  %v164_v40 = vmul.f32 0.0078125, %v143_v38  ;;  %v225_v42 = vmul.f32 %v3602_v31, %v202_v32 }
 0x131   :  { %v3049_v41 = vpop.eup %3048  ;;  %3062 = vrsqrt.f32 %v178_v34 }
 0x132   :  { %v3051_v45 = vpop.eup %3050  ;;  %v203_v47 = vmul.f32 %v3049_v41, %v3437_v27  ;;  %v179_v20 = vadd.f32 1e-05, %v163_v39  ;;  %v180_v48 = vadd.f32 1e-05, %v164_v40  ;;  %v248_v61 = vadd.f32 %v3609_v46, %v225_v42 }
 0x133   :  { %v204_v49 = vmul.f32 %v3051_v45, %v3433_v21  ;;  %v145_v50 = vpop.xlane.xlu1 %144  ;;  %v147_v53 = vpop.xlane.xlu0 %146 }
 0x134   :  { %v226_v54 = vmul.f32 %v3602_v31, %v203_v47  ;;  %3064 = vrsqrt.f32 %v179_v20  ;;  %v165_v55 = vmul.f32 0.0078125, %v145_v50  ;;  %v166_v56 = vmul.f32 0.0078125, %v147_v53 }
 0x135   :  { %v3053_v57 = vpop.eup %3052  ;;  %v227_v62 = vmul.f32 %v3602_v31, %v204_v49  ;;  %3066 = vrsqrt.f32 %v180_v48 }
 0x136   :  { %v3055_v63 = vpop.eup %3054  ;;  %v249_v27 = vadd.f32 %v3609_v46, %v226_v54  ;;  %v205_v0 = vmul.f32 %v3053_v57, %v3439_v28  ;;  %v181_v1 = vadd.f32 1e-05, %v165_v55  ;;  %v182_v21 = vadd.f32 1e-05, %v166_v56 }
 0x137   :  { %v206_v2 = vmul.f32 %v3055_v63, %v3445_v35  ;;  %v149_v3 = vpop.xlane.xlu1 %148  ;;  %v151_v4 = vpop.xlane.xlu0 %150  ;;  %v250_v28 = vadd.f32 %v3609_v46, %v227_v62 }
 0x138   :  { %v2945_v5 = vpack.c.bf16 %v249_v27, %v248_v61  ;;  %v228_v6 = vmul.f32 %v3602_v31, %v205_v0  ;;  %3068 = vrsqrt.f32 %v181_v1  ;;  %v167_v9 = vmul.f32 0.0078125, %v149_v3 }
 0x139   :  { %v3057_v10 = vpop.eup %3056  ;;  %v229_v11 = vmul.f32 %v3602_v31, %v206_v2  ;;  %3070 = vrsqrt.f32 %v182_v21  ;;  %v168_v16 = vmul.f32 0.0078125, %v151_v4 }
 0x13a   :  { %v3059_v17 = vpop.eup %3058  ;;  %2946 = vst [vmem:[#allocation2] sm:$0xff] %v2945_v5   ;;  %v251_v12 = vadd.f32 %v3609_v46, %v228_v6  ;;  %v207_v35 = vmul.f32 %v3057_v10, %v3447_v36  ;;  %v183_v13 = vadd.f32 1e-05, %v167_v9 }
 0x13b   :  { %v208_v18 = vmul.f32 %v3059_v17, %v3453_v43  ;;  %v184_v19 = vadd.f32 1e-05, %v168_v16  ;;  %v153_v22 = vpop.xlane.xlu1 %152  ;;  %v252_v15 = vadd.f32 %v3609_v46, %v229_v11 }
 0x13c   :  { %v2950_v25 = vpack.c.bf16 %v251_v12, %v250_v28  ;;  %v230_v26 = vmul.f32 %v3602_v31, %v207_v35  ;;  %3072 = vrsqrt.f32 %v183_v13  ;;  %v169_v29 = vmul.f32 0.0078125, %v153_v22  ;;  %v392_v22 = vld [vmem:[%s5039_s4] sm:$0xf] }
 0x13d   :  { %v3061_v14 = vpop.eup %3060  ;;  %3074 = vrsqrt.f32 %v184_v19  ;;  %v231_v36 = vmul.f32 %v3602_v31, %v208_v18  ;;  %v394_v35 = vlaneseq }
 0x13e   :  { %v3063_v30 = vpop.eup %3062  ;;  %2982 = vst [vmem:[#allocation2 + $0x8] sm:$0xff] %v2950_v25   ;;  %v253_v32 = vadd.f32 %v3609_v46, %v230_v26  ;;  %v209_v33 = vmul.f32 %v3061_v14, %v3455_v44  ;;  %v185_v43 = vadd.f32 1e-05, %v169_v29 }
 0x13f   :  { %v210_v34 = vmul.f32 %v3063_v30, %v3461_v51  ;;  %v254_v42 = vadd.f32 %v3609_v46, %v231_v36  ;;  %v395_v13 = vshrl.u32 %v394_v35, 7 }
 0x140   :  { %v2955_v37 = vpack.c.bf16 %v253_v32, %v252_v15  ;;  %v232_v38 = vmul.f32 %v3602_v31, %v209_v33  ;;  %3076 = vrsqrt.f32 %v185_v43 }
 0x141   :  { %v3065_v39 = vpop.eup %3064  ;;  %v3038_v40 = vld [vmem:[#allocation2] sm:$0xff]   ;;  %v233_v47 = vmul.f32 %v3602_v31, %v210_v34  ;;  %v396_v18 = vsub.s32 0, %v395_v13  ;;  %v404_v19 = vsub.s32 2, %v395_v13  ;;  %v400_v25 = vsub.s32 1, %v395_v13 }
 0x142   :  { %v3067_v41 = vpop.eup %3066  ;;  %2983 = vst [vmem:[#allocation2 + $0x10] sm:$0xff] %v2955_v37   ;;  %v255_v45 = vadd.f32 %v3609_v46, %v232_v38  ;;  %v211_v20 = vmul.f32 %v3065_v39, %v3463_v52  ;;  %655 = vmatmul.mubr.bf16.vlgmr.msra.gmra.mxu0 %v3038_v40  ;;  %768 = vmatmul.mubr.bf16.vlgmr.msra.gmra.mxu1 %v3038_v40  ;;  %v408_v26 = vsub.s32 3, %v395_v13 }
 0x143   :  { %v212_v44 = vmul.f32 %v3067_v41, %v3470_v59  ;;  %664 = vmatprep.mubr.bf16.mxu0 %v3334_v58  ;;  %777 = vmatprep.mubr.bf16.mxu1 %v3334_v58  ;;  %v256_v53 = vadd.f32 %v3609_v46, %v233_v47  ;;  %v3674_v29 = vrot.slane %v392_v22, %v396_v18 }
 0x144   :  { %v2960_v51 = vpack.c.bf16 %v255_v45, %v254_v42  ;;  %v234_v48 = vmul.f32 %v3602_v31, %v211_v20  ;;  %v3676_v14 = vrot.slane %v392_v22, %v404_v19  ;;  %v3680_v32 = vrot.slane %v392_v22, %v408_v26 }
 0x145   :  { %v3069_v49 = vpop.eup %3068  ;;  %v235_v52 = vmul.f32 %v3602_v31, %v212_v44  ;;  %v3039_v62 = vld [vmem:[#allocation2 + $0x8] sm:$0xff]  }
 0x146   :  { %v3071_v50 = vpop.eup %3070  ;;  %2984 = vst [vmem:[#allocation2 + $0x18] sm:$0xff] %v2960_v51   ;;  %v257_v54 = vadd.f32 %v3609_v46, %v234_v48  ;;  %v213_v59 = vmul.f32 %v3069_v49, %v3473_v60 }
 0x147   :  { %v214_v55 = vmul.f32 %v3071_v50, %v3492_v7  ;;  %v258_v27 = vadd.f32 %v3609_v46, %v235_v52 }
 0x148   :  { %v2965_v56 = vpack.c.bf16 %v257_v54, %v256_v53  ;;  %v236_v57 = vmul.f32 %v3602_v31, %v213_v59 }
 0x149   :  { %v3073_v61 = vpop.eup %3072  ;;  %v237_v1 = vmul.f32 %v3602_v31, %v214_v55  ;;  %v3040_v10 = vld [vmem:[#allocation2 + $0x10] sm:$0xff]  }
 0x14a   :  { %v3075_v63 = vpop.eup %3074  ;;  %2985 = vst [vmem:[#allocation2 + $0x20] sm:$0xff] %v2965_v56   ;;  %v259_v0 = vadd.f32 %v3609_v46, %v236_v57  ;;  %v215_v21 = vmul.f32 %v3073_v61, %v3495_v8  ;;  %665 = vmatmul.mubr.bf16.gmra.mxu0 %v3039_v62  ;;  %778 = vmatmul.mubr.bf16.gmra.mxu1 %v3039_v62 }
 0x14b   :  { %v216_v2 = vmul.f32 %v3075_v63, %v3514_v23  ;;  %674 = vmatprep.mubr.bf16.mxu0 %v3334_v58  ;;  %787 = vmatprep.mubr.bf16.mxu1 %v3334_v58  ;;  %v260_v4 = vadd.f32 %v3609_v46, %v237_v1 }
 0x14c   :  { %v2970_v60 = vpack.c.bf16 %v259_v0, %v258_v27  ;;  %v238_v7 = vmul.f32 %v3602_v31, %v215_v21 }
 0x14d   :  { %v3077_v3 = vpop.eup %3076  ;;  %v239_v6 = vmul.f32 %v3602_v31, %v216_v2  ;;  %v3041_v28 = vld [vmem:[#allocation2 + $0x18] sm:$0xff]  }
 0x14e   :  { %2986 = vst [vmem:[#allocation2 + $0x28] sm:$0xff] %v2970_v60   ;;  %v261_v5 = vadd.f32 %v3609_v46, %v238_v7  ;;  %v217_v8 = vmul.f32 %v3077_v3, %v3517_v24 }
 0x14f   :  { %v262_v11 = vadd.f32 %v3609_v46, %v239_v6 }
 0x150   :  { %v2975_v23 = vpack.c.bf16 %v261_v5, %v260_v4  ;;  %v240_v9 = vmul.f32 %v3602_v31, %v217_v8 }
 0x151   :  { %v3042_v24 = vld [vmem:[#allocation2 + $0x20] sm:$0xff]  }
 0x152   :  { %2987 = vst [vmem:[#allocation2 + $0x30] sm:$0xff] %v2975_v23   ;;  %v263_v16 = vadd.f32 %v3609_v46, %v240_v9  ;;  %675 = vmatmul.mubr.bf16.gmra.mxu0 %v3040_v10  ;;  %788 = vmatmul.mubr.bf16.gmra.mxu1 %v3040_v10 }
 0x153   :  { %684 = vmatprep.mubr.bf16.mxu0 %v3334_v58  ;;  %797 = vmatprep.mubr.bf16.mxu1 %v3334_v58 }
 0x154   :  { %v2980_v17 = vpack.c.bf16 %v263_v16, %v262_v11 }
 0x155   :  { %v3043_v31 = vld [vmem:[#allocation2 + $0x28] sm:$0xff]  }
 0x156   :  { %2988 = vst [vmem:[#allocation2 + $0x38] sm:$0xff] %v2980_v17  }
 0x159   :  { %v3044_v46 = vld [vmem:[#allocation2 + $0x30] sm:$0xff]  }
 0x15a   :  { %685 = vmatmul.mubr.bf16.gmra.mxu0 %v3041_v28  ;;  %798 = vmatmul.mubr.bf16.gmra.mxu1 %v3041_v28 }
 0x15b   :  { %694 = vmatprep.mubr.bf16.mxu0 %v3334_v58  ;;  %807 = vmatprep.mubr.bf16.mxu1 %v3334_v58 }
 0x15d   :  { %v3045_v12 = vld [vmem:[#allocation2 + $0x38] sm:$0xff]  }
 0x162   :  { %695 = vmatmul.mubr.bf16.gmra.mxu0 %v3042_v24  ;;  %808 = vmatmul.mubr.bf16.gmra.mxu1 %v3042_v24 }
 0x163   :  { %704 = vmatprep.mubr.bf16.mxu0 %v3334_v58  ;;  %817 = vmatprep.mubr.bf16.mxu1 %v3334_v58 }
 0x16a   :  { %705 = vmatmul.mubr.bf16.gmra.mxu0 %v3043_v31  ;;  %818 = vmatmul.mubr.bf16.gmra.mxu1 %v3043_v31 }
 0x16b   :  { %714 = vmatprep.mubr.bf16.mxu0 %v3334_v58  ;;  %827 = vmatprep.mubr.bf16.mxu1 %v3334_v58 }
 0x172   :  { %715 = vmatmul.mubr.bf16.gmra.mxu0 %v3044_v46  ;;  %828 = vmatmul.mubr.bf16.gmra.mxu1 %v3044_v46 }
 0x173   :  { %724 = vmatprep.mubr.bf16.mxu0 %v3334_v58  ;;  %837 = vmatprep.mubr.bf16.mxu1 %v3334_v58  ;;  %v3678_v58 = vrot.slane %v392_v22, %v400_v25 }
 0x17a   :  { %725 = vmatmul.mubr.bf16.gmra.mxu0 %v3045_v12  ;;  %838 = vmatmul.mubr.bf16.gmra.mxu1 %v3045_v12 }
 0x202   :  { %v656_v15 = vpop.f32.mrf.mxu0  ;;  %v769_v30 = vpop.f32.mrf.mxu1 }
 0x203   :  { %v657_v36 = vadd.f32 %v656_v15, %v3674_v29  ;;  %v770_v33 = vadd.f32 %v769_v30, %v3676_v14 }
 0x204   :  { %v658_v43 = vpop.f32.mrf.mxu0  ;;  %v771_v34 = vpop.f32.mrf.mxu1 }
 0x205   :  { %v3684_v37 = vmul.f32 0.70710677, %v657_v36  ;;  %v3686_v38 = vmul.f32 0.70710677, %v770_v33  ;;  %v659_v39 = vadd.f32 %v658_v43, %v3678_v58  ;;  %v3690_v40 = vadd.f32 %v771_v34, %v3680_v32 }
 0x206   :  { %v660_v48 = vpop.f32.mrf.mxu0  ;;  %v773_v62 = vpop.f32.mrf.mxu1  ;;  %v3720_v9 = vmul.f32 0.5, %v657_v36  ;;  %v3727_v25 = vmul.f32 0.5, %v770_v33 }
 0x207   :  { %v912_v41 = vand.u32 2147483647, %v3684_v37  ;;  %v914_v42 = vand.u32 2147483647, %v3686_v38  ;;  %v3694_v45 = vmul.f32 0.70710677, %v659_v39  ;;  %v3702_v61 = vadd.f32 %v660_v48, %v3674_v29 }
 0x208   :  { %v3697_v47 = vmul.f32 0.70710677, %v3690_v40  ;;  %v662_v63 = vpop.f32.mrf.mxu0  ;;  %v3708_v60 = vadd.f32 %v773_v62, %v3676_v14  ;;  %v775_v23 = vpop.f32.mrf.mxu1  ;;  %v3729_v26 = vmul.f32 0.5, %v659_v39  ;;  %vm2192_vm0 = vcmp.ge.f32.partialorder %v3684_v37, 0.0 }
 0x209   :  { %v976_v20 = vmul.f32 0.3275911, %v912_v41  ;;  %v1808_v44 = vsub.f32 0.0, %v912_v41  ;;  %v978_v51 = vmul.f32 0.3275911, %v914_v42  ;;  %v1810_v52 = vsub.f32 0.0, %v914_v42 }
 0x20a   :  { %v913_v49 = vand.u32 2147483647, %v3694_v45  ;;  %v915_v50 = vand.u32 2147483647, %v3697_v47  ;;  %v3705_v21 = vmul.f32 0.70710677, %v3702_v61  ;;  %v3711_v7 = vadd.f32 %v662_v63, %v3678_v58  ;;  %v666_v22 = vpop.f32.mrf.mxu0 }
 0x20b   :  { %v1040_v53 = vadd.f32 1.0, %v976_v20  ;;  %v1042_v54 = vadd.f32 1.0, %v978_v51  ;;  %v1872_v59 = vmul.f32 %v1808_v44, %v912_v41  ;;  %v1874_v0 = vmul.f32 %v1810_v52, %v914_v42  ;;  %v779_v20 = vpop.f32.mrf.mxu1 }
 0x20c   :  { %v977_v55 = vmul.f32 0.3275911, %v913_v49  ;;  %v979_v56 = vmul.f32 0.3275911, %v915_v50  ;;  %v1809_v57 = vsub.f32 0.0, %v913_v49  ;;  %v1811_v4 = vsub.f32 0.0, %v915_v50 }
 0x20d   :  { %3078 = vrcp.f32 %v1040_v53  ;;  %v1936_v2 = vmul.f32 1.442695, %v1872_v59  ;;  %v916_v5 = vand.u32 2147483647, %v3705_v21  ;;  %v3715_v6 = vmul.f32 0.70710677, %v3708_v60 }
 0x20e   :  { %3080 = vrcp.f32 %v1042_v54  ;;  %v1041_v27 = vadd.f32 1.0, %v977_v55  ;;  %v1043_v1 = vadd.f32 1.0, %v979_v56  ;;  %v1873_v3 = vmul.f32 %v1809_v57, %v913_v49 }
 0x20f   :  { %v3718_v8 = vmul.f32 0.70710677, %v3711_v7  ;;  %v1940_v10 = vmul.f32 1.442695, %v1874_v0  ;;  %v980_v11 = vmul.f32 0.3275911, %v916_v5  ;;  %v1875_v31 = vmul.f32 %v1811_v4, %v915_v50 }
 0x210   :  { %3082 = vrcp.f32 %v1041_v27  ;;  %v1812_v16 = vsub.f32 0.0, %v916_v5  ;;  %v918_v17 = vand.u32 2147483647, %v3715_v6  ;;  %v1938_v24 = vmul.f32 1.442695, %v1873_v3 }
 0x211   :  { %3084 = vrcp.f32 %v1043_v1  ;;  %v917_v28 = vand.u32 2147483647, %v3718_v8  ;;  %v1044_v46 = vadd.f32 1.0, %v980_v11  ;;  %v3725_v12 = vadd.f32 %v775_v23, %v3680_v32 }
 0x212   :  { %3086 = vpow2.f32 %v1936_v2  ;;  %v982_v35 = vmul.f32 0.3275911, %v918_v17  ;;  %v1814_v13 = vsub.f32 0.0, %v918_v17  ;;  %v1876_v30 = vmul.f32 %v1812_v16, %v916_v5 }
 0x213   :  { %v981_v18 = vmul.f32 0.3275911, %v917_v28  ;;  %v1813_v19 = vsub.f32 0.0, %v917_v28  ;;  %3088 = vrcp.f32 %v1044_v46  ;;  %v3732_v15 = vmul.f32 0.70710677, %v3725_v12 }
 0x214   :  { %3090 = vpow2.f32 %v1940_v10  ;;  %v1046_v36 = vadd.f32 1.0, %v982_v35  ;;  %v1878_v34 = vmul.f32 %v1814_v13, %v918_v17  ;;  %v3736_v42 = vadd.f32 %v666_v22, %v3674_v29 }
 0x215   :  { %v1045_v43 = vadd.f32 1.0, %v981_v18  ;;  %3092 = vpow2.f32 %v1938_v24  ;;  %v919_v41 = vand.u32 2147483647, %v3732_v15  ;;  %v1942_v39 = vmul.f32 1.442695, %v1875_v31 }
 0x216   :  { %v3741_v44 = vmul.f32 0.5, %v3690_v40  ;;  %3094 = vrcp.f32 %v1046_v36  ;;  %v1877_v51 = vmul.f32 %v1813_v19, %v917_v28  ;;  %v1944_v52 = vmul.f32 1.442695, %v1876_v30 }
 0x217   :  { %3096 = vrcp.f32 %v1045_v43  ;;  %v983_v50 = vmul.f32 0.3275911, %v919_v41  ;;  %v1815_v53 = vsub.f32 0.0, %v919_v41  ;;  %v3748_v59 = vmul.f32 0.70710677, %v3736_v42 }
 0x218   :  { %v3751_v55 = vadd.f32 %v779_v20, %v3676_v14  ;;  %v1948_v56 = vmul.f32 1.442695, %v1878_v34  ;;  %3098 = vpow2.f32 %v1942_v39  ;;  %v1946_v0 = vmul.f32 1.442695, %v1877_v51 }
 0x219   :  { %v1047_v57 = vadd.f32 1.0, %v983_v50  ;;  %v1879_v62 = vmul.f32 %v1815_v53, %v919_v41  ;;  %v920_v1 = vand.u32 2147483647, %v3748_v59  ;;  %vm2194_vm1 = vcmp.ge.f32.partialorder %v3686_v38, 0.0 }
 0x21a   :  { %v3738_v33 = vpop.eup %3078  ;;  %v3762_v16 = vmul.f32 0.70710677, %v3751_v55  ;;  %vm2193_vm2 = vcmp.ge.f32.partialorder %v3694_v45, 0.0  ;;  %vm2195_vm3 = vcmp.ge.f32.partialorder %v3697_v47, 0.0  ;;  %vm2196_vm4 = vcmp.ge.f32.partialorder %v3705_v21, 0.0 }
 0x21b   :  { %v3743_v48 = vpop.eup %3080  ;;  %v1232_v49 = vmul.f32 1.0614054, %v3738_v33  ;;  %3100 = vrcp.f32 %v1047_v57  ;;  %v1950_v4 = vmul.f32 1.442695, %v1879_v62  ;;  %v984_v10 = vmul.f32 0.3275911, %v920_v1 }
 0x21c   :  { %v1234_v54 = vmul.f32 1.0614054, %v3743_v48  ;;  %v1816_v11 = vsub.f32 0.0, %v920_v1  ;;  %3102 = vpow2.f32 %v1944_v52  ;;  %v922_v13 = vand.u32 2147483647, %v3762_v16 }
 0x21d   :  { %v1296_v40 = vadd.f32 -1.4531521, %v1232_v49  ;;  %v3753_v63 = vpop.eup %3082  ;;  %3104 = vpow2.f32 %v1948_v56  ;;  %v1048_v35 = vadd.f32 1.0, %v984_v10  ;;  %vm2197_vm5 = vcmp.ge.f32.partialorder %v3718_v8, 0.0 }
 0x21e   :  { %v1298_v27 = vadd.f32 -1.4531521, %v1234_v54  ;;  %v1233_v3 = vmul.f32 1.0614054, %v3753_v63  ;;  %v3758_v5 = vpop.eup %3084  ;;  %3106 = vpow2.f32 %v1946_v0  ;;  %v1880_v43 = vmul.f32 %v1816_v11, %v920_v1 }
 0x21f   :  { %v1360_v2 = vmul.f32 %v3738_v33, %v1296_v40  ;;  %v3087_v17 = vpop.eup %3086  ;;  %v1235_v31 = vmul.f32 1.0614054, %v3758_v5  ;;  %3108 = vpow2.f32 %v1950_v4  ;;  %v986_v34 = vmul.f32 0.3275911, %v922_v13 }
 0x220   :  { %v1362_v23 = vmul.f32 %v3743_v48, %v1298_v27  ;;  %v1297_v24 = vadd.f32 -1.4531521, %v1233_v3  ;;  %v3768_v30 = vpop.eup %3088  ;;  %3110 = vrcp.f32 %v1048_v35  ;;  %v1818_v52 = vsub.f32 0.0, %v922_v13 }
 0x221   :  { %v1424_v28 = vadd.f32 1.4214138, %v1360_v2  ;;  %v1299_v22 = vadd.f32 -1.4531521, %v1235_v31  ;;  %v3091_v41 = vpop.eup %3090  ;;  %v1236_v49 = vmul.f32 1.0614054, %v3768_v30 }
 0x222   :  { %v1426_v46 = vadd.f32 1.4214138, %v1362_v23  ;;  %v1361_v19 = vmul.f32 %v3753_v63, %v1297_v24  ;;  %v3093_v50 = vpop.eup %3092  ;;  %v1050_v54 = vadd.f32 1.0, %v986_v34  ;;  %v3781_v3 = vmul.f32 1.442695, %v1880_v43 }
 0x223   :  { %v1488_v18 = vmul.f32 %v3738_v33, %v1424_v28  ;;  %v1363_v51 = vmul.f32 %v3758_v5, %v1299_v22  ;;  %v3773_v40 = vpop.eup %3094  ;;  %v1300_v27 = vadd.f32 -1.4531521, %v1236_v49  ;;  %v668_v28 = vpop.f32.mrf.mxu0  ;;  %v1882_v35 = vmul.f32 %v1818_v52, %v922_v13 }
 0x224   :  { %v1490_v36 = vmul.f32 %v3743_v48, %v1426_v46  ;;  %v1425_v39 = vadd.f32 1.4214138, %v1361_v19  ;;  %v3777_v0 = vpop.eup %3096  ;;  %v1238_v2 = vmul.f32 1.0614054, %v3773_v40  ;;  %3112 = vrcp.f32 %v1050_v54 }
 0x225   :  { %v1552_v20 = vadd.f32 -0.28449672, %v1488_v18  ;;  %v1427_v62 = vadd.f32 1.4214138, %v1363_v51  ;;  %v1364_v11 = vmul.f32 %v3768_v30, %v1300_v27  ;;  %v1237_v46 = vmul.f32 1.0614054, %v3777_v0  ;;  %v3099_v18 = vpop.eup %3098 }
 0x226   :  { %v1554_v53 = vadd.f32 -0.28449672, %v1490_v36  ;;  %v1489_v57 = vmul.f32 %v3753_v63, %v1425_v39  ;;  %v1302_v31 = vadd.f32 -1.4531521, %v1238_v2  ;;  %v3795_v49 = vadd.f32 %v668_v28, %v3678_v58 }
 0x227   :  { %v1616_v56 = vmul.f32 %v3738_v33, %v1552_v20  ;;  %v1491_v10 = vmul.f32 %v3758_v5, %v1427_v62  ;;  %v1428_v43 = vadd.f32 1.4214138, %v1364_v11  ;;  %v1301_v51 = vadd.f32 -1.4531521, %v1237_v46 }
 0x228   :  { %v1618_v1 = vmul.f32 %v3743_v48, %v1554_v53  ;;  %v1553_v23 = vadd.f32 -0.28449672, %v1489_v57  ;;  %v3790_v34 = vpop.eup %3100  ;;  %v1366_v39 = vmul.f32 %v3773_v40, %v1302_v31  ;;  %v1956_v37 = vmul.f32 1.442695, %v1882_v35 }
 0x229   :  { %v1680_v4 = vadd.f32 0.2548296, %v1616_v56  ;;  %v1555_v36 = vadd.f32 -0.28449672, %v1491_v10  ;;  %v1492_v54 = vmul.f32 %v3768_v30, %v1428_v43  ;;  %v3103_v52 = vpop.eup %3102  ;;  %v1365_v62 = vmul.f32 %v3777_v0, %v1301_v51 }
 0x22a   :  { %v1682_v24 = vadd.f32 0.2548296, %v1618_v1  ;;  %v1617_v22 = vmul.f32 %v3753_v63, %v1553_v23  ;;  %v1430_v57 = vadd.f32 1.4214138, %v1366_v39  ;;  %v3105_v27 = vpop.eup %3104  ;;  %3114 = vpow2.f32 %v3781_v3  ;;  %v781_v3 = vpop.f32.mrf.mxu1 }
 0x22b   :  { %v1744_v19 = vmul.f32 %v3738_v33, %v1680_v4  ;;  %v1619_v33 = vmul.f32 %v3758_v5, %v1555_v36  ;;  %v3107_v23 = vpop.eup %3106  ;;  %3116 = vpow2.f32 %v1956_v37  ;;  %vm2198_vm6 = vcmp.ge.f32.partialorder %v3715_v6, 0.0 }
 0x22c   :  { %v1746_v20 = vmul.f32 %v3743_v48, %v1682_v24  ;;  %v1681_v53 = vadd.f32 0.2548296, %v1617_v22  ;;  %v1239_v48 = vmul.f32 1.0614054, %v3790_v34  ;;  %v1494_v11 = vmul.f32 %v3773_v40, %v1430_v57  ;;  %v3805_v24 = vpop.eup %3108 }
 0x22d   :  { %v2064_v13 = vmul.f32 %v3087_v17, %v1744_v19  ;;  %v1683_v4 = vadd.f32 0.2548296, %v1619_v33  ;;  %v1556_v17 = vadd.f32 -0.28449672, %v1492_v54  ;;  %v3811_v39 = vpop.eup %3110  ;;  %vm2199_vm7 = vcmp.ge.f32.partialorder %v3732_v15, 0.0 }
 0x22e   :  { %v2066_v56 = vmul.f32 %v3091_v41, %v1746_v20  ;;  %v1745_v2 = vmul.f32 %v3753_v63, %v1681_v53  ;;  %v1429_v41 = vadd.f32 1.4214138, %v1365_v62  ;;  %v1303_v28 = vadd.f32 -1.4531521, %v1239_v48 }
 0x22f   :  { %v2128_v1 = vsub.f32 1.0, %v2064_v13  ;;  %v1747_v19 = vmul.f32 %v3758_v5, %v1683_v4  ;;  %v1620_v22 = vmul.f32 %v3768_v30, %v1556_v17  ;;  %v1558_v63 = vadd.f32 -0.28449672, %v1494_v11 }
 0x230   :  { %v2130_v10 = vsub.f32 1.0, %v2066_v56  ;;  %v2065_v46 = vmul.f32 %v3093_v50, %v1745_v2  ;;  %v1493_v43 = vmul.f32 %v3777_v0, %v1429_v41  ;;  %v1367_v20 = vmul.f32 %v3790_v34, %v1303_v28 }
 0x231   :  { %v2256_v31 = vsub.f32 0.0, %v2128_v1  ;;  %v2067_v53 = vmul.f32 %v3099_v18, %v1747_v19  ;;  %v1684_v33 = vadd.f32 0.2548296, %v1620_v22  ;;  %v1622_v50 = vmul.f32 %v3773_v40, %v1558_v63  ;;  %v3818_v57 = vpop.eup %3112 }
 0x232   :  { %v2258_v36 = vsub.f32 0.0, %v2130_v10  ;;  %v2129_v13 = vsub.f32 1.0, %v2065_v46  ;;  %v1557_v56 = vadd.f32 -0.28449672, %v1493_v43  ;;  %v1431_v17 = vadd.f32 1.4214138, %v1367_v20 }
 0x233   :  { %v2320_v51 = vsel %vm2192_vm0, %v2128_v1, %v2256_v31  ;;  %v2131_v48 = vsub.f32 1.0, %v2067_v53  ;;  %v1748_v2 = vmul.f32 %v3768_v30, %v1684_v33  ;;  %v1686_v4 = vadd.f32 0.2548296, %v1622_v50 }
 0x234   :  { %v2448_v54 = vadd.f32 1.0, %v2320_v51  ;;  %v2322_v5 = vsel %vm2194_vm1, %v2130_v10, %v2258_v36  ;;  %v2257_v62 = vsub.f32 0.0, %v2129_v13  ;;  %v1621_v18 = vmul.f32 %v3777_v0, %v1557_v56 }
 0x235   :  { %v2450_v1 = vadd.f32 1.0, %v2322_v5  ;;  %v2259_v11 = vsub.f32 0.0, %v2131_v48  ;;  %v2068_v41 = vmul.f32 %v3103_v52, %v1748_v2  ;;  %v1750_v31 = vmul.f32 %v3773_v40, %v1686_v4 }
 0x236   :  { %v2512_v38 = vmul.f32 %v2448_v54, %v3720_v9  ;;  %v2321_v10 = vsel %vm2193_vm2, %v2129_v13, %v2257_v62  ;;  %v1685_v46 = vadd.f32 0.2548296, %v1621_v18  ;;  %v1495_v30 = vmul.f32 %v3790_v34, %v1431_v17 }
 0x237   :  { %v2449_v28 = vadd.f32 1.0, %v2321_v10  ;;  %v2323_v35 = vsel %vm2195_vm3, %v2131_v48, %v2259_v11  ;;  %v2132_v19 = vsub.f32 1.0, %v2068_v41  ;;  %v1240_v22 = vmul.f32 1.0614054, %v3811_v39 }
 0x238   :  { %v1242_v36 = vmul.f32 1.0614054, %v3818_v57  ;;  %v2451_v45 = vadd.f32 1.0, %v2323_v35  ;;  %v2070_v63 = vmul.f32 %v3105_v27, %v1750_v31  ;;  %v1749_v52 = vmul.f32 %v3777_v0, %v1685_v46 }
 0x239   :  { %v2513_v9 = vmul.f32 %v2449_v28, %v3729_v26  ;;  %v2514_v43 = vmul.f32 %v2450_v1, %v3727_v25  ;;  %v2260_v40 = vsub.f32 0.0, %v2132_v19  ;;  %v1559_v20 = vadd.f32 -0.28449672, %v1495_v30 }
 0x23a   :  { %v1304_v51 = vadd.f32 -1.4531521, %v1240_v22  ;;  %v2515_v47 = vmul.f32 %v2451_v45, %v3741_v44  ;;  %v2134_v53 = vsub.f32 1.0, %v2070_v63  ;;  %v2069_v33 = vmul.f32 %v3107_v23, %v1749_v52 }
 0x23b   :  { %v2910_v13 = vpack.c.bf16 %v2513_v9, %v2512_v38  ;;  %v1623_v54 = vmul.f32 %v3790_v34, %v1559_v20  ;;  %v1306_v26 = vadd.f32 -1.4531521, %v1242_v36  ;;  %v2324_v0 = vsel %vm2196_vm4, %v2132_v19, %v2260_v40 }
 0x23c   :  { %v1368_v5 = vmul.f32 %v3811_v39, %v1304_v51  ;;  %v2911_v25 = vpack.c.bf16 %v2515_v47, %v2514_v43  ;;  %v2388_v27 = vmul.f32 0.5, %v3702_v61  ;;  %v2133_v44 = vsub.f32 1.0, %v2069_v33  ;;  %v783_v47 = vpop.f32.mrf.mxu1 }
 0x23d   :  { %2768 = vst [vmem:[%s5040_s5] sm:$0xff] %v2910_v13  ;;  %v1687_v50 = vadd.f32 0.2548296, %v1623_v54  ;;  %v1370_v56 = vmul.f32 %v3818_v57, %v1306_v26  ;;  %v3847_v62 = vmul.f32 0.70710677, %v3795_v49  ;;  %v2262_v48 = vsub.f32 0.0, %v2134_v53 }
 0x23e   :  { %v1432_v23 = vadd.f32 1.4214138, %v1368_v5  ;;  %2769 = vst [vmem:[%s5040_s5 + $0x8] sm:$0xff] %v2911_v25  ;;  %v2261_v21 = vsub.f32 0.0, %v2133_v44  ;;  %v2452_v2 = vadd.f32 1.0, %v2324_v0  ;;  %v2389_v17 = vmul.f32 0.5, %v3711_v7 }
 0x23f   :  { %v1751_v61 = vmul.f32 %v3790_v34, %v1687_v50  ;;  %v1434_v4 = vadd.f32 1.4214138, %v1370_v56  ;;  %v921_v38 = vand.u32 2147483647, %v3847_v62  ;;  %v3858_v10 = vadd.f32 %v781_v3, %v3680_v32 }
 0x240   :  { %v1496_v1 = vmul.f32 %v3811_v39, %v1432_v23  ;;  %v2325_v18 = vsel %vm2197_vm5, %v2133_v44, %v2261_v21  ;;  %v2326_v41 = vsel %vm2198_vm6, %v2134_v53, %v2262_v48  ;;  %v2516_v46 = vmul.f32 %v2452_v2, %v2388_v27  ;;  %v3115_v53 = vpop.eup %3114 }
 0x241   :  { %v2453_v11 = vadd.f32 1.0, %v2325_v18  ;;  %v2071_v8 = vmul.f32 %v3805_v24, %v1751_v61  ;;  %v1498_v34 = vmul.f32 %v3818_v57, %v1434_v4  ;;  %v985_v28 = vmul.f32 0.3275911, %v921_v38  ;;  %v670_v24 = vpop.f32.mrf.mxu0  ;;  %v3117_v23 = vpop.eup %3116 }
 0x242   :  { %v1560_v37 = vadd.f32 -0.28449672, %v1496_v1  ;;  %v3864_v31 = vmul.f32 0.70710677, %v3858_v10  ;;  %v2390_v19 = vmul.f32 0.5, %v3708_v60  ;;  %v2454_v9 = vadd.f32 1.0, %v2326_v41  ;;  %v785_v4 = vpop.f32.mrf.mxu1 }
 0x243   :  { %v2517_v7 = vmul.f32 %v2453_v11, %v2389_v17  ;;  %v2135_v30 = vsub.f32 1.0, %v2071_v8  ;;  %v1562_v22 = vadd.f32 -0.28449672, %v1498_v34  ;;  %v1049_v6 = vadd.f32 1.0, %v985_v28 }
 0x244   :  { %v1624_v35 = vmul.f32 %v3811_v39, %v1560_v37  ;;  %v923_v36 = vand.u32 2147483647, %v3864_v31  ;;  %v1817_v51 = vsub.f32 0.0, %v921_v38  ;;  %v671_v13 = vadd.f32 %v670_v24, %v3674_v29 }
 0x245   :  { %v2912_v45 = vpack.c.bf16 %v2517_v7, %v2516_v46  ;;  %v2263_v63 = vsub.f32 0.0, %v2135_v30  ;;  %v1626_v43 = vmul.f32 %v3818_v57, %v1562_v22  ;;  %3118 = vrcp.f32 %v1049_v6 }
 0x246   :  { %v1688_v52 = vadd.f32 0.2548296, %v1624_v35  ;;  %v987_v40 = vmul.f32 0.3275911, %v923_v36  ;;  %v2391_v33 = vmul.f32 0.5, %v3725_v12  ;;  %v2518_v26 = vmul.f32 %v2454_v9, %v2390_v19  ;;  %v672_v12 = vpop.f32.mrf.mxu0 }
 0x247   :  { %2770 = vst [vmem:[%s5040_s5 + $0x10] sm:$0xff] %v2912_v45  ;;  %v2327_v60 = vsel %vm2199_vm7, %v2135_v30, %v2263_v63  ;;  %v1690_v15 = vadd.f32 0.2548296, %v1626_v43  ;;  %v1819_v0 = vsub.f32 0.0, %v923_v36  ;;  %v3877_v27 = vmul.f32 0.70710677, %v671_v13  ;;  %v789_v63 = vpop.f32.mrf.mxu1 }
 0x248   :  { %v1752_v20 = vmul.f32 %v3811_v39, %v1688_v52  ;;  %v2455_v54 = vadd.f32 1.0, %v2327_v60  ;;  %v1051_v5 = vadd.f32 1.0, %v987_v40  ;;  %v784_v39 = vadd.f32 %v783_v47, %v3676_v14 }
 0x249   :  { %v1754_v50 = vmul.f32 %v3818_v57, %v1690_v15  ;;  %v1881_v3 = vmul.f32 %v1817_v51, %v921_v38  ;;  %v924_v48 = vand.u32 2147483647, %v3877_v27  ;;  %v2392_v57 = vmul.f32 0.5, %v3736_v42 }
 0x24a   :  { %v2072_v25 = vmul.f32 %v3115_v53, %v1752_v20  ;;  %v2519_v44 = vmul.f32 %v2455_v54, %v2391_v33  ;;  %3120 = vrcp.f32 %v1051_v5  ;;  %v3882_v2 = vmul.f32 0.70710677, %v784_v39 }
 0x24b   :  { %v2074_v61 = vmul.f32 %v3117_v23, %v1754_v50  ;;  %v988_v1 = vmul.f32 0.3275911, %v924_v48  ;;  %v1883_v18 = vmul.f32 %v1819_v0, %v923_v36  ;;  %v673_v38 = vadd.f32 %v672_v12, %v3678_v58 }
 0x24c   :  { %v2136_v56 = vsub.f32 1.0, %v2072_v25  ;;  %v2913_v21 = vpack.c.bf16 %v2519_v44, %v2518_v26  ;;  %v926_v17 = vand.u32 2147483647, %v3882_v2  ;;  %vm2200_vm8 = vcmp.ge.f32.partialorder %v3748_v59, 0.0 }
 0x24d   :  { %v1954_v8 = vmul.f32 1.442695, %v1881_v3  ;;  %v1052_v37 = vadd.f32 1.0, %v988_v1  ;;  %vm2202_vm9 = vcmp.ge.f32.partialorder %v3762_v16, 0.0  ;;  %v3893_v41 = vmul.f32 0.5, %v3751_v55 }
 0x24e   :  { %2771 = vst [vmem:[%s5040_s5 + $0x18] sm:$0xff] %v2913_v21  ;;  %v2264_v11 = vsub.f32 0.0, %v2136_v56  ;;  %v990_v34 = vmul.f32 0.3275911, %v926_v17  ;;  %v3896_v28 = vadd.f32 %v785_v4, %v3680_v32  ;;  %v2138_v42 = vsub.f32 1.0, %v2074_v61 }
 0x24f   :  { %3122 = vrcp.f32 %v1052_v37  ;;  %v1820_v46 = vsub.f32 0.0, %v924_v48  ;;  %v3898_v7 = vmul.f32 0.70710677, %v673_v38  ;;  %v3901_v30 = vmul.f32 0.5, %v3795_v49 }
 0x250   :  { %v1958_v35 = vmul.f32 1.442695, %v1883_v18  ;;  %v3904_v19 = vmul.f32 0.5, %v3858_v10  ;;  %v1054_v22 = vadd.f32 1.0, %v990_v34  ;;  %v2328_v55 = vsel %vm2200_vm8, %v2136_v56, %v2264_v11  ;;  %v676_v10 = vpop.f32.mrf.mxu0 }
 0x251   :  { %3124 = vpow2.f32 %v1954_v8  ;;  %v3910_v36 = vmul.f32 0.5, %v671_v13  ;;  %v925_v24 = vand.u32 2147483647, %v3898_v7  ;;  %v1822_v49 = vsub.f32 0.0, %v926_v17 }
 0x252   :  { %v3906_v6 = vpop.eup %3118  ;;  %3126 = vrcp.f32 %v1054_v22  ;;  %v3915_v45 = vmul.f32 0.70710677, %v3896_v28  ;;  %v2266_v52 = vsub.f32 0.0, %v2138_v42  ;;  %v1884_v43 = vmul.f32 %v1820_v46, %v924_v48 }
 0x253   :  { %v1241_v9 = vmul.f32 1.0614054, %v3906_v6  ;;  %v3917_v40 = vmul.f32 0.5, %v784_v39  ;;  %v989_v59 = vmul.f32 0.3275911, %v925_v24  ;;  %3128 = vpow2.f32 %v1958_v35 }
 0x254   :  { %v1821_v20 = vsub.f32 0.0, %v925_v24  ;;  %v927_v51 = vand.u32 2147483647, %v3915_v45  ;;  %v2456_v47 = vadd.f32 1.0, %v2328_v55  ;;  %v3923_v33 = vadd.f32 %v676_v10, %v3674_v29 }
 0x255   :  { %v1305_v60 = vadd.f32 -1.4531521, %v1241_v9  ;;  %v1053_v53 = vadd.f32 1.0, %v989_v59  ;;  %v3926_v54 = vadd.f32 %v789_v63, %v3676_v14  ;;  %v1886_v26 = vmul.f32 %v1822_v49, %v926_v17 }
 0x256   :  { %v991_v25 = vmul.f32 0.3275911, %v927_v51  ;;  %v2330_v0 = vsel %vm2202_vm9, %v2138_v42, %v2266_v52  ;;  %v1960_v44 = vmul.f32 1.442695, %v1884_v43  ;;  %v3933_v50 = vmul.f32 0.70710677, %v3923_v33 }
 0x257   :  { %v3920_v13 = vpop.eup %3120  ;;  %v1369_v15 = vmul.f32 %v3906_v6, %v1305_v60  ;;  %3130 = vrcp.f32 %v1053_v53  ;;  %v1885_v56 = vmul.f32 %v1821_v20, %v925_v24  ;;  %v3935_v48 = vmul.f32 %v2456_v47, %v2392_v57  ;;  %v678_v57 = vpop.f32.mrf.mxu0 }
 0x258   :  { %v1243_v5 = vmul.f32 1.0614054, %v3920_v13  ;;  %v1055_v3 = vadd.f32 1.0, %v991_v25  ;;  %v3937_v12 = vmul.f32 0.5, %v673_v38  ;;  %v928_v21 = vand.u32 2147483647, %v3933_v50 }
 0x259   :  { %v1433_v39 = vadd.f32 1.4214138, %v1369_v15  ;;  %v3941_v61 = vmul.f32 0.70710677, %v3926_v54  ;;  %v1964_v4 = vmul.f32 1.442695, %v1886_v26  ;;  %v3952_v63 = vadd.f32 %v678_v57, %v3678_v58 }
 0x25a   :  { %v1307_v23 = vadd.f32 -1.4531521, %v1243_v5  ;;  %3132 = vrcp.f32 %v1055_v3  ;;  %v2458_v18 = vadd.f32 1.0, %v2330_v0  ;;  %v1823_v17 = vsub.f32 0.0, %v927_v51 }
 0x25b   :  { %v1497_v16 = vmul.f32 %v3906_v6, %v1433_v39  ;;  %v992_v11 = vmul.f32 0.3275911, %v928_v21  ;;  %v930_v8 = vand.u32 2147483647, %v3941_v61  ;;  %3134 = vpow2.f32 %v1960_v44 }
 0x25c   :  { %v1371_v1 = vmul.f32 %v3920_v13, %v1307_v23  ;;  %v3946_v37 = vpop.eup %3122  ;;  %v1962_v42 = vmul.f32 1.442695, %v1885_v56  ;;  %v1824_v22 = vsub.f32 0.0, %v928_v21  ;;  %v1887_v59 = vmul.f32 %v1823_v17, %v927_v51 }
 0x25d   :  { %v1561_v38 = vadd.f32 -0.28449672, %v1497_v16  ;;  %v1244_v46 = vmul.f32 1.0614054, %v3946_v37  ;;  %v1056_v35 = vadd.f32 1.0, %v992_v11  ;;  %v1826_v10 = vsub.f32 0.0, %v930_v8 }
 0x25e   :  { %v1435_v34 = vadd.f32 1.4214138, %v1371_v1  ;;  %v994_v55 = vmul.f32 0.3275911, %v930_v8  ;;  %v3125_v24 = vpop.eup %3124  ;;  %v3957_v20 = vmul.f32 %v2458_v18, %v3893_v41  ;;  %vm2201_vm10 = vcmp.ge.f32.partialorder %v3847_v62, 0.0 }
 0x25f   :  { %v1625_v9 = vmul.f32 %v3906_v6, %v1561_v38  ;;  %v3954_v52 = vpop.eup %3126  ;;  %v1308_v43 = vadd.f32 -1.4531521, %v1244_v46  ;;  %3136 = vrcp.f32 %v1056_v35  ;;  %v1888_v25 = vmul.f32 %v1824_v22, %v928_v21 }
 0x260   :  { %v1499_v49 = vmul.f32 %v3920_v13, %v1435_v34  ;;  %v1058_v60 = vadd.f32 1.0, %v994_v55  ;;  %v1246_v15 = vmul.f32 1.0614054, %v3954_v52  ;;  %v3129_v5 = vpop.eup %3128  ;;  %v1890_v0 = vmul.f32 %v1826_v10, %v930_v8 }
 0x261   :  { %v1689_v47 = vadd.f32 0.2548296, %v1625_v9  ;;  %v1372_v26 = vmul.f32 %v3946_v37, %v1308_v43  ;;  %v3963_v44 = vmul.f32 0.70710677, %v3952_v63  ;;  %v1966_v56 = vmul.f32 1.442695, %v1887_v59 }
 0x262   :  { %v1563_v53 = vadd.f32 -0.28449672, %v1499_v49  ;;  %v1310_v41 = vadd.f32 -1.4531521, %v1246_v15  ;;  %3138 = vrcp.f32 %v1058_v60  ;;  %vm2203_vm11 = vcmp.ge.f32.partialorder %v3864_v31, 0.0  ;;  %v791_v60 = vpop.f32.mrf.mxu1 }
 0x263   :  { %v1753_v51 = vmul.f32 %v3906_v6, %v1689_v47  ;;  %v1436_v23 = vadd.f32 1.4214138, %v1372_v26  ;;  %3140 = vpow2.f32 %v1964_v4  ;;  %v929_v3 = vand.u32 2147483647, %v3963_v44 }
 0x264   :  { %v1627_v39 = vmul.f32 %v3920_v13, %v1563_v53  ;;  %v3968_v16 = vpop.eup %3130  ;;  %v1374_v21 = vmul.f32 %v3954_v52, %v1310_v41  ;;  %3142 = vpow2.f32 %v1962_v42  ;;  %v1968_v11 = vmul.f32 1.442695, %v1888_v25 }
 0x265   :  { %v2073_v1 = vmul.f32 %v3125_v24, %v1753_v51  ;;  %v1500_v6 = vmul.f32 %v3946_v37, %v1436_v23  ;;  %v1245_v17 = vmul.f32 1.0614054, %v3968_v16  ;;  %v993_v8 = vmul.f32 0.3275911, %v929_v3 }
 0x266   :  { %v1691_v18 = vadd.f32 0.2548296, %v1627_v39  ;;  %v1438_v38 = vadd.f32 1.4214138, %v1374_v21  ;;  %v3975_v34 = vmul.f32 1.442695, %v1890_v0  ;;  %3144 = vpow2.f32 %v1966_v56 }
 0x267   :  { %v2137_v57 = vsub.f32 1.0, %v2073_v1  ;;  %v3977_v46 = vpop.eup %3132  ;;  %v1564_v35 = vadd.f32 -0.28449672, %v1500_v6  ;;  %v1309_v22 = vadd.f32 -1.4531521, %v1245_v17  ;;  %v1057_v42 = vadd.f32 1.0, %v993_v8 }
 0x268   :  { %v1755_v4 = vmul.f32 %v3920_v13, %v1691_v18  ;;  %v1502_v9 = vmul.f32 %v3954_v52, %v1438_v38  ;;  %v1247_v49 = vmul.f32 1.0614054, %v3977_v46  ;;  %v3135_v10 = vpop.eup %3134  ;;  %v1825_v59 = vsub.f32 0.0, %v929_v3 }
 0x269   :  { %v2265_v55 = vsub.f32 0.0, %v2137_v57  ;;  %v1628_v43 = vmul.f32 %v3946_v37, %v1564_v35  ;;  %v1373_v13 = vmul.f32 %v3968_v16, %v1309_v22  ;;  %3146 = vrcp.f32 %v1057_v42 }
 0x26a   :  { %v2075_v24 = vmul.f32 %v3129_v5, %v1755_v4  ;;  %v1566_v15 = vadd.f32 -0.28449672, %v1502_v9  ;;  %v1311_v26 = vadd.f32 -1.4531521, %v1247_v49  ;;  %3148 = vpow2.f32 %v1968_v11 }
 0x26b   :  { %v2329_v47 = vsel %vm2201_vm10, %v2137_v57, %v2265_v55  ;;  %v1692_v5 = vadd.f32 0.2548296, %v1628_v43  ;;  %v1437_v0 = vadd.f32 1.4214138, %v1373_v13  ;;  %v3990_v56 = vadd.f32 %v791_v60, %v3680_v32 }
 0x26c   :  { %v2139_v53 = vsub.f32 1.0, %v2075_v24  ;;  %v2457_v25 = vadd.f32 1.0, %v2329_v47  ;;  %v3985_v51 = vpop.eup %3136  ;;  %v1630_v41 = vmul.f32 %v3954_v52, %v1566_v15  ;;  %v1375_v23 = vmul.f32 %v3977_v46, %v1311_v26 }
 0x26d   :  { %v1756_v1 = vmul.f32 %v3946_v37, %v1692_v5  ;;  %v1501_v18 = vmul.f32 %v3968_v16, %v1437_v0  ;;  %v1248_v21 = vmul.f32 1.0614054, %v3985_v51  ;;  %v1889_v8 = vmul.f32 %v1825_v59, %v929_v3 }
 0x26e   :  { %v2267_v39 = vsub.f32 0.0, %v2139_v53  ;;  %v2521_v62 = vmul.f32 %v2457_v25, %v3901_v30  ;;  %v1694_v17 = vadd.f32 0.2548296, %v1630_v41  ;;  %v1439_v11 = vadd.f32 1.4214138, %v1375_v23  ;;  %v680_v41 = vpop.f32.mrf.mxu0 }
 0x26f   :  { %v3998_v57 = vpop.eup %3138  ;;  %v2076_v35 = vmul.f32 %v3135_v10, %v1756_v1  ;;  %v1565_v22 = vadd.f32 -0.28449672, %v1501_v18  ;;  %vm2204_vm12 = vcmp.ge.f32.partialorder %v3877_v27, 0.0  ;;  %v1312_v55 = vadd.f32 -1.4531521, %v1248_v21 }
 0x270   :  { %v2331_v6 = vsel %vm2203_vm11, %v2139_v53, %v2267_v39  ;;  %v2914_v4 = vpack.c.bf16 %v2521_v62, %v3935_v48  ;;  %v3141_v30 = vpop.eup %3140  ;;  %v1758_v37 = vmul.f32 %v3954_v52, %v1694_v17  ;;  %v1503_v42 = vmul.f32 %v3977_v46, %v1439_v11 }
 0x271   :  { %v2459_v38 = vadd.f32 1.0, %v2331_v6  ;;  %v1250_v31 = vmul.f32 1.0614054, %v3998_v57  ;;  %v3143_v24 = vpop.eup %3142  ;;  %v2140_v3 = vsub.f32 1.0, %v2076_v35  ;;  %v1629_v9 = vmul.f32 %v3968_v16, %v1565_v22 }
 0x272   :  { %2772 = vst [vmem:[%s5040_s5 + $0x20] sm:$0xff] %v2914_v4  ;;  %v4011_v49 = vmul.f32 0.70710677, %v3990_v56  ;;  %v2078_v10 = vmul.f32 %v3141_v30, %v1758_v37  ;;  %vm2206_vm13 = vcmp.ge.f32.partialorder %v3882_v2, 0.0  ;;  %v1567_v52 = vadd.f32 -0.28449672, %v1503_v42 }
 0x273   :  { %v2523_v48 = vmul.f32 %v2459_v38, %v3904_v19  ;;  %v1376_v43 = vmul.f32 %v3985_v51, %v1312_v55  ;;  %v1314_v13 = vadd.f32 -1.4531521, %v1250_v31  ;;  %v1693_v60 = vadd.f32 0.2548296, %v1629_v9  ;;  %v3145_v19 = vpop.eup %3144 }
 0x274   :  { %v1970_v47 = vmul.f32 1.442695, %v1889_v8  ;;  %v931_v53 = vand.u32 2147483647, %v4011_v49  ;;  %v2142_v15 = vsub.f32 1.0, %v2078_v10  ;;  %v1631_v26 = vmul.f32 %v3977_v46, %v1567_v52 }
 0x275   :  { %v2915_v59 = vpack.c.bf16 %v2523_v48, %v3957_v20  ;;  %v1440_v25 = vadd.f32 1.4214138, %v1376_v43  ;;  %v1378_v5 = vmul.f32 %v3998_v57, %v1314_v13  ;;  %v2268_v0 = vsub.f32 0.0, %v2140_v3 }
 0x276   :  { %v1757_v39 = vmul.f32 %v3968_v16, %v1693_v60  ;;  %vm2205_vm14 = vcmp.ge.f32.partialorder %v3898_v7, 0.0  ;;  %v995_v20 = vmul.f32 0.3275911, %v931_v53  ;;  %v4024_v23 = vpop.eup %3146  ;;  %v2270_v62 = vsub.f32 0.0, %v2142_v15  ;;  %v793_v7 = vpop.f32.mrf.mxu1 }
 0x277   :  { %2773 = vst [vmem:[%s5040_s5 + $0x28] sm:$0xff] %v2915_v59  ;;  %v1695_v1 = vadd.f32 0.2548296, %v1631_v26  ;;  %v1504_v18 = vmul.f32 %v3985_v51, %v1440_v25  ;;  %3150 = vpow2.f32 %v3975_v34  ;;  %v1442_v6 = vadd.f32 1.4214138, %v1378_v5  ;;  %v3149_v8 = vpop.eup %3148 }
 0x278   :  { %v2077_v21 = vmul.f32 %v3143_v24, %v1757_v39  ;;  %v1249_v17 = vmul.f32 1.0614054, %v4024_v23  ;;  %v1059_v11 = vadd.f32 1.0, %v995_v20  ;;  %3152 = vpow2.f32 %v1970_v47 }
 0x279   :  { %v1759_v16 = vmul.f32 %v3977_v46, %v1695_v1  ;;  %v1568_v4 = vadd.f32 -0.28449672, %v1504_v18  ;;  %v4031_v38 = vadd.f32 %v680_v41, %v3674_v29  ;;  %v2332_v35 = vsel %vm2204_vm12, %v2140_v3, %v2268_v0 }
 0x27a   :  { %v2141_v22 = vsub.f32 1.0, %v2077_v21  ;;  %v1506_v30 = vmul.f32 %v3998_v57, %v1442_v6  ;;  %v1313_v34 = vadd.f32 -1.4531521, %v1249_v17  ;;  %v2399_v42 = vmul.f32 0.5, %v3896_v28 }
 0x27b   :  { %v2079_v37 = vmul.f32 %v3145_v19, %v1759_v16  ;;  %v1632_v55 = vmul.f32 %v3985_v51, %v1568_v4  ;;  %3154 = vrcp.f32 %v1059_v11  ;;  %v2334_v46 = vsel %vm2206_vm13, %v2142_v15, %v2270_v62 }
 0x27c   :  { %v2269_v31 = vsub.f32 0.0, %v2141_v22  ;;  %v1570_v24 = vadd.f32 -0.28449672, %v1506_v30  ;;  %v1377_v48 = vmul.f32 %v4024_v23, %v1313_v34  ;;  %v2460_v9 = vadd.f32 1.0, %v2332_v35 }
 0x27d   :  { %v2143_v27 = vsub.f32 1.0, %v2079_v37  ;;  %v1696_v3 = vadd.f32 0.2548296, %v1632_v55  ;;  %v1827_v10 = vsub.f32 0.0, %v931_v53  ;;  %v4045_v13 = vmul.f32 0.70710677, %v4031_v38 }
 0x27e   :  { %v2333_v52 = vsel %vm2205_vm14, %v2141_v22, %v2269_v31  ;;  %v1634_v43 = vmul.f32 %v3998_v57, %v1570_v24  ;;  %v1441_v28 = vadd.f32 1.4214138, %v1377_v48  ;;  %v2462_v59 = vadd.f32 1.0, %v2334_v46 }
 0x27f   :  { %v2461_v2 = vadd.f32 1.0, %v2333_v52  ;;  %v2271_v60 = vsub.f32 0.0, %v2143_v27  ;;  %v1760_v47 = vmul.f32 %v3985_v51, %v1696_v3  ;;  %vm2207_vm15 = vcmp.ge.f32.partialorder %v3915_v45, 0.0 }
 0x280   :  { %v1698_v19 = vadd.f32 0.2548296, %v1634_v43  ;;  %v1505_v15 = vmul.f32 %v4024_v23, %v1441_v28  ;;  %v932_v26 = vand.u32 2147483647, %v4045_v13  ;;  %v2524_v25 = vmul.f32 %v2460_v9, %v3910_v36 }
 0x281   :  { %v2525_v5 = vmul.f32 %v2461_v2, %v3937_v12  ;;  %v2335_v0 = vsel %vm2207_vm15, %v2143_v27, %v2271_v60  ;;  %v2080_v39 = vmul.f32 %v3149_v8, %v1760_v47  ;;  %v1891_v62 = vmul.f32 %v1827_v10, %v931_v53  ;;  %v795_v10 = vpop.f32.mrf.mxu1 }
 0x282   :  { %v2463_v20 = vadd.f32 1.0, %v2335_v0  ;;  %v1569_v41 = vadd.f32 -0.28449672, %v1505_v15  ;;  %v996_v1 = vmul.f32 0.3275911, %v932_v26  ;;  %v2526_v51 = vmul.f32 %v2462_v59, %v3917_v40  ;;  %v682_v40 = vpop.f32.mrf.mxu0 }
 0x283   :  { %v2916_v18 = vpack.c.bf16 %v2525_v5, %v2524_v25  ;;  %v2144_v45 = vsub.f32 1.0, %v2080_v39  ;;  %v4055_v21 = vadd.f32 %v793_v7, %v3676_v14  ;;  %v1762_v11 = vmul.f32 %v3998_v57, %v1698_v19 }
 0x284   :  { %v3151_v6 = vpop.eup %3150  ;;  %v2527_v17 = vmul.f32 %v2463_v20, %v2399_v42  ;;  %v1633_v36 = vmul.f32 %v4024_v23, %v1569_v41  ;;  %v1060_v12 = vadd.f32 1.0, %v996_v1  ;;  %v1974_v37 = vmul.f32 1.442695, %v1891_v62  ;;  %v686_v59 = vpop.f32.mrf.mxu0 }
 0x285   :  { %2774 = vst [vmem:[%s5040_s5 + $0x30] sm:$0xff] %v2916_v18  ;;  %v4063_v53 = vmul.f32 0.70710677, %v4055_v21  ;;  %v3153_v8 = vpop.eup %3152  ;;  %v2272_v35 = vsub.f32 0.0, %v2144_v45  ;;  %v2082_v30 = vmul.f32 %v3151_v6, %v1762_v11  ;;  %v4075_v42 = vadd.f32 %v682_v40, %v3678_v58  ;;  %v799_v20 = vpop.f32.mrf.mxu1 }
 0x286   :  { %v2917_v16 = vpack.c.bf16 %v2527_v17, %v2526_v51  ;;  %v1697_v4 = vadd.f32 0.2548296, %v1633_v36  ;;  %3156 = vrcp.f32 %v1060_v12  ;;  %v1828_v46 = vsub.f32 0.0, %v932_v26 }
 0x287   :  { %v4066_v22 = vand.u32 2147483647, %v4063_v53  ;;  %vm2208_vm0 = vcmp.ge.f32.partialorder %v3933_v50, 0.0  ;;  %v2400_v24 = vmul.f32 0.5, %v3923_v33  ;;  %v4082_v9 = vmul.f32 0.70710677, %v4075_v42 }
 0x288   :  { %v4068_v57 = vpop.eup %3154  ;;  %2775 = vst [vmem:[%s5040_s5 + $0x38] sm:$0xff] %v2917_v16  ;;  %v1761_v34 = vmul.f32 %v4024_v23, %v1697_v4  ;;  %v2336_v27 = vsel %vm2208_vm0, %v2144_v45, %v2272_v35  ;;  %vm2210_vm1 = vcmp.ge.f32.partialorder %v3941_v61, 0.0  ;;  %v2146_v52 = vsub.f32 1.0, %v2082_v30 }
 0x289   :  { %v1251_v55 = vmul.f32 1.0614054, %v4068_v57  ;;  %v998_v31 = vmul.f32 0.3275911, %v4066_v22  ;;  %3158 = vpow2.f32 %v1974_v37  ;;  %v933_v28 = vand.u32 2147483647, %v4082_v9 }
 0x28a   :  { %v2081_v48 = vmul.f32 %v3153_v8, %v1761_v34  ;;  %v4087_v50 = vmul.f32 0.5, %v3926_v54  ;;  %v1892_v2 = vmul.f32 %v1828_v46, %v932_v26  ;;  %v2464_v60 = vadd.f32 1.0, %v2336_v27  ;;  %v688_v27 = vpop.f32.mrf.mxu0 }
 0x28b   :  { %v1315_v23 = vadd.f32 -1.4531521, %v1251_v55  ;;  %v1062_v3 = vadd.f32 1.0, %v998_v31  ;;  %v997_v19 = vmul.f32 0.3275911, %v933_v28  ;;  %v4091_v15 = vadd.f32 %v795_v10, %v3680_v32 }
 0x28c   :  { %v2145_v43 = vsub.f32 1.0, %v2081_v48  ;;  %vm2209_vm2 = vcmp.ge.f32.partialorder %v3963_v44, 0.0  ;;  %v2401_v7 = vmul.f32 0.5, %v3952_v63  ;;  %v4096_v5 = vadd.f32 %v686_v59, %v3674_v29 }
 0x28d   :  { %v1379_v33 = vmul.f32 %v4068_v57, %v1315_v23  ;;  %3160 = vrcp.f32 %v1062_v3  ;;  %v2274_v54 = vsub.f32 0.0, %v2146_v52  ;;  %v1061_v39 = vadd.f32 1.0, %v997_v19 }
 0x28e   :  { %v2273_v47 = vsub.f32 0.0, %v2145_v43  ;;  %v4099_v26 = vmul.f32 0.70710677, %v4091_v15  ;;  %v1976_v1 = vmul.f32 1.442695, %v1892_v2  ;;  %v2528_v44 = vmul.f32 %v2464_v60, %v2400_v24  ;;  %v801_v60 = vpop.f32.mrf.mxu1 }
 0x28f   :  { %v1443_v25 = vadd.f32 1.4214138, %v1379_v33  ;;  %v4103_v51 = vmul.f32 0.70710677, %v4096_v5  ;;  %v1830_v63 = vsub.f32 0.0, %v4066_v22  ;;  %3162 = vrcp.f32 %v1061_v39 }
 0x290   :  { %v2337_v0 = vsel %vm2209_vm2, %v2145_v43, %v2273_v47  ;;  %v935_v18 = vand.u32 2147483647, %v4099_v26  ;;  %v4113_v36 = vadd.f32 %v799_v20, %v3676_v14  ;;  %v2338_v12 = vsel %vm2210_vm1, %v2146_v52, %v2274_v54 }
 0x291   :  { %v2465_v41 = vadd.f32 1.0, %v2337_v0  ;;  %v1507_v62 = vmul.f32 %v4068_v57, %v1443_v25  ;;  %v4110_v11 = vand.u32 2147483647, %v4103_v51  ;;  %v1829_v8 = vsub.f32 0.0, %v933_v28 }
 0x292   :  { %v999_v16 = vmul.f32 0.3275911, %v935_v18  ;;  %v4120_v30 = vmul.f32 0.5, %v3990_v56  ;;  %3164 = vpow2.f32 %v1976_v1  ;;  %v1894_v55 = vmul.f32 %v1830_v63, %v4066_v22 }
 0x293   :  { %v4107_v45 = vpop.eup %3156  ;;  %v2529_v6 = vmul.f32 %v2465_v41, %v2401_v7  ;;  %v1571_v17 = vadd.f32 -0.28449672, %v1507_v62  ;;  %v1000_v34 = vmul.f32 0.3275911, %v4110_v11  ;;  %v2466_v31 = vadd.f32 1.0, %v2338_v12 }
 0x294   :  { %v1252_v40 = vmul.f32 1.0614054, %v4107_v45  ;;  %v1063_v46 = vadd.f32 1.0, %v999_v16  ;;  %v4128_v48 = vmul.f32 0.70710677, %v4113_v36  ;;  %vm2211_vm3 = vcmp.ge.f32.partialorder %v4011_v49, 0.0 }
 0x295   :  { %v2918_v4 = vpack.c.bf16 %v2529_v6, %v2528_v44  ;;  %v1635_v35 = vmul.f32 %v4068_v57, %v1571_v17  ;;  %v1064_v24 = vadd.f32 1.0, %v1000_v34  ;;  %v1893_v23 = vmul.f32 %v1829_v8, %v933_v28 }
 0x296   :  { %v1316_v37 = vadd.f32 -1.4531521, %v1252_v40  ;;  %3166 = vrcp.f32 %v1063_v46  ;;  %v3159_v3 = vpop.eup %3158  ;;  %v4134_v10 = vmul.f32 0.5, %v4031_v38  ;;  %v4137_v52 = vand.u32 2147483647, %v4128_v48 }
 0x297   :  { %2776 = vst [vmem:[%s5040_s5 + $0x40] sm:$0xff] %v2918_v4  ;;  %v1699_v61 = vadd.f32 0.2548296, %v1635_v35  ;;  %3168 = vrcp.f32 %v1064_v24  ;;  %v1980_v33 = vmul.f32 1.442695, %v1894_v55  ;;  %v4142_v2 = vmul.f32 0.5, %v4055_v21 }
 0x298   :  { %v1380_v56 = vmul.f32 %v4107_v45, %v1316_v37  ;;  %v4145_v28 = vadd.f32 %v688_v27, %v3678_v58  ;;  %v1002_v19 = vmul.f32 0.3275911, %v4137_v52  ;;  %v1978_v25 = vmul.f32 1.442695, %v1893_v23 }
 0x299   :  { %v1763_v22 = vmul.f32 %v4068_v57, %v1699_v61  ;;  %v2530_v57 = vmul.f32 %v2466_v31, %v4087_v50  ;;  %v1831_v54 = vsub.f32 0.0, %v935_v18  ;;  %v4155_v41 = vadd.f32 %v801_v60, %v3680_v32 }
 0x29a   :  { %v4139_v43 = vpop.eup %3160  ;;  %v1444_v59 = vadd.f32 1.4214138, %v1380_v56  ;;  %v4152_v0 = vmul.f32 0.70710677, %v4145_v28  ;;  %v1066_v20 = vadd.f32 1.0, %v1002_v19  ;;  %3170 = vpow2.f32 %v1980_v33 }
 0x29b   :  { %v2083_v47 = vmul.f32 %v3159_v3, %v1763_v22  ;;  %v1254_v38 = vmul.f32 1.0614054, %v4139_v43  ;;  %v1832_v50 = vsub.f32 0.0, %v4110_v11  ;;  %v4163_v17 = vmul.f32 0.70710677, %v4155_v41 }
 0x29c   :  { %v1508_v7 = vmul.f32 %v4107_v45, %v1444_v59  ;;  %v937_v1 = vand.u32 2147483647, %v4152_v0  ;;  %v4159_v44 = vpop.eup %3162  ;;  %3172 = vrcp.f32 %v1066_v20  ;;  %v1895_v8 = vmul.f32 %v1831_v54, %v935_v18  ;;  %v690_v54 = vpop.f32.mrf.mxu0 }
 0x29d   :  { %v2147_v21 = vsub.f32 1.0, %v2083_v47  ;;  %v1318_v39 = vadd.f32 -1.4531521, %v1254_v38  ;;  %v1253_v40 = vmul.f32 1.0614054, %v4159_v44  ;;  %3174 = vpow2.f32 %v1978_v25 }
 0x29e   :  { %v1572_v62 = vadd.f32 -0.28449672, %v1508_v7  ;;  %v1001_v16 = vmul.f32 0.3275911, %v937_v1  ;;  %v939_v34 = vand.u32 2147483647, %v4163_v17  ;;  %v1896_v31 = vmul.f32 %v1832_v50, %v4110_v11 }
 0x29f   :  { %v2275_v63 = vsub.f32 0.0, %v2147_v21  ;;  %v1382_v6 = vmul.f32 %v4139_v43, %v1318_v39  ;;  %v1317_v46 = vadd.f32 -1.4531521, %v1253_v40  ;;  %v3165_v61 = vpop.eup %3164  ;;  %v1834_v27 = vsub.f32 0.0, %v4137_v52 }
 0x2a0   :  { %v1636_v12 = vmul.f32 %v4107_v45, %v1572_v62  ;;  %v1065_v56 = vadd.f32 1.0, %v1001_v16  ;;  %v1003_v18 = vmul.f32 0.3275911, %v939_v34  ;;  %v1982_v22 = vmul.f32 1.442695, %v1895_v8 }
 0x2a1   :  { %v2339_v4 = vsel %vm2211_vm3, %v2147_v21, %v2275_v63  ;;  %v1446_v35 = vadd.f32 1.4214138, %v1382_v6  ;;  %v1381_v3 = vmul.f32 %v4159_v44, %v1317_v46  ;;  %v1833_v60 = vsub.f32 0.0, %v937_v1 }
 0x2a2   :  { %v2467_v37 = vadd.f32 1.0, %v2339_v4  ;;  %v1700_v55 = vadd.f32 0.2548296, %v1636_v12  ;;  %3176 = vrcp.f32 %v1065_v56  ;;  %v1067_v11 = vadd.f32 1.0, %v1003_v18 }
 0x2a3   :  { %v1510_v24 = vmul.f32 %v4139_v43, %v1446_v35  ;;  %v4176_v59 = vpop.eup %3166  ;;  %v1445_v7 = vadd.f32 1.4214138, %v1381_v3  ;;  %vm2212_vm4 = vcmp.ge.f32.partialorder %v4045_v13, 0.0  ;;  %v1984_v21 = vmul.f32 1.442695, %v1896_v31 }
 0x2a4   :  { %v2531_v23 = vmul.f32 %v2467_v37, %v4120_v30  ;;  %v1764_v49 = vmul.f32 %v4107_v45, %v1700_v55  ;;  %v4178_v47 = vpop.eup %3168  ;;  %v1255_v25 = vmul.f32 1.0614054, %v4176_v59  ;;  %v1898_v39 = vmul.f32 %v1834_v27, %v4137_v52 }
 0x2a5   :  { %v1574_v33 = vadd.f32 -0.28449672, %v1510_v24  ;;  %v1256_v30 = vmul.f32 1.0614054, %v4178_v47  ;;  %3178 = vrcp.f32 %v1067_v11  ;;  %v1897_v6 = vmul.f32 %v1833_v60, %v937_v1 }
 0x2a6   :  { %v2919_v38 = vpack.c.bf16 %v2531_v23, %v2530_v57  ;;  %v2084_v19 = vmul.f32 %v3165_v61, %v1764_v49  ;;  %v1509_v57 = vmul.f32 %v4159_v44, %v1445_v7  ;;  %v1319_v62 = vadd.f32 -1.4531521, %v1255_v25 }
 0x2a7   :  { %v1638_v45 = vmul.f32 %v4139_v43, %v1574_v33  ;;  %v1320_v63 = vadd.f32 -1.4531521, %v1256_v30  ;;  %v4190_v12 = vadd.f32 %v690_v54, %v3674_v29  ;;  %3180 = vpow2.f32 %v1982_v22  ;;  %v3171_v16 = vpop.eup %3170 }
 0x2a8   :  { %2777 = vst [vmem:[%s5040_s5 + $0x48] sm:$0xff] %v2919_v38  ;;  %v2148_v20 = vsub.f32 1.0, %v2084_v19  ;;  %v1573_v40 = vadd.f32 -0.28449672, %v1509_v57  ;;  %v1383_v8 = vmul.f32 %v4176_v59, %v1319_v62  ;;  %v1835_v52 = vsub.f32 0.0, %v939_v34 }
 0x2a9   :  { %v1702_v50 = vadd.f32 0.2548296, %v1638_v45  ;;  %v1384_v35 = vmul.f32 %v4178_v47, %v1320_v63  ;;  %3182 = vpow2.f32 %v1984_v21  ;;  %v1988_v37 = vmul.f32 1.442695, %v1898_v39  ;;  %v4195_v55 = vpop.eup %3172 }
 0x2aa   :  { %v2276_v46 = vsub.f32 0.0, %v2148_v20  ;;  %v1637_v1 = vmul.f32 %v4159_v44, %v1573_v40  ;;  %v1447_v31 = vadd.f32 1.4214138, %v1383_v8  ;;  %v4199_v61 = vmul.f32 0.70710677, %v4190_v12  ;;  %v3175_v23 = vpop.eup %3174 }
 0x2ab   :  { %v1766_v4 = vmul.f32 %v4139_v43, %v1702_v50  ;;  %v1448_v27 = vadd.f32 1.4214138, %v1384_v35  ;;  %v1258_v56 = vmul.f32 1.0614054, %v4195_v55  ;;  %v1986_v18 = vmul.f32 1.442695, %v1897_v6  ;;  %v803_v35 = vpop.f32.mrf.mxu1 }
 0x2ac   :  { %v1701_v43 = vadd.f32 0.2548296, %v1637_v1  ;;  %v1511_v49 = vmul.f32 %v4176_v59, %v1447_v31  ;;  %v1899_v3 = vmul.f32 %v1835_v52, %v939_v34  ;;  %v4204_v22 = vand.u32 2147483647, %v4199_v61 }
 0x2ad   :  { %v2086_v24 = vmul.f32 %v3171_v16, %v1766_v4  ;;  %vm2213_vm5 = vcmp.ge.f32.partialorder %v4082_v9, 0.0  ;;  %v2405_v33 = vmul.f32 0.5, %v4075_v42  ;;  %v1512_v60 = vmul.f32 %v4178_v47, %v1448_v27 }
 0x2ae   :  { %v1322_v11 = vadd.f32 -1.4531521, %v1258_v56  ;;  %3184 = vpow2.f32 %v1988_v37  ;;  %v2340_v38 = vsel %vm2212_vm4, %v2148_v20, %v2276_v46  ;;  %vm2214_vm6 = vcmp.ge.f32.partialorder %v4063_v53, 0.0 }
 0x2af   :  { %v1765_v19 = vmul.f32 %v4159_v44, %v1701_v43  ;;  %v1575_v7 = vadd.f32 -0.28449672, %v1511_v49  ;;  %v1004_v34 = vmul.f32 0.3275911, %v4204_v22  ;;  %v2150_v25 = vsub.f32 1.0, %v2086_v24  ;;  %v4215_v42 = vpop.eup %3176 }
 0x2b0   :  { %v1576_v54 = vadd.f32 -0.28449672, %v1512_v60  ;;  %v1386_v45 = vmul.f32 %v4195_v55, %v1322_v11  ;;  %3186 = vpow2.f32 %v1986_v18  ;;  %v1990_v39 = vmul.f32 1.442695, %v1899_v3 }
 0x2b1   :  { %v2085_v30 = vmul.f32 %v3175_v23, %v1765_v19  ;;  %v1639_v21 = vmul.f32 %v4176_v59, %v1575_v7  ;;  %v1068_v13 = vadd.f32 1.0, %v1004_v34  ;;  %v2468_v20 = vadd.f32 1.0, %v2340_v38 }
 0x2b2   :  { %v1640_v57 = vmul.f32 %v4178_v47, %v1576_v54  ;;  %v1450_v62 = vadd.f32 1.4214138, %v1386_v45  ;;  %v1257_v44 = vmul.f32 1.0614054, %v4215_v42  ;;  %v2407_v6 = vmul.f32 0.5, %v4091_v15  ;;  %v4221_v40 = vpop.eup %3178 }
 0x2b3   :  { %v2149_v50 = vsub.f32 1.0, %v2085_v30  ;;  %v1703_v63 = vadd.f32 0.2548296, %v1639_v21  ;;  %3188 = vrcp.f32 %v1068_v13  ;;  %v2278_v8 = vsub.f32 0.0, %v2150_v25 }
 0x2b4   :  { %vm2215_vm7 = vcmp.ge.f32.partialorder %v4099_v26, 0.0  ;;  %v1704_v52 = vadd.f32 0.2548296, %v1640_v57  ;;  %v1514_v16 = vmul.f32 %v4195_v55, %v1450_v62  ;;  %v1321_v4 = vadd.f32 -1.4531521, %v1257_v44  ;;  %v3181_v31 = vpop.eup %3180 }
 0x2b5   :  { %v2277_v37 = vsub.f32 0.0, %v2149_v50  ;;  %v1767_v46 = vmul.f32 %v4176_v59, %v1703_v63  ;;  %v1259_v1 = vmul.f32 1.0614054, %v4221_v40  ;;  %3190 = vpow2.f32 %v1990_v39 }
 0x2b6   :  { %v2532_v15 = vmul.f32 %v2468_v20, %v4134_v10  ;;  %v1768_v24 = vmul.f32 %v4178_v47, %v1704_v52  ;;  %v1578_v27 = vadd.f32 -0.28449672, %v1514_v16  ;;  %v1385_v56 = vmul.f32 %v4215_v42, %v1321_v4  ;;  %v3183_v18 = vpop.eup %3182 }
 0x2b7   :  { %v2341_v23 = vsel %vm2213_vm5, %v2149_v50, %v2277_v37  ;;  %v2087_v43 = vmul.f32 %v3181_v31, %v1767_v46  ;;  %v1323_v49 = vadd.f32 -1.4531521, %v1259_v1  ;;  %v4233_v3 = vadd.f32 %v803_v35, %v3676_v14 }
 0x2b8   :  { %v2342_v59 = vsel %vm2214_vm6, %v2150_v25, %v2278_v8  ;;  %v2469_v60 = vadd.f32 1.0, %v2341_v23  ;;  %v1642_v10 = vmul.f32 %v4195_v55, %v1578_v27  ;;  %v1449_v11 = vadd.f32 1.4214138, %v1385_v56  ;;  %v692_v8 = vpop.f32.mrf.mxu0  ;;  %v805_v56 = vpop.f32.mrf.mxu1 }
 0x2b9   :  { %v2151_v47 = vsub.f32 1.0, %v2087_v43  ;;  %v2088_v38 = vmul.f32 %v3183_v18, %v1768_v24  ;;  %v1387_v19 = vmul.f32 %v4221_v40, %v1323_v49  ;;  %v4240_v7 = vmul.f32 0.70710677, %v4233_v3 }
 0x2ba   :  { %v2533_v9 = vmul.f32 %v2469_v60, %v2405_v33  ;;  %v1706_v34 = vadd.f32 0.2548296, %v1642_v10  ;;  %v1513_v54 = vmul.f32 %v4215_v42, %v1449_v11  ;;  %v1836_v45 = vsub.f32 0.0, %v4204_v22 }
 0x2bb   :  { %v3185_v30 = vpop.eup %3184  ;;  %v2470_v53 = vadd.f32 1.0, %v2342_v59  ;;  %v2279_v25 = vsub.f32 0.0, %v2151_v47  ;;  %v1451_v21 = vadd.f32 1.4214138, %v1387_v19  ;;  %v4245_v39 = vand.u32 2147483647, %v4240_v7 }
 0x2bc   :  { %v2920_v13 = vpack.c.bf16 %v2533_v9, %v2532_v15  ;;  %vm2216_vm8 = vcmp.ge.f32.partialorder %v4103_v51, 0.0  ;;  %v1770_v20 = vmul.f32 %v4195_v55, %v1706_v34  ;;  %v1577_v57 = vadd.f32 -0.28449672, %v1513_v54 }
 0x2bd   :  { %v3187_v62 = vpop.eup %3186  ;;  %v2343_v33 = vsel %vm2215_vm7, %v2151_v47, %v2279_v25  ;;  %v2152_v44 = vsub.f32 1.0, %v2088_v38  ;;  %v1515_v50 = vmul.f32 %v4221_v40, %v1451_v21  ;;  %v1006_v63 = vmul.f32 0.3275911, %v4245_v39 }
 0x2be   :  { %2778 = vst [vmem:[%s5040_s5 + $0x50] sm:$0xff] %v2920_v13  ;;  %v2471_v52 = vadd.f32 1.0, %v2343_v33  ;;  %v2090_v16 = vmul.f32 %v3185_v30, %v1770_v20  ;;  %v1641_v4 = vmul.f32 %v4215_v42, %v1577_v57  ;;  %v1900_v55 = vmul.f32 %v1836_v45, %v4204_v22 }
 0x2bf   :  { %v2534_v35 = vmul.f32 %v2470_v53, %v4142_v2  ;;  %v2408_v26 = vmul.f32 0.5, %v4096_v5  ;;  %v1579_v37 = vadd.f32 -0.28449672, %v1515_v50  ;;  %v1070_v46 = vadd.f32 1.0, %v1006_v63  ;;  %v696_v53 = vpop.f32.mrf.mxu0 }
 0x2c0   :  { %v4260_v1 = vpop.eup %3188  ;;  %v2535_v31 = vmul.f32 %v2471_v52, %v2407_v6  ;;  %v2154_v15 = vsub.f32 1.0, %v2090_v16  ;;  %v1705_v24 = vadd.f32 0.2548296, %v1641_v4  ;;  %v4263_v27 = vadd.f32 %v692_v8, %v3678_v58 }
 0x2c1   :  { %v2280_v18 = vsub.f32 0.0, %v2152_v44  ;;  %v1643_v23 = vmul.f32 %v4221_v40, %v1579_v37  ;;  %v1260_v22 = vmul.f32 1.0614054, %v4260_v1  ;;  %3192 = vrcp.f32 %v1070_v46 }
 0x2c2   :  { %v3191_v2 = vpop.eup %3190  ;;  %v2921_v43 = vpack.c.bf16 %v2535_v31, %v2534_v35  ;;  %v2410_v5 = vmul.f32 0.5, %v4113_v36  ;;  %v1769_v49 = vmul.f32 %v4215_v42, %v1705_v24  ;;  %v1992_v59 = vmul.f32 1.442695, %v1900_v55 }
 0x2c3   :  { %v1707_v6 = vadd.f32 0.2548296, %v1643_v23  ;;  %v1324_v60 = vadd.f32 -1.4531521, %v1260_v22  ;;  %v4270_v10 = vmul.f32 0.70710677, %v4263_v27  ;;  %v4273_v11 = vadd.f32 %v805_v56, %v3680_v32  ;;  %v809_v23 = vpop.f32.mrf.mxu1 }
 0x2c4   :  { %2779 = vst [vmem:[%s5040_s5 + $0x58] sm:$0xff] %v2921_v43  ;;  %vm2218_vm9 = vcmp.ge.f32.partialorder %v4128_v48, 0.0  ;;  %v2282_v47 = vsub.f32 0.0, %v2154_v15  ;;  %v2089_v38 = vmul.f32 %v3187_v62, %v1769_v49  ;;  %v2409_v36 = vmul.f32 0.5, %v4145_v28  ;;  %v698_v43 = vpop.f32.mrf.mxu0 }
 0x2c5   :  { %v2344_v42 = vsel %vm2216_vm8, %v2152_v44, %v2280_v18  ;;  %v1771_v19 = vmul.f32 %v4221_v40, %v1707_v6  ;;  %v1388_v9 = vmul.f32 %v4260_v1, %v1324_v60  ;;  %v941_v34 = vand.u32 2147483647, %v4270_v10 }
 0x2c6   :  { %v2153_v54 = vsub.f32 1.0, %v2089_v38  ;;  %3194 = vpow2.f32 %v1992_v59  ;;  %v1838_v45 = vsub.f32 0.0, %v4245_v39  ;;  %v4287_v30 = vmul.f32 0.70710677, %v4273_v11 }
 0x2c7   :  { %vm2217_vm10 = vcmp.ge.f32.partialorder %v4152_v0, 0.0  ;;  %v2091_v28 = vmul.f32 %v3191_v2, %v1771_v19  ;;  %v1452_v25 = vadd.f32 1.4214138, %v1388_v9  ;;  %v1005_v51 = vmul.f32 0.3275911, %v941_v34 }
 0x2c8   :  { %v2472_v21 = vadd.f32 1.0, %v2344_v42  ;;  %v2346_v40 = vsel %vm2218_vm9, %v2154_v15, %v2282_v47  ;;  %v2281_v13 = vsub.f32 0.0, %v2153_v54  ;;  %v943_v20 = vand.u32 2147483647, %v4287_v30 }
 0x2c9   :  { %v2155_v57 = vsub.f32 1.0, %v2091_v28  ;;  %v1516_v62 = vmul.f32 %v4260_v1, %v1452_v25  ;;  %v1069_v33 = vadd.f32 1.0, %v1005_v51  ;;  %v4295_v44 = vadd.f32 %v696_v53, %v3674_v29  ;;  %v811_v53 = vpop.f32.mrf.mxu1 }
 0x2ca   :  { %v2345_v50 = vsel %vm2217_vm10, %v2153_v54, %v2281_v13  ;;  %vm2219_vm11 = vcmp.ge.f32.partialorder %v4163_v17, 0.0  ;;  %v1902_v0 = vmul.f32 %v1838_v45, %v4245_v39  ;;  %v1007_v63 = vmul.f32 0.3275911, %v943_v20 }
 0x2cb   :  { %v2473_v8 = vadd.f32 1.0, %v2345_v50  ;;  %v2283_v52 = vsub.f32 0.0, %v2155_v57  ;;  %v1580_v48 = vadd.f32 -0.28449672, %v1516_v62  ;;  %3196 = vrcp.f32 %v1069_v33 }
 0x2cc   :  { %v2536_v16 = vmul.f32 %v2472_v21, %v2408_v26  ;;  %v2474_v4 = vadd.f32 1.0, %v2346_v40  ;;  %v1071_v55 = vadd.f32 1.0, %v1007_v63  ;;  %v4300_v35 = vmul.f32 0.70710677, %v4295_v44 }
 0x2cd   :  { %v2537_v37 = vmul.f32 %v2473_v8, %v2409_v36  ;;  %v2347_v46 = vsel %vm2219_vm11, %v2155_v57, %v2283_v52  ;;  %v1644_v31 = vmul.f32 %v4260_v1, %v1580_v48  ;;  %v1837_v15 = vsub.f32 0.0, %v941_v34 }
 0x2ce   :  { %v4303_v24 = vpop.eup %3192  ;;  %v2411_v17 = vmul.f32 0.5, %v4155_v41  ;;  %v2475_v39 = vadd.f32 1.0, %v2347_v46  ;;  %v1996_v56 = vmul.f32 1.442695, %v1902_v0  ;;  %v944_v18 = vand.u32 2147483647, %v4300_v35 }
 0x2cf   :  { %v2922_v26 = vpack.c.bf16 %v2537_v37, %v2536_v16  ;;  %v1708_v22 = vadd.f32 0.2548296, %v1644_v31  ;;  %v1262_v2 = vmul.f32 1.0614054, %v4303_v24  ;;  %3198 = vrcp.f32 %v1071_v55 }
 0x2d0   :  { %v2538_v49 = vmul.f32 %v2474_v4, %v2410_v5  ;;  %v2539_v59 = vmul.f32 %v2475_v39, %v2411_v17  ;;  %v1008_v6 = vmul.f32 0.3275911, %v944_v18  ;;  %v1901_v47 = vmul.f32 %v1837_v15, %v941_v34  ;;  %v700_v17 = vpop.f32.mrf.mxu0 }
 0x2d1   :  { %2780 = vst [vmem:[%s5040_s5 + $0x60] sm:$0xff] %v2922_v26  ;;  %v1772_v41 = vmul.f32 %v4260_v1, %v1708_v22  ;;  %v1326_v60 = vadd.f32 -1.4531521, %v1262_v2  ;;  %v4313_v38 = vadd.f32 %v809_v23, %v3676_v14  ;;  %v1839_v42 = vsub.f32 0.0, %v943_v20 }
 0x2d2   :  { %v2923_v36 = vpack.c.bf16 %v2539_v59, %v2538_v49  ;;  %v1072_v19 = vadd.f32 1.0, %v1008_v6  ;;  %v699_v9 = vadd.f32 %v698_v43, %v3678_v58  ;;  %3200 = vpow2.f32 %v1996_v56 }
 0x2d3   :  { %v3195_v54 = vpop.eup %3194  ;;  %v1390_v5 = vmul.f32 %v4303_v24, %v1326_v60  ;;  %v4318_v45 = vmul.f32 0.70710677, %v4313_v38  ;;  %v1994_v25 = vmul.f32 1.442695, %v1901_v47  ;;  %v1903_v21 = vmul.f32 %v1839_v42, %v943_v20 }
 0x2d4   :  { %2781 = vst [vmem:[%s5040_s5 + $0x68] sm:$0xff] %v2923_v36  ;;  %v2092_v1 = vmul.f32 %v3195_v54, %v1772_v41  ;;  %3202 = vrcp.f32 %v1072_v19  ;;  %v4323_v34 = vmul.f32 0.70710677, %v699_v9  ;;  %v1840_v40 = vsub.f32 0.0, %v944_v18  ;;  %v813_v41 = vpop.f32.mrf.mxu1 }
 0x2d5   :  { %v1454_v28 = vadd.f32 1.4214138, %v1390_v5  ;;  %v946_v51 = vand.u32 2147483647, %v4318_v45  ;;  %v4328_v57 = vadd.f32 %v811_v53, %v3680_v32  ;;  %vm2220_vm12 = vcmp.ge.f32.partialorder %v4199_v61, 0.0 }
 0x2d6   :  { %v945_v13 = vand.u32 2147483647, %v4323_v34  ;;  %v4332_v62 = vmul.f32 0.5, %v4190_v12  ;;  %v4336_v50 = vmul.f32 0.5, %v4233_v3  ;;  %v2156_v20 = vsub.f32 1.0, %v2092_v1 }
 0x2d7   :  { %v1518_v33 = vmul.f32 %v4303_v24, %v1454_v28  ;;  %v1010_v0 = vmul.f32 0.3275911, %v946_v51  ;;  %v4341_v8 = vmul.f32 0.5, %v4263_v27  ;;  %v4344_v48 = vmul.f32 0.70710677, %v4328_v57 }
 0x2d8   :  { %v4338_v63 = vpop.eup %3196  ;;  %v1009_v52 = vmul.f32 0.3275911, %v945_v13  ;;  %3204 = vpow2.f32 %v1994_v25  ;;  %v1998_v55 = vmul.f32 1.442695, %v1903_v21  ;;  %v1904_v37 = vmul.f32 %v1840_v40, %v944_v18 }
 0x2d9   :  { %v1582_v16 = vadd.f32 -0.28449672, %v1518_v33  ;;  %v1261_v12 = vmul.f32 1.0614054, %v4338_v63  ;;  %v1074_v4 = vadd.f32 1.0, %v1010_v0  ;;  %v1842_v3 = vsub.f32 0.0, %v946_v51 }
 0x2da   :  { %v1073_v46 = vadd.f32 1.0, %v1009_v52  ;;  %v947_v27 = vand.u32 2147483647, %v4344_v48  ;;  %v2284_v56 = vsub.f32 0.0, %v2156_v20  ;;  %v4352_v23 = vmul.f32 0.5, %v4273_v11 }
 0x2db   :  { %v1646_v31 = vmul.f32 %v4303_v24, %v1582_v16  ;;  %v1325_v15 = vadd.f32 -1.4531521, %v1261_v12  ;;  %3206 = vrcp.f32 %v1074_v4  ;;  %v4355_v26 = vmul.f32 0.5, %v4295_v44 }
 0x2dc   :  { %v4349_v39 = vpop.eup %3198  ;;  %3208 = vrcp.f32 %v1073_v46  ;;  %v1011_v43 = vmul.f32 0.3275911, %v947_v27  ;;  %v2000_v49 = vmul.f32 1.442695, %v1904_v37  ;;  %v4359_v59 = vmul.f32 0.5, %v699_v9 }
 0x2dd   :  { %v1710_v18 = vadd.f32 0.2548296, %v1646_v31  ;;  %v1389_v22 = vmul.f32 %v4338_v63, %v1325_v15  ;;  %v1263_v2 = vmul.f32 1.0614054, %v4349_v39  ;;  %3210 = vpow2.f32 %v1998_v55 }
 0x2de   :  { %v4362_v6 = vadd.f32 %v700_v17, %v3674_v29  ;;  %v1906_v47 = vmul.f32 %v1842_v3, %v946_v51  ;;  %v2348_v42 = vsel %vm2220_vm12, %v2156_v20, %v2284_v56  ;;  %v1841_v19 = vsub.f32 0.0, %v945_v13 }
 0x2df   :  { %v1774_v11 = vmul.f32 %v4303_v24, %v1710_v18  ;;  %v1453_v60 = vadd.f32 1.4214138, %v1389_v22  ;;  %v1327_v44 = vadd.f32 -1.4531521, %v1263_v2  ;;  %v3201_v36 = vpop.eup %3200  ;;  %v1075_v54 = vadd.f32 1.0, %v1011_v43 }
 0x2e0   :  { %v4368_v5 = vmul.f32 0.70710677, %v4362_v6  ;;  %v1843_v28 = vsub.f32 0.0, %v947_v27  ;;  %v4375_v24 = vadd.f32 %v813_v41, %v3676_v14  ;;  %v2004_v33 = vmul.f32 1.442695, %v1906_v47 }
 0x2e1   :  { %v4370_v9 = vpop.eup %3202  ;;  %v1517_v53 = vmul.f32 %v4338_v63, %v1453_v60  ;;  %v1391_v1 = vmul.f32 %v4349_v39, %v1327_v44  ;;  %v2094_v25 = vmul.f32 %v3201_v36, %v1774_v11  ;;  %3212 = vrcp.f32 %v1075_v54 }
 0x2e2   :  { %v1264_v51 = vmul.f32 1.0614054, %v4370_v9  ;;  %v4379_v61 = vand.u32 2147483647, %v4368_v5  ;;  %v2476_v0 = vadd.f32 1.0, %v2348_v42  ;;  %v1905_v52 = vmul.f32 %v1841_v19, %v945_v13 }
 0x2e3   :  { %v1581_v21 = vadd.f32 -0.28449672, %v1517_v53  ;;  %v1455_v40 = vadd.f32 1.4214138, %v1391_v1  ;;  %vm2222_vm13 = vcmp.ge.f32.partialorder %v4240_v7, 0.0  ;;  %3214 = vpow2.f32 %v2000_v49 }
 0x2e4   :  { %v1328_v20 = vadd.f32 -1.4531521, %v1264_v51  ;;  %v1012_v16 = vmul.f32 0.3275911, %v4379_v61  ;;  %v4386_v55 = vmul.f32 0.70710677, %v4375_v24  ;;  %v1907_v31 = vmul.f32 %v1843_v28, %v947_v27  ;;  %v702_v51 = vpop.f32.mrf.mxu0 }
 0x2e5   :  { %v1645_v12 = vmul.f32 %v4338_v63, %v1581_v21  ;;  %v1519_v4 = vmul.f32 %v4349_v39, %v1455_v40  ;;  %v3205_v37 = vpop.eup %3204  ;;  %v2158_v3 = vsub.f32 1.0, %v2094_v25  ;;  %3216 = vpow2.f32 %v2004_v33 }
 0x2e6   :  { %v1392_v46 = vmul.f32 %v4370_v9, %v1328_v20  ;;  %v1076_v15 = vadd.f32 1.0, %v1012_v16  ;;  %v4390_v56 = vand.u32 2147483647, %v4386_v55  ;;  %v4395_v22 = vmul.f32 %v2476_v0, %v4332_v62 }
 0x2e7   :  { %v1709_v17 = vadd.f32 0.2548296, %v1645_v12  ;;  %v1583_v13 = vadd.f32 -0.28449672, %v1519_v4  ;;  %vm2221_vm14 = vcmp.ge.f32.partialorder %v4270_v10, 0.0  ;;  %v2286_v44 = vsub.f32 0.0, %v2158_v3 }
 0x2e8   :  { %v4392_v18 = vpop.eup %3206  ;;  %v1456_v2 = vadd.f32 1.4214138, %v1392_v46  ;;  %v2002_v43 = vmul.f32 1.442695, %v1905_v52  ;;  %3218 = vrcp.f32 %v1076_v15  ;;  %v1014_v60 = vmul.f32 0.3275911, %v4390_v56 }
 0x2e9   :  { %v4398_v49 = vpop.eup %3208  ;;  %v1773_v27 = vmul.f32 %v4338_v63, %v1709_v17  ;;  %v1647_v41 = vmul.f32 %v4349_v39, %v1583_v13  ;;  %v1266_v11 = vmul.f32 1.0614054, %v4392_v18  ;;  %v2006_v36 = vmul.f32 1.442695, %v1907_v31 }
 0x2ea   :  { %v1520_v47 = vmul.f32 %v4370_v9, %v1456_v2  ;;  %v1265_v62 = vmul.f32 1.0614054, %v4398_v49  ;;  %v3211_v42 = vpop.eup %3210  ;;  %v1078_v1 = vadd.f32 1.0, %v1014_v60  ;;  %vm2223_vm15 = vcmp.ge.f32.partialorder %v4287_v30, 0.0 }
 0x2eb   :  { %v2093_v19 = vmul.f32 %v3205_v37, %v1773_v27  ;;  %v1711_v54 = vadd.f32 0.2548296, %v1647_v41  ;;  %v1330_v53 = vadd.f32 -1.4531521, %v1266_v11  ;;  %3220 = vpow2.f32 %v2002_v43 }
 0x2ec   :  { %v1584_v63 = vadd.f32 -0.28449672, %v1520_v47  ;;  %v1329_v28 = vadd.f32 -1.4531521, %v1265_v62  ;;  %v1844_v25 = vsub.f32 0.0, %v4379_v61  ;;  %3222 = vrcp.f32 %v1078_v1 }
 0x2ed   :  { %v2157_v21 = vsub.f32 1.0, %v2093_v19  ;;  %v1775_v40 = vmul.f32 %v4349_v39, %v1711_v54  ;;  %v1394_v33 = vmul.f32 %v4392_v18, %v1330_v53  ;;  %v2350_v0 = vsel %vm2222_vm13, %v2158_v3, %v2286_v44 }
 0x2ee   :  { %v1648_v20 = vmul.f32 %v4370_v9, %v1584_v63  ;;  %v1393_v52 = vmul.f32 %v4398_v49, %v1329_v28  ;;  %3224 = vpow2.f32 %v2006_v36  ;;  %v4414_v16 = vpop.eup %3212  ;;  %v4417_v46 = vadd.f32 %v702_v51, %v3678_v58 }
 0x2ef   :  { %v2285_v12 = vsub.f32 0.0, %v2157_v21  ;;  %v2095_v4 = vmul.f32 %v3211_v42, %v1775_v40  ;;  %v1458_v37 = vadd.f32 1.4214138, %v1394_v33  ;;  %v1267_v15 = vmul.f32 1.0614054, %v4414_v16 }
 0x2f0   :  { %v1712_v39 = vadd.f32 0.2548296, %v1648_v20  ;;  %v1457_v31 = vadd.f32 1.4214138, %v1393_v52  ;;  %v1908_v7 = vmul.f32 %v1844_v25, %v4379_v61  ;;  %v2478_v3 = vadd.f32 1.0, %v2350_v0  ;;  %v3215_v43 = vpop.eup %3214 }
 0x2f1   :  { %v2349_v17 = vsel %vm2221_vm14, %v2157_v21, %v2285_v12  ;;  %v2159_v13 = vsub.f32 1.0, %v2095_v4  ;;  %v1522_v2 = vmul.f32 %v4392_v18, %v1458_v37  ;;  %v1331_v60 = vadd.f32 -1.4531521, %v1267_v15  ;;  %v815_v4 = vpop.f32.mrf.mxu1 }
 0x2f2   :  { %v2477_v27 = vadd.f32 1.0, %v2349_v17  ;;  %v1776_v41 = vmul.f32 %v4370_v9, %v1712_v39  ;;  %v1521_v11 = vmul.f32 %v4398_v49, %v1457_v31  ;;  %v1846_v62 = vsub.f32 0.0, %v4390_v56  ;;  %v3217_v36 = vpop.eup %3216 }
 0x2f3   :  { %v2287_v44 = vsub.f32 0.0, %v2159_v13  ;;  %v1586_v47 = vadd.f32 -0.28449672, %v1522_v2  ;;  %v4428_v61 = vmul.f32 0.70710677, %v4417_v46  ;;  %vm2224_vm0 = vcmp.ge.f32.partialorder %v4300_v35, 0.0  ;;  %v819_v35 = vpop.f32.mrf.mxu1 }
 0x2f4   :  { %v2541_v10 = vmul.f32 %v2477_v27, %v4341_v8  ;;  %v2096_v42 = vmul.f32 %v3215_v43, %v1776_v41  ;;  %v1585_v19 = vadd.f32 -0.28449672, %v1521_v11  ;;  %v1395_v54 = vmul.f32 %v4414_v16, %v1331_v60  ;;  %v706_v11 = vpop.f32.mrf.mxu0 }
 0x2f5   :  { %v4433_v9 = vpop.eup %3218  ;;  %v2351_v53 = vsel %vm2223_vm15, %v2159_v13, %v2287_v44  ;;  %v1650_v1 = vmul.f32 %v4392_v18, %v1586_v47  ;;  %v2008_v63 = vmul.f32 1.442695, %v1908_v7  ;;  %v949_v28 = vand.u32 2147483647, %v4428_v61 }
 0x2f6   :  { %v2924_v25 = vpack.c.bf16 %v2541_v10, %v4395_v22  ;;  %v2479_v51 = vadd.f32 1.0, %v2351_v53  ;;  %v2160_v8 = vsub.f32 1.0, %v2096_v42  ;;  %v1649_v21 = vmul.f32 %v4398_v49, %v1585_v19 }
 0x2f7   :  { %v2542_v40 = vmul.f32 %v2478_v3, %v4336_v50  ;;  %v1714_v33 = vadd.f32 0.2548296, %v1650_v1  ;;  %v1459_v0 = vadd.f32 1.4214138, %v1395_v54  ;;  %v1268_v20 = vmul.f32 1.0614054, %v4433_v9 }
 0x2f8   :  { %2782 = vst [vmem:[%s5040_s5 + $0x70] sm:$0xff] %v2924_v25  ;;  %v2543_v30 = vmul.f32 %v2479_v51, %v4352_v23  ;;  %v1713_v52 = vadd.f32 0.2548296, %v1649_v21  ;;  %v1910_v12 = vmul.f32 %v1846_v62, %v4390_v56  ;;  %v1013_v22 = vmul.f32 0.3275911, %v949_v28  ;;  %v3221_v37 = vpop.eup %3220 }
 0x2f9   :  { %v2288_v39 = vsub.f32 0.0, %v2160_v8  ;;  %v1778_v31 = vmul.f32 %v4392_v18, %v1714_v33  ;;  %v1523_v50 = vmul.f32 %v4414_v16, %v1459_v0  ;;  %v1332_v15 = vadd.f32 -1.4531521, %v1268_v20  ;;  %v4450_v7 = vpop.eup %3222 }
 0x2fa   :  { %v2925_v3 = vpack.c.bf16 %v2543_v30, %v2542_v40  ;;  %v1777_v17 = vmul.f32 %v4398_v49, %v1713_v52  ;;  %3226 = vpow2.f32 %v2008_v63  ;;  %v1077_v13 = vadd.f32 1.0, %v1013_v22 }
 0x2fb   :  { %v3225_v23 = vpop.eup %3224  ;;  %v2098_v2 = vmul.f32 %v3217_v36, %v1778_v31  ;;  %vm2226_vm1 = vcmp.ge.f32.partialorder %v4318_v45, 0.0  ;;  %v1587_v56 = vadd.f32 -0.28449672, %v1523_v50  ;;  %v1396_v43 = vmul.f32 %v4433_v9, %v1332_v15 }
 0x2fc   :  { %v4456_v27 = vadd.f32 %v815_v4, %v3680_v32  ;;  %2783 = vst [vmem:[%s5040_s5 + $0x78] sm:$0xff] %v2925_v3  ;;  %v2097_v18 = vmul.f32 %v3221_v37, %v1777_v17  ;;  %v1270_v41 = vmul.f32 1.0614054, %v4450_v7  ;;  %v2012_v49 = vmul.f32 1.442695, %v1910_v12 }
 0x2fd   :  { %3228 = vrcp.f32 %v1077_v13  ;;  %v2352_v60 = vsel %vm2224_vm0, %v2160_v8, %v2288_v39  ;;  %v2162_v44 = vsub.f32 1.0, %v2098_v2  ;;  %v1651_v47 = vmul.f32 %v4414_v16, %v1587_v56 }
 0x2fe   :  { %v1460_v62 = vadd.f32 1.4214138, %v1396_v43  ;;  %v2161_v36 = vsub.f32 1.0, %v2097_v18  ;;  %vm2225_vm2 = vcmp.ge.f32.partialorder %v4323_v34, 0.0  ;;  %v1334_v10 = vadd.f32 -1.4531521, %v1270_v41 }
 0x2ff   :  { %v1845_v42 = vsub.f32 0.0, %v949_v28  ;;  %v1715_v19 = vadd.f32 0.2548296, %v1651_v47  ;;  %v4468_v53 = vmul.f32 0.70710677, %v4456_v27  ;;  %v4471_v1 = vadd.f32 %v706_v11, %v3674_v29 }
 0x300   :  { %v1524_v54 = vmul.f32 %v4433_v9, %v1460_v62  ;;  %v2480_v63 = vadd.f32 1.0, %v2352_v60  ;;  %v2290_v25 = vsub.f32 0.0, %v2162_v44  ;;  %v2289_v51 = vsub.f32 0.0, %v2161_v36  ;;  %v708_v62 = vpop.f32.mrf.mxu0 }
 0x301   :  { %v1398_v8 = vmul.f32 %v4450_v7, %v1334_v10  ;;  %v1779_v21 = vmul.f32 %v4414_v16, %v1715_v19  ;;  %3230 = vpow2.f32 %v2012_v49  ;;  %v951_v33 = vand.u32 2147483647, %v4468_v53 }
 0x302   :  { %v1588_v40 = vadd.f32 -0.28449672, %v1524_v54  ;;  %v2353_v0 = vsel %vm2225_vm2, %v2161_v36, %v2289_v51  ;;  %v1909_v30 = vmul.f32 %v1845_v42, %v949_v28  ;;  %v4479_v52 = vadd.f32 %v819_v35, %v3676_v14 }
 0x303   :  { %v1462_v20 = vadd.f32 1.4214138, %v1398_v8  ;;  %v2481_v12 = vadd.f32 1.0, %v2353_v0  ;;  %v2099_v22 = vmul.f32 %v3225_v23, %v1779_v21  ;;  %v1015_v37 = vmul.f32 0.3275911, %v951_v33  ;;  %v821_v21 = vpop.f32.mrf.mxu1 }
 0x304   :  { %v1652_v4 = vmul.f32 %v4433_v9, %v1588_v40  ;;  %v2544_v39 = vmul.f32 %v2480_v63, %v4355_v26  ;;  %v2354_v16 = vsel %vm2226_vm1, %v2162_v44, %v2290_v25  ;;  %v4487_v34 = vmul.f32 0.70710677, %v4471_v1  ;;  %v710_v40 = vpop.f32.mrf.mxu0 }
 0x305   :  { %v1526_v31 = vmul.f32 %v4450_v7, %v1462_v20  ;;  %v2545_v28 = vmul.f32 %v2481_v12, %v4359_v59  ;;  %v2163_v50 = vsub.f32 1.0, %v2099_v22  ;;  %v1079_v3 = vadd.f32 1.0, %v1015_v37 }
 0x306   :  { %v1716_v15 = vadd.f32 0.2548296, %v1652_v4  ;;  %v952_v13 = vand.u32 2147483647, %v4487_v34  ;;  %v2482_v45 = vadd.f32 1.0, %v2354_v16  ;;  %vm2227_vm3 = vcmp.ge.f32.partialorder %v4344_v48, 0.0 }
 0x307   :  { %v1590_v17 = vadd.f32 -0.28449672, %v1526_v31  ;;  %v3227_v23 = vpop.eup %3226  ;;  %v2926_v2 = vpack.c.bf16 %v2545_v28, %v2544_v39  ;;  %v2291_v56 = vsub.f32 0.0, %v2163_v50  ;;  %3232 = vrcp.f32 %v1079_v3 }
 0x308   :  { %v1780_v26 = vmul.f32 %v4433_v9, %v1716_v15  ;;  %v1016_v18 = vmul.f32 0.3275911, %v952_v13  ;;  %v2418_v59 = vmul.f32 0.5, %v4313_v38  ;;  %v2010_v11 = vmul.f32 1.442695, %v1909_v30 }
 0x309   :  { %v1654_v43 = vmul.f32 %v4450_v7, %v1590_v17  ;;  %2784 = vst [vmem:[%s5040_s5 + $0x80] sm:$0xff] %v2926_v2  ;;  %v2355_v49 = vsel %vm2227_vm3, %v2163_v50, %v2291_v56  ;;  %v4501_v60 = vmul.f32 0.70710677, %v4479_v52  ;;  %v2419_v9 = vmul.f32 0.5, %v4328_v57 }
 0x30a   :  { %v4494_v41 = vpop.eup %3228  ;;  %v2483_v44 = vadd.f32 1.0, %v2355_v49  ;;  %v2100_v36 = vmul.f32 %v3227_v23, %v1780_v26  ;;  %v1080_v10 = vadd.f32 1.0, %v1016_v18  ;;  %v2546_v42 = vmul.f32 %v2482_v45, %v2418_v59 }
 0x30b   :  { %v1718_v48 = vadd.f32 0.2548296, %v1654_v43  ;;  %v1269_v47 = vmul.f32 1.0614054, %v4494_v41  ;;  %v954_v38 = vand.u32 2147483647, %v4501_v60  ;;  %v4512_v4 = vadd.f32 %v708_v62, %v3678_v58 }
 0x30c   :  { %v2547_v19 = vmul.f32 %v2483_v44, %v2419_v9  ;;  %v1847_v35 = vsub.f32 0.0, %v951_v33  ;;  %3234 = vrcp.f32 %v1080_v10  ;;  %v2164_v0 = vsub.f32 1.0, %v2100_v36 }
 0x30d   :  { %v1333_v54 = vadd.f32 -1.4531521, %v1269_v47  ;;  %v1018_v63 = vmul.f32 0.3275911, %v954_v38  ;;  %v1782_v8 = vmul.f32 %v4450_v7, %v1718_v48  ;;  %3236 = vpow2.f32 %v2010_v11 }
 0x30e   :  { %v3231_v25 = vpop.eup %3230  ;;  %v2927_v51 = vpack.c.bf16 %v2547_v19, %v2546_v42  ;;  %v1911_v12 = vmul.f32 %v1847_v35, %v951_v33  ;;  %v1848_v22 = vsub.f32 0.0, %v952_v13  ;;  %v4515_v7 = vadd.f32 %v821_v21, %v3680_v32 }
 0x30f   :  { %v1397_v57 = vmul.f32 %v4494_v41, %v1333_v54  ;;  %v1082_v20 = vadd.f32 1.0, %v1018_v63  ;;  %v4518_v37 = vadd.f32 %v710_v40, %v3674_v29  ;;  %vm2228_vm4 = vcmp.ge.f32.partialorder %v4368_v5, 0.0 }
 0x310   :  { %2785 = vst [vmem:[%s5040_s5 + $0x88] sm:$0xff] %v2927_v51  ;;  %v2420_v39 = vmul.f32 0.5, %v4362_v6  ;;  %v2102_v16 = vmul.f32 %v3231_v25, %v1782_v8  ;;  %v2292_v28 = vsub.f32 0.0, %v2164_v0  ;;  %v4524_v33 = vmul.f32 0.5, %v4375_v24 }
 0x311   :  { %v1461_v30 = vadd.f32 1.4214138, %v1397_v57  ;;  %3238 = vrcp.f32 %v1082_v20  ;;  %v4527_v50 = vmul.f32 0.70710677, %v4512_v4  ;;  %v4530_v15 = vmul.f32 0.70710677, %v4515_v7 }
 0x312   :  { %v2014_v23 = vmul.f32 1.442695, %v1911_v12  ;;  %v1912_v2 = vmul.f32 %v1848_v22, %v952_v13  ;;  %v4535_v6 = vmul.f32 0.70710677, %v4518_v37  ;;  %vm2230_vm5 = vcmp.ge.f32.partialorder %v4386_v55, 0.0 }
 0x313   :  { %v1525_v31 = vmul.f32 %v4494_v41, %v1461_v30  ;;  %v4539_v56 = vmul.f32 0.5, %v4417_v46  ;;  %v1850_v26 = vsub.f32 0.0, %v954_v38  ;;  %v953_v45 = vand.u32 2147483647, %v4527_v50  ;;  %v823_v30 = vpop.f32.mrf.mxu1 }
 0x314   :  { %v4532_v3 = vpop.eup %3232  ;;  %v2166_v43 = vsub.f32 1.0, %v2102_v16  ;;  %v955_v59 = vand.u32 2147483647, %v4530_v15  ;;  %v4546_v13 = vand.u32 2147483647, %v4535_v6  ;;  %v2356_v49 = vsel %vm2228_vm4, %v2164_v0, %v2292_v28 }
 0x315   :  { %v1589_v17 = vadd.f32 -0.28449672, %v1525_v31  ;;  %v1271_v24 = vmul.f32 1.0614054, %v4532_v3  ;;  %v4551_v46 = vmul.f32 0.5, %v4456_v27  ;;  %3240 = vpow2.f32 %v2014_v23 }
 0x316   :  { %v1017_v9 = vmul.f32 0.3275911, %v953_v45  ;;  %v2016_v48 = vmul.f32 1.442695, %v1912_v2  ;;  %v1019_v47 = vmul.f32 0.3275911, %v955_v59  ;;  %v1914_v36 = vmul.f32 %v1850_v26, %v954_v38 }
 0x317   :  { %v1653_v18 = vmul.f32 %v4494_v41, %v1589_v17  ;;  %v1335_v11 = vadd.f32 -1.4531521, %v1271_v24  ;;  %vm2229_vm6 = vcmp.ge.f32.partialorder %v4428_v61, 0.0  ;;  %v1020_v42 = vmul.f32 0.3275911, %v4546_v13 }
 0x318   :  { %v1081_v10 = vadd.f32 1.0, %v1017_v9  ;;  %v2484_v5 = vadd.f32 1.0, %v2356_v49  ;;  %v2294_v54 = vsub.f32 0.0, %v2166_v43  ;;  %v1083_v35 = vadd.f32 1.0, %v1019_v47 }
 0x319   :  { %v1717_v44 = vadd.f32 0.2548296, %v1653_v18  ;;  %v1399_v62 = vmul.f32 %v4532_v3, %v1335_v11  ;;  %v4556_v19 = vpop.eup %3234  ;;  %v4561_v8 = vmul.f32 0.5, %v4471_v1  ;;  %v1849_v38 = vsub.f32 0.0, %v953_v45 }
 0x31a   :  { %v3237_v63 = vpop.eup %3236  ;;  %v1272_v51 = vmul.f32 1.0614054, %v4556_v19  ;;  %3242 = vrcp.f32 %v1081_v10  ;;  %v1084_v21 = vadd.f32 1.0, %v1020_v42  ;;  %v2020_v20 = vmul.f32 1.442695, %v1914_v36 }
 0x31b   :  { %v1781_v27 = vmul.f32 %v4494_v41, %v1717_v44  ;;  %v1463_v25 = vadd.f32 1.4214138, %v1399_v62  ;;  %3244 = vrcp.f32 %v1083_v35  ;;  %v712_v41 = vpop.f32.mrf.mxu0  ;;  %v2548_v22 = vmul.f32 %v2484_v5, %v2420_v39 }
 0x31c   :  { %v1336_v0 = vadd.f32 -1.4531521, %v1272_v51  ;;  %3246 = vpow2.f32 %v2016_v48  ;;  %v2358_v16 = vsel %vm2230_vm5, %v2166_v43, %v2294_v54  ;;  %v1851_v31 = vsub.f32 0.0, %v955_v59 }
 0x31d   :  { %v2101_v57 = vmul.f32 %v3237_v63, %v1781_v27  ;;  %v1527_v40 = vmul.f32 %v4532_v3, %v1463_v25  ;;  %3248 = vrcp.f32 %v1084_v21  ;;  %v1913_v24 = vmul.f32 %v1849_v38, %v953_v45  ;;  %v825_v21 = vpop.f32.mrf.mxu1 }
 0x31e   :  { %v4564_v12 = vpop.eup %3238  ;;  %v1400_v17 = vmul.f32 %v4556_v19, %v1336_v0  ;;  %v4571_v26 = vadd.f32 %v823_v30, %v3676_v14  ;;  %v4574_v18 = vadd.f32 %v712_v41, %v3678_v58  ;;  %3250 = vpow2.f32 %v2020_v20 }
 0x31f   :  { %v2165_v1 = vsub.f32 1.0, %v2101_v57  ;;  %v1591_v28 = vadd.f32 -0.28449672, %v1527_v40  ;;  %v1274_v23 = vmul.f32 1.0614054, %v4564_v12  ;;  %v1852_v11 = vsub.f32 0.0, %v4546_v13 }
 0x320   :  { %v1464_v55 = vadd.f32 1.4214138, %v1400_v17  ;;  %v4581_v9 = vmul.f32 0.70710677, %v4571_v26  ;;  %v4584_v45 = vmul.f32 0.70710677, %v4574_v18  ;;  %v1915_v10 = vmul.f32 %v1851_v31, %v955_v59 }
 0x321   :  { %v2293_v2 = vsub.f32 0.0, %v2165_v1  ;;  %v1655_v39 = vmul.f32 %v4532_v3, %v1591_v28  ;;  %v1338_v43 = vadd.f32 -1.4531521, %v1274_v23  ;;  %vm2231_vm7 = vcmp.ge.f32.partialorder %v4468_v53, 0.0 }
 0x322   :  { %v1528_v47 = vmul.f32 %v4556_v19, %v1464_v55  ;;  %v2018_v36 = vmul.f32 1.442695, %v1913_v24  ;;  %v958_v61 = vand.u32 2147483647, %v4581_v9  ;;  %v4591_v42 = vand.u32 2147483647, %v4584_v45  ;;  %v3241_v5 = vpop.eup %3240 }
 0x323   :  { %v2357_v49 = vsel %vm2229_vm6, %v2165_v1, %v2293_v2  ;;  %v1719_v48 = vadd.f32 0.2548296, %v1655_v39  ;;  %v1402_v62 = vmul.f32 %v4564_v12, %v1338_v43  ;;  %v2486_v25 = vadd.f32 1.0, %v2358_v16 }
 0x324   :  { %v2485_v44 = vadd.f32 1.0, %v2357_v49  ;;  %v1592_v35 = vadd.f32 -0.28449672, %v1528_v47  ;;  %v1916_v51 = vmul.f32 %v1852_v11, %v4546_v13  ;;  %v1022_v57 = vmul.f32 0.3275911, %v958_v61 }
 0x325   :  { %v1783_v27 = vmul.f32 %v4532_v3, %v1719_v48  ;;  %v1466_v63 = vadd.f32 1.4214138, %v1402_v62  ;;  %v1021_v38 = vmul.f32 0.3275911, %v4591_v42  ;;  %3252 = vpow2.f32 %v2018_v36 }
 0x326   :  { %v2549_v54 = vmul.f32 %v2485_v44, %v4539_v56  ;;  %v1656_v0 = vmul.f32 %v4556_v19, %v1592_v35  ;;  %v2022_v56 = vmul.f32 1.442695, %v1915_v10  ;;  %v1086_v3 = vadd.f32 1.0, %v1022_v57 }
 0x327   :  { %v2103_v40 = vmul.f32 %v3241_v5, %v1783_v27  ;;  %v1530_v20 = vmul.f32 %v4564_v12, %v1466_v63  ;;  %v4599_v30 = vpop.eup %3242  ;;  %v1085_v41 = vadd.f32 1.0, %v1021_v38  ;;  %v4607_v31 = vadd.f32 %v825_v21, %v3680_v32 }
 0x328   :  { %v2928_v59 = vpack.c.bf16 %v2549_v54, %v2548_v22  ;;  %v4601_v1 = vpop.eup %3244  ;;  %v1720_v16 = vadd.f32 0.2548296, %v1656_v0  ;;  %v1273_v17 = vmul.f32 1.0614054, %v4599_v30  ;;  %3254 = vrcp.f32 %v1086_v3 }
 0x329   :  { %v2167_v13 = vsub.f32 1.0, %v2103_v40  ;;  %v1594_v22 = vadd.f32 -0.28449672, %v1530_v20  ;;  %v3247_v28 = vpop.eup %3246  ;;  %v1275_v23 = vmul.f32 1.0614054, %v4601_v1  ;;  %v1854_v2 = vsub.f32 0.0, %v958_v61 }
 0x32a   :  { %2786 = vst [vmem:[%s5040_s5 + $0x90] sm:$0xff] %v2928_v59  ;;  %v1784_v39 = vmul.f32 %v4556_v19, %v1720_v16  ;;  %3256 = vrcp.f32 %v1085_v41  ;;  %v4613_v43 = vpop.eup %3248  ;;  %v1337_v49 = vadd.f32 -1.4531521, %v1273_v17  ;;  %v2024_v44 = vmul.f32 1.442695, %v1916_v51  ;;  %v716_v41 = vpop.f32.mrf.mxu0 }
 0x32b   :  { %v2295_v24 = vsub.f32 0.0, %v2167_v13  ;;  %v1658_v55 = vmul.f32 %v4564_v12, %v1594_v22  ;;  %v1339_v11 = vadd.f32 -1.4531521, %v1275_v23  ;;  %3258 = vpow2.f32 %v2022_v56  ;;  %v3251_v10 = vpop.eup %3250 }
 0x32c   :  { %v2104_v47 = vmul.f32 %v3247_v28, %v1784_v39  ;;  %v1276_v36 = vmul.f32 1.0614054, %v4613_v43  ;;  %v1401_v19 = vmul.f32 %v4599_v30, %v1337_v49  ;;  %v1853_v27 = vsub.f32 0.0, %v4591_v42 }
 0x32d   :  { %v2359_v48 = vsel %vm2231_vm7, %v2167_v13, %v2295_v24  ;;  %v1722_v62 = vadd.f32 0.2548296, %v1658_v55  ;;  %v1403_v54 = vmul.f32 %v4601_v1, %v1339_v11  ;;  %v1918_v57 = vmul.f32 %v1854_v2, %v958_v61 }
 0x32e   :  { %v2487_v5 = vadd.f32 1.0, %v2359_v48  ;;  %v1340_v63 = vadd.f32 -1.4531521, %v1276_v36  ;;  %v4623_v51 = vmul.f32 0.70710677, %v4607_v31  ;;  %v2550_v53 = vmul.f32 %v2486_v25, %v4524_v33 }
 0x32f   :  { %v1786_v35 = vmul.f32 %v4564_v12, %v1722_v62  ;;  %vm2232_vm8 = vcmp.ge.f32.partialorder %v4487_v34, 0.0  ;;  %v1465_v21 = vadd.f32 1.4214138, %v1401_v19  ;;  %v1467_v59 = vadd.f32 1.4214138, %v1403_v54 }
 0x330   :  { %v2551_v38 = vmul.f32 %v2487_v5, %v4551_v46  ;;  %v2168_v40 = vsub.f32 1.0, %v2104_v47  ;;  %v1404_v20 = vmul.f32 %v4613_v43, %v1340_v63  ;;  %v959_v56 = vand.u32 2147483647, %v4623_v51 }
 0x331   :  { %v2106_v0 = vmul.f32 %v3251_v10, %v1786_v35  ;;  %v1529_v61 = vmul.f32 %v4599_v30, %v1465_v21  ;;  %v1531_v3 = vmul.f32 %v4601_v1, %v1467_v59  ;;  %3260 = vpow2.f32 %v2024_v44 }
 0x332   :  { %v2929_v12 = vpack.c.bf16 %v2551_v38, %v2550_v53  ;;  %v1468_v33 = vadd.f32 1.4214138, %v1404_v20  ;;  %v2028_v25 = vmul.f32 1.442695, %v1918_v57  ;;  %v1917_v46 = vmul.f32 %v1853_v27, %v4591_v42  ;;  %v3253_v17 = vpop.eup %3252 }
 0x333   :  { %v1023_v13 = vmul.f32 0.3275911, %v959_v56  ;;  %v2170_v16 = vsub.f32 1.0, %v2106_v0  ;;  %vm2234_vm9 = vcmp.ge.f32.partialorder %v4501_v60, 0.0  ;;  %v1593_v22 = vadd.f32 -0.28449672, %v1529_v61  ;;  %v829_v61 = vpop.f32.mrf.mxu1 }
 0x334   :  { %2787 = vst [vmem:[%s5040_s5 + $0x98] sm:$0xff] %v2929_v12  ;;  %v1595_v28 = vadd.f32 -0.28449672, %v1531_v3  ;;  %v2296_v23 = vsub.f32 0.0, %v2168_v40  ;;  %v1532_v2 = vmul.f32 %v4613_v43, %v1468_v33  ;;  %v4639_v39 = vadd.f32 %v716_v41, %v3674_v29 }
 0x335   :  { %v1087_v24 = vadd.f32 1.0, %v1023_v13  ;;  %v4642_v42 = vmul.f32 0.5, %v4479_v52  ;;  %v1657_v55 = vmul.f32 %v4599_v30, %v1593_v22  ;;  %v4646_v49 = vmul.f32 0.5, %v4512_v4  ;;  %v4649_v44 = vpop.eup %3254 }
 0x336   :  { %v1659_v11 = vmul.f32 %v4601_v1, %v1595_v28  ;;  %v1596_v48 = vadd.f32 -0.28449672, %v1532_v2  ;;  %v2026_v47 = vmul.f32 1.442695, %v1917_v46  ;;  %v4652_v62 = vmul.f32 0.70710677, %v4639_v39 }
 0x337   :  { %3262 = vrcp.f32 %v1087_v24  ;;  %v4654_v36 = vpop.eup %3256  ;;  %v2298_v10 = vsub.f32 0.0, %v2170_v16  ;;  %v1721_v52 = vadd.f32 0.2548296, %v1657_v55  ;;  %v2360_v4 = vsel %vm2232_vm8, %v2168_v40, %v2296_v23 }
 0x338   :  { %v1723_v5 = vadd.f32 0.2548296, %v1659_v11  ;;  %3264 = vpow2.f32 %v2028_v25  ;;  %v3259_v19 = vpop.eup %3258  ;;  %vm2233_vm10 = vcmp.ge.f32.partialorder %v4527_v50, 0.0  ;;  %v1660_v54 = vmul.f32 %v4613_v43, %v1596_v48 }
 0x339   :  { %v1278_v27 = vmul.f32 1.0614054, %v4649_v44  ;;  %v1277_v35 = vmul.f32 1.0614054, %v4654_v36  ;;  %v1785_v63 = vmul.f32 %v4599_v30, %v1721_v52  ;;  %v1855_v53 = vsub.f32 0.0, %v959_v56  ;;  %v718_v52 = vpop.f32.mrf.mxu0 }
 0x33a   :  { %v1787_v57 = vmul.f32 %v4601_v1, %v1723_v5  ;;  %v4665_v38 = vand.u32 2147483647, %v4652_v62  ;;  %v1724_v21 = vadd.f32 0.2548296, %v1660_v54  ;;  %3266 = vpow2.f32 %v2026_v47 }
 0x33b   :  { %v1342_v59 = vadd.f32 -1.4531521, %v1278_v27  ;;  %v1341_v34 = vadd.f32 -1.4531521, %v1277_v35  ;;  %v2362_v40 = vsel %vm2234_vm9, %v2170_v16, %v2298_v10  ;;  %v2105_v0 = vmul.f32 %v3253_v17, %v1785_v63 }
 0x33c   :  { %v2107_v20 = vmul.f32 %v3259_v19, %v1787_v57  ;;  %v1024_v12 = vmul.f32 0.3275911, %v4665_v38  ;;  %v2488_v3 = vadd.f32 1.0, %v2360_v4  ;;  %v1788_v30 = vmul.f32 %v4613_v43, %v1724_v21 }
 0x33d   :  { %v1406_v1 = vmul.f32 %v4649_v44, %v1342_v59  ;;  %v1405_v41 = vmul.f32 %v4654_v36, %v1341_v34  ;;  %v2169_v33 = vsub.f32 1.0, %v2105_v0  ;;  %v1919_v46 = vmul.f32 %v1855_v53, %v959_v56 }
 0x33e   :  { %v2171_v25 = vsub.f32 1.0, %v2107_v20  ;;  %v1088_v13 = vadd.f32 1.0, %v1024_v12  ;;  %v3261_v22 = vpop.eup %3260  ;;  %v2490_v28 = vadd.f32 1.0, %v2362_v40  ;;  %v4674_v17 = vadd.f32 %v829_v61, %v3676_v14  ;;  %v831_v12 = vpop.f32.mrf.mxu1 }
 0x33f   :  { %v1470_v60 = vadd.f32 1.4214138, %v1406_v1  ;;  %v1469_v16 = vadd.f32 1.4214138, %v1405_v41  ;;  %v2297_v23 = vsub.f32 0.0, %v2169_v33  ;;  %v2108_v24 = vmul.f32 %v3261_v22, %v1788_v30 }
 0x340   :  { %v2299_v2 = vsub.f32 0.0, %v2171_v25  ;;  %3268 = vrcp.f32 %v1088_v13  ;;  %vm2235_vm11 = vcmp.ge.f32.partialorder %v4530_v15, 0.0  ;;  %v4680_v56 = vmul.f32 0.70710677, %v4674_v17 }
 0x341   :  { %v1534_v43 = vmul.f32 %v4649_v44, %v1470_v60  ;;  %v1533_v55 = vmul.f32 %v4654_v36, %v1469_v16  ;;  %v2552_v11 = vmul.f32 %v2488_v3, %v4561_v8  ;;  %v2361_v48 = vsel %vm2233_vm10, %v2169_v33, %v2297_v23 }
 0x342   :  { %v2363_v47 = vsel %vm2235_vm11, %v2171_v25, %v2299_v2  ;;  %v2427_v10 = vmul.f32 0.5, %v4515_v7  ;;  %v2489_v5 = vadd.f32 1.0, %v2361_v48  ;;  %v2030_v15 = vmul.f32 1.442695, %v1919_v46 }
 0x343   :  { %v2491_v19 = vadd.f32 1.0, %v2363_v47  ;;  %v1598_v4 = vadd.f32 -0.28449672, %v1534_v43  ;;  %v2554_v27 = vmul.f32 %v2490_v28, %v4642_v42  ;;  %v2172_v35 = vsub.f32 1.0, %v2108_v24 }
 0x344   :  { %v4686_v54 = vpop.eup %3262  ;;  %v1597_v63 = vadd.f32 -0.28449672, %v1533_v55  ;;  %v4690_v57 = vand.u32 2147483647, %v4680_v56  ;;  %v2553_v50 = vmul.f32 %v2489_v5, %v4646_v49  ;;  %v4695_v21 = vadd.f32 %v718_v52, %v3678_v58 }
 0x345   :  { %v3265_v8 = vpop.eup %3264  ;;  %v2555_v53 = vmul.f32 %v2491_v19, %v2427_v10  ;;  %v1662_v7 = vmul.f32 %v4649_v44, %v1598_v4  ;;  %v1279_v34 = vmul.f32 1.0614054, %v4686_v54  ;;  %3270 = vpow2.f32 %v2030_v15 }
 0x346   :  { %v1661_v59 = vmul.f32 %v4654_v36, %v1597_v63  ;;  %v1026_v42 = vmul.f32 0.3275911, %v4690_v57  ;;  %v2930_v40 = vpack.c.bf16 %v2553_v50, %v2552_v11  ;;  %v2300_v1 = vsub.f32 0.0, %v2172_v35  ;;  %v720_v63 = vpop.f32.mrf.mxu0 }
 0x347   :  { %v2931_v0 = vpack.c.bf16 %v2555_v53, %v2554_v27  ;;  %v1726_v20 = vadd.f32 0.2548296, %v1662_v7  ;;  %v3267_v61 = vpop.eup %3266  ;;  %v1343_v30 = vadd.f32 -1.4531521, %v1279_v34  ;;  %v1856_v33 = vsub.f32 0.0, %v4665_v38  ;;  %v833_v53 = vpop.f32.mrf.mxu1 }
 0x348   :  { %v1725_v3 = vadd.f32 0.2548296, %v1661_v59  ;;  %v1090_v49 = vadd.f32 1.0, %v1026_v42  ;;  %2788 = vst [vmem:[%s5040_s5 + $0xa0] sm:$0xff] %v2930_v40  ;;  %v4709_v25 = vmul.f32 0.70710677, %v4695_v21  ;;  %v4714_v22 = vadd.f32 %v831_v12, %v3680_v32 }
 0x349   :  { %2789 = vst [vmem:[%s5040_s5 + $0xa8] sm:$0xff] %v2931_v0  ;;  %v1790_v41 = vmul.f32 %v4649_v44, %v1726_v20  ;;  %v1407_v13 = vmul.f32 %v4686_v54, %v1343_v30  ;;  %vm2236_vm12 = vcmp.ge.f32.partialorder %v4535_v6, 0.0  ;;  %v2428_v28 = vmul.f32 0.5, %v4518_v37 }
 0x34a   :  { %v1789_v46 = vmul.f32 %v4654_v36, %v1725_v3  ;;  %3272 = vrcp.f32 %v1090_v49  ;;  %v961_v60 = vand.u32 2147483647, %v4709_v25  ;;  %v4720_v44 = vmul.f32 0.5, %v4571_v26 }
 0x34b   :  { %v1471_v23 = vadd.f32 1.4214138, %v1407_v13  ;;  %v4723_v2 = vmul.f32 0.70710677, %v4714_v22  ;;  %v2364_v24 = vsel %vm2236_vm12, %v2172_v35, %v2300_v1  ;;  %v2110_v43 = vmul.f32 %v3265_v8, %v1790_v41  ;;  %v722_v41 = vpop.f32.mrf.mxu0 }
 0x34c   :  { %v2109_v16 = vmul.f32 %v3267_v61, %v1789_v46  ;;  %v1920_v55 = vmul.f32 %v1856_v33, %v4665_v38  ;;  %v1025_v11 = vmul.f32 0.3275911, %v961_v60  ;;  %vm2237_vm13 = vcmp.ge.f32.partialorder %v4584_v45, 0.0 }
 0x34d   :  { %v4725_v36 = vpop.eup %3268  ;;  %v1535_v37 = vmul.f32 %v4686_v54, %v1471_v23  ;;  %v4731_v26 = vand.u32 2147483647, %v4723_v2  ;;  %v2429_v47 = vmul.f32 0.5, %v4574_v18  ;;  %v1858_v10 = vsub.f32 0.0, %v4690_v57 }
 0x34e   :  { %v2173_v6 = vsub.f32 1.0, %v2109_v16  ;;  %v1280_v48 = vmul.f32 1.0614054, %v4725_v36  ;;  %v1089_v52 = vadd.f32 1.0, %v1025_v11  ;;  %v2492_v5 = vadd.f32 1.0, %v2364_v24 }
 0x34f   :  { %vm2238_vm14 = vcmp.ge.f32.partialorder %v4581_v9, 0.0  ;;  %v1599_v19 = vadd.f32 -0.28449672, %v1535_v37  ;;  %v2174_v15 = vsub.f32 1.0, %v2110_v43  ;;  %v4738_v27 = vmul.f32 0.5, %v4607_v31 }
 0x350   :  { %v2301_v38 = vsub.f32 0.0, %v2173_v6  ;;  %v1344_v4 = vadd.f32 -1.4531521, %v1280_v48  ;;  %3274 = vrcp.f32 %v1089_v52  ;;  %v1027_v35 = vmul.f32 0.3275911, %v4731_v26 }
 0x351   :  { %v1663_v18 = vmul.f32 %v4686_v54, %v1599_v19  ;;  %v2032_v50 = vmul.f32 1.442695, %v1920_v55  ;;  %v1922_v59 = vmul.f32 %v1858_v10, %v4690_v57  ;;  %v1857_v34 = vsub.f32 0.0, %v961_v60 }
 0x352   :  { %v2365_v45 = vsel %vm2237_vm13, %v2173_v6, %v2301_v38  ;;  %v1408_v8 = vmul.f32 %v4725_v36, %v1344_v4  ;;  %v1091_v42 = vadd.f32 1.0, %v1027_v35  ;;  %v2556_v40 = vmul.f32 %v2492_v5, %v2428_v28  ;;  %v3271_v12 = vpop.eup %3270 }
 0x353   :  { %v2493_v7 = vadd.f32 1.0, %v2365_v45  ;;  %v1727_v0 = vadd.f32 0.2548296, %v1663_v18  ;;  %v4745_v20 = vadd.f32 %v720_v63, %v3674_v29  ;;  %v2302_v61 = vsub.f32 0.0, %v2174_v15 }
 0x354   :  { %v1472_v31 = vadd.f32 1.4214138, %v1408_v8  ;;  %3276 = vrcp.f32 %v1091_v42  ;;  %v4748_v30 = vadd.f32 %v833_v53, %v3676_v14  ;;  %v2036_v13 = vmul.f32 1.442695, %v1922_v59 }
 0x355   :  { %v2557_v3 = vmul.f32 %v2493_v7, %v2429_v47  ;;  %v1791_v49 = vmul.f32 %v4686_v54, %v1727_v0  ;;  %3278 = vpow2.f32 %v2032_v50  ;;  %v4753_v57 = vmul.f32 0.70710677, %v4745_v20 }
 0x356   :  { %v1536_v1 = vmul.f32 %v4725_v36, %v1472_v31  ;;  %v1921_v28 = vmul.f32 %v1857_v34, %v961_v60  ;;  %v4758_v16 = vmul.f32 0.70710677, %v4748_v30  ;;  %v2366_v55 = vsel %vm2238_vm14, %v2174_v15, %v2302_v61 }
 0x357   :  { %v4755_v33 = vpop.eup %3272  ;;  %v2932_v46 = vpack.c.bf16 %v2557_v3, %v2556_v40  ;;  %v2111_v23 = vmul.f32 %v3271_v12, %v1791_v49  ;;  %v964_v54 = vand.u32 2147483647, %v4753_v57  ;;  %v1859_v11 = vsub.f32 0.0, %v4731_v26 }
 0x358   :  { %v1600_v24 = vadd.f32 -0.28449672, %v1536_v1  ;;  %v1282_v43 = vmul.f32 1.0614054, %v4755_v33  ;;  %v966_v60 = vand.u32 2147483647, %v4758_v16  ;;  %v4770_v6 = vadd.f32 %v722_v41, %v3678_v58  ;;  %v835_v41 = vpop.f32.mrf.mxu1 }
 0x359   :  { %2790 = vst [vmem:[%s5040_s5 + $0xb0] sm:$0xff] %v2932_v46  ;;  %v2175_v37 = vsub.f32 1.0, %v2111_v23  ;;  %v1028_v10 = vmul.f32 0.3275911, %v964_v54  ;;  %vm2239_vm15 = vcmp.ge.f32.partialorder %v4623_v51, 0.0  ;;  %3280 = vpow2.f32 %v2036_v13 }
 0x35a   :  { %v1664_v48 = vmul.f32 %v4725_v36, %v1600_v24  ;;  %v1346_v47 = vadd.f32 -1.4531521, %v1282_v43  ;;  %v1030_v9 = vmul.f32 0.3275911, %v966_v60  ;;  %v4775_v52 = vmul.f32 0.70710677, %v4770_v6  ;;  %v726_v24 = vpop.f32.mrf.mxu0 }
 0x35b   :  { %v2303_v5 = vsub.f32 0.0, %v2175_v37  ;;  %v1092_v4 = vadd.f32 1.0, %v1028_v10  ;;  %v2494_v15 = vadd.f32 1.0, %v2366_v55  ;;  %v2034_v35 = vmul.f32 1.442695, %v1921_v28 }
 0x35c   :  { %v1728_v38 = vadd.f32 0.2548296, %v1664_v48  ;;  %v1410_v19 = vmul.f32 %v4755_v33, %v1346_v47  ;;  %v1094_v63 = vadd.f32 1.0, %v1030_v9  ;;  %v965_v45 = vand.u32 2147483647, %v4775_v52 }
 0x35d   :  { %v4779_v18 = vpop.eup %3274  ;;  %v2367_v8 = vsel %vm2239_vm15, %v2175_v37, %v2303_v5  ;;  %v1923_v51 = vmul.f32 %v1859_v11, %v4731_v26  ;;  %3282 = vrcp.f32 %v1092_v4  ;;  %v1860_v59 = vsub.f32 0.0, %v964_v54 }
 0x35e   :  { %v1474_v50 = vadd.f32 1.4214138, %v1410_v19  ;;  %v2495_v53 = vadd.f32 1.0, %v2367_v8  ;;  %v1281_v7 = vmul.f32 1.0614054, %v4779_v18  ;;  %3284 = vrcp.f32 %v1094_v63 }
 0x35f   :  { %v1792_v34 = vmul.f32 %v4725_v36, %v1728_v38  ;;  %v1029_v40 = vmul.f32 0.3275911, %v965_v45  ;;  %v2558_v0 = vmul.f32 %v2494_v15, %v4720_v44  ;;  %v1862_v61 = vsub.f32 0.0, %v966_v60 }
 0x360   :  { %v1538_v42 = vmul.f32 %v4755_v33, %v1474_v50  ;;  %v2559_v31 = vmul.f32 %v2495_v53, %v4738_v27  ;;  %v1345_v12 = vadd.f32 -1.4531521, %v1281_v7  ;;  %3286 = vpow2.f32 %v2034_v35 }
 0x361   :  { %v4787_v3 = vpop.eup %3276  ;;  %v2038_v49 = vmul.f32 1.442695, %v1923_v51  ;;  %v1093_v1 = vadd.f32 1.0, %v1029_v40  ;;  %v1924_v23 = vmul.f32 %v1860_v59, %v964_v54  ;;  %v4792_v27 = vmul.f32 0.5, %v4639_v39 }
 0x362   :  { %v1602_v26 = vadd.f32 -0.28449672, %v1538_v42  ;;  %v3279_v46 = vpop.eup %3278  ;;  %v2933_v13 = vpack.c.bf16 %v2559_v31, %v2558_v0  ;;  %v1409_v36 = vmul.f32 %v4779_v18, %v1345_v12  ;;  %v1283_v28 = vmul.f32 1.0614054, %v4787_v3 }
 0x363   :  { %v2112_v44 = vmul.f32 %v3279_v46, %v1792_v34  ;;  %3288 = vrcp.f32 %v1093_v1  ;;  %v1926_v37 = vmul.f32 %v1862_v61, %v966_v60  ;;  %v4799_v48 = vadd.f32 %v835_v41, %v3680_v32 }
 0x364   :  { %v1666_v43 = vmul.f32 %v4755_v33, %v1602_v26  ;;  %2791 = vst [vmem:[%s5040_s5 + $0xb8] sm:$0xff] %v2933_v13  ;;  %v1473_v55 = vadd.f32 1.4214138, %v1409_v36  ;;  %v1347_v11 = vadd.f32 -1.4531521, %v1283_v28  ;;  %v4802_v54 = vmul.f32 0.5, %v4674_v17 }
 0x365   :  { %v1861_v10 = vsub.f32 0.0, %v965_v45  ;;  %v4805_v39 = vadd.f32 %v726_v24, %v3674_v29  ;;  %vm2240_vm0 = vcmp.ge.f32.partialorder %v4652_v62, 0.0  ;;  %3290 = vpow2.f32 %v2038_v49  ;;  %v839_v49 = vpop.f32.mrf.mxu1 }
 0x366   :  { %v1730_v47 = vadd.f32 0.2548296, %v1666_v43  ;;  %v1537_v9 = vmul.f32 %v4779_v18, %v1473_v55  ;;  %v1411_v5 = vmul.f32 %v4787_v3, %v1347_v11  ;;  %v2040_v38 = vmul.f32 1.442695, %v1924_v23  ;;  %v3281_v60 = vpop.eup %3280 }
 0x367   :  { %v2176_v19 = vsub.f32 1.0, %v2112_v44  ;;  %v4812_v15 = vmul.f32 0.70710677, %v4799_v48  ;;  %v4815_v17 = vmul.f32 0.70710677, %v4805_v39  ;;  %v4818_v51 = vmul.f32 0.5, %v4695_v21 }
 0x368   :  { %v1794_v4 = vmul.f32 %v4755_v33, %v1730_v47  ;;  %v1601_v35 = vadd.f32 -0.28449672, %v1537_v9  ;;  %v1475_v63 = vadd.f32 1.4214138, %v1411_v5  ;;  %v2044_v8 = vmul.f32 1.442695, %v1926_v37 }
 0x369   :  { %v1925_v53 = vmul.f32 %v1861_v10, %v965_v45  ;;  %v967_v7 = vand.u32 2147483647, %v4812_v15  ;;  %v4826_v42 = vmul.f32 0.5, %v4714_v22  ;;  %v4829_v40 = vand.u32 2147483647, %v4815_v17 }
 0x36a   :  { %v2114_v50 = vmul.f32 %v3281_v60, %v1794_v4  ;;  %v4821_v59 = vpop.eup %3282  ;;  %v1665_v33 = vmul.f32 %v4779_v18, %v1601_v35  ;;  %v1539_v34 = vmul.f32 %v4787_v3, %v1475_v63  ;;  %v2304_v31 = vsub.f32 0.0, %v2176_v19 }
 0x36b   :  { %v4831_v0 = vpop.eup %3284  ;;  %v1284_v21 = vmul.f32 1.0614054, %v4821_v59  ;;  %3292 = vpow2.f32 %v2040_v38  ;;  %v1031_v45 = vmul.f32 0.3275911, %v967_v7  ;;  %vm2242_vm1 = vcmp.ge.f32.partialorder %v4680_v56, 0.0 }
 0x36c   :  { %v1729_v12 = vadd.f32 0.2548296, %v1665_v33  ;;  %v1603_v61 = vadd.f32 -0.28449672, %v1539_v34  ;;  %v1286_v26 = vmul.f32 1.0614054, %v4831_v0  ;;  %3294 = vpow2.f32 %v2044_v8 }
 0x36d   :  { %v2178_v22 = vsub.f32 1.0, %v2114_v50  ;;  %vm2241_vm2 = vcmp.ge.f32.partialorder %v4709_v25, 0.0  ;;  %v1348_v1 = vadd.f32 -1.4531521, %v1284_v21  ;;  %v2042_v41 = vmul.f32 1.442695, %v1925_v53  ;;  %v3287_v13 = vpop.eup %3286 }
 0x36e   :  { %v1095_v46 = vadd.f32 1.0, %v1031_v45  ;;  %v1793_v36 = vmul.f32 %v4779_v18, %v1729_v12  ;;  %v1667_v28 = vmul.f32 %v4787_v3, %v1603_v61  ;;  %v1350_v23 = vadd.f32 -1.4531521, %v1286_v26 }
 0x36f   :  { %v1032_v24 = vmul.f32 0.3275911, %v4829_v40  ;;  %v2368_v44 = vsel %vm2240_vm0, %v2176_v19, %v2304_v31  ;;  %v1412_v43 = vmul.f32 %v4821_v59, %v1348_v1  ;;  %v4844_v55 = vadd.f32 %v839_v49, %v3676_v14 }
 0x370   :  { %3296 = vrcp.f32 %v1095_v46  ;;  %v4846_v11 = vpop.eup %3288  ;;  %v2113_v37 = vmul.f32 %v3287_v13, %v1793_v36  ;;  %v1731_v47 = vadd.f32 0.2548296, %v1667_v28  ;;  %v1414_v18 = vmul.f32 %v4831_v0, %v1350_v23 }
 0x371   :  { %v1863_v10 = vsub.f32 0.0, %v967_v7  ;;  %v2306_v9 = vsub.f32 0.0, %v2178_v22  ;;  %vm2243_vm3 = vcmp.ge.f32.partialorder %v4723_v2, 0.0  ;;  %v1476_v5 = vadd.f32 1.4214138, %v1412_v43 }
 0x372   :  { %v1285_v62 = vmul.f32 1.0614054, %v4846_v11  ;;  %v1096_v38 = vadd.f32 1.0, %v1032_v24  ;;  %v2177_v60 = vsub.f32 1.0, %v2113_v37  ;;  %v1795_v19 = vmul.f32 %v4787_v3, %v1731_v47  ;;  %v3291_v35 = vpop.eup %3290 }
 0x373   :  { %v1478_v4 = vadd.f32 1.4214138, %v1414_v18  ;;  %3298 = vpow2.f32 %v2042_v41  ;;  %v2496_v63 = vadd.f32 1.0, %v2368_v44  ;;  %v1540_v8 = vmul.f32 %v4821_v59, %v1476_v5  ;;  %v728_v41 = vpop.f32.mrf.mxu0 }
 0x374   :  { %v1349_v50 = vadd.f32 -1.4531521, %v1285_v62  ;;  %3300 = vrcp.f32 %v1096_v38  ;;  %v2305_v53 = vsub.f32 0.0, %v2177_v60  ;;  %v2115_v33 = vmul.f32 %v3291_v35, %v1795_v19 }
 0x375   :  { %v1542_v34 = vmul.f32 %v4831_v0, %v1478_v4  ;;  %v4855_v31 = vmul.f32 0.70710677, %v4844_v55  ;;  %v2370_v21 = vsel %vm2242_vm1, %v2178_v22, %v2306_v9  ;;  %v1604_v45 = vadd.f32 -0.28449672, %v1540_v8 }
 0x376   :  { %v1413_v3 = vmul.f32 %v4846_v11, %v1349_v50  ;;  %v1927_v12 = vmul.f32 %v1863_v10, %v967_v7  ;;  %v2369_v61 = vsel %vm2241_vm2, %v2177_v60, %v2305_v53  ;;  %v2179_v26 = vsub.f32 1.0, %v2115_v33  ;;  %v841_v50 = vpop.f32.mrf.mxu1 }
 0x377   :  { %v1606_v49 = vadd.f32 -0.28449672, %v1542_v34  ;;  %v4863_v1 = vand.u32 2147483647, %v4855_v31  ;;  %v2560_v46 = vmul.f32 %v2496_v63, %v4792_v27  ;;  %v2497_v13 = vadd.f32 1.0, %v2369_v61 }
 0x378   :  { %v1668_v36 = vmul.f32 %v4821_v59, %v1604_v45  ;;  %v1477_v56 = vadd.f32 1.4214138, %v1413_v3  ;;  %v3293_v22 = vpop.eup %3292  ;;  %v2498_v28 = vadd.f32 1.0, %v2370_v21  ;;  %v2307_v23 = vsub.f32 0.0, %v2179_v26 }
 0x379   :  { %v1670_v7 = vmul.f32 %v4831_v0, %v1606_v49  ;;  %v1034_v25 = vmul.f32 0.3275911, %v4863_v1  ;;  %v3295_v24 = vpop.eup %3294  ;;  %v2561_v44 = vmul.f32 %v2497_v13, %v4818_v51  ;;  %v4872_v47 = vadd.f32 %v728_v41, %v3678_v58 }
 0x37a   :  { %v1732_v43 = vadd.f32 0.2548296, %v1668_v36  ;;  %v1541_v37 = vmul.f32 %v4846_v11, %v1477_v56  ;;  %v2371_v27 = vsel %vm2243_vm3, %v2179_v26, %v2307_v23  ;;  %v2046_v10 = vmul.f32 1.442695, %v1927_v12 }
 0x37b   :  { %v1734_v18 = vadd.f32 0.2548296, %v1670_v7  ;;  %v1098_v9 = vadd.f32 1.0, %v1034_v25  ;;  %v2934_v5 = vpack.c.bf16 %v2561_v44, %v2560_v46  ;;  %v2499_v62 = vadd.f32 1.0, %v2371_v27 }
 0x37c   :  { %v1796_v38 = vmul.f32 %v4821_v59, %v1732_v43  ;;  %v1605_v60 = vadd.f32 -0.28449672, %v1541_v37  ;;  %v2562_v51 = vmul.f32 %v2498_v28, %v4802_v54  ;;  %v1864_v35 = vsub.f32 0.0, %v4829_v40 }
 0x37d   :  { %v4877_v19 = vpop.eup %3296  ;;  %v1798_v4 = vmul.f32 %v4831_v0, %v1734_v18  ;;  %3302 = vrcp.f32 %v1098_v9  ;;  %2792 = vst [vmem:[%s5040_s5 + $0xc0] sm:$0xff] %v2934_v5  ;;  %v2563_v2 = vmul.f32 %v2499_v62, %v4826_v42  ;;  %v4889_v54 = vmul.f32 0.70710677, %v4872_v47 }
 0x37e   :  { %v2116_v63 = vmul.f32 %v3293_v22, %v1796_v38  ;;  %v1669_v8 = vmul.f32 %v4846_v11, %v1605_v60  ;;  %v1287_v59 = vmul.f32 1.0614054, %v4877_v19  ;;  %3304 = vpow2.f32 %v2046_v10  ;;  %v730_v60 = vpop.f32.mrf.mxu0 }
 0x37f   :  { %v2935_v53 = vpack.c.bf16 %v2563_v2, %v2562_v51  ;;  %v4893_v3 = vmul.f32 %v3295_v24, %v1798_v4  ;;  %v1928_v42 = vmul.f32 %v1864_v35, %v4829_v40  ;;  %v4897_v12 = vand.u32 2147483647, %v4889_v54  ;;  %v843_v51 = vpop.f32.mrf.mxu1 }
 0x380   :  { %v3299_v0 = vpop.eup %3298  ;;  %v2180_v33 = vsub.f32 1.0, %v2116_v63  ;;  %v1733_v34 = vadd.f32 0.2548296, %v1669_v8  ;;  %v1351_v21 = vadd.f32 -1.4531521, %v1287_v59  ;;  %v4900_v61 = vadd.f32 %v841_v50, %v3680_v32 }
 0x381   :  { %v4891_v45 = vpop.eup %3300  ;;  %2793 = vst [vmem:[%s5040_s5 + $0xc8] sm:$0xff] %v2935_v53  ;;  %v1033_v13 = vmul.f32 0.3275911, %v4897_v12  ;;  %vm2244_vm4 = vcmp.ge.f32.partialorder %v4753_v57, 0.0  ;;  %v2182_v28 = vsub.f32 1.0, %v4893_v3  ;;  %v1866_v7 = vsub.f32 0.0, %v4863_v1 }
 0x382   :  { %v2308_v26 = vsub.f32 0.0, %v2180_v33  ;;  %v1797_v49 = vmul.f32 %v4846_v11, %v1733_v34  ;;  %v1415_v41 = vmul.f32 %v4877_v19, %v1351_v21  ;;  %v1288_v46 = vmul.f32 1.0614054, %v4891_v45 }
 0x383   :  { %v4910_v40 = vmul.f32 0.70710677, %v4900_v61  ;;  %v2048_v23 = vmul.f32 1.442695, %v1928_v42  ;;  %v1097_v11 = vadd.f32 1.0, %v1033_v13  ;;  %v2436_v37 = vmul.f32 0.5, %v4745_v20 }
 0x384   :  { %v2117_v36 = vmul.f32 %v3299_v0, %v1797_v49  ;;  %v1479_v56 = vadd.f32 1.4214138, %v1415_v41  ;;  %v1352_v22 = vadd.f32 -1.4531521, %v1288_v46  ;;  %v2372_v25 = vsel %vm2244_vm4, %v2180_v33, %v2308_v26 }
 0x385   :  { %vm2245_vm5 = vcmp.ge.f32.partialorder %v4775_v52, 0.0  ;;  %3306 = vrcp.f32 %v1097_v11  ;;  %v4920_v57 = vand.u32 2147483647, %v4910_v40  ;;  %v2437_v18 = vmul.f32 0.5, %v4770_v6  ;;  %v732_v11 = vpop.f32.mrf.mxu0 }
 0x386   :  { %v2181_v24 = vsub.f32 1.0, %v2117_v36  ;;  %v1543_v44 = vmul.f32 %v4877_v19, %v1479_v56  ;;  %v1416_v43 = vmul.f32 %v4891_v45, %v1352_v22  ;;  %v2500_v5 = vadd.f32 1.0, %v2372_v25 }
 0x387   :  { %3308 = vpow2.f32 %v2048_v23  ;;  %v1930_v62 = vmul.f32 %v1866_v7, %v4863_v1  ;;  %v1035_v38 = vmul.f32 0.3275911, %v4920_v57  ;;  %v2310_v52 = vsub.f32 0.0, %v2182_v28 }
 0x388   :  { %v2309_v27 = vsub.f32 0.0, %v2181_v24  ;;  %v1607_v10 = vadd.f32 -0.28449672, %v1543_v44  ;;  %v1480_v9 = vadd.f32 1.4214138, %v1416_v43  ;;  %v1865_v8 = vsub.f32 0.0, %v4897_v12 }
 0x389   :  { %v1099_v59 = vadd.f32 1.0, %v1035_v38  ;;  %v4932_v53 = vadd.f32 %v730_v60, %v3674_v29  ;;  %v4935_v33 = vadd.f32 %v843_v51, %v3676_v14  ;;  %v2564_v34 = vmul.f32 %v2500_v5, %v2436_v37 }
 0x38a   :  { %v4925_v20 = vpop.eup %3302  ;;  %v2373_v4 = vsel %vm2245_vm5, %v2181_v24, %v2309_v27  ;;  %v1671_v35 = vmul.f32 %v4877_v19, %v1607_v10  ;;  %v1544_v2 = vmul.f32 %v4891_v45, %v1480_v9  ;;  %v2438_v42 = vmul.f32 0.5, %v4748_v30 }
 0x38b   :  { %v2501_v63 = vadd.f32 1.0, %v2373_v4  ;;  %v1290_v6 = vmul.f32 1.0614054, %v4925_v20  ;;  %v3305_v50 = vpop.eup %3304  ;;  %3310 = vrcp.f32 %v1099_v59  ;;  %v4941_v41 = vmul.f32 0.70710677, %v4932_v53 }
 0x38c   :  { %v1735_v1 = vadd.f32 0.2548296, %v1671_v35  ;;  %v1608_v0 = vadd.f32 -0.28449672, %v1544_v2  ;;  %v2052_v13 = vmul.f32 1.442695, %v1930_v62  ;;  %v1929_v56 = vmul.f32 %v1865_v8, %v4897_v12  ;;  %v845_v8 = vpop.f32.mrf.mxu1 }
 0x38d   :  { %v2565_v21 = vmul.f32 %v2501_v63, %v2437_v18  ;;  %v1354_v3 = vadd.f32 -1.4531521, %v1290_v6  ;;  %v4945_v14 = vmul.f32 0.70710677, %v4935_v33  ;;  %vm2246_vm6 = vcmp.ge.f32.partialorder %v4758_v16, 0.0 }
 0x38e   :  { %v1799_v26 = vmul.f32 %v4877_v19, %v1735_v1  ;;  %v1672_v49 = vmul.f32 %v4891_v45, %v1608_v0  ;;  %v972_v30 = vand.u32 2147483647, %v4941_v41  ;;  %v2374_v19 = vsel %vm2246_vm6, %v2182_v28, %v2310_v52 }
 0x38f   :  { %v2936_v46 = vpack.c.bf16 %v2565_v21, %v2564_v34  ;;  %v1418_v29 = vmul.f32 %v4925_v20, %v1354_v3  ;;  %v2439_v22 = vmul.f32 0.5, %v4799_v48  ;;  %v4955_v7 = vand.u32 2147483647, %v4945_v14 }
 0x390   :  { %v2119_v36 = vmul.f32 %v3305_v50, %v1799_v26  ;;  %v1736_v24 = vadd.f32 0.2548296, %v1672_v49  ;;  %v1867_v16 = vsub.f32 0.0, %v4920_v57  ;;  %v1036_v44 = vmul.f32 0.3275911, %v972_v30 }
 0x391   :  { %2794 = vst [vmem:[%s5040_s5 + $0xd0] sm:$0xff] %v2936_v46  ;;  %v1482_v23 = vadd.f32 1.4214138, %v1418_v29  ;;  %vm2247_vm7 = vcmp.ge.f32.partialorder %v4812_v15, 0.0  ;;  %3312 = vpow2.f32 %v2052_v13  ;;  %v1038_v28 = vmul.f32 0.3275911, %v4955_v7 }
 0x392   :  { %v2183_v25 = vsub.f32 1.0, %v2119_v36  ;;  %v3307_v43 = vpop.eup %3306  ;;  %v2050_v48 = vmul.f32 1.442695, %v1929_v56  ;;  %v1100_v27 = vadd.f32 1.0, %v1036_v44  ;;  %v4962_v18 = vadd.f32 %v732_v11, %v3678_v58 }
 0x393   :  { %v1546_v12 = vmul.f32 %v4925_v20, %v1482_v23  ;;  %v2502_v10 = vadd.f32 1.0, %v2374_v19  ;;  %v1289_v5 = vmul.f32 1.0614054, %v3307_v43  ;;  %v1102_v62 = vadd.f32 1.0, %v1038_v28 }
 0x394   :  { %v2311_v37 = vsub.f32 0.0, %v2183_v25  ;;  %v3309_v38 = vpop.eup %3308  ;;  %v1800_v15 = vmul.f32 %v4891_v45, %v1736_v24  ;;  %v1931_v51 = vmul.f32 %v1867_v16, %v4920_v57  ;;  %3314 = vrcp.f32 %v1100_v27 }
 0x395   :  { %v1610_v9 = vadd.f32 -0.28449672, %v1546_v12  ;;  %v1353_v35 = vadd.f32 -1.4531521, %v1289_v5  ;;  %3316 = vrcp.f32 %v1102_v62  ;;  %v4968_v2 = vmul.f32 0.70710677, %v4962_v18 }
 0x396   :  { %v2375_v60 = vsel %vm2247_vm7, %v2183_v25, %v2311_v37  ;;  %v2566_v58 = vmul.f32 %v2502_v10, %v2438_v42  ;;  %3318 = vpow2.f32 %v2050_v48  ;;  %v2054_v50 = vmul.f32 1.442695, %v1931_v51 }
 0x397   :  { %v2503_v52 = vadd.f32 1.0, %v2375_v60  ;;  %v1674_v4 = vmul.f32 %v4925_v20, %v1610_v9  ;;  %v1417_v6 = vmul.f32 %v3307_v43, %v1353_v35  ;;  %v973_v45 = vand.u32 2147483647, %v4968_v2 }
 0x398   :  { %v4970_v59 = vpop.eup %3310  ;;  %v2120_v1 = vmul.f32 %v3309_v38, %v1800_v15  ;;  %v1868_v3 = vsub.f32 0.0, %v972_v30  ;;  %v4975_v49 = vadd.f32 %v845_v8, %v3680_v32  ;;  %3320 = vpow2.f32 %v2054_v50 }
 0x399   :  { %v2567_v63 = vmul.f32 %v2503_v52, %v2439_v22  ;;  %v1738_v0 = vadd.f32 0.2548296, %v1674_v4  ;;  %v1481_v34 = vadd.f32 1.4214138, %v1417_v6  ;;  %v1291_v21 = vmul.f32 1.0614054, %v4970_v59 }
 0x39a   :  { %v1037_v26 = vmul.f32 0.3275911, %v973_v45  ;;  %v4981_v13 = vmul.f32 0.70710677, %v4975_v49  ;;  %v2184_v36 = vsub.f32 1.0, %v2120_v1  ;;  %v1932_v32 = vmul.f32 %v1868_v3, %v972_v30 }
 0x39b   :  { %v2937_v57 = vpack.c.bf16 %v2567_v63, %v2566_v58  ;;  %v1545_v42 = vmul.f32 %v3307_v43, %v1481_v34  ;;  %v1355_v46 = vadd.f32 -1.4531521, %v1291_v21  ;;  %v1802_v56 = vmul.f32 %v4925_v20, %v1738_v0 }
 0x39c   :  { %v1101_v29 = vadd.f32 1.0, %v1037_v26  ;;  %v975_v11 = vand.u32 2147483647, %v4981_v13  ;;  %v1870_v24 = vsub.f32 0.0, %v4955_v7  ;;  %v2312_v28 = vsub.f32 0.0, %v2184_v36 }
 0x39d   :  { %2795 = vst [vmem:[%s5040_s5 + $0xd8] sm:$0xff] %v2937_v57  ;;  %v1609_v19 = vadd.f32 -0.28449672, %v1545_v42  ;;  %v1419_v23 = vmul.f32 %v4970_v59, %v1355_v46  ;;  %v2056_v30 = vmul.f32 1.442695, %v1932_v32  ;;  %v1869_v60 = vsub.f32 0.0, %v973_v45 }
 0x39e   :  { %v3313_v22 = vpop.eup %3312  ;;  %3322 = vrcp.f32 %v1101_v29  ;;  %v1039_v44 = vmul.f32 0.3275911, %v975_v11  ;;  %v1934_v38 = vmul.f32 %v1870_v24, %v4955_v7  ;;  %vm2248_vm8 = vcmp.ge.f32.partialorder %v4815_v17, 0.0 }
 0x39f   :  { %v1673_v25 = vmul.f32 %v3307_v43, %v1609_v19  ;;  %v1483_v16 = vadd.f32 1.4214138, %v1419_v23  ;;  %v2122_v37 = vmul.f32 %v3313_v22, %v1802_v56  ;;  %v2376_v4 = vsel %vm2248_vm8, %v2184_v36, %v2312_v28 }
 0x3a0   :  { %v1103_v9 = vadd.f32 1.0, %v1039_v44  ;;  %v2440_v6 = vmul.f32 0.5, %v4805_v39  ;;  %v2060_v57 = vmul.f32 1.442695, %v1934_v38  ;;  %v1933_v1 = vmul.f32 %v1869_v60, %v973_v45 }
 0x3a1   :  { %v4987_v12 = vpop.eup %3314  ;;  %v1737_v48 = vadd.f32 0.2548296, %v1673_v25  ;;  %v1547_v27 = vmul.f32 %v4970_v59, %v1483_v16  ;;  %v2186_v35 = vsub.f32 1.0, %v2122_v37  ;;  %v2504_v17 = vadd.f32 1.0, %v2376_v4 }
 0x3a2   :  { %v4989_v20 = vpop.eup %3316  ;;  %v1292_v10 = vmul.f32 1.0614054, %v4987_v12  ;;  %3324 = vrcp.f32 %v1103_v9  ;;  %vm2250_vm9 = vcmp.ge.f32.partialorder %v4855_v31, 0.0  ;;  %v1871_v42 = vsub.f32 0.0, %v975_v11 }
 0x3a3   :  { %v1801_v5 = vmul.f32 %v3307_v43, %v1737_v48  ;;  %v1294_v62 = vmul.f32 1.0614054, %v4989_v20  ;;  %v3319_v15 = vpop.eup %3318  ;;  %v1611_v51 = vadd.f32 -0.28449672, %v1547_v27  ;;  %3326 = vpow2.f32 %v2056_v30 }
 0x3a4   :  { %v1356_v52 = vadd.f32 -1.4531521, %v1292_v10  ;;  %v2314_v21 = vsub.f32 0.0, %v2186_v35  ;;  %vm2249_vm10 = vcmp.ge.f32.partialorder %v4889_v54, 0.0  ;;  %v2441_v46 = vmul.f32 0.5, %v4872_v47 }
 0x3a5   :  { %v2121_v58 = vmul.f32 %v3319_v15, %v1801_v5  ;;  %v1358_v63 = vadd.f32 -1.4531521, %v1294_v62  ;;  %v1675_v8 = vmul.f32 %v4970_v59, %v1611_v51  ;;  %v3321_v39 = vpop.eup %3320  ;;  %3328 = vpow2.f32 %v2060_v57 }
 0x3a6   :  { %v1420_v43 = vmul.f32 %v4987_v12, %v1356_v52  ;;  %v2058_v22 = vmul.f32 1.442695, %v1933_v1  ;;  %v2568_v16 = vmul.f32 %v2504_v17, %v2440_v6  ;;  %v2378_v54 = vsel %vm2250_vm9, %v2186_v35, %v2314_v21 }
 0x3a7   :  { %v2185_v50 = vsub.f32 1.0, %v2121_v58  ;;  %v1422_v7 = vmul.f32 %v4989_v20, %v1358_v63  ;;  %v1739_v0 = vadd.f32 0.2548296, %v1675_v8  ;;  %v1935_v47 = vmul.f32 %v1871_v42, %v975_v11 }
 0x3a8   :  { %v1484_v34 = vadd.f32 1.4214138, %v1420_v43  ;;  %3330 = vpow2.f32 %v2058_v22  ;;  %v2506_v38 = vadd.f32 1.0, %v2378_v54  ;;  %vm2251_vm11 = vcmp.ge.f32.partialorder %v4910_v40, 0.0 }
 0x3a9   :  { %v2313_v3 = vsub.f32 0.0, %v2185_v50  ;;  %v1486_v26 = vadd.f32 1.4214138, %v1422_v7  ;;  %v1803_v29 = vmul.f32 %v4970_v59, %v1739_v0  ;;  %v2062_v60 = vmul.f32 1.442695, %v1935_v47 }
 0x3aa   :  { %v1548_v36 = vmul.f32 %v4987_v12, %v1484_v34  ;;  %v2442_v35 = vmul.f32 0.5, %v4844_v55  ;;  %v2443_v58 = vmul.f32 0.5, %v4900_v61  ;;  %vm2252_vm12 = vcmp.ge.f32.partialorder %v4941_v41, 0.0 }
 0x3ab   :  { %v3323_v56 = vpop.eup %3322  ;;  %v2377_v45 = vsel %vm2249_vm10, %v2185_v50, %v2313_v3  ;;  %v1550_v19 = vmul.f32 %v4989_v20, %v1486_v26  ;;  %v2123_v32 = vmul.f32 %v3321_v39, %v1803_v29  ;;  %3332 = vpow2.f32 %v2062_v60 }
 0x3ac   :  { %v2505_v23 = vadd.f32 1.0, %v2377_v45  ;;  %v1612_v25 = vadd.f32 -0.28449672, %v1548_v36  ;;  %v1293_v24 = vmul.f32 1.0614054, %v3323_v56  ;;  %v2570_v43 = vmul.f32 %v2506_v38, %v2442_v35 }
 0x3ad   :  { %v1614_v44 = vadd.f32 -0.28449672, %v1550_v19  ;;  %v2187_v59 = vsub.f32 1.0, %v2123_v32  ;;  %vm2253_vm13 = vcmp.ge.f32.partialorder %v4968_v2, 0.0  ;;  %vm2254_vm14 = vcmp.ge.f32.partialorder %v4945_v14, 0.0 }
 0x3ae   :  { %v2569_v28 = vmul.f32 %v2505_v23, %v2441_v46  ;;  %v1676_v37 = vmul.f32 %v4987_v12, %v1612_v25  ;;  %v1357_v48 = vadd.f32 -1.4531521, %v1293_v24  ;;  %v2445_v47 = vmul.f32 0.5, %v4962_v18 }
 0x3af   :  { %v1678_v27 = vmul.f32 %v4989_v20, %v1614_v44  ;;  %v2315_v30 = vsub.f32 0.0, %v2187_v59  ;;  %v3325_v62 = vpop.eup %3324  ;;  %vm2255_vm15 = vcmp.ge.f32.partialorder %v4981_v13, 0.0  ;;  %v2446_v2 = vmul.f32 0.5, %v4935_v33 }
 0x3b0   :  { %v2938_v10 = vpack.c.bf16 %v2569_v28, %v2568_v16  ;;  %v1740_v9 = vadd.f32 0.2548296, %v1676_v37  ;;  %v1421_v5 = vmul.f32 %v3323_v56, %v1357_v48  ;;  %v1295_v52 = vmul.f32 1.0614054, %v3325_v62  ;;  %v3327_v4 = vpop.eup %3326 }
 0x3b1   :  { %v1742_v31 = vadd.f32 0.2548296, %v1678_v27  ;;  %v2379_v11 = vsel %vm2251_vm11, %v2187_v59, %v2315_v30 }
 0x3b2   :  { %2796 = vst [vmem:[%s5040_s5 + $0xe0] sm:$0xff] %v2938_v10  ;;  %v1804_v15 = vmul.f32 %v4987_v12, %v1740_v9  ;;  %v1485_v51 = vadd.f32 1.4214138, %v1421_v5  ;;  %v2507_v63 = vadd.f32 1.0, %v2379_v11  ;;  %v1359_v40 = vadd.f32 -1.4531521, %v1295_v52  ;;  %v3329_v12 = vpop.eup %3328 }
 0x3b3   :  { %v1806_v7 = vmul.f32 %v4989_v20, %v1742_v31 }
 0x3b4   :  { %v2124_v6 = vmul.f32 %v3327_v4, %v1804_v15  ;;  %v1549_v8 = vmul.f32 %v3323_v56, %v1485_v51  ;;  %v2571_v50 = vmul.f32 %v2507_v63, %v2443_v58  ;;  %v1423_v1 = vmul.f32 %v3325_v62, %v1359_v40 }
 0x3b5   :  { %v2126_v55 = vmul.f32 %v3329_v12, %v1806_v7  ;;  %v3331_v26 = vpop.eup %3330 }
 0x3b6   :  { %v1613_v57 = vadd.f32 -0.28449672, %v1549_v8  ;;  %v2939_v17 = vpack.c.bf16 %v2571_v50, %v2570_v43  ;;  %v2188_v0 = vsub.f32 1.0, %v2124_v6  ;;  %v1487_v21 = vadd.f32 1.4214138, %v1423_v1 }
 0x3b7   :  { %v2190_v20 = vsub.f32 1.0, %v2126_v55 }
 0x3b8   :  { %v1677_v34 = vmul.f32 %v3323_v56, %v1613_v57  ;;  %2797 = vst [vmem:[%s5040_s5 + $0xe8] sm:$0xff] %v2939_v17  ;;  %v1551_v3 = vmul.f32 %v3325_v62, %v1487_v21  ;;  %v2316_v42 = vsub.f32 0.0, %v2188_v0  ;;  %v3333_v24 = vpop.eup %3332 }
 0x3b9   :  { %v2318_v23 = vsub.f32 0.0, %v2190_v20 }
 0x3ba   :  { %v1741_v61 = vadd.f32 0.2548296, %v1677_v34  ;;  %v1615_v46 = vadd.f32 -0.28449672, %v1551_v3  ;;  %v2380_v45 = vsel %vm2252_vm12, %v2188_v0, %v2316_v42 }
 0x3bb   :  { %v2508_v16 = vadd.f32 1.0, %v2380_v45  ;;  %v2382_v41 = vsel %vm2254_vm14, %v2190_v20, %v2318_v23 }
 0x3bc   :  { %v1805_v39 = vmul.f32 %v3323_v56, %v1741_v61  ;;  %v1679_v36 = vmul.f32 %v3325_v62, %v1615_v46  ;;  %v2444_v56 = vmul.f32 0.5, %v4932_v53  ;;  %v2510_v10 = vadd.f32 1.0, %v2382_v41 }
 0x3bd   :  { %v2447_v53 = vmul.f32 0.5, %v4975_v49 }
 0x3be   :  { %v2125_v29 = vmul.f32 %v3331_v26, %v1805_v39  ;;  %v1743_v22 = vadd.f32 0.2548296, %v1679_v36  ;;  %v2572_v37 = vmul.f32 %v2508_v16, %v2444_v56  ;;  %v2574_v18 = vmul.f32 %v2510_v10, %v2446_v2 }
 0x3c0   :  { %v2189_v19 = vsub.f32 1.0, %v2125_v29  ;;  %v1807_v25 = vmul.f32 %v3325_v62, %v1743_v22 }
 0x3c2   :  { %v2317_v32 = vsub.f32 0.0, %v2189_v19  ;;  %v2127_v44 = vmul.f32 %v3333_v24, %v1807_v25 }
 0x3c4   :  { %v2381_v54 = vsel %vm2253_vm13, %v2189_v19, %v2317_v32  ;;  %v2191_v59 = vsub.f32 1.0, %v2127_v44 }
 0x3c5   :  { %v2509_v28 = vadd.f32 1.0, %v2381_v54 }
 0x3c6   :  { %v2319_v27 = vsub.f32 0.0, %v2191_v59 }
 0x3c7   :  { %v2573_v48 = vmul.f32 %v2509_v28, %v2445_v47 }
 0x3c8   :  { %v2383_v9 = vsel %vm2255_vm15, %v2191_v59, %v2319_v27 }
 0x3c9   :  { %v2940_v30 = vpack.c.bf16 %v2573_v48, %v2572_v37  ;;  %v2511_v14 = vadd.f32 1.0, %v2383_v9 }
 0x3cb   :  { %2798 = vst [vmem:[%s5040_s5 + $0xf0] sm:$0xff] %v2940_v30  ;;  %v2575_v5 = vmul.f32 %v2511_v14, %v2447_v53 }
 0x3cd   :  { %v2941_v62 = vpack.c.bf16 %v2575_v5, %v2574_v18 }
 0x3cf   :  { %2799 = vst [vmem:[%s5040_s5 + $0xf8] sm:$0xff] %v2941_v62 }

</bundles_post_ra>
